<compile_context>
chip_gen: v6e
topology: v6e:2x2x1
jax: 0.10.0
libtpu: 0.0.40
codegen_flags: <defaults>
</compile_context>

<pallas_src>
import functools

import jax
import jax.numpy as jnp
from jax.experimental import pallas as pl
from jax.experimental.pallas import tpu as pltpu


# ------------------------------ static config ------------------------------

_K1, _K = 5, 10          # conv1 time-kernel width, conv2..10 time-kernel width
_C = 128                 # lane-padded channel width
_OFF = 8                 # 8-aligned buffer row where valid activations start

# Per-layer (pad_left, pad_right) along time (W), from the PyTorch module.
_PADS = ((2, 2), (5, 5), (4, 4), (5, 5), (4, 4),
         (5, 5), (4, 4), (5, 5), (4, 4), (4, 4))


def _round_up(x, m):
    return (x + m - 1) // m * m


def _time_plan(T):
    """Static per-layer output lengths and required activation-buffer rows."""
    t_outs = []
    t = T
    max_row = _OFF + T
    for i, (p_l, p_r) in enumerate(_PADS):
        k = _K1 if i == 0 else _K
        max_row = max(max_row, _OFF + t + p_r)   # deepest row any tap reads
        t = t + p_l + p_r - k + 1
        t_outs.append(t)
    return tuple(t_outs), _round_up(max_row, 8)


# ------------------------------ Pallas kernel ------------------------------

def _psc10_kernel(x_ref, w1_ref, w29_ref, b19_ref, w10_ref, b10_ref, o_ref,
                  act_a, act_b, *, T, C):
    """One grid step == one batch element; all 10 layers fused in VMEM.

    x_ref  : (1, T, C)      f32   input frames, channels zero-padded to 128
    w1_ref : (K1*C, C)      bf16  conv1 im2col weight (K1 = 5 taps)
    w29_ref: (8, K*C, C)    bf16  conv2..conv9 im2col weights (K = 10 taps)
    b19_ref: (9, 1, C)      f32   conv1..conv9 biases
    w10_ref: (K*C, CL)      bf16  conv10 im2col weight (CL = 1024 lanes)
    b10_ref: (1, CL)        f32   conv10 bias
    o_ref  : (1, T_out, CL) f32   final-layer output (lane-dense)
    act_a/b: (T_buf, C)     f32   padded-activation ping-pong buffers
    """
    # Scratch persists across grid steps -> re-zero for this batch.  The
    # buffers are tiny (T_buf x 128 f32), so this is a handful of vreg stores.
    act_a[...] = jnp.zeros_like(act_a)
    act_b[...] = jnp.zeros_like(act_b)
    # Valid data always lives starting at the 8-aligned row _OFF: every
    # activation store below is sublane-aligned; each layer's pad_left is
    # folded into its read offset instead.
    act_a[_OFF:_OFF + T, :] = x_ref[0]

    bufs = (act_a, act_b)
    extents = [T, 0]            # rows of possibly non-zero data past _OFF
    t_in = T
    for i in range(10):         # static unroll over the 10 layers
        cur, nxt = bufs[i % 2], bufs[(i + 1) % 2]
        p_l, p_r = _PADS[i]
        k_taps = _K1 if i == 0 else _K
        t_out = t_in + p_l + p_r - k_taps + 1
        start = _OFF - p_l      # buffer row of padded-frame 0 for this layer

        # In-register im2col: K shifted (t_out, C) tap slices concatenated
        # along lanes -> (t_out, K*C).  bf16 operands, f32 MXU accumulation.
        taps = [cur[start + k:start + k + t_out, :].astype(jnp.bfloat16)
                for k in range(k_taps)]
        u = jnp.concatenate(taps, axis=-1)

        if i == 0:
            w, bias = w1_ref[...], b19_ref[0]
        elif i < 9:
            w, bias = w29_ref[i - 1], b19_ref[i]
        else:
            w, bias = w10_ref[...], b10_ref[...]
        # bf16 x bf16 -> f32 accumulate (explicit via preferred_element_type).
        y = jnp.dot(u, w, preferred_element_type=jnp.float32) + bias

        if i < 9:
            y = jnp.maximum(y, 0.0)
            nxt[_OFF:_OFF + t_out, :] = y          # 8-aligned store
            nxt_idx = (i + 1) % 2
            stale = extents[nxt_idx] - t_out
            if stale > 0:   # static: zero stale tail only if the buffer shrank
                nxt[_OFF + t_out:_OFF + t_out + stale, :] = jnp.zeros(
                    (stale, C), jnp.float32)
            extents[nxt_idx] = t_out
        else:
            o_ref[0] = y
        t_in = t_out


def psc10_pallas_stack(x, w1, w29, b19, w10, b10):
    """x: (N, T, 128) f32; packed weights from pack_psc10_params."""
    N, T, C = x.shape
    CL = w10.shape[-1]
    t_outs, T_buf = _time_plan(T)
    T_out = t_outs[-1]

    kernel = functools.partial(_psc10_kernel, T=T, C=C)

    grid_spec = pltpu.PrefetchScalarGridSpec(
        num_scalar_prefetch=0,
        grid=(N,),                                              # batch axis
        in_specs=[
            pl.BlockSpec((1, T, C), lambda b: (b, 0, 0)),       # x (per batch)
            pl.BlockSpec((_K1 * C, C), lambda b: (0, 0)),       # w1  (resident)
            pl.BlockSpec((8, _K * C, C), lambda b: (0, 0, 0)),  # w2..w9
            pl.BlockSpec((9, 1, C), lambda b: (0, 0, 0)),       # b1..b9
            pl.BlockSpec((_K * C, CL), lambda b: (0, 0)),       # w10
            pl.BlockSpec((1, CL), lambda b: (0, 0)),            # b10
        ],
        out_specs=pl.BlockSpec((1, T_out, CL), lambda b: (b, 0, 0)),
        scratch_shapes=[
            pltpu.VMEM((T_buf, C), jnp.float32),                # activation ping
            pltpu.VMEM((T_buf, C), jnp.float32),                # activation pong
        ],
    )
    return pl.pallas_call(
        kernel,
        out_shape=jax.ShapeDtypeStruct((N, T_out, CL), jnp.float32),
        grid_spec=grid_spec,
        compiler_params=pltpu.CompilerParams(
            dimension_semantics=("parallel",),      # shard batches over v7x TCs
            vmem_limit_bytes=32 * 1024 * 1024),
    )(x, w1, w29, b19, w10, b10)


# ----------------------------- parameter init ------------------------------

def _xavier_normal(key, shape_oihw):
    o, i, kh, kw = shape_oihw
    fan_in = i * kh * kw
    fan_out = o * kh * kw
    std = (2.0 / (fan_in + fan_out)) ** 0.5
    return std * jax.random.normal(key, shape_oihw, jnp.float32)


def _bias_init(key, shape_oihw):
    o, i, kh, kw = shape_oihw
    bound = 1.0 / ((i * kh * kw) ** 0.5)
    return jax.random.uniform(key, (o,), jnp.float32, -bound, bound)


def init_psc10_params(key, kernel_sizes=(5, 10), num_mfcc=39, len_last=1000):
    """Weights in PyTorch OIHW layout, deterministic xavier-normal init."""
    shapes = [(80, 1, num_mfcc, kernel_sizes[0])]
    shapes += [(80, 80, 1, kernel_sizes[1])] * 8
    shapes += [(len_last, 80, 1, kernel_sizes[1])]
    params = []
    for s in shapes:
        key, kw_, kb_ = jax.random.split(key, 3)
        params.append((_xavier_normal(kw_, s), _bias_init(kb_, s)))
    return params


def pack_psc10_params(params, C=_C):
    """PyTorch OIHW params -> lane-padded im2col matrices (weights in bf16)."""
    # conv1: (80, 1, 39, 5) -> (5, 39, 80) -> pad channels -> (5*128, 128)
    w1, b1 = params[0]
    wk = jnp.transpose(w1[:, 0], (2, 1, 0))
    wk = jnp.pad(wk, ((0, 0), (0, C - wk.shape[1]), (0, C - wk.shape[2])))
    w1p = wk.reshape(-1, C).astype(jnp.bfloat16)

    biases = [jnp.pad(b1, (0, C - b1.shape[0]))]
    w29 = []
    for w, b in params[1:-1]:
        wk = jnp.transpose(w[:, :, 0, :], (2, 1, 0))           # (10, 80, 80)
        wk = jnp.pad(wk, ((0, 0), (0, C - wk.shape[1]), (0, C - wk.shape[2])))
        w29.append(wk.reshape(-1, C))
        biases.append(jnp.pad(b, (0, C - b.shape[0])))
    w29 = jnp.stack(w29).astype(jnp.bfloat16)                  # (8, 1280, 128)
    b19 = jnp.stack(biases)[:, None, :]                        # (9, 1, 128) f32

    wL, bL = params[-1]
    wk = jnp.transpose(wL[:, :, 0, :], (2, 1, 0))              # (10, 80, 1000)
    CL = _round_up(wk.shape[-1], 128)
    wk = jnp.pad(wk, ((0, 0), (0, C - wk.shape[1]), (0, CL - wk.shape[-1])))
    w10 = wk.reshape(-1, CL).astype(jnp.bfloat16)              # (1280, 1024)
    b10 = jnp.pad(bL, (0, CL - bL.shape[0]))[None, :]          # (1, 1024) f32
    return w1p, w29, b19, w10, b10


# -------------------------------- forward ----------------------------------

@functools.partial(jax.jit, static_argnums=(2,))
def psc10_forward(x_nchw, packed, n_out=1000):
    """x_nchw: (N, 1, num_mfcc, W) -> (N, n_out, 1, W-1), matching PyTorch."""
    w1, w29, b19, w10, b10 = packed
    C = b19.shape[-1]
    N, _, nm, T = x_nchw.shape
    x = jnp.transpose(x_nchw[:, 0], (0, 2, 1))              # (N, W, num_mfcc)
    x = jnp.pad(x, ((0, 0), (0, 0), (0, C - nm)))           # (N, W, 128)
    out = psc10_pallas_stack(x, w1, w29, b19, w10, b10)     # (N, W-1, 1024)
    out = out[:, :, :n_out]
    return jnp.transpose(out, (0, 2, 1))[:, :, None, :]     # (N, n_out, 1, W-1)


def psc10_reference(x_nchw, params):
    """Pure-XLA NCHW reference using lax.conv_general_dilated (f32)."""
    x = x_nchw
    n_layers = len(params)
    for i, ((w, b), pad) in enumerate(zip(params, _PADS)):
        x = jax.lax.conv_general_dilated(
            x, w, window_strides=(1, 1),
            padding=((0, 0), pad),
            dimension_numbers=("NCHW", "OIHW", "NCHW"),
        ) + b.reshape(1, -1, 1, 1)
        if i < n_layers - 1:
            x = jnp.maximum(x, 0.0)
    return x


# ---------------------------------- main ------------------------------------

if __name__ == "__main__":
    key = jax.random.PRNGKey(0)
    k_params, k_x = jax.random.split(key)

    N, T = 2, 16                 # small batch / time frames
    NUM_MFCC = 39                # required by conv1's (39, 5) kernel
    LEN_LAST = 1000              # module default

    params = init_psc10_params(k_params, kernel_sizes=(5, 10),
                               num_mfcc=NUM_MFCC, len_last=LEN_LAST)
    packed = pack_psc10_params(params)
    x = jax.random.normal(k_x, (N, 1, NUM_MFCC, T), jnp.float32)

    out = jax.block_until_ready(psc10_forward(x, packed, LEN_LAST))
    assert out.shape == (N, LEN_LAST, 1, T - 1), out.shape

    ref = jax.block_until_ready(psc10_reference(x, params))
    max_err = float(jnp.max(jnp.abs(out - ref)))
    assert jnp.allclose(out, ref, atol=5e-3, rtol=5e-3), max_err

    print("KERNEL_OK")
</pallas_src>

<mosaic_0001>
module attributes {stable_mosaic.version = 11 : i64} {
  func.func @_psc10_kernel(%arg0: i32, %arg1: memref<1x16x128xf32, #tpu.memory_space<vmem>>, %arg2: memref<640x128xbf16, #tpu.memory_space<vmem>>, %arg3: memref<8x1280x128xbf16, #tpu.memory_space<vmem>>, %arg4: memref<9x1x128xf32, #tpu.memory_space<vmem>>, %arg5: memref<1280x1024xbf16, #tpu.memory_space<vmem>>, %arg6: memref<1x1024xf32, #tpu.memory_space<vmem>>, %arg7: memref<1x15x1024xf32, #tpu.memory_space<vmem>>, %arg8: memref<32x128xf32, #tpu.memory_space<vmem>>, %arg9: memref<32x128xf32, #tpu.memory_space<vmem>>) attributes {dimension_semantics = [#tpu.dimension_semantics<parallel>], iteration_bounds = array<i64: 2>, scalar_prefetch = 0 : i64, scratch_operands = 2 : i64, tpu.core_type = #tpu.core_type<tc>, window_params = [{transform_indices = @transform_0, window_bounds = array<i64: 1, 16, 128>}, {pipeline_mode = #tpu.pipeline_mode<synchronous>, transform_indices = @transform_1, window_bounds = array<i64: 640, 128>}, {pipeline_mode = #tpu.pipeline_mode<synchronous>, transform_indices = @transform_2, window_bounds = array<i64: 8, 1280, 128>}, {pipeline_mode = #tpu.pipeline_mode<synchronous>, transform_indices = @transform_3, window_bounds = array<i64: 9, 1, 128>}, {pipeline_mode = #tpu.pipeline_mode<synchronous>, transform_indices = @transform_4, window_bounds = array<i64: 1280, 1024>}, {pipeline_mode = #tpu.pipeline_mode<synchronous>, transform_indices = @transform_5, window_bounds = array<i64: 1, 1024>}, {transform_indices = @transform_6, window_bounds = array<i64: 1, 15, 1024>}]} {
    %cst = arith.constant 0.000000e+00 : f32
    %0 = vector.broadcast %cst : f32 to vector<32x128xf32>
    %c0 = arith.constant 0 : index
    %c0_0 = arith.constant 0 : index
    %1 = vector.load %arg8[%c0, %c0_0] : memref<32x128xf32, #tpu.memory_space<vmem>>, vector<32x128xf32>
    tpu.vector_store %arg8[%c0, %c0_0], %0 {strides = array<i32>} : memref<32x128xf32, #tpu.memory_space<vmem>>, vector<32x128xf32>,
    %cst_1 = arith.constant 0.000000e+00 : f32
    %2 = vector.broadcast %cst_1 : f32 to vector<32x128xf32>
    %c0_2 = arith.constant 0 : index
    %c0_3 = arith.constant 0 : index
    %3 = vector.load %arg9[%c0_2, %c0_3] : memref<32x128xf32, #tpu.memory_space<vmem>>, vector<32x128xf32>
    tpu.vector_store %arg9[%c0_2, %c0_3], %2 {strides = array<i32>} : memref<32x128xf32, #tpu.memory_space<vmem>>, vector<32x128xf32>,
    %c0_4 = arith.constant 0 : index
    %c0_5 = arith.constant 0 : index
    %c0_6 = arith.constant 0 : index
    %4 = vector.load %arg1[%c0_4, %c0_5, %c0_6] : memref<1x16x128xf32, #tpu.memory_space<vmem>>, vector<1x16x128xf32>
    %5 = vector.shape_cast %4 : vector<1x16x128xf32> to vector<16x128xf32>
    %c8 = arith.constant 8 : index
    %c0_7 = arith.constant 0 : index
    %6 = vector.load %arg8[%c8, %c0_7] : memref<32x128xf32, #tpu.memory_space<vmem>>, vector<16x128xf32>
    tpu.vector_store %arg8[%c8, %c0_7], %5 {strides = array<i32>} : memref<32x128xf32, #tpu.memory_space<vmem>>, vector<16x128xf32>,
    %c6 = arith.constant 6 : index
    %c0_8 = arith.constant 0 : index
    %7 = vector.load %arg8[%c6, %c0_8] : memref<32x128xf32, #tpu.memory_space<vmem>>, vector<16x128xf32>
    %8 = arith.truncf %7 : vector<16x128xf32> to vector<16x128xbf16>
    %c7 = arith.constant 7 : index
    %c0_9 = arith.constant 0 : index
    %9 = vector.load %arg8[%c7, %c0_9] : memref<32x128xf32, #tpu.memory_space<vmem>>, vector<16x128xf32>
    %10 = arith.truncf %9 : vector<16x128xf32> to vector<16x128xbf16>
    %c8_10 = arith.constant 8 : index
    %c0_11 = arith.constant 0 : index
    %11 = vector.load %arg8[%c8_10, %c0_11] : memref<32x128xf32, #tpu.memory_space<vmem>>, vector<16x128xf32>
    %12 = arith.truncf %11 : vector<16x128xf32> to vector<16x128xbf16>
    %c9 = arith.constant 9 : index
    %c0_12 = arith.constant 0 : index
    %13 = vector.load %arg8[%c9, %c0_12] : memref<32x128xf32, #tpu.memory_space<vmem>>, vector<16x128xf32>
    %14 = arith.truncf %13 : vector<16x128xf32> to vector<16x128xbf16>
    %c10 = arith.constant 10 : index
    %c0_13 = arith.constant 0 : index
    %15 = vector.load %arg8[%c10, %c0_13] : memref<32x128xf32, #tpu.memory_space<vmem>>, vector<16x128xf32>
    %16 = arith.truncf %15 : vector<16x128xf32> to vector<16x128xbf16>
    %17 = tpu.concatenate %8, %10, %12, %14, %16 in 1 : vector<16x128xbf16>, vector<16x128xbf16>, vector<16x128xbf16>, vector<16x128xbf16>, vector<16x128xbf16> -> vector<16x640xbf16>
    %c0_14 = arith.constant 0 : index
    %c0_15 = arith.constant 0 : index
    %18 = vector.load %arg2[%c0_14, %c0_15] : memref<640x128xbf16, #tpu.memory_space<vmem>>, vector<640x128xbf16>
    %c0_16 = arith.constant 0 : index
    %c0_17 = arith.constant 0 : index
    %c0_18 = arith.constant 0 : index
    %19 = vector.load %arg4[%c0_16, %c0_17, %c0_18] : memref<9x1x128xf32, #tpu.memory_space<vmem>>, vector<1x1x128xf32>
    %20 = vector.shape_cast %19 : vector<1x1x128xf32> to vector<1x128xf32>
    %cst_19 = arith.constant dense<0.000000e+00> : vector<16x128xf32>
    %21 = tpu.matmul %17, %18, %cst_19 {dimension_numbers = #tpu.dot_dimension_numbers<[1], [0], [0], [1], [0, 0, 1, 1], [], []>} : vector<16x640xbf16>, vector<640x128xbf16>, vector<16x128xf32> -> vector<16x128xf32>
    %22 = vector.broadcast %20 : vector<1x128xf32> to vector<16x128xf32>
    %23 = arith.addf %21, %22 : vector<16x128xf32>
    %cst_20 = arith.constant 0.000000e+00 : f32
    %24 = vector.broadcast %cst_20 : f32 to vector<16x128xf32>
    %25 = arith.maximumf %23, %24 : vector<16x128xf32>
    %c8_21 = arith.constant 8 : index
    %c0_22 = arith.constant 0 : index
    %26 = vector.load %arg9[%c8_21, %c0_22] : memref<32x128xf32, #tpu.memory_space<vmem>>, vector<16x128xf32>
    tpu.vector_store %arg9[%c8_21, %c0_22], %25 {strides = array<i32>} : memref<32x128xf32, #tpu.memory_space<vmem>>, vector<16x128xf32>,
    %c3 = arith.constant 3 : index
    %c0_23 = arith.constant 0 : index
    %27 = vector.load %arg9[%c3, %c0_23] : memref<32x128xf32, #tpu.memory_space<vmem>>, vector<17x128xf32>
    %28 = arith.truncf %27 : vector<17x128xf32> to vector<17x128xbf16>
    %c4 = arith.constant 4 : index
    %c0_24 = arith.constant 0 : index
    %29 = vector.load %arg9[%c4, %c0_24] : memref<32x128xf32, #tpu.memory_space<vmem>>, vector<17x128xf32>
    %30 = arith.truncf %29 : vector<17x128xf32> to vector<17x128xbf16>
    %c5 = arith.constant 5 : index
    %c0_25 = arith.constant 0 : index
    %31 = vector.load %arg9[%c5, %c0_25] : memref<32x128xf32, #tpu.memory_space<vmem>>, vector<17x128xf32>
    %32 = arith.truncf %31 : vector<17x128xf32> to vector<17x128xbf16>
    %c6_26 = arith.constant 6 : index
    %c0_27 = arith.constant 0 : index
    %33 = vector.load %arg9[%c6_26, %c0_27] : memref<32x128xf32, #tpu.memory_space<vmem>>, vector<17x128xf32>
    %34 = arith.truncf %33 : vector<17x128xf32> to vector<17x128xbf16>
    %c7_28 = arith.constant 7 : index
    %c0_29 = arith.constant 0 : index
    %35 = vector.load %arg9[%c7_28, %c0_29] : memref<32x128xf32, #tpu.memory_space<vmem>>, vector<17x128xf32>
    %36 = arith.truncf %35 : vector<17x128xf32> to vector<17x128xbf16>
    %c8_30 = arith.constant 8 : index
    %c0_31 = arith.constant 0 : index
    %37 = vector.load %arg9[%c8_30, %c0_31] : memref<32x128xf32, #tpu.memory_space<vmem>>, vector<17x128xf32>
    %38 = arith.truncf %37 : vector<17x128xf32> to vector<17x128xbf16>
    %c9_32 = arith.constant 9 : index
    %c0_33 = arith.constant 0 : index
    %39 = vector.load %arg9[%c9_32, %c0_33] : memref<32x128xf32, #tpu.memory_space<vmem>>, vector<17x128xf32>
    %40 = arith.truncf %39 : vector<17x128xf32> to vector<17x128xbf16>
    %c10_34 = arith.constant 10 : index
    %c0_35 = arith.constant 0 : index
    %41 = vector.load %arg9[%c10_34, %c0_35] : memref<32x128xf32, #tpu.memory_space<vmem>>, vector<17x128xf32>
    %42 = arith.truncf %41 : vector<17x128xf32> to vector<17x128xbf16>
    %c11 = arith.constant 11 : index
    %c0_36 = arith.constant 0 : index
    %43 = vector.load %arg9[%c11, %c0_36] : memref<32x128xf32, #tpu.memory_space<vmem>>, vector<17x128xf32>
    %44 = arith.truncf %43 : vector<17x128xf32> to vector<17x128xbf16>
    %c12 = arith.constant 12 : index
    %c0_37 = arith.constant 0 : index
    %45 = vector.load %arg9[%c12, %c0_37] : memref<32x128xf32, #tpu.memory_space<vmem>>, vector<17x128xf32>
    %46 = arith.truncf %45 : vector<17x128xf32> to vector<17x128xbf16>
    %47 = tpu.concatenate %28, %30, %32, %34, %36, %38, %40, %42, %44, %46 in 1 : vector<17x128xbf16>, vector<17x128xbf16>, vector<17x128xbf16>, vector<17x128xbf16>, vector<17x128xbf16>, vector<17x128xbf16>, vector<17x128xbf16>, vector<17x128xbf16>, vector<17x128xbf16>, vector<17x128xbf16> -> vector<17x1280xbf16>
    %c0_38 = arith.constant 0 : index
    %c0_39 = arith.constant 0 : index
    %c0_40 = arith.constant 0 : index
    %48 = vector.load %arg3[%c0_38, %c0_39, %c0_40] : memref<8x1280x128xbf16, #tpu.memory_space<vmem>>, vector<1x1280x128xbf16>
    %49 = vector.shape_cast %48 : vector<1x1280x128xbf16> to vector<1280x128xbf16>
    %c1 = arith.constant 1 : index
    %c0_41 = arith.constant 0 : index
    %c0_42 = arith.constant 0 : index
    %50 = vector.load %arg4[%c1, %c0_41, %c0_42] : memref<9x1x128xf32, #tpu.memory_space<vmem>>, vector<1x1x128xf32>
    %51 = vector.shape_cast %50 : vector<1x1x128xf32> to vector<1x128xf32>
    %cst_43 = arith.constant dense<0.000000e+00> : vector<17x128xf32>
    %52 = tpu.matmul %47, %49, %cst_43 {dimension_numbers = #tpu.dot_dimension_numbers<[1], [0], [0], [1], [0, 0, 1, 1], [], []>} : vector<17x1280xbf16>, vector<1280x128xbf16>, vector<17x128xf32> -> vector<17x128xf32>
    %53 = vector.broadcast %51 : vector<1x128xf32> to vector<17x128xf32>
    %54 = arith.addf %52, %53 : vector<17x128xf32>
    %cst_44 = arith.constant 0.000000e+00 : f32
    %55 = vector.broadcast %cst_44 : f32 to vector<17x128xf32>
    %56 = arith.maximumf %54, %55 : vector<17x128xf32>
    %c8_45 = arith.constant 8 : index
    %c0_46 = arith.constant 0 : index
    %57 = vector.load %arg8[%c8_45, %c0_46] : memref<32x128xf32, #tpu.memory_space<vmem>>, vector<17x128xf32>
    tpu.vector_store %arg8[%c8_45, %c0_46], %56 {strides = array<i32>} : memref<32x128xf32, #tpu.memory_space<vmem>>, vector<17x128xf32>,
    %c4_47 = arith.constant 4 : index
    %c0_48 = arith.constant 0 : index
    %58 = vector.load %arg8[%c4_47, %c0_48] : memref<32x128xf32, #tpu.memory_space<vmem>>, vector<16x128xf32>
    %59 = arith.truncf %58 : vector<16x128xf32> to vector<16x128xbf16>
    %c5_49 = arith.constant 5 : index
    %c0_50 = arith.constant 0 : index
    %60 = vector.load %arg8[%c5_49, %c0_50] : memref<32x128xf32, #tpu.memory_space<vmem>>, vector<16x128xf32>
    %61 = arith.truncf %60 : vector<16x128xf32> to vector<16x128xbf16>
    %c6_51 = arith.constant 6 : index
    %c0_52 = arith.constant 0 : index
    %62 = vector.load %arg8[%c6_51, %c0_52] : memref<32x128xf32, #tpu.memory_space<vmem>>, vector<16x128xf32>
    %63 = arith.truncf %62 : vector<16x128xf32> to vector<16x128xbf16>
    %c7_53 = arith.constant 7 : index
    %c0_54 = arith.constant 0 : index
    %64 = vector.load %arg8[%c7_53, %c0_54] : memref<32x128xf32, #tpu.memory_space<vmem>>, vector<16x128xf32>
    %65 = arith.truncf %64 : vector<16x128xf32> to vector<16x128xbf16>
    %c8_55 = arith.constant 8 : index
    %c0_56 = arith.constant 0 : index
    %66 = vector.load %arg8[%c8_55, %c0_56] : memref<32x128xf32, #tpu.memory_space<vmem>>, vector<16x128xf32>
    %67 = arith.truncf %66 : vector<16x128xf32> to vector<16x128xbf16>
    %c9_57 = arith.constant 9 : index
    %c0_58 = arith.constant 0 : index
    %68 = vector.load %arg8[%c9_57, %c0_58] : memref<32x128xf32, #tpu.memory_space<vmem>>, vector<16x128xf32>
    %69 = arith.truncf %68 : vector<16x128xf32> to vector<16x128xbf16>
    %c10_59 = arith.constant 10 : index
    %c0_60 = arith.constant 0 : index
    %70 = vector.load %arg8[%c10_59, %c0_60] : memref<32x128xf32, #tpu.memory_space<vmem>>, vector<16x128xf32>
    %71 = arith.truncf %70 : vector<16x128xf32> to vector<16x128xbf16>
    %c11_61 = arith.constant 11 : index
    %c0_62 = arith.constant 0 : index
    %72 = vector.load %arg8[%c11_61, %c0_62] : memref<32x128xf32, #tpu.memory_space<vmem>>, vector<16x128xf32>
    %73 = arith.truncf %72 : vector<16x128xf32> to vector<16x128xbf16>
    %c12_63 = arith.constant 12 : index
    %c0_64 = arith.constant 0 : index
    %74 = vector.load %arg8[%c12_63, %c0_64] : memref<32x128xf32, #tpu.memory_space<vmem>>, vector<16x128xf32>
    %75 = arith.truncf %74 : vector<16x128xf32> to vector<16x128xbf16>
    %c13 = arith.constant 13 : index
    %c0_65 = arith.constant 0 : index
    %76 = vector.load %arg8[%c13, %c0_65] : memref<32x128xf32, #tpu.memory_space<vmem>>, vector<16x128xf32>
    %77 = arith.truncf %76 : vector<16x128xf32> to vector<16x128xbf16>
    %78 = tpu.concatenate %59, %61, %63, %65, %67, %69, %71, %73, %75, %77 in 1 : vector<16x128xbf16>, vector<16x128xbf16>, vector<16x128xbf16>, vector<16x128xbf16>, vector<16x128xbf16>, vector<16x128xbf16>, vector<16x128xbf16>, vector<16x128xbf16>, vector<16x128xbf16>, vector<16x128xbf16> -> vector<16x1280xbf16>
    %c1_66 = arith.constant 1 : index
    %c0_67 = arith.constant 0 : index
    %c0_68 = arith.constant 0 : index
    %79 = vector.load %arg3[%c1_66, %c0_67, %c0_68] : memref<8x1280x128xbf16, #tpu.memory_space<vmem>>, vector<1x1280x128xbf16>
    %80 = vector.shape_cast %79 : vector<1x1280x128xbf16> to vector<1280x128xbf16>
    %c2 = arith.constant 2 : index
    %c0_69 = arith.constant 0 : index
    %c0_70 = arith.constant 0 : index
    %81 = vector.load %arg4[%c2, %c0_69, %c0_70] : memref<9x1x128xf32, #tpu.memory_space<vmem>>, vector<1x1x128xf32>
    %82 = vector.shape_cast %81 : vector<1x1x128xf32> to vector<1x128xf32>
    %cst_71 = arith.constant dense<0.000000e+00> : vector<16x128xf32>
    %83 = tpu.matmul %78, %80, %cst_71 {dimension_numbers = #tpu.dot_dimension_numbers<[1], [0], [0], [1], [0, 0, 1, 1], [], []>} : vector<16x1280xbf16>, vector<1280x128xbf16>, vector<16x128xf32> -> vector<16x128xf32>
    %84 = vector.broadcast %82 : vector<1x128xf32> to vector<16x128xf32>
    %85 = arith.addf %83, %84 : vector<16x128xf32>
    %cst_72 = arith.constant 0.000000e+00 : f32
    %86 = vector.broadcast %cst_72 : f32 to vector<16x128xf32>
    %87 = arith.maximumf %85, %86 : vector<16x128xf32>
    %c8_73 = arith.constant 8 : index
    %c0_74 = arith.constant 0 : index
    %88 = vector.load %arg9[%c8_73, %c0_74] : memref<32x128xf32, #tpu.memory_space<vmem>>, vector<16x128xf32>
    tpu.vector_store %arg9[%c8_73, %c0_74], %87 {strides = array<i32>} : memref<32x128xf32, #tpu.memory_space<vmem>>, vector<16x128xf32>,
    %c3_75 = arith.constant 3 : index
    %c0_76 = arith.constant 0 : index
    %89 = vector.load %arg9[%c3_75, %c0_76] : memref<32x128xf32, #tpu.memory_space<vmem>>, vector<17x128xf32>
    %90 = arith.truncf %89 : vector<17x128xf32> to vector<17x128xbf16>
    %c4_77 = arith.constant 4 : index
    %c0_78 = arith.constant 0 : index
    %91 = vector.load %arg9[%c4_77, %c0_78] : memref<32x128xf32, #tpu.memory_space<vmem>>, vector<17x128xf32>
    %92 = arith.truncf %91 : vector<17x128xf32> to vector<17x128xbf16>
    %c5_79 = arith.constant 5 : index
    %c0_80 = arith.constant 0 : index
    %93 = vector.load %arg9[%c5_79, %c0_80] : memref<32x128xf32, #tpu.memory_space<vmem>>, vector<17x128xf32>
    %94 = arith.truncf %93 : vector<17x128xf32> to vector<17x128xbf16>
    %c6_81 = arith.constant 6 : index
    %c0_82 = arith.constant 0 : index
    %95 = vector.load %arg9[%c6_81, %c0_82] : memref<32x128xf32, #tpu.memory_space<vmem>>, vector<17x128xf32>
    %96 = arith.truncf %95 : vector<17x128xf32> to vector<17x128xbf16>
    %c7_83 = arith.constant 7 : index
    %c0_84 = arith.constant 0 : index
    %97 = vector.load %arg9[%c7_83, %c0_84] : memref<32x128xf32, #tpu.memory_space<vmem>>, vector<17x128xf32>
    %98 = arith.truncf %97 : vector<17x128xf32> to vector<17x128xbf16>
    %c8_85 = arith.constant 8 : index
    %c0_86 = arith.constant 0 : index
    %99 = vector.load %arg9[%c8_85, %c0_86] : memref<32x128xf32, #tpu.memory_space<vmem>>, vector<17x128xf32>
    %100 = arith.truncf %99 : vector<17x128xf32> to vector<17x128xbf16>
    %c9_87 = arith.constant 9 : index
    %c0_88 = arith.constant 0 : index
    %101 = vector.load %arg9[%c9_87, %c0_88] : memref<32x128xf32, #tpu.memory_space<vmem>>, vector<17x128xf32>
    %102 = arith.truncf %101 : vector<17x128xf32> to vector<17x128xbf16>
    %c10_89 = arith.constant 10 : index
    %c0_90 = arith.constant 0 : index
    %103 = vector.load %arg9[%c10_89, %c0_90] : memref<32x128xf32, #tpu.memory_space<vmem>>, vector<17x128xf32>
    %104 = arith.truncf %103 : vector<17x128xf32> to vector<17x128xbf16>
    %c11_91 = arith.constant 11 : index
    %c0_92 = arith.constant 0 : index
    %105 = vector.load %arg9[%c11_91, %c0_92] : memref<32x128xf32, #tpu.memory_space<vmem>>, vector<17x128xf32>
    %106 = arith.truncf %105 : vector<17x128xf32> to vector<17x128xbf16>
    %c12_93 = arith.constant 12 : index
    %c0_94 = arith.constant 0 : index
    %107 = vector.load %arg9[%c12_93, %c0_94] : memref<32x128xf32, #tpu.memory_space<vmem>>, vector<17x128xf32>
    %108 = arith.truncf %107 : vector<17x128xf32> to vector<17x128xbf16>
    %109 = tpu.concatenate %90, %92, %94, %96, %98, %100, %102, %104, %106, %108 in 1 : vector<17x128xbf16>, vector<17x128xbf16>, vector<17x128xbf16>, vector<17x128xbf16>, vector<17x128xbf16>, vector<17x128xbf16>, vector<17x128xbf16>, vector<17x128xbf16>, vector<17x128xbf16>, vector<17x128xbf16> -> vector<17x1280xbf16>
    %c2_95 = arith.constant 2 : index
    %c0_96 = arith.constant 0 : index
    %c0_97 = arith.constant 0 : index
    %110 = vector.load %arg3[%c2_95, %c0_96, %c0_97] : memref<8x1280x128xbf16, #tpu.memory_space<vmem>>, vector<1x1280x128xbf16>
    %111 = vector.shape_cast %110 : vector<1x1280x128xbf16> to vector<1280x128xbf16>
    %c3_98 = arith.constant 3 : index
    %c0_99 = arith.constant 0 : index
    %c0_100 = arith.constant 0 : index
    %112 = vector.load %arg4[%c3_98, %c0_99, %c0_100] : memref<9x1x128xf32, #tpu.memory_space<vmem>>, vector<1x1x128xf32>
    %113 = vector.shape_cast %112 : vector<1x1x128xf32> to vector<1x128xf32>
    %cst_101 = arith.constant dense<0.000000e+00> : vector<17x128xf32>
    %114 = tpu.matmul %109, %111, %cst_101 {dimension_numbers = #tpu.dot_dimension_numbers<[1], [0], [0], [1], [0, 0, 1, 1], [], []>} : vector<17x1280xbf16>, vector<1280x128xbf16>, vector<17x128xf32> -> vector<17x128xf32>
    %115 = vector.broadcast %113 : vector<1x128xf32> to vector<17x128xf32>
    %116 = arith.addf %114, %115 : vector<17x128xf32>
    %cst_102 = arith.constant 0.000000e+00 : f32
    %117 = vector.broadcast %cst_102 : f32 to vector<17x128xf32>
    %118 = arith.maximumf %116, %117 : vector<17x128xf32>
    %c8_103 = arith.constant 8 : index
    %c0_104 = arith.constant 0 : index
    %119 = vector.load %arg8[%c8_103, %c0_104] : memref<32x128xf32, #tpu.memory_space<vmem>>, vector<17x128xf32>
    tpu.vector_store %arg8[%c8_103, %c0_104], %118 {strides = array<i32>} : memref<32x128xf32, #tpu.memory_space<vmem>>, vector<17x128xf32>,
    %c4_105 = arith.constant 4 : index
    %c0_106 = arith.constant 0 : index
    %120 = vector.load %arg8[%c4_105, %c0_106] : memref<32x128xf32, #tpu.memory_space<vmem>>, vector<16x128xf32>
    %121 = arith.truncf %120 : vector<16x128xf32> to vector<16x128xbf16>
    %c5_107 = arith.constant 5 : index
    %c0_108 = arith.constant 0 : index
    %122 = vector.load %arg8[%c5_107, %c0_108] : memref<32x128xf32, #tpu.memory_space<vmem>>, vector<16x128xf32>
    %123 = arith.truncf %122 : vector<16x128xf32> to vector<16x128xbf16>
    %c6_109 = arith.constant 6 : index
    %c0_110 = arith.constant 0 : index
    %124 = vector.load %arg8[%c6_109, %c0_110] : memref<32x128xf32, #tpu.memory_space<vmem>>, vector<16x128xf32>
    %125 = arith.truncf %124 : vector<16x128xf32> to vector<16x128xbf16>
    %c7_111 = arith.constant 7 : index
    %c0_112 = arith.constant 0 : index
    %126 = vector.load %arg8[%c7_111, %c0_112] : memref<32x128xf32, #tpu.memory_space<vmem>>, vector<16x128xf32>
    %127 = arith.truncf %126 : vector<16x128xf32> to vector<16x128xbf16>
    %c8_113 = arith.constant 8 : index
    %c0_114 = arith.constant 0 : index
    %128 = vector.load %arg8[%c8_113, %c0_114] : memref<32x128xf32, #tpu.memory_space<vmem>>, vector<16x128xf32>
    %129 = arith.truncf %128 : vector<16x128xf32> to vector<16x128xbf16>
    %c9_115 = arith.constant 9 : index
    %c0_116 = arith.constant 0 : index
    %130 = vector.load %arg8[%c9_115, %c0_116] : memref<32x128xf32, #tpu.memory_space<vmem>>, vector<16x128xf32>
    %131 = arith.truncf %130 : vector<16x128xf32> to vector<16x128xbf16>
    %c10_117 = arith.constant 10 : index
    %c0_118 = arith.constant 0 : index
    %132 = vector.load %arg8[%c10_117, %c0_118] : memref<32x128xf32, #tpu.memory_space<vmem>>, vector<16x128xf32>
    %133 = arith.truncf %132 : vector<16x128xf32> to vector<16x128xbf16>
    %c11_119 = arith.constant 11 : index
    %c0_120 = arith.constant 0 : index
    %134 = vector.load %arg8[%c11_119, %c0_120] : memref<32x128xf32, #tpu.memory_space<vmem>>, vector<16x128xf32>
    %135 = arith.truncf %134 : vector<16x128xf32> to vector<16x128xbf16>
    %c12_121 = arith.constant 12 : index
    %c0_122 = arith.constant 0 : index
    %136 = vector.load %arg8[%c12_121, %c0_122] : memref<32x128xf32, #tpu.memory_space<vmem>>, vector<16x128xf32>
    %137 = arith.truncf %136 : vector<16x128xf32> to vector<16x128xbf16>
    %c13_123 = arith.constant 13 : index
    %c0_124 = arith.constant 0 : index
    %138 = vector.load %arg8[%c13_123, %c0_124] : memref<32x128xf32, #tpu.memory_space<vmem>>, vector<16x128xf32>
    %139 = arith.truncf %138 : vector<16x128xf32> to vector<16x128xbf16>
    %140 = tpu.concatenate %121, %123, %125, %127, %129, %131, %133, %135, %137, %139 in 1 : vector<16x128xbf16>, vector<16x128xbf16>, vector<16x128xbf16>, vector<16x128xbf16>, vector<16x128xbf16>, vector<16x128xbf16>, vector<16x128xbf16>, vector<16x128xbf16>, vector<16x128xbf16>, vector<16x128xbf16> -> vector<16x1280xbf16>
    %c3_125 = arith.constant 3 : index
    %c0_126 = arith.constant 0 : index
    %c0_127 = arith.constant 0 : index
    %141 = vector.load %arg3[%c3_125, %c0_126, %c0_127] : memref<8x1280x128xbf16, #tpu.memory_space<vmem>>, vector<1x1280x128xbf16>
    %142 = vector.shape_cast %141 : vector<1x1280x128xbf16> to vector<1280x128xbf16>
    %c4_128 = arith.constant 4 : index
    %c0_129 = arith.constant 0 : index
    %c0_130 = arith.constant 0 : index
    %143 = vector.load %arg4[%c4_128, %c0_129, %c0_130] : memref<9x1x128xf32, #tpu.memory_space<vmem>>, vector<1x1x128xf32>
    %144 = vector.shape_cast %143 : vector<1x1x128xf32> to vector<1x128xf32>
    %cst_131 = arith.constant dense<0.000000e+00> : vector<16x128xf32>
    %145 = tpu.matmul %140, %142, %cst_131 {dimension_numbers = #tpu.dot_dimension_numbers<[1], [0], [0], [1], [0, 0, 1, 1], [], []>} : vector<16x1280xbf16>, vector<1280x128xbf16>, vector<16x128xf32> -> vector<16x128xf32>
    %146 = vector.broadcast %144 : vector<1x128xf32> to vector<16x128xf32>
    %147 = arith.addf %145, %146 : vector<16x128xf32>
    %cst_132 = arith.constant 0.000000e+00 : f32
    %148 = vector.broadcast %cst_132 : f32 to vector<16x128xf32>
    %149 = arith.maximumf %147, %148 : vector<16x128xf32>
    %c8_133 = arith.constant 8 : index
    %c0_134 = arith.constant 0 : index
    %150 = vector.load %arg9[%c8_133, %c0_134] : memref<32x128xf32, #tpu.memory_space<vmem>>, vector<16x128xf32>
    tpu.vector_store %arg9[%c8_133, %c0_134], %149 {strides = array<i32>} : memref<32x128xf32, #tpu.memory_space<vmem>>, vector<16x128xf32>,
    %c3_135 = arith.constant 3 : index
    %c0_136 = arith.constant 0 : index
    %151 = vector.load %arg9[%c3_135, %c0_136] : memref<32x128xf32, #tpu.memory_space<vmem>>, vector<17x128xf32>
    %152 = arith.truncf %151 : vector<17x128xf32> to vector<17x128xbf16>
    %c4_137 = arith.constant 4 : index
    %c0_138 = arith.constant 0 : index
    %153 = vector.load %arg9[%c4_137, %c0_138] : memref<32x128xf32, #tpu.memory_space<vmem>>, vector<17x128xf32>
    %154 = arith.truncf %153 : vector<17x128xf32> to vector<17x128xbf16>
    %c5_139 = arith.constant 5 : index
    %c0_140 = arith.constant 0 : index
    %155 = vector.load %arg9[%c5_139, %c0_140] : memref<32x128xf32, #tpu.memory_space<vmem>>, vector<17x128xf32>
    %156 = arith.truncf %155 : vector<17x128xf32> to vector<17x128xbf16>
    %c6_141 = arith.constant 6 : index
    %c0_142 = arith.constant 0 : index
    %157 = vector.load %arg9[%c6_141, %c0_142] : memref<32x128xf32, #tpu.memory_space<vmem>>, vector<17x128xf32>
    %158 = arith.truncf %157 : vector<17x128xf32> to vector<17x128xbf16>
    %c7_143 = arith.constant 7 : index
    %c0_144 = arith.constant 0 : index
    %159 = vector.load %arg9[%c7_143, %c0_144] : memref<32x128xf32, #tpu.memory_space<vmem>>, vector<17x128xf32>
    %160 = arith.truncf %159 : vector<17x128xf32> to vector<17x128xbf16>
    %c8_145 = arith.constant 8 : index
    %c0_146 = arith.constant 0 : index
    %161 = vector.load %arg9[%c8_145, %c0_146] : memref<32x128xf32, #tpu.memory_space<vmem>>, vector<17x128xf32>
    %162 = arith.truncf %161 : vector<17x128xf32> to vector<17x128xbf16>
    %c9_147 = arith.constant 9 : index
    %c0_148 = arith.constant 0 : index
    %163 = vector.load %arg9[%c9_147, %c0_148] : memref<32x128xf32, #tpu.memory_space<vmem>>, vector<17x128xf32>
    %164 = arith.truncf %163 : vector<17x128xf32> to vector<17x128xbf16>
    %c10_149 = arith.constant 10 : index
    %c0_150 = arith.constant 0 : index
    %165 = vector.load %arg9[%c10_149, %c0_150] : memref<32x128xf32, #tpu.memory_space<vmem>>, vector<17x128xf32>
    %166 = arith.truncf %165 : vector<17x128xf32> to vector<17x128xbf16>
    %c11_151 = arith.constant 11 : index
    %c0_152 = arith.constant 0 : index
    %167 = vector.load %arg9[%c11_151, %c0_152] : memref<32x128xf32, #tpu.memory_space<vmem>>, vector<17x128xf32>
    %168 = arith.truncf %167 : vector<17x128xf32> to vector<17x128xbf16>
    %c12_153 = arith.constant 12 : index
    %c0_154 = arith.constant 0 : index
    %169 = vector.load %arg9[%c12_153, %c0_154] : memref<32x128xf32, #tpu.memory_space<vmem>>, vector<17x128xf32>
    %170 = arith.truncf %169 : vector<17x128xf32> to vector<17x128xbf16>
    %171 = tpu.concatenate %152, %154, %156, %158, %160, %162, %164, %166, %168, %170 in 1 : vector<17x128xbf16>, vector<17x128xbf16>, vector<17x128xbf16>, vector<17x128xbf16>, vector<17x128xbf16>, vector<17x128xbf16>, vector<17x128xbf16>, vector<17x128xbf16>, vector<17x128xbf16>, vector<17x128xbf16> -> vector<17x1280xbf16>
    %c4_155 = arith.constant 4 : index
    %c0_156 = arith.constant 0 : index
    %c0_157 = arith.constant 0 : index
    %172 = vector.load %arg3[%c4_155, %c0_156, %c0_157] : memref<8x1280x128xbf16, #tpu.memory_space<vmem>>, vector<1x1280x128xbf16>
    %173 = vector.shape_cast %172 : vector<1x1280x128xbf16> to vector<1280x128xbf16>
    %c5_158 = arith.constant 5 : index
    %c0_159 = arith.constant 0 : index
    %c0_160 = arith.constant 0 : index
    %174 = vector.load %arg4[%c5_158, %c0_159, %c0_160] : memref<9x1x128xf32, #tpu.memory_space<vmem>>, vector<1x1x128xf32>
    %175 = vector.shape_cast %174 : vector<1x1x128xf32> to vector<1x128xf32>
    %cst_161 = arith.constant dense<0.000000e+00> : vector<17x128xf32>
    %176 = tpu.matmul %171, %173, %cst_161 {dimension_numbers = #tpu.dot_dimension_numbers<[1], [0], [0], [1], [0, 0, 1, 1], [], []>} : vector<17x1280xbf16>, vector<1280x128xbf16>, vector<17x128xf32> -> vector<17x128xf32>
    %177 = vector.broadcast %175 : vector<1x128xf32> to vector<17x128xf32>
    %178 = arith.addf %176, %177 : vector<17x128xf32>
    %cst_162 = arith.constant 0.000000e+00 : f32
    %179 = vector.broadcast %cst_162 : f32 to vector<17x128xf32>
    %180 = arith.maximumf %178, %179 : vector<17x128xf32>
    %c8_163 = arith.constant 8 : index
    %c0_164 = arith.constant 0 : index
    %181 = vector.load %arg8[%c8_163, %c0_164] : memref<32x128xf32, #tpu.memory_space<vmem>>, vector<17x128xf32>
    tpu.vector_store %arg8[%c8_163, %c0_164], %180 {strides = array<i32>} : memref<32x128xf32, #tpu.memory_space<vmem>>, vector<17x128xf32>,
    %c4_165 = arith.constant 4 : index
    %c0_166 = arith.constant 0 : index
    %182 = vector.load %arg8[%c4_165, %c0_166] : memref<32x128xf32, #tpu.memory_space<vmem>>, vector<16x128xf32>
    %183 = arith.truncf %182 : vector<16x128xf32> to vector<16x128xbf16>
    %c5_167 = arith.constant 5 : index
    %c0_168 = arith.constant 0 : index
    %184 = vector.load %arg8[%c5_167, %c0_168] : memref<32x128xf32, #tpu.memory_space<vmem>>, vector<16x128xf32>
    %185 = arith.truncf %184 : vector<16x128xf32> to vector<16x128xbf16>
    %c6_169 = arith.constant 6 : index
    %c0_170 = arith.constant 0 : index
    %186 = vector.load %arg8[%c6_169, %c0_170] : memref<32x128xf32, #tpu.memory_space<vmem>>, vector<16x128xf32>
    %187 = arith.truncf %186 : vector<16x128xf32> to vector<16x128xbf16>
    %c7_171 = arith.constant 7 : index
    %c0_172 = arith.constant 0 : index
    %188 = vector.load %arg8[%c7_171, %c0_172] : memref<32x128xf32, #tpu.memory_space<vmem>>, vector<16x128xf32>
    %189 = arith.truncf %188 : vector<16x128xf32> to vector<16x128xbf16>
    %c8_173 = arith.constant 8 : index
    %c0_174 = arith.constant 0 : index
    %190 = vector.load %arg8[%c8_173, %c0_174] : memref<32x128xf32, #tpu.memory_space<vmem>>, vector<16x128xf32>
    %191 = arith.truncf %190 : vector<16x128xf32> to vector<16x128xbf16>
    %c9_175 = arith.constant 9 : index
    %c0_176 = arith.constant 0 : index
    %192 = vector.load %arg8[%c9_175, %c0_176] : memref<32x128xf32, #tpu.memory_space<vmem>>, vector<16x128xf32>
    %193 = arith.truncf %192 : vector<16x128xf32> to vector<16x128xbf16>
    %c10_177 = arith.constant 10 : index
    %c0_178 = arith.constant 0 : index
    %194 = vector.load %arg8[%c10_177, %c0_178] : memref<32x128xf32, #tpu.memory_space<vmem>>, vector<16x128xf32>
    %195 = arith.truncf %194 : vector<16x128xf32> to vector<16x128xbf16>
    %c11_179 = arith.constant 11 : index
    %c0_180 = arith.constant 0 : index
    %196 = vector.load %arg8[%c11_179, %c0_180] : memref<32x128xf32, #tpu.memory_space<vmem>>, vector<16x128xf32>
    %197 = arith.truncf %196 : vector<16x128xf32> to vector<16x128xbf16>
    %c12_181 = arith.constant 12 : index
    %c0_182 = arith.constant 0 : index
    %198 = vector.load %arg8[%c12_181, %c0_182] : memref<32x128xf32, #tpu.memory_space<vmem>>, vector<16x128xf32>
    %199 = arith.truncf %198 : vector<16x128xf32> to vector<16x128xbf16>
    %c13_183 = arith.constant 13 : index
    %c0_184 = arith.constant 0 : index
    %200 = vector.load %arg8[%c13_183, %c0_184] : memref<32x128xf32, #tpu.memory_space<vmem>>, vector<16x128xf32>
    %201 = arith.truncf %200 : vector<16x128xf32> to vector<16x128xbf16>
    %202 = tpu.concatenate %183, %185, %187, %189, %191, %193, %195, %197, %199, %201 in 1 : vector<16x128xbf16>, vector<16x128xbf16>, vector<16x128xbf16>, vector<16x128xbf16>, vector<16x128xbf16>, vector<16x128xbf16>, vector<16x128xbf16>, vector<16x128xbf16>, vector<16x128xbf16>, vector<16x128xbf16> -> vector<16x1280xbf16>
    %c5_185 = arith.constant 5 : index
    %c0_186 = arith.constant 0 : index
    %c0_187 = arith.constant 0 : index
    %203 = vector.load %arg3[%c5_185, %c0_186, %c0_187] : memref<8x1280x128xbf16, #tpu.memory_space<vmem>>, vector<1x1280x128xbf16>
    %204 = vector.shape_cast %203 : vector<1x1280x128xbf16> to vector<1280x128xbf16>
    %c6_188 = arith.constant 6 : index
    %c0_189 = arith.constant 0 : index
    %c0_190 = arith.constant 0 : index
    %205 = vector.load %arg4[%c6_188, %c0_189, %c0_190] : memref<9x1x128xf32, #tpu.memory_space<vmem>>, vector<1x1x128xf32>
    %206 = vector.shape_cast %205 : vector<1x1x128xf32> to vector<1x128xf32>
    %cst_191 = arith.constant dense<0.000000e+00> : vector<16x128xf32>
    %207 = tpu.matmul %202, %204, %cst_191 {dimension_numbers = #tpu.dot_dimension_numbers<[1], [0], [0], [1], [0, 0, 1, 1], [], []>} : vector<16x1280xbf16>, vector<1280x128xbf16>, vector<16x128xf32> -> vector<16x128xf32>
    %208 = vector.broadcast %206 : vector<1x128xf32> to vector<16x128xf32>
    %209 = arith.addf %207, %208 : vector<16x128xf32>
    %cst_192 = arith.constant 0.000000e+00 : f32
    %210 = vector.broadcast %cst_192 : f32 to vector<16x128xf32>
    %211 = arith.maximumf %209, %210 : vector<16x128xf32>
    %c8_193 = arith.constant 8 : index
    %c0_194 = arith.constant 0 : index
    %212 = vector.load %arg9[%c8_193, %c0_194] : memref<32x128xf32, #tpu.memory_space<vmem>>, vector<16x128xf32>
    tpu.vector_store %arg9[%c8_193, %c0_194], %211 {strides = array<i32>} : memref<32x128xf32, #tpu.memory_space<vmem>>, vector<16x128xf32>,
    %c3_195 = arith.constant 3 : index
    %c0_196 = arith.constant 0 : index
    %213 = vector.load %arg9[%c3_195, %c0_196] : memref<32x128xf32, #tpu.memory_space<vmem>>, vector<17x128xf32>
    %214 = arith.truncf %213 : vector<17x128xf32> to vector<17x128xbf16>
    %c4_197 = arith.constant 4 : index
    %c0_198 = arith.constant 0 : index
    %215 = vector.load %arg9[%c4_197, %c0_198] : memref<32x128xf32, #tpu.memory_space<vmem>>, vector<17x128xf32>
    %216 = arith.truncf %215 : vector<17x128xf32> to vector<17x128xbf16>
    %c5_199 = arith.constant 5 : index
    %c0_200 = arith.constant 0 : index
    %217 = vector.load %arg9[%c5_199, %c0_200] : memref<32x128xf32, #tpu.memory_space<vmem>>, vector<17x128xf32>
    %218 = arith.truncf %217 : vector<17x128xf32> to vector<17x128xbf16>
    %c6_201 = arith.constant 6 : index
    %c0_202 = arith.constant 0 : index
    %219 = vector.load %arg9[%c6_201, %c0_202] : memref<32x128xf32, #tpu.memory_space<vmem>>, vector<17x128xf32>
    %220 = arith.truncf %219 : vector<17x128xf32> to vector<17x128xbf16>
    %c7_203 = arith.constant 7 : index
    %c0_204 = arith.constant 0 : index
    %221 = vector.load %arg9[%c7_203, %c0_204] : memref<32x128xf32, #tpu.memory_space<vmem>>, vector<17x128xf32>
    %222 = arith.truncf %221 : vector<17x128xf32> to vector<17x128xbf16>
    %c8_205 = arith.constant 8 : index
    %c0_206 = arith.constant 0 : index
    %223 = vector.load %arg9[%c8_205, %c0_206] : memref<32x128xf32, #tpu.memory_space<vmem>>, vector<17x128xf32>
    %224 = arith.truncf %223 : vector<17x128xf32> to vector<17x128xbf16>
    %c9_207 = arith.constant 9 : index
    %c0_208 = arith.constant 0 : index
    %225 = vector.load %arg9[%c9_207, %c0_208] : memref<32x128xf32, #tpu.memory_space<vmem>>, vector<17x128xf32>
    %226 = arith.truncf %225 : vector<17x128xf32> to vector<17x128xbf16>
    %c10_209 = arith.constant 10 : index
    %c0_210 = arith.constant 0 : index
    %227 = vector.load %arg9[%c10_209, %c0_210] : memref<32x128xf32, #tpu.memory_space<vmem>>, vector<17x128xf32>
    %228 = arith.truncf %227 : vector<17x128xf32> to vector<17x128xbf16>
    %c11_211 = arith.constant 11 : index
    %c0_212 = arith.constant 0 : index
    %229 = vector.load %arg9[%c11_211, %c0_212] : memref<32x128xf32, #tpu.memory_space<vmem>>, vector<17x128xf32>
    %230 = arith.truncf %229 : vector<17x128xf32> to vector<17x128xbf16>
    %c12_213 = arith.constant 12 : index
    %c0_214 = arith.constant 0 : index
    %231 = vector.load %arg9[%c12_213, %c0_214] : memref<32x128xf32, #tpu.memory_space<vmem>>, vector<17x128xf32>
    %232 = arith.truncf %231 : vector<17x128xf32> to vector<17x128xbf16>
    %233 = tpu.concatenate %214, %216, %218, %220, %222, %224, %226, %228, %230, %232 in 1 : vector<17x128xbf16>, vector<17x128xbf16>, vector<17x128xbf16>, vector<17x128xbf16>, vector<17x128xbf16>, vector<17x128xbf16>, vector<17x128xbf16>, vector<17x128xbf16>, vector<17x128xbf16>, vector<17x128xbf16> -> vector<17x1280xbf16>
    %c6_215 = arith.constant 6 : index
    %c0_216 = arith.constant 0 : index
    %c0_217 = arith.constant 0 : index
    %234 = vector.load %arg3[%c6_215, %c0_216, %c0_217] : memref<8x1280x128xbf16, #tpu.memory_space<vmem>>, vector<1x1280x128xbf16>
    %235 = vector.shape_cast %234 : vector<1x1280x128xbf16> to vector<1280x128xbf16>
    %c7_218 = arith.constant 7 : index
    %c0_219 = arith.constant 0 : index
    %c0_220 = arith.constant 0 : index
    %236 = vector.load %arg4[%c7_218, %c0_219, %c0_220] : memref<9x1x128xf32, #tpu.memory_space<vmem>>, vector<1x1x128xf32>
    %237 = vector.shape_cast %236 : vector<1x1x128xf32> to vector<1x128xf32>
    %cst_221 = arith.constant dense<0.000000e+00> : vector<17x128xf32>
    %238 = tpu.matmul %233, %235, %cst_221 {dimension_numbers = #tpu.dot_dimension_numbers<[1], [0], [0], [1], [0, 0, 1, 1], [], []>} : vector<17x1280xbf16>, vector<1280x128xbf16>, vector<17x128xf32> -> vector<17x128xf32>
    %239 = vector.broadcast %237 : vector<1x128xf32> to vector<17x128xf32>
    %240 = arith.addf %238, %239 : vector<17x128xf32>
    %cst_222 = arith.constant 0.000000e+00 : f32
    %241 = vector.broadcast %cst_222 : f32 to vector<17x128xf32>
    %242 = arith.maximumf %240, %241 : vector<17x128xf32>
    %c8_223 = arith.constant 8 : index
    %c0_224 = arith.constant 0 : index
    %243 = vector.load %arg8[%c8_223, %c0_224] : memref<32x128xf32, #tpu.memory_space<vmem>>, vector<17x128xf32>
    tpu.vector_store %arg8[%c8_223, %c0_224], %242 {strides = array<i32>} : memref<32x128xf32, #tpu.memory_space<vmem>>, vector<17x128xf32>,
    %c4_225 = arith.constant 4 : index
    %c0_226 = arith.constant 0 : index
    %244 = vector.load %arg8[%c4_225, %c0_226] : memref<32x128xf32, #tpu.memory_space<vmem>>, vector<16x128xf32>
    %245 = arith.truncf %244 : vector<16x128xf32> to vector<16x128xbf16>
    %c5_227 = arith.constant 5 : index
    %c0_228 = arith.constant 0 : index
    %246 = vector.load %arg8[%c5_227, %c0_228] : memref<32x128xf32, #tpu.memory_space<vmem>>, vector<16x128xf32>
    %247 = arith.truncf %246 : vector<16x128xf32> to vector<16x128xbf16>
    %c6_229 = arith.constant 6 : index
    %c0_230 = arith.constant 0 : index
    %248 = vector.load %arg8[%c6_229, %c0_230] : memref<32x128xf32, #tpu.memory_space<vmem>>, vector<16x128xf32>
    %249 = arith.truncf %248 : vector<16x128xf32> to vector<16x128xbf16>
    %c7_231 = arith.constant 7 : index
    %c0_232 = arith.constant 0 : index
    %250 = vector.load %arg8[%c7_231, %c0_232] : memref<32x128xf32, #tpu.memory_space<vmem>>, vector<16x128xf32>
    %251 = arith.truncf %250 : vector<16x128xf32> to vector<16x128xbf16>
    %c8_233 = arith.constant 8 : index
    %c0_234 = arith.constant 0 : index
    %252 = vector.load %arg8[%c8_233, %c0_234] : memref<32x128xf32, #tpu.memory_space<vmem>>, vector<16x128xf32>
    %253 = arith.truncf %252 : vector<16x128xf32> to vector<16x128xbf16>
    %c9_235 = arith.constant 9 : index
    %c0_236 = arith.constant 0 : index
    %254 = vector.load %arg8[%c9_235, %c0_236] : memref<32x128xf32, #tpu.memory_space<vmem>>, vector<16x128xf32>
    %255 = arith.truncf %254 : vector<16x128xf32> to vector<16x128xbf16>
    %c10_237 = arith.constant 10 : index
    %c0_238 = arith.constant 0 : index
    %256 = vector.load %arg8[%c10_237, %c0_238] : memref<32x128xf32, #tpu.memory_space<vmem>>, vector<16x128xf32>
    %257 = arith.truncf %256 : vector<16x128xf32> to vector<16x128xbf16>
    %c11_239 = arith.constant 11 : index
    %c0_240 = arith.constant 0 : index
    %258 = vector.load %arg8[%c11_239, %c0_240] : memref<32x128xf32, #tpu.memory_space<vmem>>, vector<16x128xf32>
    %259 = arith.truncf %258 : vector<16x128xf32> to vector<16x128xbf16>
    %c12_241 = arith.constant 12 : index
    %c0_242 = arith.constant 0 : index
    %260 = vector.load %arg8[%c12_241, %c0_242] : memref<32x128xf32, #tpu.memory_space<vmem>>, vector<16x128xf32>
    %261 = arith.truncf %260 : vector<16x128xf32> to vector<16x128xbf16>
    %c13_243 = arith.constant 13 : index
    %c0_244 = arith.constant 0 : index
    %262 = vector.load %arg8[%c13_243, %c0_244] : memref<32x128xf32, #tpu.memory_space<vmem>>, vector<16x128xf32>
    %263 = arith.truncf %262 : vector<16x128xf32> to vector<16x128xbf16>
    %264 = tpu.concatenate %245, %247, %249, %251, %253, %255, %257, %259, %261, %263 in 1 : vector<16x128xbf16>, vector<16x128xbf16>, vector<16x128xbf16>, vector<16x128xbf16>, vector<16x128xbf16>, vector<16x128xbf16>, vector<16x128xbf16>, vector<16x128xbf16>, vector<16x128xbf16>, vector<16x128xbf16> -> vector<16x1280xbf16>
    %c7_245 = arith.constant 7 : index
    %c0_246 = arith.constant 0 : index
    %c0_247 = arith.constant 0 : index
    %265 = vector.load %arg3[%c7_245, %c0_246, %c0_247] : memref<8x1280x128xbf16, #tpu.memory_space<vmem>>, vector<1x1280x128xbf16>
    %266 = vector.shape_cast %265 : vector<1x1280x128xbf16> to vector<1280x128xbf16>
    %c8_248 = arith.constant 8 : index
    %c0_249 = arith.constant 0 : index
    %c0_250 = arith.constant 0 : index
    %267 = vector.load %arg4[%c8_248, %c0_249, %c0_250] : memref<9x1x128xf32, #tpu.memory_space<vmem>>, vector<1x1x128xf32>
    %268 = vector.shape_cast %267 : vector<1x1x128xf32> to vector<1x128xf32>
    %cst_251 = arith.constant dense<0.000000e+00> : vector<16x128xf32>
    %269 = tpu.matmul %264, %266, %cst_251 {dimension_numbers = #tpu.dot_dimension_numbers<[1], [0], [0], [1], [0, 0, 1, 1], [], []>} : vector<16x1280xbf16>, vector<1280x128xbf16>, vector<16x128xf32> -> vector<16x128xf32>
    %270 = vector.broadcast %268 : vector<1x128xf32> to vector<16x128xf32>
    %271 = arith.addf %269, %270 : vector<16x128xf32>
    %cst_252 = arith.constant 0.000000e+00 : f32
    %272 = vector.broadcast %cst_252 : f32 to vector<16x128xf32>
    %273 = arith.maximumf %271, %272 : vector<16x128xf32>
    %c8_253 = arith.constant 8 : index
    %c0_254 = arith.constant 0 : index
    %274 = vector.load %arg9[%c8_253, %c0_254] : memref<32x128xf32, #tpu.memory_space<vmem>>, vector<16x128xf32>
    tpu.vector_store %arg9[%c8_253, %c0_254], %273 {strides = array<i32>} : memref<32x128xf32, #tpu.memory_space<vmem>>, vector<16x128xf32>,
    %c4_255 = arith.constant 4 : index
    %c0_256 = arith.constant 0 : index
    %275 = vector.load %arg9[%c4_255, %c0_256] : memref<32x128xf32, #tpu.memory_space<vmem>>, vector<15x128xf32>
    %276 = arith.truncf %275 : vector<15x128xf32> to vector<15x128xbf16>
    %c5_257 = arith.constant 5 : index
    %c0_258 = arith.constant 0 : index
    %277 = vector.load %arg9[%c5_257, %c0_258] : memref<32x128xf32, #tpu.memory_space<vmem>>, vector<15x128xf32>
    %278 = arith.truncf %277 : vector<15x128xf32> to vector<15x128xbf16>
    %c6_259 = arith.constant 6 : index
    %c0_260 = arith.constant 0 : index
    %279 = vector.load %arg9[%c6_259, %c0_260] : memref<32x128xf32, #tpu.memory_space<vmem>>, vector<15x128xf32>
    %280 = arith.truncf %279 : vector<15x128xf32> to vector<15x128xbf16>
    %c7_261 = arith.constant 7 : index
    %c0_262 = arith.constant 0 : index
    %281 = vector.load %arg9[%c7_261, %c0_262] : memref<32x128xf32, #tpu.memory_space<vmem>>, vector<15x128xf32>
    %282 = arith.truncf %281 : vector<15x128xf32> to vector<15x128xbf16>
    %c8_263 = arith.constant 8 : index
    %c0_264 = arith.constant 0 : index
    %283 = vector.load %arg9[%c8_263, %c0_264] : memref<32x128xf32, #tpu.memory_space<vmem>>, vector<15x128xf32>
    %284 = arith.truncf %283 : vector<15x128xf32> to vector<15x128xbf16>
    %c9_265 = arith.constant 9 : index
    %c0_266 = arith.constant 0 : index
    %285 = vector.load %arg9[%c9_265, %c0_266] : memref<32x128xf32, #tpu.memory_space<vmem>>, vector<15x128xf32>
    %286 = arith.truncf %285 : vector<15x128xf32> to vector<15x128xbf16>
    %c10_267 = arith.constant 10 : index
    %c0_268 = arith.constant 0 : index
    %287 = vector.load %arg9[%c10_267, %c0_268] : memref<32x128xf32, #tpu.memory_space<vmem>>, vector<15x128xf32>
    %288 = arith.truncf %287 : vector<15x128xf32> to vector<15x128xbf16>
    %c11_269 = arith.constant 11 : index
    %c0_270 = arith.constant 0 : index
    %289 = vector.load %arg9[%c11_269, %c0_270] : memref<32x128xf32, #tpu.memory_space<vmem>>, vector<15x128xf32>
    %290 = arith.truncf %289 : vector<15x128xf32> to vector<15x128xbf16>
    %c12_271 = arith.constant 12 : index
    %c0_272 = arith.constant 0 : index
    %291 = vector.load %arg9[%c12_271, %c0_272] : memref<32x128xf32, #tpu.memory_space<vmem>>, vector<15x128xf32>
    %292 = arith.truncf %291 : vector<15x128xf32> to vector<15x128xbf16>
    %c13_273 = arith.constant 13 : index
    %c0_274 = arith.constant 0 : index
    %293 = vector.load %arg9[%c13_273, %c0_274] : memref<32x128xf32, #tpu.memory_space<vmem>>, vector<15x128xf32>
    %294 = arith.truncf %293 : vector<15x128xf32> to vector<15x128xbf16>
    %295 = tpu.concatenate %276, %278, %280, %282, %284, %286, %288, %290, %292, %294 in 1 : vector<15x128xbf16>, vector<15x128xbf16>, vector<15x128xbf16>, vector<15x128xbf16>, vector<15x128xbf16>, vector<15x128xbf16>, vector<15x128xbf16>, vector<15x128xbf16>, vector<15x128xbf16>, vector<15x128xbf16> -> vector<15x1280xbf16>
    %c0_275 = arith.constant 0 : index
    %c0_276 = arith.constant 0 : index
    %296 = vector.load %arg5[%c0_275, %c0_276] : memref<1280x1024xbf16, #tpu.memory_space<vmem>>, vector<1280x1024xbf16>
    %c0_277 = arith.constant 0 : index
    %c0_278 = arith.constant 0 : index
    %297 = vector.load %arg6[%c0_277, %c0_278] : memref<1x1024xf32, #tpu.memory_space<vmem>>, vector<1x1024xf32>
    %cst_279 = arith.constant dense<0.000000e+00> : vector<15x1024xf32>
    %298 = tpu.matmul %295, %296, %cst_279 {dimension_numbers = #tpu.dot_dimension_numbers<[1], [0], [0], [1], [0, 0, 1, 1], [], []>} : vector<15x1280xbf16>, vector<1280x1024xbf16>, vector<15x1024xf32> -> vector<15x1024xf32>
    %299 = vector.broadcast %297 : vector<1x1024xf32> to vector<15x1024xf32>
    %300 = arith.addf %298, %299 : vector<15x1024xf32>
    %c0_280 = arith.constant 0 : index
    %c0_281 = arith.constant 0 : index
    %c0_282 = arith.constant 0 : index
    %301 = vector.load %arg7[%c0_280, %c0_281, %c0_282] : memref<1x15x1024xf32, #tpu.memory_space<vmem>>, vector<1x15x1024xf32>
    %302 = vector.shape_cast %301 : vector<1x15x1024xf32> to vector<15x1024xf32>
    %303 = vector.shape_cast %300 : vector<15x1024xf32> to vector<1x15x1024xf32>
    tpu.vector_store %arg7[%c0_280, %c0_281, %c0_282], %303 {strides = array<i32>} : memref<1x15x1024xf32, #tpu.memory_space<vmem>>, vector<1x15x1024xf32>,
    return
  }
  func.func @transform_0(%arg0: i32) -> (i32, i32, i32) {
    %c0_i32 = arith.constant 0 : i32
    %c0_i32_0 = arith.constant 0 : i32
    %c0_i32_1 = arith.constant 0 : i32
    return %arg0, %c0_i32, %c0_i32_0 : i32, i32, i32
  }
  func.func @transform_1(%arg0: i32) -> (i32, i32) {
    %c0_i32 = arith.constant 0 : i32
    %c0_i32_0 = arith.constant 0 : i32
    %c0_i32_1 = arith.constant 0 : i32
    return %c0_i32, %c0_i32_0 : i32, i32
  }
  func.func @transform_2(%arg0: i32) -> (i32, i32, i32) {
    %c0_i32 = arith.constant 0 : i32
    %c0_i32_0 = arith.constant 0 : i32
    %c0_i32_1 = arith.constant 0 : i32
    %c0_i32_2 = arith.constant 0 : i32
    return %c0_i32, %c0_i32_0, %c0_i32_1 : i32, i32, i32
  }
  func.func @transform_3(%arg0: i32) -> (i32, i32, i32) {
    %c0_i32 = arith.constant 0 : i32
    %c0_i32_0 = arith.constant 0 : i32
    %c0_i32_1 = arith.constant 0 : i32
    %c0_i32_2 = arith.constant 0 : i32
    return %c0_i32, %c0_i32_0, %c0_i32_1 : i32, i32, i32
  }
  func.func @transform_4(%arg0: i32) -> (i32, i32) {
    %c0_i32 = arith.constant 0 : i32
    %c0_i32_0 = arith.constant 0 : i32
    %c0_i32_1 = arith.constant 0 : i32
    return %c0_i32, %c0_i32_0 : i32, i32
  }
  func.func @transform_5(%arg0: i32) -> (i32, i32) {
    %c0_i32 = arith.constant 0 : i32
    %c0_i32_0 = arith.constant 0 : i32
    %c0_i32_1 = arith.constant 0 : i32
    return %c0_i32, %c0_i32_0 : i32, i32
  }
  func.func @transform_6(%arg0: i32) -> (i32, i32, i32) {
    %c0_i32 = arith.constant 0 : i32
    %c0_i32_0 = arith.constant 0 : i32
    %c0_i32_1 = arith.constant 0 : i32
    return %arg0, %c0_i32, %c0_i32_0 : i32, i32, i32
  }
}

</mosaic_0001>

<bundles_post_ra>
// kernel: psc10_forward.1
= control target key start
LH: loop header
LB: loop body
LE: loop exit
PB: predicated region body
PF: predicated region fallthrough
CT: control target
= control target key end

     0   :  { %11 = vsyncpa [#allocation5], 0  ;;  %s16761_s0 = inlined_call_operand.vmem [shape: f32[2,16,128], index: 0, kind: input, shape index: {}]   ;;  %s16762_s1 = inlined_call_operand.hbm [shape: bf16[640,128], index: 1, kind: input, shape index: {}]   ;;  %s16763_s2 = inlined_call_operand.hbm [shape: bf16[8,1280,128], index: 2, kind: input, shape index: {}]   ;;  %s16764_s3 = inlined_call_operand.hbm [shape: f32[9,1,128], index: 3, kind: input, shape index: {}]   ;;  %s16765_s4 = inlined_call_operand.hbm [shape: bf16[1280,1024], index: 4, kind: input, shape index: {}]   ;;  %s16766_s5 = inlined_call_operand.hbm [shape: f32[1,1024], index: 5, kind: input, shape index: {}]   ;;  %s16767_s6 = inlined_call_operand.vmem [shape: f32[2,15,1024], index: 6, kind: output, shape index: {}]  }
   0x1   :  { %12 = vsyncpa [#allocation7], 0 }
   0x2   :  { %13 = vsyncpa [#allocation10], 0  ;;  %s16384_s21 = smov 0  }
   0x3 LB: > { %s16390_s22 = sadd.s32 4294967295, %s16334_s21   ;;  %p13015_p0 = scmp.ge.s32.totalorder %s16334_s21, 1  ;;  %s16334_s21 = sphi %s16384_s21, %s19_s21  }
   0x4   : > { %p181_p1 = scmp.lt.s32.totalorder %s16334_s21, 3  ;;  %p15474_p2 = scmp.eq.s32.totalorder %s16390_s22, 0 }
   0x5   : > { %s16336_s24 = smov [#allocation6]   ;;  %s16337_s26 = smov [#allocation9]  }
   0x6   : > { %p16395_p3 = pnand %p13015_p0, %p181_p1  ;;  %s206_s25 = sshll.u32 %s16336_s24, 4  ;;  %s207_s25 = int_to_ptr.vmem [resolvable:$true] %s206_s25 }
   0x7   : > { %s232_s27 = sshll.u32 %s16337_s26, 4  ;;  %s16338_s29 = smov [#allocation4]   ;;  %s16401_s27 = int_to_ptr.vmem [resolvable:$true] %s232_s27 }
   0x8   : > { %p15458_p4 = pneg %p16395_p3  ;;  %s16409_s30 = sshll.u32 %s16338_s29, 4  ;;  %s194_s30 = int_to_ptr.vmem [resolvable:$true] %s16409_s30 }
   0x9   : > { %s16197_s8 = scalar_lea.vmem %s207_s25, 81920  ;;  %p16205_p10 = scmp.lt.s32.totalorder %s207_s25, %s207_s25 }
   0xa   : > { %p16405_p5 = pnand %p15474_p2, %p15458_p4  ;;  %p16198_p7 = scmp.ne.s32.totalorder %s207_s25, %s16197_s8 }
   0xb   : > { %p16206_p11 = scmp.lt.s32.totalorder %s16197_s8, %s16197_s8 }
   0xc   : > { %p16413_p6 = pneg %p16405_p5 }
   0xd   : > { %p16207_p12 = por %p16206_p11, %p16205_p10 }
   0xe   : > { %p16200_p8 = pnand %p16198_p7, %p16413_p6 }
  0x10   : > { %p16201_p9 = pneg %p16200_p8 }
  0x12   : > { %p16208_p13 = pnand %p16207_p12, %p16201_p9 }
  0x14   : > { %16211 = shalt.err (!%p16208_p13)
}
  0x15   : > { %s16339_s9 = smov 64   ;;  %s16340_s10 = smov 4  }
  0x16   : > { %15464 = dma.hbm_to_vmem [thread:$0]  (!%p16405_p5), %s16763_s2, 81920, %s207_s25, [#allocation7], %s16339_s9, %s16339_s9, %s16340_s10  }
  0x17   : > { %s16223_s13 = scalar_lea.vmem %s16401_s27, 81920  ;;  %p16231_p7 = scmp.lt.s32.totalorder %s16401_s27, %s16401_s27 }
  0x18   : > { %p16224_p0 = scmp.ne.s32.totalorder %s16401_s27, %s16223_s13  ;;  %p16232_p8 = scmp.lt.s32.totalorder %s16223_s13, %s16223_s13 }
  0x1a   : > { %p16226_p1 = pnand %p16224_p0, %p16413_p6  ;;  %p16233_p9 = por %p16232_p8, %p16231_p7 }
  0x1c   : > { %p16227_p4 = pneg %p16226_p1 }
  0x1e   : > { %p16234_p10 = pnand %p16233_p9, %p16227_p4 }
  0x20   : > { %16237 = shalt.err (!%p16234_p10)
}
  0x21   : > { %s16341_s14 = smov 512   ;;  %s16342_s15 = smov 32  }
  0x22   : > { %15470 = dma.hbm_to_vmem [thread:$0]  (!%p16405_p5), %s16765_s4, 81920, %s16401_s27, [#allocation10], %s16341_s14, %s16341_s14, %s16342_s15  }
  0x23   : > { %s16343_s18 = smov [#allocation8]   ;;  %s16249_s20 = scalar_lea.vmem %s194_s30, 5120 }
  0x24   : > { %s219_s19 = sshll.u32 %s16343_s18, 4  ;;  %p16250_p11 = scmp.ne.s32.totalorder %s194_s30, %s16249_s20  ;;  %s220_s19 = int_to_ptr.vmem [resolvable:$true] %s219_s19 }
  0x25   : > { %p16257_p0 = scmp.lt.s32.totalorder %s194_s30, %s194_s30  ;;  %p16258_p1 = scmp.lt.s32.totalorder %s16249_s20, %s16249_s20 }
  0x26   : > { %p16252_p12 = pnand %p16250_p11, %p16413_p6 }
  0x27   : > { %p16259_p4 = por %p16258_p1, %p16257_p0 }
  0x28   : > { %p16253_p13 = pneg %p16252_p12 }
  0x2a   : > { %p16260_p7 = pnand %p16259_p4, %p16253_p13 }
  0x2c   : > { %16263 = shalt.err (!%p16260_p7)
}
  0x2d   : > { %15461 = dma.hbm_to_vmem [thread:$0]  (!%p16405_p5), %s16762_s1, 5120, %s194_s30, [#allocation5], %s16339_s9, %s16339_s9, %s16340_s10  }
  0x2e   : > { %s16275_s26 = scalar_lea.vmem %s220_s19, 144  ;;  %s16282_s27 = scalar_lea.vmem %s220_s19, 160 }
  0x2f   : > { %p16276_p8 = scmp.ne.s32.totalorder %s220_s19, %s16275_s26  ;;  %p16283_p11 = scmp.lt.s32.totalorder %s220_s19, %s220_s19 }
  0x30   : > { %p16284_p12 = scmp.lt.s32.totalorder %s16282_s27, %s16275_s26 }
  0x31   : > { %p16278_p9 = pnand %p16276_p8, %p16413_p6 }
  0x32   : > { %p16285_p13 = por %p16284_p12, %p16283_p11 }
  0x33   : > { %p16279_p10 = pneg %p16278_p9 }
  0x35   : > { %p16286_p0 = pnand %p16285_p13, %p16279_p10 }
  0x37   : > { %16289 = shalt.err (!%p16286_p0)
}
  0x38   : > { %s16344_s29 = smov 16   ;;  %s16345_s8 = smov 1  }
  0x39   : > { %15467 = dma.hbm_to_vmem [thread:$0]  (!%p16405_p5), %s16764_s3, 144, %s220_s19, [#allocation7], %s16344_s29, %s16344_s29, %s16345_s8  }
  0x3a   : > { %s16346_s30 = smov [#allocation11]  }
  0x3b   : > { %s246_s9 = sshll.u32 %s16346_s30, 4  ;;  %s247_s9 = int_to_ptr.vmem [resolvable:$true] %s246_s9 }
  0x3c   : > { %s16301_s10 = scalar_lea.vmem %s247_s9, 128  ;;  %p16309_p8 = scmp.lt.s32.totalorder %s247_s9, %s247_s9 }
  0x3d   : > { %p16302_p1 = scmp.ne.s32.totalorder %s247_s9, %s16301_s10  ;;  %p16310_p9 = scmp.lt.s32.totalorder %s16301_s10, %s16301_s10 }
  0x3f   : > { %p16304_p4 = pnand %p16302_p1, %p16413_p6  ;;  %p16311_p10 = por %p16310_p9, %p16309_p8 }
  0x41   : > { %p16305_p7 = pneg %p16304_p4 }
  0x43   : > { %p16312_p11 = pnand %p16311_p10, %p16305_p7 }
  0x45   : > { %16315 = shalt.err (!%p16312_p11)
}
  0x46   : > { %15473 = dma.hbm_to_vmem [thread:$0]  (!%p16405_p5), %s16766_s5, 128, %s247_s9, [#allocation10]  }
  0x47   : > { %267 = sbr.rel (%p16395_p3) target bundleno = 3387 (0xd3b), region = 44 }
  0x4c   : > { %16321 = dma.done.wait (%p15474_p2), [#allocation5], 5120  }
  0x4d   : > { %16323 = vsyncadd (%p15474_p2), [#allocation5], 4294962176 }
  0x4e   : > { %16325 = dma.done.wait (%p15474_p2), [#allocation7], 82064  }
  0x4f   : > { %16327 = vsyncadd (%p15474_p2), [#allocation7], 4294885232 }
  0x50   : > { %16329 = dma.done.wait (%p15474_p2), [#allocation10], 82048  }
  0x51   : > { %16331 = vsyncadd (%p15474_p2), [#allocation10], 4294885248  ;;  %v16347_v0 = vmov 0.0   ;;  %v15505_v1 = vld [vmem:[#allocation4 + $0x78] sm:$0xff]   ;;  %v15509_v5 = vld [vmem:[#allocation4 + $0x70] sm:$0xff]   ;;  %p313_p2 = scmp.lt.s32.totalorder %s16390_s22, 1 }
  0x52   : > { %324 = vst [vmem:[#allocation2] sm:$0xff] %v16347_v0  ;;  %327 = vst [vmem:[#allocation2 + $0x18] sm:$0xff] %v16347_v0  ;;  %v15506_v2 = vld [vmem:[#allocation4 + $0x38] sm:$0xff]   ;;  %14365 = vmatprep.subr.bf16.mxu0 %v15505_v1  ;;  %v15510_v6 = vld [vmem:[#allocation4 + $0x30] sm:$0xff]   ;;  %vm16348_vm0 = vmmov 0  }
  0x53   : > { %328 = vst [vmem:[#allocation3] sm:$0xff] %v16347_v0  ;;  %331 = vst [vmem:[#allocation3 + $0x18] sm:$0xff] %v16347_v0  ;;  %v15507_v3 = vld [vmem:[#allocation4 + $0xf8] sm:$0xff]   ;;  %14366 = vmatpush3.bf16.msra.mxu0 %v15506_v2  ;;  %v15511_v7 = vld [vmem:[#allocation4 + $0xf0] sm:$0xff]   ;;  %s16772_s22 = smov (!%p313_p2, %s16390_s22), 1 }
  0x54   : > { %v15508_v4 = vld [vmem:[#allocation4 + $0xb8] sm:$0xff]   ;;  %14387 = vmatprep.subr.bf16.mxu1 %v15507_v3  ;;  %14367 = vmatprep.subr.bf16.mxu0 %v15509_v5  ;;  %v15512_v8 = vld [vmem:[#allocation4 + $0xb0] sm:$0xff]   ;;  %v15513_v9 = vld [vmem:[#allocation4 + $0x68] sm:$0xff]   ;;  %s14363_s23 = sshll.u32 %s16772_s22, 4  ;;  %s14364_s16 = sshll.u32 %s16772_s22, 7 }
  0x55   : > { %14388 = vmatpush3.bf16.msra.mxu1 %v15508_v4  ;;  %v15514_v10 = vld [vmem:[#allocation4 + $0x28] sm:$0xff]   ;;  %v15517_v13 = vld [vmem:[#allocation4 + $0x60] sm:$0xff]   ;;  %v15521_v17 = vld [vmem:[#allocation4 + $0x58] sm:$0xff]   ;;  %s317_s15 = scalar_lea.vmem %s16761_s0, %s14363_s23  ;;  %s16708_s22 = scalar_lea.vmem %s16767_s6, %s14364_s16 }
  0x56   : > { %14389 = vmatprep.subr.bf16.mxu1 %v15511_v7  ;;  %v15515_v11 = vld [vmem:[#allocation4 + $0xe8] sm:$0xff]   ;;  %v15518_v14 = vld [vmem:[#allocation4 + $0x20] sm:$0xff]   ;;  %v15522_v18 = vld [vmem:[#allocation4 + $0x18] sm:$0xff]  }
  0x57   : > { %14368 = vmatpush3.bf16.msra.mxu0 %v15510_v6  ;;  %v15516_v12 = vld [vmem:[#allocation4 + $0xa8] sm:$0xff]   ;;  %v15519_v15 = vld [vmem:[#allocation4 + $0xe0] sm:$0xff]   ;;  %v15523_v19 = vld [vmem:[#allocation4 + $0xd8] sm:$0xff]  }
  0x58   : > { %14369 = vmatprep.subr.bf16.mxu0 %v15513_v9  ;;  %v15520_v16 = vld [vmem:[#allocation4 + $0xa0] sm:$0xff]   ;;  %v15524_v20 = vld [vmem:[#allocation4 + $0x98] sm:$0xff]   ;;  %v15525_v21 = vld [vmem:[#allocation4 + $0x50] sm:$0xff]  }
  0x59   : > { %14390 = vmatpush3.bf16.msra.mxu1 %v15512_v8  ;;  %v15526_v22 = vld [vmem:[#allocation4 + $0x10] sm:$0xff]   ;;  %v15529_v25 = vld [vmem:[#allocation4 + $0x48] sm:$0xff]   ;;  %v15533_v29 = vld [vmem:[#allocation4 + $0x40] sm:$0xff]  }
  0x5a   : > { %14391 = vmatprep.subr.bf16.mxu1 %v15515_v11  ;;  %v15527_v23 = vld [vmem:[#allocation4 + $0xd0] sm:$0xff]   ;;  %v15530_v26 = vld [vmem:[#allocation4 + $0x8] sm:$0xff]   ;;  %v15534_v30 = vld [vmem:[#allocation4] sm:$0xff]  }
  0x5b   : > { %14370 = vmatpush3.bf16.msra.mxu0 %v15514_v10  ;;  %v15528_v24 = vld [vmem:[#allocation4 + $0x90] sm:$0xff]   ;;  %v15531_v27 = vld [vmem:[#allocation4 + $0xc8] sm:$0xff]   ;;  %v15535_v31 = vld [vmem:[#allocation4 + $0xc0] sm:$0xff]  }
  0x5c   : > { %14371 = vmatprep.subr.bf16.mxu0 %v15517_v13  ;;  %v15532_v28 = vld [vmem:[#allocation4 + $0x88] sm:$0xff]   ;;  %v332_v32 = vld [vmem:[%s317_s15] sm:$0xff]  ;;  %v15537_v35 = vld [vmem:[#allocation4 + $0x138] sm:$0xff]  }
  0x5d   : > { %14392 = vmatpush3.bf16.msra.mxu1 %v15516_v12  ;;  %v333_v33 = vld [vmem:[%s317_s15 + $0x8] sm:$0xff]  ;;  %334 = vst [vmem:[#allocation2 + $0x8] sm:$0xff] %v332_v32  ;;  %v15536_v34 = vld [vmem:[#allocation4 + $0x80] sm:$0xff]   ;;  %v15538_v46 = vld [vmem:[#allocation4 + $0x130] sm:$0xff]  }
  0x5e   : > { %14393 = vmatprep.subr.bf16.mxu1 %v15519_v15  ;;  %335 = vst [vmem:[#allocation2 + $0x10] sm:$0xff] %v333_v33  ;;  %v344_v43 = vpack.c.bf16 %v333_v33, %v332_v32  ;;  %v15539_v47 = vld [vmem:[#allocation4 + $0x128] sm:$0xff]   ;;  %v15540_v48 = vld [vmem:[#allocation4 + $0x120] sm:$0xff]   ;;  %v15541_v49 = vld [vmem:[#allocation4 + $0x118] sm:$0xff]  }
  0x5f   : > { %14372 = vmatpush3.bf16.msra.mxu0 %v15518_v14  ;;  %v15542_v50 = vld [vmem:[#allocation4 + $0x110] sm:$0xff]   ;;  %v15543_v51 = vld [vmem:[#allocation4 + $0x108] sm:$0xff]   ;;  %v15544_v52 = vld [vmem:[#allocation4 + $0x100] sm:$0xff]  }
  0x60   : > { %14373 = vmatprep.subr.bf16.mxu0 %v15521_v17  ;;  %v15545_v56 = vld [vmem:[#allocation6 + $0x78] sm:$0xff]   ;;  %v15549_v60 = vld [vmem:[#allocation6 + $0x70] sm:$0xff]   ;;  %v15553_v1 = vld [vmem:[#allocation6 + $0x68] sm:$0xff]  }
  0x61   : > { %14394 = vmatpush3.bf16.msra.mxu1 %v15520_v16  ;;  %v15546_v57 = vld [vmem:[#allocation6 + $0xf8] sm:$0xff]   ;;  %v15550_v61 = vld [vmem:[#allocation6 + $0xf0] sm:$0xff]   ;;  %v15554_v2 = vld [vmem:[#allocation6 + $0xe8] sm:$0xff]  }
  0x62   : > { %14395 = vmatprep.subr.bf16.mxu1 %v15523_v19  ;;  %v15547_v58 = vld [vmem:[#allocation6 + $0x38] sm:$0xff]   ;;  %v15551_v62 = vld [vmem:[#allocation6 + $0x30] sm:$0xff]   ;;  %v15556_v3 = vld [vmem:[#allocation6 + $0xa8] sm:$0xff]  }
  0x63   : > { %14374 = vmatpush3.bf16.msra.mxu0 %v15522_v18  ;;  %v15548_v59 = vld [vmem:[#allocation6 + $0xb8] sm:$0xff]   ;;  %v15552_v63 = vld [vmem:[#allocation6 + $0xb0] sm:$0xff]   ;;  %v15557_v4 = vld [vmem:[#allocation6 + $0x60] sm:$0xff]  }
  0x64   : > { %14375 = vmatprep.subr.bf16.mxu0 %v15525_v21  ;;  %v339_v36 = vld [vmem:[#allocation2 + $0x7] sm:$0xff]  ;;  %v15561_v8 = vld [vmem:[#allocation6 + $0x58] sm:$0xff]   ;;  %v15565_v12 = vld [vmem:[#allocation6 + $0x50] sm:$0xff]  }
  0x65   : > { %14396 = vmatpush3.bf16.msra.mxu1 %v15524_v20  ;;  %v340_v37 = vld [vmem:[#allocation2 + $0xf] sm:$0xff]  ;;  %v336_v38 = vld [vmem:[#allocation2 + $0x6] sm:$0xff]  ;;  %v15562_v9 = vld [vmem:[#allocation6 + $0xd8] sm:$0xff]  }
  0x66   : > { %14397 = vmatprep.subr.bf16.mxu1 %v15527_v23  ;;  %v341_v39 = vpack.c.bf16 %v340_v37, %v339_v36  ;;  %v337_v40 = vld [vmem:[#allocation2 + $0xe] sm:$0xff]  ;;  %v15558_v5 = vld [vmem:[#allocation6 + $0xe0] sm:$0xff]   ;;  %v15563_v10 = vld [vmem:[#allocation6 + $0x18] sm:$0xff]  }
  0x67   : > { %14376 = vmatpush3.bf16.msra.mxu0 %v15526_v22  ;;  %v345_v41 = vld [vmem:[#allocation2 + $0x9] sm:$0xff]  ;;  %v346_v42 = vld [vmem:[#allocation2 + $0x11] sm:$0xff]  ;;  %v338_v44 = vpack.c.bf16 %v337_v40, %v336_v38  ;;  %v15559_v6 = vld [vmem:[#allocation6 + $0x20] sm:$0xff]  }
  0x68   : > { %14377 = vmatprep.subr.bf16.mxu0 %v15529_v25  ;;  %v347_v45 = vpack.c.bf16 %v346_v42, %v345_v41  ;;  %710 = vmatprep.mubr.bf16.mxu0 %v341_v39  ;;  %v348_v53 = vld [vmem:[#allocation2 + $0xa] sm:$0xff]  ;;  %v349_v54 = vld [vmem:[#allocation2 + $0x12] sm:$0xff]  ;;  %v15560_v7 = vld [vmem:[#allocation6 + $0xa0] sm:$0xff]  }
  0x69   : > { %14398 = vmatpush3.bf16.msra.mxu1 %v15528_v24  ;;  %v350_v55 = vpack.c.bf16 %v349_v54, %v348_v53  ;;  %v15564_v11 = vld [vmem:[#allocation6 + $0x98] sm:$0xff]   ;;  %v15566_v13 = vld [vmem:[#allocation6 + $0xd0] sm:$0xff]   ;;  %v15569_v16 = vld [vmem:[#allocation6 + $0x48] sm:$0xff]  }
  0x6a   : > { %14399 = vmatprep.subr.bf16.mxu1 %v15531_v27  ;;  %751 = vmatprep.mubr.bf16.mxu1 %v347_v45  ;;  %v15567_v14 = vld [vmem:[#allocation6 + $0x10] sm:$0xff]   ;;  %v15570_v17 = vld [vmem:[#allocation6 + $0xc8] sm:$0xff]   ;;  %v15573_v20 = vld [vmem:[#allocation6 + $0x40] sm:$0xff]  }
  0x6b   : > { %14378 = vmatpush3.bf16.msra.mxu0 %v15530_v26  ;;  %v15568_v15 = vld [vmem:[#allocation6 + $0x90] sm:$0xff]   ;;  %v15571_v18 = vld [vmem:[#allocation6 + $0x8] sm:$0xff]   ;;  %v15574_v21 = vld [vmem:[#allocation6 + $0xc0] sm:$0xff]  }
  0x6c   : > { %14379 = vmatprep.subr.bf16.mxu0 %v15533_v29  ;;  %v15572_v19 = vld [vmem:[#allocation6 + $0x88] sm:$0xff]   ;;  %v15575_v22 = vld [vmem:[#allocation6] sm:$0xff]   ;;  %v15577_v24 = vld [vmem:[#allocation6 + $0x178] sm:$0xff]  }
  0x6d   : > { %14400 = vmatpush3.bf16.msra.mxu1 %v15532_v28  ;;  %v15576_v23 = vld [vmem:[#allocation6 + $0x80] sm:$0xff]   ;;  %v15578_v25 = vld [vmem:[#allocation6 + $0x1f8] sm:$0xff]  }
  0x6e   : > { %14401 = vmatprep.subr.bf16.mxu1 %v15535_v31  ;;  %v13032_v31 = vld [vmem:[#allocation8] ss:$0 sm:$0xff] }
  0x6f   : > { %14380 = vmatpush3.bf16.msra.mxu0 %v15534_v30 }
  0x70   : > { %15418 = vmatprep.subr.bf16.mxu0 %v16347_v0 }
  0x71   : > { %14402 = vmatpush3.bf16.msra.mxu1 %v15536_v34 }
  0x72   : > { %711 = vmatmul.mubr.bf16.vlgmr.msra.gmra.mxu0 %v338_v44  ;;  %14418 = vmatprep.subr.bf16.mxu1 %v15545_v56  ;;  %v15580_v56 = vld [vmem:[#allocation6 + $0x1b8] sm:$0xff]  }
  0x73   : > { %15419 = vmatpush3.bf16.msra.mxu0 %v15537_v35  ;;  %15434 = vmatprep.mubr.msk.bf16.mxu0 %vm16348_vm0, %v16347_v0 }
  0x74   : > { %752 = vmatmul.mubr.bf16.vlgmr.msra.gmra.mxu1 %v344_v43  ;;  %15420 = vmatprep.subr.bf16.mxu0 %v16347_v0 }
  0x75   : > { %14419 = vmatpush3.bf16.msra.mxu1 %v15547_v58 }
  0x76   : > { %14420 = vmatprep.subr.bf16.mxu1 %v15549_v60 }
  0x77   : > { %15421 = vmatpush3.bf16.msra.mxu0 %v15538_v46 }
  0x78   : > { %15422 = vmatprep.subr.bf16.mxu0 %v16347_v0 }
  0x79   : > { %14421 = vmatpush3.bf16.msra.mxu1 %v15551_v62 }
  0x7a   : > { %14422 = vmatprep.subr.bf16.mxu1 %v15553_v1 }
  0x7b   : > { %15423 = vmatpush3.bf16.msra.mxu0 %v15539_v47 }
  0x7c   : > { %15424 = vmatprep.subr.bf16.mxu0 %v16347_v0 }
  0x7f   : > { %15425 = vmatpush3.bf16.msra.mxu0 %v15540_v48 }
  0x80   : > { %15426 = vmatprep.subr.bf16.mxu0 %v16347_v0 }
  0x83   : > { %15427 = vmatpush3.bf16.msra.mxu0 %v15541_v49 }
  0x84   : > { %15428 = vmatprep.subr.bf16.mxu0 %v16347_v0 }
  0x87   : > { %15429 = vmatpush3.bf16.msra.mxu0 %v15542_v50 }
  0x88   : > { %15430 = vmatprep.subr.bf16.mxu0 %v16347_v0 }
  0x8b   : > { %15431 = vmatpush3.bf16.msra.mxu0 %v15543_v51 }
  0x8c   : > { %15432 = vmatprep.subr.bf16.mxu0 %v16347_v0  ;;  %v15555_v0 = vld [vmem:[#allocation6 + $0x28] sm:$0xff]  }
  0x8d   : > { %14423 = vmatpush3.bf16.msra.mxu1 %v15555_v0 }
  0x8e   : > { %14424 = vmatprep.subr.bf16.mxu1 %v15557_v4  ;;  %v15582_v4 = vld [vmem:[#allocation6 + $0x1f0] sm:$0xff]  }
  0x8f   : > { %15433 = vmatpush3.bf16.msra.mxu0 %v15544_v52 }
  0x90   : > { %14446 = vmatprep.subr.bf16.mxu0 %v15546_v57 }
  0x91   : > { %14425 = vmatpush3.bf16.msra.mxu1 %v15559_v6 }
  0x92   : > { %15435 = vmatmul.mubr.bf16.vlgmr.msra.gmra.mxu0 %v350_v55  ;;  %14426 = vmatprep.subr.bf16.mxu1 %v15561_v8  ;;  %v15579_v55 = vld [vmem:[#allocation6 + $0x138] sm:$0xff]   ;;  %v15584_v8 = vld [vmem:[#allocation6 + $0x1b0] sm:$0xff]  }
  0x93   : > { %14447 = vmatpush3.bf16.msra.mxu0 %v15548_v59 }
  0x94   : > { %14448 = vmatprep.subr.bf16.mxu0 %v15550_v61 }
  0x95   : > { %14427 = vmatpush3.bf16.msra.mxu1 %v15563_v10  ;;  %v15586_v10 = vld [vmem:[#allocation6 + $0x1e8] sm:$0xff]  }
  0x96   : > { %14428 = vmatprep.subr.bf16.mxu1 %v15565_v12 }
  0x97   : > { %14449 = vmatpush3.bf16.msra.mxu0 %v15552_v63 }
  0x98   : > { %14450 = vmatprep.subr.bf16.mxu0 %v15554_v2 }
  0x99   : > { %14429 = vmatpush3.bf16.msra.mxu1 %v15567_v14  ;;  %v15588_v14 = vld [vmem:[#allocation6 + $0x1a8] sm:$0xff]  }
  0x9a   : > { %14430 = vmatprep.subr.bf16.mxu1 %v15569_v16 }
  0x9b   : > { %14451 = vmatpush3.bf16.msra.mxu0 %v15556_v3  ;;  %v15581_v3 = vld [vmem:[#allocation6 + $0x170] sm:$0xff]  }
  0x9c   : > { %14452 = vmatprep.subr.bf16.mxu0 %v15558_v5  ;;  %v15583_v5 = vld [vmem:[#allocation6 + $0x130] sm:$0xff]  }
  0x9d   : > { %14431 = vmatpush3.bf16.msra.mxu1 %v15571_v18  ;;  %v15590_v18 = vld [vmem:[#allocation6 + $0x1e0] sm:$0xff]  }
  0x9e   : > { %14432 = vmatprep.subr.bf16.mxu1 %v15573_v20 }
  0x9f   : > { %14453 = vmatpush3.bf16.msra.mxu0 %v15560_v7 }
  0xa0   : > { %14454 = vmatprep.subr.bf16.mxu0 %v15562_v9  ;;  %v15585_v9 = vld [vmem:[#allocation6 + $0x168] sm:$0xff]  }
  0xa1   : > { %14433 = vmatpush3.bf16.msra.mxu1 %v15575_v22  ;;  %v15592_v22 = vld [vmem:[#allocation6 + $0x1a0] sm:$0xff]  }
  0xa2   : > { %14474 = vmatprep.subr.bf16.mxu1 %v15577_v24 }
  0xa3   : > { %14455 = vmatpush3.bf16.msra.mxu0 %v15564_v11 }
  0xa4   : > { %14456 = vmatprep.subr.bf16.mxu0 %v15566_v13  ;;  %v15587_v13 = vld [vmem:[#allocation6 + $0x128] sm:$0xff]  }
  0xa7   : > { %14457 = vmatpush3.bf16.msra.mxu0 %v15568_v15 }
  0xa8   : > { %14458 = vmatprep.subr.bf16.mxu0 %v15570_v17  ;;  %v15589_v17 = vld [vmem:[#allocation6 + $0x160] sm:$0xff]  }
  0xab   : > { %14459 = vmatpush3.bf16.msra.mxu0 %v15572_v19 }
  0xac   : > { %14460 = vmatprep.subr.bf16.mxu0 %v15574_v21  ;;  %v15591_v21 = vld [vmem:[#allocation6 + $0x120] sm:$0xff]  }
  0xaf   : > { %14461 = vmatpush3.bf16.msra.mxu0 %v15576_v23 }
  0xb0   : > { %14502 = vmatprep.subr.bf16.mxu0 %v15578_v25  ;;  %v15593_v25 = vld [vmem:[#allocation6 + $0x158] sm:$0xff]  }
 0x132   : > { %v14381_v26 = vpop.f32.mrf.mxu0 }
 0x134   : > { %v14382_v27 = vpop.f32.mrf.mxu0  ;;  %v14403_v28 = vpop.f32.mrf.mxu1 }
 0x135   : > { %v14383_v32 = vadd.f32 %v14382_v27, %v14381_v26  ;;  %v15594_v26 = vld [vmem:[#allocation6 + $0x1d8] sm:$0xff]  }
 0x136   : > { %v14384_v29 = vpop.f32.mrf.mxu0  ;;  %v14404_v30 = vpop.f32.mrf.mxu1  ;;  %v15595_v27 = vld [vmem:[#allocation6 + $0x118] sm:$0xff]  }
 0x137   : > { %v713_v35 = vadd.f32 %v14383_v32, %v13032_v31  ;;  %v14405_v36 = vadd.f32 %v14404_v30, %v14403_v28  ;;  %v15596_v28 = vld [vmem:[#allocation6 + $0x198] sm:$0xff]   ;;  %v15598_v30 = vld [vmem:[#allocation6 + $0x1d0] sm:$0xff]  }
 0x138   : > { %v14385_v33 = vpop.f32.mrf.mxu0  ;;  %v14406_v34 = vpop.f32.mrf.mxu1  ;;  %v15600_v32 = vld [vmem:[#allocation6 + $0x190] sm:$0xff]  }
 0x139   : > { %v14386_v37 = vadd.f32 %v14385_v33, %v14384_v29  ;;  %v754_v41 = vadd.f32 %v14405_v36, %v713_v35  ;;  %v15597_v29 = vld [vmem:[#allocation6 + $0x150] sm:$0xff]   ;;  %v15601_v33 = vld [vmem:[#allocation6 + $0x148] sm:$0xff]  }
 0x13a   : > { %v14407_v38 = vpop.f32.mrf.mxu1  ;;  %v15603_v35 = vld [vmem:[#allocation6 + $0x108] sm:$0xff]  }
 0x13b   : > { %v716_v39 = vadd.f32 %v14386_v37, %v13032_v31  ;;  %v14408_v40 = vadd.f32 %v14407_v38, %v14406_v34  ;;  %v15599_v31 = vld [vmem:[#allocation6 + $0x110] sm:$0xff]   ;;  %v15602_v34 = vld [vmem:[#allocation6 + $0x1c8] sm:$0xff]   ;;  %v15605_v37 = vld [vmem:[#allocation6 + $0x140] sm:$0xff]  }
 0x13c   : > { %v15604_v36 = vld [vmem:[#allocation6 + $0x188] sm:$0xff]   ;;  %v15606_v38 = vld [vmem:[#allocation6 + $0x1c0] sm:$0xff]  }
 0x13d   : > { %v757_v46 = vadd.f32 %v14408_v40, %v716_v39  ;;  %v15607_v39 = vld [vmem:[#allocation6 + $0x100] sm:$0xff]  }
 0x13e   : > { %v15608_v40 = vld [vmem:[#allocation6 + $0x180] sm:$0xff]  }
 0x152   : > { %v794_v42 = vpop.f32.mrf.mxu0 }
 0x153   : > { %v16499_v43 = vadd.f32 %v794_v42, %v754_v41  ;;  %v15609_v41 = vld [vmem:[#allocation6 + $0x278] sm:$0xff]  }
 0x154   : > { %v15436_v44 = vpop.f32.mrf.mxu0  ;;  %v832_v42 = vld [vmem:[#allocation3 + $0x18] sm:$0x1] }
 0x155   : > { %v801_v45 = vmax.f32 %v16499_v43, 0.0 }
 0x156   : > { %v797_v47 = vpop.f32.mrf.mxu0 }
 0x157   : > { %803 = vst [vmem:[#allocation3 + $0x8] sm:$0xff] %v801_v45  ;;  %v798_v48 = vadd.f32 %v797_v47, %v757_v46  ;;  %v842_v46 = vld [vmem:[#allocation3 + $0x1a] sm:$0x1] }
 0x158   : > { %v15437_v49 = vpop.f32.mrf.mxu0 }
 0x159   : > { %v802_v50 = vmax.f32 %v798_v48, 0.0  ;;  %v15610_v48 = vld [vmem:[#allocation6 + $0x238] sm:$0xff]   ;;  %v15611_v49 = vld [vmem:[#allocation6 + $0x270] sm:$0xff]  }
 0x15b   : > { %804 = vst [vmem:[#allocation3 + $0x10] sm:$0xff] %v802_v50  ;;  %v833_v23 = vpack.c.bf16 %v802_v50, %v801_v45  ;;  %v834_v50 = vpack.c.bf16 %v832_v42, %v832_v42  ;;  %v15652_v42 = vld [vmem:[#allocation6 + $0x308] sm:$0xff]  }
 0x15e   : > { %v810_v51 = vld [vmem:[#allocation3 + $0x4] sm:$0xff] }
 0x15f   : > { %v820_v52 = vld [vmem:[#allocation3 + $0x6] sm:$0xff] }
 0x160   : > { %v805_v53 = vld [vmem:[#allocation3 + $0x3] sm:$0xff] }
 0x161   : > { %v815_v54 = vld [vmem:[#allocation3 + $0x5] sm:$0xff] }
 0x162   : > { %v16502_v57 = vld [vmem:[#allocation3 + $0xc] sm:$0xff]  ;;  %v812_v1 = vld [vmem:[#allocation3 + $0x14] sm:$0x1]  ;;  %v822_v2 = vld [vmem:[#allocation3 + $0x16] sm:$0x1] }
 0x163   : > { %v821_v58 = vld [vmem:[#allocation3 + $0xe] sm:$0xff]  ;;  %v813_v60 = vpack.c.bf16 %v16502_v57, %v810_v51  ;;  %v814_v6 = vpack.c.bf16 %v812_v1, %v812_v1  ;;  %v824_v7 = vpack.c.bf16 %v822_v2, %v822_v2 }
 0x164   : > { %v16504_v59 = vld [vmem:[#allocation3 + $0xb] sm:$0xff]  ;;  %v823_v61 = vpack.c.bf16 %v821_v58, %v820_v52  ;;  %v807_v11 = vld [vmem:[#allocation3 + $0x13] sm:$0x1]  ;;  %v817_v12 = vld [vmem:[#allocation3 + $0x15] sm:$0x1] }
 0x165   : > { %v808_v62 = vpack.c.bf16 %v16504_v59, %v805_v53  ;;  %v816_v63 = vld [vmem:[#allocation3 + $0xd] sm:$0xff]  ;;  %1533 = vmatprep.mubr.bf16.mxu1 %v813_v60  ;;  %v809_v19 = vpack.c.bf16 %v807_v11, %v807_v11  ;;  %v819_v20 = vpack.c.bf16 %v817_v12, %v817_v12  ;;  %v844_v53 = vpack.c.bf16 %v842_v46, %v842_v46  ;;  %v827_v58 = vld [vmem:[#allocation3 + $0x17] sm:$0x1]  ;;  %v15656_v46 = vld [vmem:[#allocation6 + $0x300] sm:$0xff]  }
 0x166   : > { %v818_v0 = vpack.c.bf16 %v816_v63, %v815_v54  ;;  %1581 = vmatprep.mubr.bf16.mxu0 %v823_v61  ;;  %v840_v15 = vld [vmem:[#allocation3 + $0xa] sm:$0xff]  ;;  %v841_v16 = vld [vmem:[#allocation3 + $0x12] sm:$0xff]  ;;  %v15615_v63 = vld [vmem:[#allocation6 + $0x260] sm:$0xff]   ;;  %v829_v1 = vpack.c.bf16 %v827_v58, %v827_v58 }
 0x167   : > { %1534 = vmatmul.mubr.bf16.vlgmr.msra.gmra.mxu1 %v808_v62  ;;  %v843_v24 = vpack.c.bf16 %v841_v16, %v840_v15  ;;  %v826_v43 = vld [vmem:[#allocation3 + $0xf] sm:$0xff]  ;;  %v825_v47 = vld [vmem:[#allocation3 + $0x7] sm:$0xff]  ;;  %v15625_v16 = vld [vmem:[#allocation6 + $0x2f8] sm:$0xff]  }
 0x168   : > { %1582 = vmatmul.mubr.bf16.vlgmr.msra.gmra.mxu0 %v818_v0  ;;  %14475 = vmatpush3.bf16.msra.mxu1 %v15579_v55  ;;  %v835_v44 = vld [vmem:[#allocation3 + $0x9] sm:$0xff]  ;;  %v836_v45 = vld [vmem:[#allocation3 + $0x11] sm:$0xff]  ;;  %v828_v51 = vpack.c.bf16 %v826_v43, %v825_v47  ;;  %v837_v55 = vld [vmem:[#allocation3 + $0x19] sm:$0x1] }
 0x169   : > { %14503 = vmatpush3.bf16.msra.mxu0 %v15580_v56  ;;  %1541 = vmatprep.mubr.bf16.mxu1 %v814_v6  ;;  %v838_v52 = vpack.c.bf16 %v836_v45, %v835_v44  ;;  %v15612_v54 = vld [vmem:[#allocation6 + $0x230] sm:$0xff]   ;;  %v15613_v56 = vld [vmem:[#allocation6 + $0x268] sm:$0xff]   ;;  %v839_v62 = vpack.c.bf16 %v837_v55, %v837_v55  ;;  %v15616_v0 = vld [vmem:[#allocation6 + $0x220] sm:$0xff]  }
 0x16a   : > { %1589 = vmatprep.mubr.bf16.mxu0 %v824_v7  ;;  %14476 = vmatprep.subr.bf16.mxu1 %v15581_v3  ;;  %v849_v60 = vld [vmem:[#allocation3 + $0x14] sm:$0xff]  ;;  %v15614_v61 = vld [vmem:[#allocation6 + $0x228] sm:$0xff]   ;;  %v15653_v43 = vld [vmem:[#allocation6 + $0x2c0] sm:$0xff]  }
 0x16b   : > { %14504 = vmatprep.subr.bf16.mxu0 %v15582_v4  ;;  %v851_v2 = vpack.c.bf16 %v849_v60, %v16502_v57  ;;  %v15617_v3 = vld [vmem:[#allocation6 + $0x258] sm:$0xff]   ;;  %v15620_v6 = vld [vmem:[#allocation6 + $0x210] sm:$0xff]   ;;  %v15621_v7 = vld [vmem:[#allocation6 + $0x248] sm:$0xff]  }
 0x16c   : > { %14477 = vmatpush3.bf16.msra.mxu1 %v15583_v5  ;;  %v15618_v4 = vld [vmem:[#allocation6 + $0x218] sm:$0xff]   ;;  %v15619_v5 = vld [vmem:[#allocation6 + $0x250] sm:$0xff]   ;;  %v15624_v57 = vld [vmem:[#allocation6 + $0x200] sm:$0xff]  }
 0x16d   : > { %14505 = vmatpush3.bf16.msra.mxu0 %v15584_v8  ;;  %14478 = vmatprep.subr.bf16.mxu1 %v15585_v9  ;;  %v15622_v8 = vld [vmem:[#allocation6 + $0x208] sm:$0xff]   ;;  %v15623_v9 = vld [vmem:[#allocation6 + $0x240] sm:$0xff]   ;;  %v845_v11 = vld [vmem:[#allocation3 + $0x13] sm:$0xff] }
 0x16e   : > { %14506 = vmatprep.subr.bf16.mxu0 %v15586_v10  ;;  %v850_v10 = vld [vmem:[#allocation3 + $0x1c] sm:$0x1]  ;;  %v15654_v44 = vld [vmem:[#allocation6 + $0x340] sm:$0xff]  }
 0x16f   : > { %1542 = vmatmul.mubr.bf16.gmra.mxu1 %v809_v19  ;;  %v852_v12 = vpack.c.bf16 %v850_v10, %v850_v10  ;;  %v15628_v19 = vld [vmem:[#allocation6 + $0x338] sm:$0xff]   ;;  %v15655_v45 = vld [vmem:[#allocation6 + $0x280] sm:$0xff]  }
 0x170   : > { %1590 = vmatmul.mubr.bf16.gmra.mxu0 %v819_v20  ;;  %14479 = vmatpush3.bf16.msra.mxu1 %v15587_v13  ;;  %v847_v13 = vpack.c.bf16 %v845_v11, %v16504_v59  ;;  %v15629_v20 = vld [vmem:[#allocation6 + $0x2f0] sm:$0xff]   ;;  %v15635_v59 = vld [vmem:[#allocation6 + $0x2a8] sm:$0xff]   ;;  %v15657_v47 = vld [vmem:[#allocation6 + $0x3f8] sm:$0xff]  }
 0x171   : > { %14507 = vmatpush3.bf16.msra.mxu0 %v15588_v14  ;;  %1629 = vmatprep.mubr.bf16.mxu1 %v833_v23  ;;  %v846_v14 = vld [vmem:[#allocation3 + $0x1b] sm:$0x1]  ;;  %v15632_v23 = vld [vmem:[#allocation6 + $0x330] sm:$0xff]  }
 0x172   : > { %1677 = vmatprep.mubr.bf16.mxu0 %v843_v24  ;;  %14480 = vmatprep.subr.bf16.mxu1 %v15589_v17  ;;  %v848_v15 = vpack.c.bf16 %v846_v14, %v846_v14  ;;  %v15626_v17 = vld [vmem:[#allocation6 + $0x378] sm:$0xff]   ;;  %v15633_v24 = vld [vmem:[#allocation6 + $0x2e8] sm:$0xff]  }
 0x173   : > { %14508 = vmatprep.subr.bf16.mxu0 %v15590_v18  ;;  %v15627_v18 = vld [vmem:[#allocation6 + $0x2b8] sm:$0xff]  }
 0x174   : > { %14481 = vmatpush3.bf16.msra.mxu1 %v15591_v21  ;;  %v15630_v21 = vld [vmem:[#allocation6 + $0x370] sm:$0xff]  }
 0x175   : > { %14509 = vmatpush3.bf16.msra.mxu0 %v15592_v22  ;;  %14482 = vmatprep.subr.bf16.mxu1 %v15593_v25  ;;  %v15631_v22 = vld [vmem:[#allocation6 + $0x2b0] sm:$0xff]   ;;  %v15634_v25 = vld [vmem:[#allocation6 + $0x368] sm:$0xff]  }
 0x176   : > { %14510 = vmatprep.subr.bf16.mxu0 %v15594_v26  ;;  %v15636_v26 = vld [vmem:[#allocation6 + $0x328] sm:$0xff]  }
 0x178   : > { %14483 = vmatpush3.bf16.msra.mxu1 %v15595_v27  ;;  %v15637_v27 = vld [vmem:[#allocation6 + $0x2e0] sm:$0xff]  }
 0x179   : > { %14511 = vmatpush3.bf16.msra.mxu0 %v15596_v28  ;;  %14484 = vmatprep.subr.bf16.mxu1 %v15597_v29  ;;  %v15638_v28 = vld [vmem:[#allocation6 + $0x360] sm:$0xff]  }
 0x17a   : > { %14512 = vmatprep.subr.bf16.mxu0 %v15598_v30  ;;  %v15639_v29 = vld [vmem:[#allocation6 + $0x2a0] sm:$0xff]  }
 0x17b   : > { %v15640_v30 = vld [vmem:[#allocation6 + $0x320] sm:$0xff]  }
 0x17c   : > { %14485 = vmatpush3.bf16.msra.mxu1 %v15599_v31  ;;  %v15641_v31 = vld [vmem:[#allocation6 + $0x2d8] sm:$0xff]  }
 0x17d   : > { %14513 = vmatpush3.bf16.msra.mxu0 %v15600_v32  ;;  %14486 = vmatprep.subr.bf16.mxu1 %v15601_v33  ;;  %v15642_v32 = vld [vmem:[#allocation6 + $0x358] sm:$0xff]  }
 0x17e   : > { %14514 = vmatprep.subr.bf16.mxu0 %v15602_v34  ;;  %v15643_v33 = vld [vmem:[#allocation6 + $0x298] sm:$0xff]  }
 0x17f   : > { %v15644_v34 = vld [vmem:[#allocation6 + $0x318] sm:$0xff]  }
 0x180   : > { %14487 = vmatpush3.bf16.msra.mxu1 %v15603_v35  ;;  %v15645_v35 = vld [vmem:[#allocation6 + $0x2d0] sm:$0xff]  }
 0x181   : > { %14515 = vmatpush3.bf16.msra.mxu0 %v15604_v36  ;;  %14488 = vmatprep.subr.bf16.mxu1 %v15605_v37  ;;  %v15646_v36 = vld [vmem:[#allocation6 + $0x350] sm:$0xff]  }
 0x182   : > { %14516 = vmatprep.subr.bf16.mxu0 %v15606_v38  ;;  %v15647_v37 = vld [vmem:[#allocation6 + $0x290] sm:$0xff]  }
 0x183   : > { %v15648_v38 = vld [vmem:[#allocation6 + $0x310] sm:$0xff]  }
 0x184   : > { %14489 = vmatpush3.bf16.msra.mxu1 %v15607_v39  ;;  %v15649_v39 = vld [vmem:[#allocation6 + $0x2c8] sm:$0xff]  }
 0x185   : > { %14517 = vmatpush3.bf16.msra.mxu0 %v15608_v40  ;;  %14530 = vmatprep.subr.bf16.mxu1 %v15609_v41  ;;  %v15650_v40 = vld [vmem:[#allocation6 + $0x348] sm:$0xff]  }
 0x186   : > { %14558 = vmatprep.subr.bf16.mxu0 %v15625_v16  ;;  %v15651_v41 = vld [vmem:[#allocation6 + $0x288] sm:$0xff]  }
 0x187   : > { %1630 = vmatmul.mubr.bf16.vlgmr.msra.gmra.mxu1 %v828_v51 }
 0x188   : > { %1678 = vmatmul.mubr.bf16.vlgmr.msra.gmra.mxu0 %v838_v52  ;;  %14531 = vmatpush3.bf16.msra.mxu1 %v15610_v48  ;;  %v15658_v48 = vld [vmem:[#allocation6 + $0x478] sm:$0xff]  }
 0x189   : > { %1637 = vmatprep.mubr.bf16.mxu1 %v834_v50  ;;  %14532 = vmatprep.subr.bf16.mxu1 %v15611_v49 }
 0x18a   : > { %1685 = vmatprep.mubr.bf16.mxu0 %v844_v53  ;;  %14559 = vmatpush3.bf16.msra.mxu0 %v15627_v18 }
 0x18b   : > { %14560 = vmatprep.subr.bf16.mxu0 %v15629_v20 }
 0x18c   : > { %14533 = vmatpush3.bf16.msra.mxu1 %v15612_v54 }
 0x18d   : > { %14534 = vmatprep.subr.bf16.mxu1 %v15613_v56 }
 0x18e   : > { %14561 = vmatpush3.bf16.msra.mxu0 %v15631_v22 }
 0x18f   : > { %1638 = vmatmul.mubr.bf16.gmra.mxu1 %v829_v1  ;;  %14562 = vmatprep.subr.bf16.mxu0 %v15633_v24 }
 0x190   : > { %1686 = vmatmul.mubr.bf16.gmra.mxu0 %v839_v62  ;;  %14535 = vmatpush3.bf16.msra.mxu1 %v15614_v61 }
 0x191   : > { %1725 = vmatprep.mubr.bf16.mxu1 %v851_v2  ;;  %14536 = vmatprep.subr.bf16.mxu1 %v15615_v63 }
 0x192   : > { %14563 = vmatpush3.bf16.msra.mxu0 %v15635_v59 }
 0x193   : > { %14564 = vmatprep.subr.bf16.mxu0 %v15637_v27 }
 0x194   : > { %14537 = vmatpush3.bf16.msra.mxu1 %v15616_v0 }
 0x195   : > { %14538 = vmatprep.subr.bf16.mxu1 %v15617_v3 }
 0x196   : > { %14565 = vmatpush3.bf16.msra.mxu0 %v15639_v29 }
 0x197   : > { %14566 = vmatprep.subr.bf16.mxu0 %v15641_v31 }
 0x198   : > { %14539 = vmatpush3.bf16.msra.mxu1 %v15618_v4 }
 0x199   : > { %14540 = vmatprep.subr.bf16.mxu1 %v15619_v5 }
 0x19a   : > { %14567 = vmatpush3.bf16.msra.mxu0 %v15643_v33 }
 0x19b   : > { %14568 = vmatprep.subr.bf16.mxu0 %v15645_v35 }
 0x19c   : > { %14541 = vmatpush3.bf16.msra.mxu1 %v15620_v6 }
 0x19d   : > { %14542 = vmatprep.subr.bf16.mxu1 %v15621_v7 }
 0x19e   : > { %14569 = vmatpush3.bf16.msra.mxu0 %v15647_v37 }
 0x19f   : > { %14570 = vmatprep.subr.bf16.mxu0 %v15649_v39 }
 0x1a0   : > { %14543 = vmatpush3.bf16.msra.mxu1 %v15622_v8 }
 0x1a1   : > { %14544 = vmatprep.subr.bf16.mxu1 %v15623_v9 }
 0x1a2   : > { %14571 = vmatpush3.bf16.msra.mxu0 %v15651_v41 }
 0x1a3   : > { %14572 = vmatprep.subr.bf16.mxu0 %v15653_v43 }
 0x1a4   : > { %14545 = vmatpush3.bf16.msra.mxu1 %v15624_v57 }
 0x1a5   : > { %14580 = vmatprep.subr.bf16.mxu1 %v15626_v17 }
 0x1a6   : > { %14573 = vmatpush3.bf16.msra.mxu0 %v15655_v45 }
 0x1a7   : > { %1726 = vmatmul.mubr.bf16.vlgmr.msra.gmra.mxu1 %v847_v13  ;;  %14602 = vmatprep.subr.bf16.mxu0 %v15657_v47 }
 0x1a8   : > { %1733 = vmatprep.mubr.bf16.mxu1 %v852_v12  ;;  %14581 = vmatpush3.bf16.msra.mxu1 %v15628_v19  ;;  %v13073_v19 = vld [vmem:[#allocation8 + $0x1] ss:$0 sm:$0xff] }
 0x1a9   : > { %14582 = vmatprep.subr.bf16.mxu1 %v15630_v21 }
 0x1ac   : > { %14583 = vmatpush3.bf16.msra.mxu1 %v15632_v23 }
 0x1ad   : > { %14584 = vmatprep.subr.bf16.mxu1 %v15634_v25 }
 0x1af   : > { %1734 = vmatmul.mubr.bf16.gmra.mxu1 %v848_v15 }
 0x1b0   : > { %14585 = vmatpush3.bf16.msra.mxu1 %v15636_v26 }
 0x1b1   : > { %14586 = vmatprep.subr.bf16.mxu1 %v15638_v28 }
 0x1b4   : > { %14587 = vmatpush3.bf16.msra.mxu1 %v15640_v30 }
 0x1b5   : > { %14588 = vmatprep.subr.bf16.mxu1 %v15642_v32 }
 0x1b8   : > { %14589 = vmatpush3.bf16.msra.mxu1 %v15644_v34 }
 0x1b9   : > { %14590 = vmatprep.subr.bf16.mxu1 %v15646_v36 }
 0x1bc   : > { %14591 = vmatpush3.bf16.msra.mxu1 %v15648_v38 }
 0x1bd   : > { %14592 = vmatprep.subr.bf16.mxu1 %v15650_v40 }
 0x1c0   : > { %14593 = vmatpush3.bf16.msra.mxu1 %v15652_v42 }
 0x1c1   : > { %14594 = vmatprep.subr.bf16.mxu1 %v15654_v44 }
 0x1c4   : > { %14595 = vmatpush3.bf16.msra.mxu1 %v15656_v46 }
 0x1c5   : > { %14624 = vmatprep.subr.bf16.mxu1 %v15658_v48 }
 0x227   : > { %v14434_v49 = vpop.f32.mrf.mxu1 }
 0x228   : > { %v14462_v50 = vpop.f32.mrf.mxu0 }
 0x229   : > { %v14435_v51 = vpop.f32.mrf.mxu1 }
 0x22a   : > { %v14463_v52 = vpop.f32.mrf.mxu0  ;;  %v14436_v18 = vadd.f32 %v14435_v51, %v14434_v49 }
 0x22b   : > { %v14437_v53 = vpop.f32.mrf.mxu1  ;;  %v14464_v22 = vadd.f32 %v14463_v52, %v14462_v50 }
 0x22c   : > { %v14465_v54 = vpop.f32.mrf.mxu0  ;;  %v1536_v21 = vadd.f32 %v14436_v18, %v13073_v19  ;;  %v15663_v18 = vld [vmem:[#allocation6 + $0x3b0] sm:$0xff]  }
 0x22d   : > { %v14438_v55 = vpop.f32.mrf.mxu1 }
 0x22e   : > { %v14466_v56 = vpop.f32.mrf.mxu0  ;;  %v14439_v20 = vadd.f32 %v14438_v55, %v14437_v53  ;;  %v1584_v25 = vadd.f32 %v14464_v22, %v1536_v21  ;;  %v15666_v21 = vld [vmem:[#allocation6 + $0x468] sm:$0xff]  }
 0x22f   : > { %v14440_v58 = vpop.f32.mrf.mxu1  ;;  %v14467_v26 = vadd.f32 %v14466_v56, %v14465_v54  ;;  %v15667_v22 = vld [vmem:[#allocation6 + $0x3a8] sm:$0xff]  }
 0x230   : > { %v14468_v60 = vpop.f32.mrf.mxu0  ;;  %v1539_v24 = vadd.f32 %v14439_v20, %v13073_v19  ;;  %v15665_v20 = vld [vmem:[#allocation6 + $0x3e8] sm:$0xff]  }
 0x231   : > { %v14441_v61 = vpop.f32.mrf.mxu1 }
 0x232   : > { %v14469_v62 = vpop.f32.mrf.mxu0  ;;  %v14442_v59 = vadd.f32 %v14441_v61, %v14440_v58  ;;  %v1587_v29 = vadd.f32 %v14467_v26, %v1539_v24  ;;  %v15669_v24 = vld [vmem:[#allocation6 + $0x3e0] sm:$0xff]  }
 0x233   : > { %v14443_v63 = vpop.f32.mrf.mxu1  ;;  %v14470_v35 = vadd.f32 %v14469_v62, %v14468_v60  ;;  %v15672_v26 = vld [vmem:[#allocation6 + $0x420] sm:$0xff]  }
 0x234   : > { %v14471_v1 = vpop.f32.mrf.mxu0  ;;  %v1544_v31 = vadd.f32 %v14442_v59, %v13073_v19  ;;  %v15664_v19 = vld [vmem:[#allocation6 + $0x430] sm:$0xff]   ;;  %v15671_v59 = vld [vmem:[#allocation6 + $0x3a0] sm:$0xff]  }
 0x235   : > { %v14444_v2 = vpop.f32.mrf.mxu1  ;;  %v15659_v1 = vld [vmem:[#allocation6 + $0x3b8] sm:$0xff]  }
 0x236   : > { %v14472_v0 = vpop.f32.mrf.mxu0  ;;  %v1592_v41 = vadd.f32 %v14470_v35, %v1544_v31  ;;  %v15677_v31 = vld [vmem:[#allocation6 + $0x3d0] sm:$0xff]   ;;  %v15681_v35 = vld [vmem:[#allocation6 + $0x3c8] sm:$0xff]  }
 0x247   : > { %v14490_v3 = vpop.f32.mrf.mxu1 }
 0x248   : > { %v14518_v4 = vpop.f32.mrf.mxu0 }
 0x249   : > { %v14491_v5 = vpop.f32.mrf.mxu1 }
 0x24a   : > { %v14519_v6 = vpop.f32.mrf.mxu0  ;;  %v14492_v23 = vadd.f32 %v14491_v5, %v14490_v3 }
 0x24b   : > { %v14493_v7 = vpop.f32.mrf.mxu1  ;;  %v14520_v32 = vadd.f32 %v14519_v6, %v14518_v4 }
 0x24c   : > { %v14521_v8 = vpop.f32.mrf.mxu0  ;;  %v1632_v28 = vadd.f32 %v14492_v23, %v1584_v25  ;;  %v15668_v23 = vld [vmem:[#allocation6 + $0x428] sm:$0xff]   ;;  %v15670_v25 = vld [vmem:[#allocation6 + $0x460] sm:$0xff]  }
 0x24d   : > { %v14494_v9 = vpop.f32.mrf.mxu1 }
 0x24e   : > { %v14522_v57 = vpop.f32.mrf.mxu0  ;;  %v14495_v27 = vadd.f32 %v14494_v9, %v14493_v7  ;;  %v1680_v36 = vadd.f32 %v14520_v32, %v1632_v28  ;;  %v15660_v9 = vld [vmem:[#allocation6 + $0x438] sm:$0xff]   ;;  %v15678_v32 = vld [vmem:[#allocation6 + $0x450] sm:$0xff]  }
 0x24f   : > { %v14496_v10 = vpop.f32.mrf.mxu1  ;;  %v14523_v39 = vadd.f32 %v14522_v57, %v14521_v8  ;;  %v15674_v28 = vld [vmem:[#allocation6 + $0x458] sm:$0xff]  }
 0x250   : > { %v14524_v11 = vpop.f32.mrf.mxu0  ;;  %v1635_v33 = vadd.f32 %v14495_v27, %v1587_v29  ;;  %v15673_v27 = vld [vmem:[#allocation6 + $0x3d8] sm:$0xff]  }
 0x251   : > { %v14497_v12 = vpop.f32.mrf.mxu1  ;;  %v15675_v29 = vld [vmem:[#allocation6 + $0x398] sm:$0xff]  }
 0x252   : > { %v14525_v13 = vpop.f32.mrf.mxu0  ;;  %v14498_v37 = vadd.f32 %v14497_v12, %v14496_v10  ;;  %v1683_v43 = vadd.f32 %v14523_v39, %v1635_v33  ;;  %v15661_v10 = vld [vmem:[#allocation6 + $0x3f0] sm:$0xff]   ;;  %v15685_v39 = vld [vmem:[#allocation6 + $0x3c0] sm:$0xff]  }
 0x253   : > { %v14499_v14 = vpop.f32.mrf.mxu1  ;;  %v14526_v46 = vadd.f32 %v14525_v13, %v14524_v11  ;;  %v15662_v11 = vld [vmem:[#allocation6 + $0x470] sm:$0xff]  }
 0x254   : > { %v14527_v15 = vpop.f32.mrf.mxu0  ;;  %v1640_v45 = vadd.f32 %v14498_v37, %v1592_v41  ;;  %v15679_v33 = vld [vmem:[#allocation6 + $0x390] sm:$0xff]   ;;  %v15683_v37 = vld [vmem:[#allocation6 + $0x388] sm:$0xff]   ;;  %v15687_v41 = vld [vmem:[#allocation6 + $0x380] sm:$0xff]  }
 0x255   : > { %v14500_v16 = vpop.f32.mrf.mxu1 }
 0x256   : > { %v14528_v17 = vpop.f32.mrf.mxu0  ;;  %v1688_v52 = vadd.f32 %v14526_v46, %v1640_v45 }
 0x267   : > { %v14546_v30 = vpop.f32.mrf.mxu1 }
 0x269   : > { %v14547_v34 = vpop.f32.mrf.mxu1 }
 0x26a   : > { %v14548_v38 = vadd.f32 %v14547_v34, %v14546_v30  ;;  %v15676_v30 = vld [vmem:[#allocation6 + $0x418] sm:$0xff]   ;;  %v15680_v34 = vld [vmem:[#allocation6 + $0x410] sm:$0xff]  }
 0x26b   : > { %v14549_v40 = vpop.f32.mrf.mxu1 }
 0x26c   : > { %v16510_v42 = vadd.f32 %v14548_v38, %v1680_v36  ;;  %v15682_v36 = vld [vmem:[#allocation6 + $0x448] sm:$0xff]  }
 0x26d   : > { %v14550_v44 = vpop.f32.mrf.mxu1  ;;  %v15684_v38 = vld [vmem:[#allocation6 + $0x408] sm:$0xff]  }
 0x26e   : > { %v1741_v47 = vmax.f32 %v16510_v42, 0.0  ;;  %v14551_v48 = vadd.f32 %v14550_v44, %v14549_v40  ;;  %v15686_v40 = vld [vmem:[#allocation6 + $0x440] sm:$0xff]   ;;  %v15689_v44 = vld [vmem:[#allocation6 + $0x4f8] sm:$0xff]  }
 0x26f   : > { %v14552_v49 = vpop.f32.mrf.mxu1  ;;  %v15696_v42 = vld [vmem:[#allocation6 + $0x4a0] sm:$0xff]  }
 0x270   : > { %1744 = vst [vmem:[#allocation2 + $0x8] sm:$0xff] %v1741_v47  ;;  %v16515_v50 = vadd.f32 %v14551_v48, %v1683_v43  ;;  %v15688_v43 = vld [vmem:[#allocation6 + $0x400] sm:$0xff]  }
 0x271   : > { %v14553_v51 = vpop.f32.mrf.mxu1 }
 0x272   : > { %v1742_v53 = vmax.f32 %v16515_v50, 0.0  ;;  %v14554_v54 = vadd.f32 %v14553_v51, %v14552_v49  ;;  %v15690_v49 = vld [vmem:[#allocation6 + $0x4b8] sm:$0xff]  }
 0x273   : > { %v14555_v55 = vpop.f32.mrf.mxu1  ;;  %v15698_v50 = vld [vmem:[#allocation6 + $0x498] sm:$0xff]  }
 0x274   : > { %1745 = vst [vmem:[#allocation2 + $0x10] sm:$0xff] %v1742_v53  ;;  %v1736_v56 = vadd.f32 %v14554_v54, %v1688_v52  ;;  %v1761_v51 = vpack.c.bf16 %v1742_v53, %v1741_v47  ;;  %v15691_v54 = vld [vmem:[#allocation6 + $0x4f0] sm:$0xff]   ;;  %v15697_v47 = vld [vmem:[#allocation6 + $0x4d8] sm:$0xff]  }
 0x275   : > { %v14556_v58 = vpop.f32.mrf.mxu1  ;;  %v15699_v53 = vld [vmem:[#allocation6 + $0x4d0] sm:$0xff]  }
 0x276   : > { %v1743_v60 = vmax.f32 %v1736_v56, 0.0  ;;  %v15692_v56 = vld [vmem:[#allocation6 + $0x4b0] sm:$0xff]   ;;  %v15693_v58 = vld [vmem:[#allocation6 + $0x4e8] sm:$0xff]  }
 0x277   : > { %v1750_v61 = vld [vmem:[#allocation2 + $0x5] sm:$0xff] }
 0x278   : > { %1746 = vst [vmem:[#allocation2 + $0x18] sm:$0x1] %v1743_v60  ;;  %v1756_v62 = vld [vmem:[#allocation2 + $0x7] sm:$0xff] }
 0x279   : > { %v1747_v63 = vld [vmem:[#allocation2 + $0x4] sm:$0xff] }
 0x27a   : > { %v1753_v7 = vld [vmem:[#allocation2 + $0x6] sm:$0xff] }
 0x27b   : > { %v16520_v2 = vld [vmem:[#allocation2 + $0xd] sm:$0xff] }
 0x27c   : > { %v1757_v0 = vld [vmem:[#allocation2 + $0xf] sm:$0xff]  ;;  %v1752_v4 = vpack.c.bf16 %v16520_v2, %v1750_v61  ;;  %v15695_v61 = vld [vmem:[#allocation6 + $0x4e0] sm:$0xff]  }
 0x27d   : > { %v16522_v3 = vld [vmem:[#allocation2 + $0xc] sm:$0xff]  ;;  %v1758_v5 = vpack.c.bf16 %v1757_v0, %v1756_v62  ;;  %v15704_v0 = vld [vmem:[#allocation6 + $0x480] sm:$0xff]  }
 0x27e   : > { %v1749_v6 = vpack.c.bf16 %v16522_v3, %v1747_v63  ;;  %v1754_v8 = vld [vmem:[#allocation2 + $0xe] sm:$0xff]  ;;  %2456 = vmatprep.mubr.bf16.mxu0 %v1752_v4 }
 0x27f   : > { %v1755_v57 = vpack.c.bf16 %v1754_v8, %v1753_v7  ;;  %2497 = vmatprep.mubr.bf16.mxu1 %v1758_v5  ;;  %v1762_v12 = vld [vmem:[#allocation2 + $0x9] sm:$0xff]  ;;  %v1763_v13 = vld [vmem:[#allocation2 + $0x11] sm:$0xff] }
 0x280   : > { %2457 = vmatmul.mubr.bf16.vlgmr.msra.gmra.mxu0 %v1749_v6  ;;  %v1768_v14 = vld [vmem:[#allocation2 + $0xb] sm:$0xff]  ;;  %v1769_v15 = vld [vmem:[#allocation2 + $0x13] sm:$0xff]  ;;  %v1764_v16 = vpack.c.bf16 %v1763_v13, %v1762_v12 }
 0x281   : > { %2498 = vmatmul.mubr.bf16.vlgmr.msra.gmra.mxu1 %v1755_v57  ;;  %14603 = vmatpush3.bf16.msra.mxu0 %v15659_v1  ;;  %v1770_v17 = vpack.c.bf16 %v1769_v15, %v1768_v14  ;;  %v1766_v45 = vld [vmem:[#allocation2 + $0x12] sm:$0xff]  ;;  %v1765_v48 = vld [vmem:[#allocation2 + $0xa] sm:$0xff] }
 0x282   : > { %14625 = vmatpush3.bf16.msra.mxu1 %v15660_v9  ;;  %14604 = vmatprep.subr.bf16.mxu0 %v15661_v10  ;;  %v1773_v46 = vld [vmem:[#allocation2 + $0x15] sm:$0xff]  ;;  %v1767_v52 = vpack.c.bf16 %v1766_v45, %v1765_v48  ;;  %v15694_v60 = vld [vmem:[#allocation6 + $0x4a8] sm:$0xff]  }
 0x283   : > { %14626 = vmatprep.subr.bf16.mxu1 %v15662_v11  ;;  %2538 = vmatprep.mubr.bf16.mxu0 %v1764_v16  ;;  %v1774_v55 = vpack.c.bf16 %v1773_v46, %v16520_v2  ;;  %v15700_v62 = vld [vmem:[#allocation6 + $0x490] sm:$0xff]   ;;  %v15701_v63 = vld [vmem:[#allocation6 + $0x4c8] sm:$0xff]   ;;  %v15703_v2 = vld [vmem:[#allocation6 + $0x4c0] sm:$0xff]  }
 0x284   : > { %2579 = vmatprep.mubr.bf16.mxu1 %v1770_v17  ;;  %v15702_v1 = vld [vmem:[#allocation6 + $0x488] sm:$0xff]   ;;  %v1771_v4 = vld [vmem:[#allocation2 + $0x14] sm:$0xff]  ;;  %v15717_v16 = vld [vmem:[#allocation6 + $0x560] sm:$0xff]  }
 0x285   : > { %14605 = vmatpush3.bf16.msra.mxu0 %v15663_v18  ;;  %v1772_v5 = vpack.c.bf16 %v1771_v4, %v16522_v3  ;;  %v15705_v6 = vld [vmem:[#allocation6 + $0x578] sm:$0xff]   ;;  %v15709_v57 = vld [vmem:[#allocation6 + $0x570] sm:$0xff]   ;;  %v15713_v13 = vld [vmem:[#allocation6 + $0x568] sm:$0xff]  }
 0x286   : > { %14627 = vmatpush3.bf16.msra.mxu1 %v15664_v19  ;;  %14606 = vmatprep.subr.bf16.mxu0 %v15665_v20  ;;  %v15706_v7 = vld [vmem:[#allocation6 + $0x5f8] sm:$0xff]   ;;  %v15710_v10 = vld [vmem:[#allocation6 + $0x5f0] sm:$0xff]   ;;  %v15714_v14 = vld [vmem:[#allocation6 + $0x5e8] sm:$0xff]  }
 0x287   : > { %14628 = vmatprep.subr.bf16.mxu1 %v15666_v21  ;;  %v15707_v8 = vld [vmem:[#allocation6 + $0x538] sm:$0xff]   ;;  %v15711_v11 = vld [vmem:[#allocation6 + $0x530] sm:$0xff]   ;;  %v15715_v3 = vld [vmem:[#allocation6 + $0x528] sm:$0xff]  }
 0x288   : > { %v15708_v9 = vld [vmem:[#allocation6 + $0x5b8] sm:$0xff]   ;;  %v15712_v12 = vld [vmem:[#allocation6 + $0x5b0] sm:$0xff]   ;;  %v15716_v15 = vld [vmem:[#allocation6 + $0x5a8] sm:$0xff]  }
 0x289   : > { %14607 = vmatpush3.bf16.msra.mxu0 %v15667_v22  ;;  %v15718_v17 = vld [vmem:[#allocation6 + $0x5e0] sm:$0xff]   ;;  %v15721_v20 = vld [vmem:[#allocation6 + $0x558] sm:$0xff]  }
 0x28a   : > { %14629 = vmatpush3.bf16.msra.mxu1 %v15668_v23  ;;  %14608 = vmatprep.subr.bf16.mxu0 %v15669_v24  ;;  %v15719_v18 = vld [vmem:[#allocation6 + $0x520] sm:$0xff]   ;;  %v15722_v21 = vld [vmem:[#allocation6 + $0x5d8] sm:$0xff]   ;;  %v15725_v24 = vld [vmem:[#allocation6 + $0x550] sm:$0xff]  }
 0x28b   : > { %14630 = vmatprep.subr.bf16.mxu1 %v15670_v25  ;;  %v15720_v19 = vld [vmem:[#allocation6 + $0x5a0] sm:$0xff]   ;;  %v15723_v22 = vld [vmem:[#allocation6 + $0x518] sm:$0xff]   ;;  %v15726_v25 = vld [vmem:[#allocation6 + $0x5d0] sm:$0xff]  }
 0x28c   : > { %v15724_v23 = vld [vmem:[#allocation6 + $0x598] sm:$0xff]  }
 0x28d   : > { %14609 = vmatpush3.bf16.msra.mxu0 %v15671_v59  ;;  %v15727_v59 = vld [vmem:[#allocation6 + $0x510] sm:$0xff]  }
 0x28e   : > { %14631 = vmatpush3.bf16.msra.mxu1 %v15672_v26  ;;  %14610 = vmatprep.subr.bf16.mxu0 %v15673_v27  ;;  %v15728_v26 = vld [vmem:[#allocation6 + $0x590] sm:$0xff]   ;;  %v15729_v27 = vld [vmem:[#allocation6 + $0x548] sm:$0xff]  }
 0x28f   : > { %14632 = vmatprep.subr.bf16.mxu1 %v15674_v28  ;;  %v15730_v28 = vld [vmem:[#allocation6 + $0x5c8] sm:$0xff]  }
 0x291   : > { %14611 = vmatpush3.bf16.msra.mxu0 %v15675_v29  ;;  %v15731_v29 = vld [vmem:[#allocation6 + $0x508] sm:$0xff]  }
 0x292   : > { %14633 = vmatpush3.bf16.msra.mxu1 %v15676_v30  ;;  %14612 = vmatprep.subr.bf16.mxu0 %v15677_v31  ;;  %v15732_v30 = vld [vmem:[#allocation6 + $0x588] sm:$0xff]   ;;  %v15733_v31 = vld [vmem:[#allocation6 + $0x540] sm:$0xff]  }
 0x293   : > { %14634 = vmatprep.subr.bf16.mxu1 %v15678_v32  ;;  %v15734_v32 = vld [vmem:[#allocation6 + $0x5c0] sm:$0xff]  }
 0x295   : > { %14613 = vmatpush3.bf16.msra.mxu0 %v15679_v33  ;;  %v15735_v33 = vld [vmem:[#allocation6 + $0x500] sm:$0xff]  }
 0x296   : > { %14635 = vmatpush3.bf16.msra.mxu1 %v15680_v34  ;;  %14614 = vmatprep.subr.bf16.mxu0 %v15681_v35  ;;  %v15736_v34 = vld [vmem:[#allocation6 + $0x580] sm:$0xff]   ;;  %v15737_v35 = vld [vmem:[#allocation6 + $0x678] sm:$0xff]  }
 0x297   : > { %14636 = vmatprep.subr.bf16.mxu1 %v15682_v36  ;;  %v15738_v36 = vld [vmem:[#allocation6 + $0x6f8] sm:$0xff]  }
 0x299   : > { %14615 = vmatpush3.bf16.msra.mxu0 %v15683_v37 }
 0x29a   : > { %14637 = vmatpush3.bf16.msra.mxu1 %v15684_v38  ;;  %14616 = vmatprep.subr.bf16.mxu0 %v15685_v39 }
 0x29b   : > { %14638 = vmatprep.subr.bf16.mxu1 %v15686_v40 }
 0x29d   : > { %14617 = vmatpush3.bf16.msra.mxu0 %v15687_v41 }
 0x29e   : > { %14639 = vmatpush3.bf16.msra.mxu1 %v15688_v43  ;;  %14646 = vmatprep.subr.bf16.mxu0 %v15689_v44 }
 0x29f   : > { %14668 = vmatprep.subr.bf16.mxu1 %v15705_v6 }
 0x2a0   : > { %2539 = vmatmul.mubr.bf16.vlgmr.msra.gmra.mxu0 %v1761_v51  ;;  %v13154_v51 = vld [vmem:[#allocation8 + $0x2] ss:$0 sm:$0xff] }
 0x2a1   : > { %2580 = vmatmul.mubr.bf16.vlgmr.msra.gmra.mxu1 %v1767_v52  ;;  %14647 = vmatpush3.bf16.msra.mxu0 %v15690_v49 }
 0x2a2   : > { %2620 = vmatprep.mubr.bf16.mxu0 %v1774_v55  ;;  %14648 = vmatprep.subr.bf16.mxu0 %v15691_v54 }
 0x2a3   : > { %14669 = vmatpush3.bf16.msra.mxu1 %v15707_v8 }
 0x2a4   : > { %14670 = vmatprep.subr.bf16.mxu1 %v15709_v57 }
 0x2a5   : > { %14649 = vmatpush3.bf16.msra.mxu0 %v15692_v56 }
 0x2a6   : > { %14650 = vmatprep.subr.bf16.mxu0 %v15693_v58 }
 0x2a7   : > { %14671 = vmatpush3.bf16.msra.mxu1 %v15711_v11 }
 0x2a8   : > { %14672 = vmatprep.subr.bf16.mxu1 %v15713_v13 }
 0x2a9   : > { %14651 = vmatpush3.bf16.msra.mxu0 %v15694_v60 }
 0x2aa   : > { %14652 = vmatprep.subr.bf16.mxu0 %v15695_v61 }
 0x2ab   : > { %14673 = vmatpush3.bf16.msra.mxu1 %v15715_v3 }
 0x2ac   : > { %14674 = vmatprep.subr.bf16.mxu1 %v15717_v16 }
 0x2ad   : > { %14653 = vmatpush3.bf16.msra.mxu0 %v15696_v42 }
 0x2ae   : > { %14654 = vmatprep.subr.bf16.mxu0 %v15697_v47 }
 0x2af   : > { %14675 = vmatpush3.bf16.msra.mxu1 %v15719_v18 }
 0x2b0   : > { %14676 = vmatprep.subr.bf16.mxu1 %v15721_v20 }
 0x2b1   : > { %14655 = vmatpush3.bf16.msra.mxu0 %v15698_v50 }
 0x2b2   : > { %14656 = vmatprep.subr.bf16.mxu0 %v15699_v53 }
 0x2b3   : > { %14677 = vmatpush3.bf16.msra.mxu1 %v15723_v22  ;;  %v15740_v22 = vld [vmem:[#allocation6 + $0x6b8] sm:$0xff]  }
 0x2b4   : > { %14678 = vmatprep.subr.bf16.mxu1 %v15725_v24 }
 0x2b5   : > { %14657 = vmatpush3.bf16.msra.mxu0 %v15700_v62 }
 0x2b6   : > { %14658 = vmatprep.subr.bf16.mxu0 %v15701_v63 }
 0x2b7   : > { %14679 = vmatpush3.bf16.msra.mxu1 %v15727_v59 }
 0x2b8   : > { %14680 = vmatprep.subr.bf16.mxu1 %v15729_v27 }
 0x2b9   : > { %14659 = vmatpush3.bf16.msra.mxu0 %v15702_v1 }
 0x2ba   : > { %14660 = vmatprep.subr.bf16.mxu0 %v15703_v2 }
 0x2bb   : > { %14681 = vmatpush3.bf16.msra.mxu1 %v15731_v29 }
 0x2bc   : > { %14682 = vmatprep.subr.bf16.mxu1 %v15733_v31 }
 0x2bd   : > { %14661 = vmatpush3.bf16.msra.mxu0 %v15704_v0 }
 0x2be   : > { %14696 = vmatprep.subr.bf16.mxu0 %v15706_v7 }
 0x2bf   : > { %14683 = vmatpush3.bf16.msra.mxu1 %v15735_v33  ;;  %v15742_v33 = vld [vmem:[#allocation6 + $0x6f0] sm:$0xff]  }
 0x2c0   : > { %2621 = vmatmul.mubr.bf16.vlgmr.msra.gmra.mxu0 %v1772_v5  ;;  %14724 = vmatprep.subr.bf16.mxu1 %v15737_v35 }
 0x2c1   : > { %14697 = vmatpush3.bf16.msra.mxu0 %v15708_v9 }
 0x2c2   : > { %14698 = vmatprep.subr.bf16.mxu0 %v15710_v10 }
 0x2c5   : > { %14699 = vmatpush3.bf16.msra.mxu0 %v15712_v12 }
 0x2c6   : > { %14700 = vmatprep.subr.bf16.mxu0 %v15714_v14 }
 0x2c9   : > { %14701 = vmatpush3.bf16.msra.mxu0 %v15716_v15 }
 0x2ca   : > { %14702 = vmatprep.subr.bf16.mxu0 %v15718_v17 }
 0x2cd   : > { %14703 = vmatpush3.bf16.msra.mxu0 %v15720_v19 }
 0x2ce   : > { %14704 = vmatprep.subr.bf16.mxu0 %v15722_v21  ;;  %v15739_v21 = vld [vmem:[#allocation6 + $0x638] sm:$0xff]  }
 0x2d1   : > { %14705 = vmatpush3.bf16.msra.mxu0 %v15724_v23 }
 0x2d2   : > { %14706 = vmatprep.subr.bf16.mxu0 %v15726_v25 }
 0x2d5   : > { %14707 = vmatpush3.bf16.msra.mxu0 %v15728_v26 }
 0x2d6   : > { %14708 = vmatprep.subr.bf16.mxu0 %v15730_v28 }
 0x2d9   : > { %14709 = vmatpush3.bf16.msra.mxu0 %v15732_v30 }
 0x2da   : > { %14710 = vmatprep.subr.bf16.mxu0 %v15734_v32  ;;  %v15741_v32 = vld [vmem:[#allocation6 + $0x670] sm:$0xff]  }
 0x2dd   : > { %14711 = vmatpush3.bf16.msra.mxu0 %v15736_v34 }
 0x2de   : > { %14752 = vmatprep.subr.bf16.mxu0 %v15738_v36  ;;  %v15743_v36 = vld [vmem:[#allocation6 + $0x630] sm:$0xff]  }
 0x340   : > { %v14574_v37 = vpop.f32.mrf.mxu0 }
 0x341   : > { %v14596_v39 = vpop.f32.mrf.mxu1 }
 0x342   : > { %v14575_v38 = vpop.f32.mrf.mxu0 }
 0x343   : > { %v14597_v41 = vpop.f32.mrf.mxu1  ;;  %v14576_v49 = vadd.f32 %v14575_v38, %v14574_v37  ;;  %v15744_v37 = vld [vmem:[#allocation6 + $0x6b0] sm:$0xff]   ;;  %v15745_v38 = vld [vmem:[#allocation6 + $0x668] sm:$0xff]  }
 0x344   : > { %v14577_v40 = vpop.f32.mrf.mxu0  ;;  %v14598_v60 = vadd.f32 %v14597_v41, %v14596_v39  ;;  %v15746_v39 = vld [vmem:[#allocation6 + $0x6e8] sm:$0xff]  }
 0x345   : > { %v14599_v44 = vpop.f32.mrf.mxu1  ;;  %v2459_v55 = vadd.f32 %v14576_v49, %v13154_v51 }
 0x346   : > { %v14578_v43 = vpop.f32.mrf.mxu0 }
 0x347   : > { %v14600_v46 = vpop.f32.mrf.mxu1  ;;  %v14579_v56 = vadd.f32 %v14578_v43, %v14577_v40  ;;  %v2500_v47 = vadd.f32 %v14598_v60, %v2459_v55  ;;  %v15747_v43 = vld [vmem:[#allocation6 + $0x628] sm:$0xff]   ;;  %v15753_v60 = vld [vmem:[#allocation6 + $0x658] sm:$0xff]  }
 0x348   : > { %v14601_v62 = vadd.f32 %v14600_v46, %v14599_v44  ;;  %v15748_v44 = vld [vmem:[#allocation6 + $0x6a8] sm:$0xff]  }
 0x349   : > { %v2462_v50 = vadd.f32 %v14579_v56, %v13154_v51  ;;  %v15749_v51 = vld [vmem:[#allocation6 + $0x660] sm:$0xff]  }
 0x34a   : > { %v15751_v56 = vld [vmem:[#allocation6 + $0x620] sm:$0xff]  }
 0x34b   : > { %v2503_v0 = vadd.f32 %v14601_v62, %v2462_v50  ;;  %v15757_v50 = vld [vmem:[#allocation6 + $0x650] sm:$0xff]  }
 0x34c   : > { %v15759_v62 = vld [vmem:[#allocation6 + $0x610] sm:$0xff]  }
 0x360   : > { %v14618_v45 = vpop.f32.mrf.mxu0 }
 0x361   : > { %v14640_v52 = vpop.f32.mrf.mxu1 }
 0x362   : > { %v14619_v48 = vpop.f32.mrf.mxu0 }
 0x363   : > { %v14641_v58 = vpop.f32.mrf.mxu1  ;;  %v14620_v61 = vadd.f32 %v14619_v48, %v14618_v45 }
 0x364   : > { %v14621_v54 = vpop.f32.mrf.mxu0  ;;  %v14642_v4 = vadd.f32 %v14641_v58, %v14640_v52  ;;  %v15750_v52 = vld [vmem:[#allocation6 + $0x6e0] sm:$0xff]  }
 0x365   : > { %v14643_v53 = vpop.f32.mrf.mxu1  ;;  %v2541_v63 = vadd.f32 %v14620_v61, %v2500_v47  ;;  %v15752_v58 = vld [vmem:[#allocation6 + $0x6a0] sm:$0xff]   ;;  %v15754_v61 = vld [vmem:[#allocation6 + $0x6d8] sm:$0xff]  }
 0x366   : > { %v14622_v42 = vpop.f32.mrf.mxu0  ;;  %v15756_v47 = vld [vmem:[#allocation6 + $0x698] sm:$0xff]  }
 0x367   : > { %v14623_v1 = vadd.f32 %v14622_v42, %v14621_v54  ;;  %v14644_v5 = vpop.f32.mrf.mxu1  ;;  %v2582_v7 = vadd.f32 %v14642_v4, %v2541_v63  ;;  %v15755_v42 = vld [vmem:[#allocation6 + $0x618] sm:$0xff]   ;;  %v15760_v63 = vld [vmem:[#allocation6 + $0x690] sm:$0xff]   ;;  %v15764_v4 = vld [vmem:[#allocation6 + $0x688] sm:$0xff]  }
 0x368   : > { %v14645_v10 = vadd.f32 %v14644_v5, %v14643_v53  ;;  %v15758_v53 = vld [vmem:[#allocation6 + $0x6d0] sm:$0xff]   ;;  %v15765_v5 = vld [vmem:[#allocation6 + $0x640] sm:$0xff]  }
 0x369   : > { %v2544_v8 = vadd.f32 %v14623_v1, %v2503_v0  ;;  %v15761_v1 = vld [vmem:[#allocation6 + $0x648] sm:$0xff]  }
 0x36a   : > { %v15763_v0 = vld [vmem:[#allocation6 + $0x608] sm:$0xff]  }
 0x36b   : > { %v2585_v13 = vadd.f32 %v14645_v10, %v2544_v8  ;;  %v15768_v8 = vld [vmem:[#allocation6 + $0x680] sm:$0xff]   ;;  %v2670_v10 = vld [vmem:[#allocation3 + $0x1a] sm:$0x1] }
 0x380   : > { %v14662_v2 = vpop.f32.mrf.mxu0 }
 0x382   : > { %v14663_v6 = vpop.f32.mrf.mxu0 }
 0x383   : > { %v14664_v9 = vadd.f32 %v14663_v6, %v14662_v2  ;;  %v15762_v2 = vld [vmem:[#allocation6 + $0x6c8] sm:$0xff]   ;;  %v15766_v6 = vld [vmem:[#allocation6 + $0x6c0] sm:$0xff]  }
 0x384   : > { %v14665_v57 = vpop.f32.mrf.mxu0 }
 0x385   : > { %v2623_v11 = vadd.f32 %v14664_v9, %v2582_v7  ;;  %v15767_v7 = vld [vmem:[#allocation6 + $0x600] sm:$0xff]   ;;  %v15769_v9 = vld [vmem:[#allocation6 + $0x778] sm:$0xff]  }
 0x386   : > { %v14666_v12 = vpop.f32.mrf.mxu0 }
 0x387   : > { %v2629_v14 = vmax.f32 %v2623_v11, 0.0  ;;  %v14667_v3 = vadd.f32 %v14666_v12, %v14665_v57  ;;  %v2660_v57 = vld [vmem:[#allocation3 + $0x18] sm:$0x1] }
 0x389   : > { %2631 = vst [vmem:[#allocation3 + $0x8] sm:$0xff] %v2629_v14  ;;  %v2626_v15 = vadd.f32 %v14667_v3, %v2585_v13  ;;  %v15770_v3 = vld [vmem:[#allocation6 + $0x738] sm:$0xff]  }
 0x38b   : > { %v2630_v16 = vmax.f32 %v2626_v15, 0.0  ;;  %v2662_v15 = vpack.c.bf16 %v2660_v57, %v2660_v57  ;;  %v15812_v57 = vld [vmem:[#allocation6 + $0x808] sm:$0xff]  }
 0x38d   : > { %2632 = vst [vmem:[#allocation3 + $0x10] sm:$0xff] %v2630_v16  ;;  %v2661_v54 = vpack.c.bf16 %v2630_v16, %v2629_v14 }
 0x390   : > { %v2638_v17 = vld [vmem:[#allocation3 + $0x4] sm:$0xff] }
 0x391   : > { %v2648_v18 = vld [vmem:[#allocation3 + $0x6] sm:$0xff] }
 0x392   : > { %v2633_v19 = vld [vmem:[#allocation3 + $0x3] sm:$0xff] }
 0x393   : > { %v2643_v20 = vld [vmem:[#allocation3 + $0x5] sm:$0xff] }
 0x394   : > { %v16532_v23 = vld [vmem:[#allocation3 + $0xc] sm:$0xff]  ;;  %v2640_v29 = vld [vmem:[#allocation3 + $0x14] sm:$0x1]  ;;  %v2650_v30 = vld [vmem:[#allocation3 + $0x16] sm:$0x1] }
 0x395   : > { %v2649_v24 = vld [vmem:[#allocation3 + $0xe] sm:$0xff]  ;;  %v2641_v59 = vpack.c.bf16 %v16532_v23, %v2638_v17  ;;  %v2642_v34 = vpack.c.bf16 %v2640_v29, %v2640_v29  ;;  %v2652_v35 = vpack.c.bf16 %v2650_v30, %v2650_v30  ;;  %v15775_v29 = vld [vmem:[#allocation6 + $0x760] sm:$0xff]  }
 0x396   : > { %v16534_v25 = vld [vmem:[#allocation3 + $0xb] sm:$0xff]  ;;  %v2651_v26 = vpack.c.bf16 %v2649_v24, %v2648_v18  ;;  %v2635_v40 = vld [vmem:[#allocation3 + $0x13] sm:$0x1]  ;;  %v2645_v41 = vld [vmem:[#allocation3 + $0x15] sm:$0x1] }
 0x397   : > { %v2636_v27 = vpack.c.bf16 %v16534_v25, %v2633_v19  ;;  %v2644_v28 = vld [vmem:[#allocation3 + $0xd] sm:$0xff]  ;;  %3362 = vmatprep.mubr.bf16.mxu1 %v2641_v59  ;;  %v2637_v48 = vpack.c.bf16 %v2635_v40, %v2635_v40  ;;  %v2647_v49 = vpack.c.bf16 %v2645_v41, %v2645_v41  ;;  %v2672_v19 = vpack.c.bf16 %v2670_v10, %v2670_v10  ;;  %v2655_v24 = vld [vmem:[#allocation3 + $0x17] sm:$0x1]  ;;  %v15813_v10 = vld [vmem:[#allocation6 + $0x7c0] sm:$0xff]  }
 0x398   : > { %v2646_v31 = vpack.c.bf16 %v2644_v28, %v2643_v20  ;;  %3410 = vmatprep.mubr.bf16.mxu0 %v2651_v26  ;;  %v2668_v45 = vld [vmem:[#allocation3 + $0xa] sm:$0xff]  ;;  %v2669_v46 = vld [vmem:[#allocation3 + $0x12] sm:$0xff]  ;;  %v2657_v28 = vpack.c.bf16 %v2655_v24, %v2655_v24 }
 0x399   : > { %3363 = vmatmul.mubr.bf16.vlgmr.msra.gmra.mxu1 %v2636_v27  ;;  %v2671_v55 = vpack.c.bf16 %v2669_v46, %v2668_v45  ;;  %v2654_v11 = vld [vmem:[#allocation3 + $0xf] sm:$0xff]  ;;  %v2653_v14 = vld [vmem:[#allocation3 + $0x7] sm:$0xff]  ;;  %v15785_v46 = vld [vmem:[#allocation6 + $0x7f8] sm:$0xff]  }
 0x39a   : > { %3411 = vmatmul.mubr.bf16.vlgmr.msra.gmra.mxu0 %v2646_v31  ;;  %14725 = vmatpush3.bf16.msra.mxu1 %v15739_v21  ;;  %v2663_v12 = vld [vmem:[#allocation3 + $0x9] sm:$0xff]  ;;  %v2664_v13 = vld [vmem:[#allocation3 + $0x11] sm:$0xff]  ;;  %v2656_v16 = vpack.c.bf16 %v2654_v11, %v2653_v14  ;;  %v2665_v21 = vld [vmem:[#allocation3 + $0x19] sm:$0x1] }
 0x39b   : > { %14753 = vmatpush3.bf16.msra.mxu0 %v15740_v22  ;;  %3370 = vmatprep.mubr.bf16.mxu1 %v2642_v34  ;;  %v2666_v17 = vpack.c.bf16 %v2664_v13, %v2663_v12  ;;  %v15771_v18 = vld [vmem:[#allocation6 + $0x770] sm:$0xff]   ;;  %v15773_v22 = vld [vmem:[#allocation6 + $0x768] sm:$0xff]   ;;  %v2667_v26 = vpack.c.bf16 %v2665_v21, %v2665_v21  ;;  %v15776_v31 = vld [vmem:[#allocation6 + $0x720] sm:$0xff]  }
 0x39c   : > { %3418 = vmatprep.mubr.bf16.mxu0 %v2652_v35  ;;  %14726 = vmatprep.subr.bf16.mxu1 %v15741_v32  ;;  %v15772_v20 = vld [vmem:[#allocation6 + $0x730] sm:$0xff]   ;;  %v15774_v27 = vld [vmem:[#allocation6 + $0x728] sm:$0xff]   ;;  %v15777_v32 = vld [vmem:[#allocation6 + $0x758] sm:$0xff]  }
 0x39d   : > { %14754 = vmatprep.subr.bf16.mxu0 %v15742_v33  ;;  %v2677_v59 = vld [vmem:[#allocation3 + $0x14] sm:$0xff]  ;;  %v15814_v11 = vld [vmem:[#allocation6 + $0x840] sm:$0xff]  }
 0x39e   : > { %14727 = vmatpush3.bf16.msra.mxu1 %v15743_v36  ;;  %v2679_v30 = vpack.c.bf16 %v2677_v59, %v16532_v23  ;;  %v15778_v33 = vld [vmem:[#allocation6 + $0x718] sm:$0xff]   ;;  %v15779_v34 = vld [vmem:[#allocation6 + $0x750] sm:$0xff]   ;;  %v15781_v36 = vld [vmem:[#allocation6 + $0x748] sm:$0xff]  }
 0x39f   : > { %14755 = vmatpush3.bf16.msra.mxu0 %v15744_v37  ;;  %14728 = vmatprep.subr.bf16.mxu1 %v15745_v38  ;;  %v15780_v35 = vld [vmem:[#allocation6 + $0x710] sm:$0xff]   ;;  %v15782_v37 = vld [vmem:[#allocation6 + $0x708] sm:$0xff]   ;;  %v15783_v38 = vld [vmem:[#allocation6 + $0x740] sm:$0xff]  }
 0x3a0   : > { %14756 = vmatprep.subr.bf16.mxu0 %v15746_v39  ;;  %v15784_v23 = vld [vmem:[#allocation6 + $0x700] sm:$0xff]   ;;  %v2678_v39 = vld [vmem:[#allocation3 + $0x1c] sm:$0x1]  ;;  %v2673_v40 = vld [vmem:[#allocation3 + $0x13] sm:$0xff] }
 0x3a1   : > { %3371 = vmatmul.mubr.bf16.gmra.mxu1 %v2637_v48  ;;  %v2680_v41 = vpack.c.bf16 %v2678_v39, %v2678_v39  ;;  %v15786_v48 = vld [vmem:[#allocation6 + $0x878] sm:$0xff]   ;;  %v15815_v12 = vld [vmem:[#allocation6 + $0x780] sm:$0xff]  }
 0x3a2   : > { %3419 = vmatmul.mubr.bf16.gmra.mxu0 %v2647_v49  ;;  %14729 = vmatpush3.bf16.msra.mxu1 %v15747_v43  ;;  %v2675_v43 = vpack.c.bf16 %v2673_v40, %v16534_v25  ;;  %v15787_v49 = vld [vmem:[#allocation6 + $0x7b8] sm:$0xff]   ;;  %v15793_v25 = vld [vmem:[#allocation6 + $0x7e8] sm:$0xff]   ;;  %v15816_v13 = vld [vmem:[#allocation6 + $0x800] sm:$0xff]  }
 0x3a3   : > { %14757 = vmatpush3.bf16.msra.mxu0 %v15748_v44  ;;  %3458 = vmatprep.mubr.bf16.mxu1 %v2661_v54  ;;  %v2674_v44 = vld [vmem:[#allocation3 + $0x1b] sm:$0x1]  ;;  %v15790_v54 = vld [vmem:[#allocation6 + $0x870] sm:$0xff]  }
 0x3a4   : > { %3506 = vmatprep.mubr.bf16.mxu0 %v2671_v55  ;;  %14730 = vmatprep.subr.bf16.mxu1 %v15749_v51  ;;  %v2676_v45 = vpack.c.bf16 %v2674_v44, %v2674_v44  ;;  %v15788_v51 = vld [vmem:[#allocation6 + $0x838] sm:$0xff]   ;;  %v15791_v55 = vld [vmem:[#allocation6 + $0x7b0] sm:$0xff]  }
 0x3a5   : > { %14758 = vmatprep.subr.bf16.mxu0 %v15750_v52  ;;  %v15789_v52 = vld [vmem:[#allocation6 + $0x7f0] sm:$0xff]   ;;  %v15817_v14 = vld [vmem:[#allocation6 + $0x8f8] sm:$0xff]  }
 0x3a6   : > { %14731 = vmatpush3.bf16.msra.mxu1 %v15751_v56  ;;  %v15792_v56 = vld [vmem:[#allocation6 + $0x830] sm:$0xff]  }
 0x3a7   : > { %14759 = vmatpush3.bf16.msra.mxu0 %v15752_v58  ;;  %14732 = vmatprep.subr.bf16.mxu1 %v15753_v60  ;;  %v15794_v58 = vld [vmem:[#allocation6 + $0x868] sm:$0xff]  }
 0x3a8   : > { %14760 = vmatprep.subr.bf16.mxu0 %v15754_v61  ;;  %v15795_v60 = vld [vmem:[#allocation6 + $0x7a8] sm:$0xff]  }
 0x3a9   : > { %v15796_v61 = vld [vmem:[#allocation6 + $0x828] sm:$0xff]  }
 0x3aa   : > { %14733 = vmatpush3.bf16.msra.mxu1 %v15755_v42  ;;  %v15797_v42 = vld [vmem:[#allocation6 + $0x7e0] sm:$0xff]  }
 0x3ab   : > { %14761 = vmatpush3.bf16.msra.mxu0 %v15756_v47  ;;  %14734 = vmatprep.subr.bf16.mxu1 %v15757_v50  ;;  %v15798_v47 = vld [vmem:[#allocation6 + $0x860] sm:$0xff]  }
 0x3ac   : > { %14762 = vmatprep.subr.bf16.mxu0 %v15758_v53  ;;  %v15799_v50 = vld [vmem:[#allocation6 + $0x7a0] sm:$0xff]  }
 0x3ad   : > { %v15800_v53 = vld [vmem:[#allocation6 + $0x820] sm:$0xff]  }
 0x3ae   : > { %14735 = vmatpush3.bf16.msra.mxu1 %v15759_v62  ;;  %v15801_v62 = vld [vmem:[#allocation6 + $0x7d8] sm:$0xff]  }
 0x3af   : > { %14763 = vmatpush3.bf16.msra.mxu0 %v15760_v63  ;;  %14736 = vmatprep.subr.bf16.mxu1 %v15761_v1  ;;  %v15802_v63 = vld [vmem:[#allocation6 + $0x858] sm:$0xff]  }
 0x3b0   : > { %14764 = vmatprep.subr.bf16.mxu0 %v15762_v2  ;;  %v15803_v1 = vld [vmem:[#allocation6 + $0x798] sm:$0xff]  }
 0x3b1   : > { %v15804_v2 = vld [vmem:[#allocation6 + $0x818] sm:$0xff]  }
 0x3b2   : > { %14737 = vmatpush3.bf16.msra.mxu1 %v15763_v0  ;;  %v15805_v0 = vld [vmem:[#allocation6 + $0x7d0] sm:$0xff]  }
 0x3b3   : > { %14765 = vmatpush3.bf16.msra.mxu0 %v15764_v4  ;;  %14738 = vmatprep.subr.bf16.mxu1 %v15765_v5  ;;  %v15806_v4 = vld [vmem:[#allocation6 + $0x850] sm:$0xff]  }
 0x3b4   : > { %14766 = vmatprep.subr.bf16.mxu0 %v15766_v6  ;;  %v15807_v5 = vld [vmem:[#allocation6 + $0x790] sm:$0xff]  }
 0x3b5   : > { %v15808_v6 = vld [vmem:[#allocation6 + $0x810] sm:$0xff]  }
 0x3b6   : > { %14739 = vmatpush3.bf16.msra.mxu1 %v15767_v7  ;;  %v15809_v7 = vld [vmem:[#allocation6 + $0x7c8] sm:$0xff]  }
 0x3b7   : > { %14767 = vmatpush3.bf16.msra.mxu0 %v15768_v8  ;;  %14780 = vmatprep.subr.bf16.mxu1 %v15769_v9  ;;  %v15810_v8 = vld [vmem:[#allocation6 + $0x848] sm:$0xff]  }
 0x3b8   : > { %14808 = vmatprep.subr.bf16.mxu0 %v15785_v46  ;;  %v15811_v9 = vld [vmem:[#allocation6 + $0x788] sm:$0xff]  }
 0x3b9   : > { %3459 = vmatmul.mubr.bf16.vlgmr.msra.gmra.mxu1 %v2656_v16 }
 0x3ba   : > { %3507 = vmatmul.mubr.bf16.vlgmr.msra.gmra.mxu0 %v2666_v17  ;;  %14781 = vmatpush3.bf16.msra.mxu1 %v15770_v3  ;;  %v15818_v3 = vld [vmem:[#allocation6 + $0x978] sm:$0xff]  }
 0x3bb   : > { %3466 = vmatprep.mubr.bf16.mxu1 %v2662_v15  ;;  %14782 = vmatprep.subr.bf16.mxu1 %v15771_v18 }
 0x3bc   : > { %3514 = vmatprep.mubr.bf16.mxu0 %v2672_v19  ;;  %14809 = vmatpush3.bf16.msra.mxu0 %v15787_v49 }
 0x3bd   : > { %14810 = vmatprep.subr.bf16.mxu0 %v15789_v52 }
 0x3be   : > { %14783 = vmatpush3.bf16.msra.mxu1 %v15772_v20 }
 0x3bf   : > { %14784 = vmatprep.subr.bf16.mxu1 %v15773_v22 }
 0x3c0   : > { %14811 = vmatpush3.bf16.msra.mxu0 %v15791_v55 }
 0x3c1   : > { %3467 = vmatmul.mubr.bf16.gmra.mxu1 %v2657_v28  ;;  %14812 = vmatprep.subr.bf16.mxu0 %v15793_v25 }
 0x3c2   : > { %3515 = vmatmul.mubr.bf16.gmra.mxu0 %v2667_v26  ;;  %14785 = vmatpush3.bf16.msra.mxu1 %v15774_v27 }
 0x3c3   : > { %3554 = vmatprep.mubr.bf16.mxu1 %v2679_v30  ;;  %14786 = vmatprep.subr.bf16.mxu1 %v15775_v29 }
 0x3c4   : > { %14813 = vmatpush3.bf16.msra.mxu0 %v15795_v60 }
 0x3c5   : > { %14814 = vmatprep.subr.bf16.mxu0 %v15797_v42 }
 0x3c6   : > { %14787 = vmatpush3.bf16.msra.mxu1 %v15776_v31 }
 0x3c7   : > { %14788 = vmatprep.subr.bf16.mxu1 %v15777_v32 }
 0x3c8   : > { %14815 = vmatpush3.bf16.msra.mxu0 %v15799_v50 }
 0x3c9   : > { %14816 = vmatprep.subr.bf16.mxu0 %v15801_v62 }
 0x3ca   : > { %14789 = vmatpush3.bf16.msra.mxu1 %v15778_v33 }
 0x3cb   : > { %14790 = vmatprep.subr.bf16.mxu1 %v15779_v34 }
 0x3cc   : > { %14817 = vmatpush3.bf16.msra.mxu0 %v15803_v1 }
 0x3cd   : > { %14818 = vmatprep.subr.bf16.mxu0 %v15805_v0 }
 0x3ce   : > { %14791 = vmatpush3.bf16.msra.mxu1 %v15780_v35 }
 0x3cf   : > { %14792 = vmatprep.subr.bf16.mxu1 %v15781_v36 }
 0x3d0   : > { %14819 = vmatpush3.bf16.msra.mxu0 %v15807_v5 }
 0x3d1   : > { %14820 = vmatprep.subr.bf16.mxu0 %v15809_v7 }
 0x3d2   : > { %14793 = vmatpush3.bf16.msra.mxu1 %v15782_v37 }
 0x3d3   : > { %14794 = vmatprep.subr.bf16.mxu1 %v15783_v38 }
 0x3d4   : > { %14821 = vmatpush3.bf16.msra.mxu0 %v15811_v9 }
 0x3d5   : > { %14822 = vmatprep.subr.bf16.mxu0 %v15813_v10 }
 0x3d6   : > { %14795 = vmatpush3.bf16.msra.mxu1 %v15784_v23 }
 0x3d7   : > { %14830 = vmatprep.subr.bf16.mxu1 %v15786_v48 }
 0x3d8   : > { %14823 = vmatpush3.bf16.msra.mxu0 %v15815_v12 }
 0x3d9   : > { %3555 = vmatmul.mubr.bf16.vlgmr.msra.gmra.mxu1 %v2675_v43  ;;  %14852 = vmatprep.subr.bf16.mxu0 %v15817_v14 }
 0x3da   : > { %3562 = vmatprep.mubr.bf16.mxu1 %v2680_v41  ;;  %14831 = vmatpush3.bf16.msra.mxu1 %v15788_v51  ;;  %v13235_v51 = vld [vmem:[#allocation8 + $0x3] ss:$0 sm:$0xff] }
 0x3db   : > { %14832 = vmatprep.subr.bf16.mxu1 %v15790_v54 }
 0x3de   : > { %14833 = vmatpush3.bf16.msra.mxu1 %v15792_v56 }
 0x3df   : > { %14834 = vmatprep.subr.bf16.mxu1 %v15794_v58 }
 0x3e1   : > { %3563 = vmatmul.mubr.bf16.gmra.mxu1 %v2676_v45 }
 0x3e2   : > { %14835 = vmatpush3.bf16.msra.mxu1 %v15796_v61 }
 0x3e3   : > { %14836 = vmatprep.subr.bf16.mxu1 %v15798_v47 }
 0x3e6   : > { %14837 = vmatpush3.bf16.msra.mxu1 %v15800_v53 }
 0x3e7   : > { %14838 = vmatprep.subr.bf16.mxu1 %v15802_v63 }
 0x3ea   : > { %14839 = vmatpush3.bf16.msra.mxu1 %v15804_v2 }
 0x3eb   : > { %14840 = vmatprep.subr.bf16.mxu1 %v15806_v4 }
 0x3ee   : > { %14841 = vmatpush3.bf16.msra.mxu1 %v15808_v6 }
 0x3ef   : > { %14842 = vmatprep.subr.bf16.mxu1 %v15810_v8 }
 0x3f2   : > { %14843 = vmatpush3.bf16.msra.mxu1 %v15812_v57 }
 0x3f3   : > { %14844 = vmatprep.subr.bf16.mxu1 %v15814_v11 }
 0x3f6   : > { %14845 = vmatpush3.bf16.msra.mxu1 %v15816_v13 }
 0x3f7   : > { %14874 = vmatprep.subr.bf16.mxu1 %v15818_v3 }
 0x459   : > { %v14684_v15 = vpop.f32.mrf.mxu1 }
 0x45a   : > { %v14712_v16 = vpop.f32.mrf.mxu0 }
 0x45b   : > { %v14685_v17 = vpop.f32.mrf.mxu1 }
 0x45c   : > { %v14713_v18 = vpop.f32.mrf.mxu0  ;;  %v14686_v49 = vadd.f32 %v14685_v17, %v14684_v15 }
 0x45d   : > { %v14687_v19 = vpop.f32.mrf.mxu1  ;;  %v14714_v55 = vadd.f32 %v14713_v18, %v14712_v16 }
 0x45e   : > { %v14715_v20 = vpop.f32.mrf.mxu0  ;;  %v3365_v54 = vadd.f32 %v14686_v49, %v13235_v51  ;;  %v15823_v49 = vld [vmem:[#allocation6 + $0x8b0] sm:$0xff]  }
 0x45f   : > { %v14688_v21 = vpop.f32.mrf.mxu1 }
 0x460   : > { %v14716_v22 = vpop.f32.mrf.mxu0  ;;  %v14689_v52 = vadd.f32 %v14688_v21, %v14687_v19  ;;  %v3413_v58 = vadd.f32 %v14714_v55, %v3365_v54  ;;  %v15826_v54 = vld [vmem:[#allocation6 + $0x968] sm:$0xff]  }
 0x461   : > { %v14690_v24 = vpop.f32.mrf.mxu1  ;;  %v14717_v61 = vadd.f32 %v14716_v22, %v14715_v20  ;;  %v15827_v55 = vld [vmem:[#allocation6 + $0x8a8] sm:$0xff]  }
 0x462   : > { %v14718_v59 = vpop.f32.mrf.mxu0  ;;  %v3368_v25 = vadd.f32 %v14689_v52, %v13235_v51  ;;  %v15825_v52 = vld [vmem:[#allocation6 + $0x8e8] sm:$0xff]  }
 0x463   : > { %v14691_v26 = vpop.f32.mrf.mxu1 }
 0x464   : > { %v14719_v27 = vpop.f32.mrf.mxu0  ;;  %v14692_v60 = vadd.f32 %v14691_v26, %v14690_v24  ;;  %v3416_v50 = vadd.f32 %v14717_v61, %v3368_v25  ;;  %v15829_v25 = vld [vmem:[#allocation6 + $0x8e0] sm:$0xff]  }
 0x465   : > { %v14693_v28 = vpop.f32.mrf.mxu1  ;;  %v14720_v0 = vadd.f32 %v14719_v27, %v14718_v59  ;;  %v15832_v61 = vld [vmem:[#allocation6 + $0x920] sm:$0xff]  }
 0x466   : > { %v14721_v29 = vpop.f32.mrf.mxu0  ;;  %v3373_v62 = vadd.f32 %v14692_v60, %v13235_v51  ;;  %v15824_v51 = vld [vmem:[#allocation6 + $0x930] sm:$0xff]   ;;  %v15831_v60 = vld [vmem:[#allocation6 + $0x8a0] sm:$0xff]  }
 0x467   : > { %v14694_v30 = vpop.f32.mrf.mxu1  ;;  %v15819_v29 = vld [vmem:[#allocation6 + $0x8b8] sm:$0xff]  }
 0x468   : > { %v14722_v31 = vpop.f32.mrf.mxu0  ;;  %v3421_v9 = vadd.f32 %v14720_v0, %v3373_v62  ;;  %v15837_v62 = vld [vmem:[#allocation6 + $0x8d0] sm:$0xff]   ;;  %v15841_v0 = vld [vmem:[#allocation6 + $0x8c8] sm:$0xff]  }
 0x479   : > { %v14740_v32 = vpop.f32.mrf.mxu1 }
 0x47a   : > { %v14768_v33 = vpop.f32.mrf.mxu0 }
 0x47b   : > { %v14741_v34 = vpop.f32.mrf.mxu1 }
 0x47c   : > { %v14769_v35 = vpop.f32.mrf.mxu0  ;;  %v14742_v56 = vadd.f32 %v14741_v34, %v14740_v32 }
 0x47d   : > { %v14743_v36 = vpop.f32.mrf.mxu1  ;;  %v14770_v63 = vadd.f32 %v14769_v35, %v14768_v33 }
 0x47e   : > { %v14771_v37 = vpop.f32.mrf.mxu0  ;;  %v3461_v47 = vadd.f32 %v14742_v56, %v3413_v58  ;;  %v15828_v56 = vld [vmem:[#allocation6 + $0x928] sm:$0xff]   ;;  %v15830_v58 = vld [vmem:[#allocation6 + $0x960] sm:$0xff]  }
 0x47f   : > { %v14744_v38 = vpop.f32.mrf.mxu1 }
 0x480   : > { %v14772_v23 = vpop.f32.mrf.mxu0  ;;  %v14745_v42 = vadd.f32 %v14744_v38, %v14743_v36  ;;  %v3509_v4 = vadd.f32 %v14770_v63, %v3461_v47  ;;  %v15820_v38 = vld [vmem:[#allocation6 + $0x938] sm:$0xff]   ;;  %v15838_v63 = vld [vmem:[#allocation6 + $0x950] sm:$0xff]  }
 0x481   : > { %v14746_v39 = vpop.f32.mrf.mxu1  ;;  %v14773_v7 = vadd.f32 %v14772_v23, %v14771_v37  ;;  %v15834_v47 = vld [vmem:[#allocation6 + $0x958] sm:$0xff]  }
 0x482   : > { %v14774_v40 = vpop.f32.mrf.mxu0  ;;  %v3464_v1 = vadd.f32 %v14745_v42, %v3416_v50  ;;  %v15833_v42 = vld [vmem:[#allocation6 + $0x8d8] sm:$0xff]  }
 0x483   : > { %v14747_v41 = vpop.f32.mrf.mxu1  ;;  %v15835_v50 = vld [vmem:[#allocation6 + $0x898] sm:$0xff]  }
 0x484   : > { %v14775_v43 = vpop.f32.mrf.mxu0  ;;  %v14748_v5 = vadd.f32 %v14747_v41, %v14746_v39  ;;  %v3512_v10 = vadd.f32 %v14773_v7, %v3464_v1  ;;  %v15821_v39 = vld [vmem:[#allocation6 + $0x8f0] sm:$0xff]   ;;  %v15845_v7 = vld [vmem:[#allocation6 + $0x8c0] sm:$0xff]  }
 0x485   : > { %v14749_v44 = vpop.f32.mrf.mxu1  ;;  %v14776_v13 = vadd.f32 %v14775_v43, %v14774_v40  ;;  %v15822_v40 = vld [vmem:[#allocation6 + $0x970] sm:$0xff]  }
 0x486   : > { %v14777_v45 = vpop.f32.mrf.mxu0  ;;  %v3469_v12 = vadd.f32 %v14748_v5, %v3421_v9  ;;  %v15839_v1 = vld [vmem:[#allocation6 + $0x890] sm:$0xff]   ;;  %v15843_v5 = vld [vmem:[#allocation6 + $0x888] sm:$0xff]   ;;  %v15847_v9 = vld [vmem:[#allocation6 + $0x880] sm:$0xff]  }
 0x487   : > { %v14750_v46 = vpop.f32.mrf.mxu1 }
 0x488   : > { %v14778_v48 = vpop.f32.mrf.mxu0  ;;  %v3517_v18 = vadd.f32 %v14776_v13, %v3469_v12 }
 0x499   : > { %v14796_v53 = vpop.f32.mrf.mxu1 }
 0x49b   : > { %v14797_v2 = vpop.f32.mrf.mxu1 }
 0x49c   : > { %v14798_v6 = vadd.f32 %v14797_v2, %v14796_v53  ;;  %v15836_v53 = vld [vmem:[#allocation6 + $0x918] sm:$0xff]   ;;  %v15840_v2 = vld [vmem:[#allocation6 + $0x910] sm:$0xff]  }
 0x49d   : > { %v14799_v8 = vpop.f32.mrf.mxu1 }
 0x49e   : > { %v16540_v57 = vadd.f32 %v14798_v6, %v3509_v4  ;;  %v15842_v4 = vld [vmem:[#allocation6 + $0x948] sm:$0xff]  }
 0x49f   : > { %v14800_v11 = vpop.f32.mrf.mxu1  ;;  %v15844_v6 = vld [vmem:[#allocation6 + $0x908] sm:$0xff]  }
 0x4a0   : > { %v3570_v14 = vmax.f32 %v16540_v57, 0.0  ;;  %v14801_v3 = vadd.f32 %v14800_v11, %v14799_v8  ;;  %v15846_v8 = vld [vmem:[#allocation6 + $0x940] sm:$0xff]   ;;  %v15849_v11 = vld [vmem:[#allocation6 + $0x9f8] sm:$0xff]  }
 0x4a1   : > { %v14802_v15 = vpop.f32.mrf.mxu1  ;;  %v15856_v57 = vld [vmem:[#allocation6 + $0x9a0] sm:$0xff]  }
 0x4a2   : > { %3573 = vst [vmem:[#allocation2 + $0x8] sm:$0xff] %v3570_v14  ;;  %v16545_v16 = vadd.f32 %v14801_v3, %v3512_v10  ;;  %v15848_v10 = vld [vmem:[#allocation6 + $0x900] sm:$0xff]  }
 0x4a3   : > { %v14803_v17 = vpop.f32.mrf.mxu1 }
 0x4a4   : > { %v3571_v19 = vmax.f32 %v16545_v16, 0.0  ;;  %v14804_v20 = vadd.f32 %v14803_v17, %v14802_v15  ;;  %v15850_v15 = vld [vmem:[#allocation6 + $0x9b8] sm:$0xff]  }
 0x4a5   : > { %v14805_v21 = vpop.f32.mrf.mxu1  ;;  %v15858_v16 = vld [vmem:[#allocation6 + $0x998] sm:$0xff]  }
 0x4a6   : > { %3574 = vst [vmem:[#allocation2 + $0x10] sm:$0xff] %v3571_v19  ;;  %v3565_v22 = vadd.f32 %v14804_v20, %v3517_v18  ;;  %v3590_v17 = vpack.c.bf16 %v3571_v19, %v3570_v14  ;;  %v15851_v20 = vld [vmem:[#allocation6 + $0x9f0] sm:$0xff]   ;;  %v15857_v14 = vld [vmem:[#allocation6 + $0x9d8] sm:$0xff]  }
 0x4a7   : > { %v14806_v24 = vpop.f32.mrf.mxu1  ;;  %v15859_v19 = vld [vmem:[#allocation6 + $0x9d0] sm:$0xff]  }
 0x4a8   : > { %v3572_v59 = vmax.f32 %v3565_v22, 0.0  ;;  %v15852_v22 = vld [vmem:[#allocation6 + $0x9b0] sm:$0xff]   ;;  %v15853_v24 = vld [vmem:[#allocation6 + $0x9e8] sm:$0xff]  }
 0x4a9   : > { %v3579_v26 = vld [vmem:[#allocation2 + $0x5] sm:$0xff] }
 0x4aa   : > { %3575 = vst [vmem:[#allocation2 + $0x18] sm:$0x1] %v3572_v59  ;;  %v3585_v27 = vld [vmem:[#allocation2 + $0x7] sm:$0xff] }
 0x4ab   : > { %v3576_v28 = vld [vmem:[#allocation2 + $0x4] sm:$0xff] }
 0x4ac   : > { %v3582_v36 = vld [vmem:[#allocation2 + $0x6] sm:$0xff] }
 0x4ad   : > { %v16550_v30 = vld [vmem:[#allocation2 + $0xd] sm:$0xff] }
 0x4ae   : > { %v3586_v31 = vld [vmem:[#allocation2 + $0xf] sm:$0xff]  ;;  %v3581_v33 = vpack.c.bf16 %v16550_v30, %v3579_v26  ;;  %v15855_v26 = vld [vmem:[#allocation6 + $0x9e0] sm:$0xff]  }
 0x4af   : > { %v16552_v32 = vld [vmem:[#allocation2 + $0xc] sm:$0xff]  ;;  %v3587_v34 = vpack.c.bf16 %v3586_v31, %v3585_v27  ;;  %v15864_v31 = vld [vmem:[#allocation6 + $0x980] sm:$0xff]  }
 0x4b0   : > { %v3578_v35 = vpack.c.bf16 %v16552_v32, %v3576_v28  ;;  %v3583_v37 = vld [vmem:[#allocation2 + $0xe] sm:$0xff]  ;;  %4285 = vmatprep.mubr.bf16.mxu0 %v3581_v33 }
 0x4b1   : > { %v3584_v23 = vpack.c.bf16 %v3583_v37, %v3582_v36  ;;  %4326 = vmatprep.mubr.bf16.mxu1 %v3587_v34  ;;  %v3591_v41 = vld [vmem:[#allocation2 + $0x9] sm:$0xff]  ;;  %v3592_v43 = vld [vmem:[#allocation2 + $0x11] sm:$0xff] }
 0x4b2   : > { %4286 = vmatmul.mubr.bf16.vlgmr.msra.gmra.mxu0 %v3578_v35  ;;  %v3597_v44 = vld [vmem:[#allocation2 + $0xb] sm:$0xff]  ;;  %v3598_v45 = vld [vmem:[#allocation2 + $0x13] sm:$0xff]  ;;  %v3593_v46 = vpack.c.bf16 %v3592_v43, %v3591_v41 }
 0x4b3   : > { %4327 = vmatmul.mubr.bf16.vlgmr.msra.gmra.mxu1 %v3584_v23  ;;  %14853 = vmatpush3.bf16.msra.mxu0 %v15819_v29  ;;  %v3599_v48 = vpack.c.bf16 %v3598_v45, %v3597_v44  ;;  %v3595_v12 = vld [vmem:[#allocation2 + $0x12] sm:$0xff]  ;;  %v3594_v3 = vld [vmem:[#allocation2 + $0xa] sm:$0xff] }
 0x4b4   : > { %14875 = vmatpush3.bf16.msra.mxu1 %v15820_v38  ;;  %14854 = vmatprep.subr.bf16.mxu0 %v15821_v39  ;;  %v3602_v13 = vld [vmem:[#allocation2 + $0x15] sm:$0xff]  ;;  %v3596_v18 = vpack.c.bf16 %v3595_v12, %v3594_v3  ;;  %v15854_v59 = vld [vmem:[#allocation6 + $0x9a8] sm:$0xff]  }
 0x4b5   : > { %14876 = vmatprep.subr.bf16.mxu1 %v15822_v40  ;;  %4367 = vmatprep.mubr.bf16.mxu0 %v3593_v46  ;;  %v3603_v21 = vpack.c.bf16 %v3602_v13, %v16550_v30  ;;  %v15860_v27 = vld [vmem:[#allocation6 + $0x990] sm:$0xff]   ;;  %v15861_v28 = vld [vmem:[#allocation6 + $0x9c8] sm:$0xff]   ;;  %v15863_v30 = vld [vmem:[#allocation6 + $0x9c0] sm:$0xff]  }
 0x4b6   : > { %4408 = vmatprep.mubr.bf16.mxu1 %v3599_v48  ;;  %v15862_v29 = vld [vmem:[#allocation6 + $0x988] sm:$0xff]   ;;  %v3600_v33 = vld [vmem:[#allocation2 + $0x14] sm:$0xff]  ;;  %v15877_v46 = vld [vmem:[#allocation6 + $0xa60] sm:$0xff]  }
 0x4b7   : > { %14855 = vmatpush3.bf16.msra.mxu0 %v15823_v49  ;;  %v3601_v34 = vpack.c.bf16 %v3600_v33, %v16552_v32  ;;  %v15865_v35 = vld [vmem:[#allocation6 + $0xa78] sm:$0xff]   ;;  %v15869_v23 = vld [vmem:[#allocation6 + $0xa70] sm:$0xff]   ;;  %v15873_v43 = vld [vmem:[#allocation6 + $0xa68] sm:$0xff]  }
 0x4b8   : > { %14877 = vmatpush3.bf16.msra.mxu1 %v15824_v51  ;;  %14856 = vmatprep.subr.bf16.mxu0 %v15825_v52  ;;  %v15866_v36 = vld [vmem:[#allocation6 + $0xaf8] sm:$0xff]   ;;  %v15870_v39 = vld [vmem:[#allocation6 + $0xaf0] sm:$0xff]   ;;  %v15874_v44 = vld [vmem:[#allocation6 + $0xae8] sm:$0xff]  }
 0x4b9   : > { %14878 = vmatprep.subr.bf16.mxu1 %v15826_v54  ;;  %v15867_v37 = vld [vmem:[#allocation6 + $0xa38] sm:$0xff]   ;;  %v15871_v40 = vld [vmem:[#allocation6 + $0xa30] sm:$0xff]   ;;  %v15875_v32 = vld [vmem:[#allocation6 + $0xa28] sm:$0xff]  }
 0x4ba   : > { %v15868_v38 = vld [vmem:[#allocation6 + $0xab8] sm:$0xff]   ;;  %v15872_v41 = vld [vmem:[#allocation6 + $0xab0] sm:$0xff]   ;;  %v15876_v45 = vld [vmem:[#allocation6 + $0xaa8] sm:$0xff]  }
 0x4bb   : > { %14857 = vmatpush3.bf16.msra.mxu0 %v15827_v55  ;;  %v15878_v48 = vld [vmem:[#allocation6 + $0xae0] sm:$0xff]   ;;  %v15881_v52 = vld [vmem:[#allocation6 + $0xa58] sm:$0xff]  }
 0x4bc   : > { %14879 = vmatpush3.bf16.msra.mxu1 %v15828_v56  ;;  %14858 = vmatprep.subr.bf16.mxu0 %v15829_v25  ;;  %v15879_v49 = vld [vmem:[#allocation6 + $0xa20] sm:$0xff]   ;;  %v15882_v54 = vld [vmem:[#allocation6 + $0xad8] sm:$0xff]   ;;  %v15885_v25 = vld [vmem:[#allocation6 + $0xa50] sm:$0xff]  }
 0x4bd   : > { %14880 = vmatprep.subr.bf16.mxu1 %v15830_v58  ;;  %v15880_v51 = vld [vmem:[#allocation6 + $0xaa0] sm:$0xff]   ;;  %v15883_v55 = vld [vmem:[#allocation6 + $0xa18] sm:$0xff]   ;;  %v15886_v58 = vld [vmem:[#allocation6 + $0xad0] sm:$0xff]  }
 0x4be   : > { %v15884_v56 = vld [vmem:[#allocation6 + $0xa98] sm:$0xff]  }
 0x4bf   : > { %14859 = vmatpush3.bf16.msra.mxu0 %v15831_v60  ;;  %v15887_v60 = vld [vmem:[#allocation6 + $0xa10] sm:$0xff]  }
 0x4c0   : > { %14881 = vmatpush3.bf16.msra.mxu1 %v15832_v61  ;;  %14860 = vmatprep.subr.bf16.mxu0 %v15833_v42  ;;  %v15888_v61 = vld [vmem:[#allocation6 + $0xa90] sm:$0xff]   ;;  %v15889_v42 = vld [vmem:[#allocation6 + $0xa48] sm:$0xff]  }
 0x4c1   : > { %14882 = vmatprep.subr.bf16.mxu1 %v15834_v47  ;;  %v15890_v47 = vld [vmem:[#allocation6 + $0xac8] sm:$0xff]  }
 0x4c3   : > { %14861 = vmatpush3.bf16.msra.mxu0 %v15835_v50  ;;  %v15891_v50 = vld [vmem:[#allocation6 + $0xa08] sm:$0xff]  }
 0x4c4   : > { %14883 = vmatpush3.bf16.msra.mxu1 %v15836_v53  ;;  %14862 = vmatprep.subr.bf16.mxu0 %v15837_v62  ;;  %v15892_v53 = vld [vmem:[#allocation6 + $0xa88] sm:$0xff]   ;;  %v15893_v62 = vld [vmem:[#allocation6 + $0xa40] sm:$0xff]  }
 0x4c5   : > { %14884 = vmatprep.subr.bf16.mxu1 %v15838_v63  ;;  %v15894_v63 = vld [vmem:[#allocation6 + $0xac0] sm:$0xff]  }
 0x4c7   : > { %14863 = vmatpush3.bf16.msra.mxu0 %v15839_v1  ;;  %v15895_v1 = vld [vmem:[#allocation6 + $0xa00] sm:$0xff]  }
 0x4c8   : > { %14885 = vmatpush3.bf16.msra.mxu1 %v15840_v2  ;;  %14864 = vmatprep.subr.bf16.mxu0 %v15841_v0  ;;  %v15896_v2 = vld [vmem:[#allocation6 + $0xa80] sm:$0xff]   ;;  %v15897_v0 = vld [vmem:[#allocation6 + $0xb78] sm:$0xff]  }
 0x4c9   : > { %14886 = vmatprep.subr.bf16.mxu1 %v15842_v4  ;;  %v15898_v4 = vld [vmem:[#allocation6 + $0xbf8] sm:$0xff]  }
 0x4cb   : > { %14865 = vmatpush3.bf16.msra.mxu0 %v15843_v5 }
 0x4cc   : > { %14887 = vmatpush3.bf16.msra.mxu1 %v15844_v6  ;;  %14866 = vmatprep.subr.bf16.mxu0 %v15845_v7 }
 0x4cd   : > { %14888 = vmatprep.subr.bf16.mxu1 %v15846_v8 }
 0x4cf   : > { %14867 = vmatpush3.bf16.msra.mxu0 %v15847_v9 }
 0x4d0   : > { %14889 = vmatpush3.bf16.msra.mxu1 %v15848_v10  ;;  %14896 = vmatprep.subr.bf16.mxu0 %v15849_v11 }
 0x4d1   : > { %14918 = vmatprep.subr.bf16.mxu1 %v15865_v35 }
 0x4d2   : > { %4368 = vmatmul.mubr.bf16.vlgmr.msra.gmra.mxu0 %v3590_v17  ;;  %v13316_v17 = vld [vmem:[#allocation8 + $0x4] ss:$0 sm:$0xff] }
 0x4d3   : > { %4409 = vmatmul.mubr.bf16.vlgmr.msra.gmra.mxu1 %v3596_v18  ;;  %14897 = vmatpush3.bf16.msra.mxu0 %v15850_v15 }
 0x4d4   : > { %4449 = vmatprep.mubr.bf16.mxu0 %v3603_v21  ;;  %14898 = vmatprep.subr.bf16.mxu0 %v15851_v20 }
 0x4d5   : > { %14919 = vmatpush3.bf16.msra.mxu1 %v15867_v37 }
 0x4d6   : > { %14920 = vmatprep.subr.bf16.mxu1 %v15869_v23 }
 0x4d7   : > { %14899 = vmatpush3.bf16.msra.mxu0 %v15852_v22 }
 0x4d8   : > { %14900 = vmatprep.subr.bf16.mxu0 %v15853_v24 }
 0x4d9   : > { %14921 = vmatpush3.bf16.msra.mxu1 %v15871_v40 }
 0x4da   : > { %14922 = vmatprep.subr.bf16.mxu1 %v15873_v43 }
 0x4db   : > { %14901 = vmatpush3.bf16.msra.mxu0 %v15854_v59 }
 0x4dc   : > { %14902 = vmatprep.subr.bf16.mxu0 %v15855_v26 }
 0x4dd   : > { %14923 = vmatpush3.bf16.msra.mxu1 %v15875_v32 }
 0x4de   : > { %14924 = vmatprep.subr.bf16.mxu1 %v15877_v46 }
 0x4df   : > { %14903 = vmatpush3.bf16.msra.mxu0 %v15856_v57 }
 0x4e0   : > { %14904 = vmatprep.subr.bf16.mxu0 %v15857_v14 }
 0x4e1   : > { %14925 = vmatpush3.bf16.msra.mxu1 %v15879_v49 }
 0x4e2   : > { %14926 = vmatprep.subr.bf16.mxu1 %v15881_v52 }
 0x4e3   : > { %14905 = vmatpush3.bf16.msra.mxu0 %v15858_v16 }
 0x4e4   : > { %14906 = vmatprep.subr.bf16.mxu0 %v15859_v19 }
 0x4e5   : > { %14927 = vmatpush3.bf16.msra.mxu1 %v15883_v55  ;;  %v15900_v55 = vld [vmem:[#allocation6 + $0xbb8] sm:$0xff]  }
 0x4e6   : > { %14928 = vmatprep.subr.bf16.mxu1 %v15885_v25 }
 0x4e7   : > { %14907 = vmatpush3.bf16.msra.mxu0 %v15860_v27 }
 0x4e8   : > { %14908 = vmatprep.subr.bf16.mxu0 %v15861_v28 }
 0x4e9   : > { %14929 = vmatpush3.bf16.msra.mxu1 %v15887_v60 }
 0x4ea   : > { %14930 = vmatprep.subr.bf16.mxu1 %v15889_v42 }
 0x4eb   : > { %14909 = vmatpush3.bf16.msra.mxu0 %v15862_v29 }
 0x4ec   : > { %14910 = vmatprep.subr.bf16.mxu0 %v15863_v30 }
 0x4ed   : > { %14931 = vmatpush3.bf16.msra.mxu1 %v15891_v50 }
 0x4ee   : > { %14932 = vmatprep.subr.bf16.mxu1 %v15893_v62 }
 0x4ef   : > { %14911 = vmatpush3.bf16.msra.mxu0 %v15864_v31 }
 0x4f0   : > { %14946 = vmatprep.subr.bf16.mxu0 %v15866_v36 }
 0x4f1   : > { %14933 = vmatpush3.bf16.msra.mxu1 %v15895_v1  ;;  %v15902_v1 = vld [vmem:[#allocation6 + $0xbf0] sm:$0xff]  }
 0x4f2   : > { %4450 = vmatmul.mubr.bf16.vlgmr.msra.gmra.mxu0 %v3601_v34  ;;  %14974 = vmatprep.subr.bf16.mxu1 %v15897_v0 }
 0x4f3   : > { %14947 = vmatpush3.bf16.msra.mxu0 %v15868_v38 }
 0x4f4   : > { %14948 = vmatprep.subr.bf16.mxu0 %v15870_v39 }
 0x4f7   : > { %14949 = vmatpush3.bf16.msra.mxu0 %v15872_v41 }
 0x4f8   : > { %14950 = vmatprep.subr.bf16.mxu0 %v15874_v44 }
 0x4fb   : > { %14951 = vmatpush3.bf16.msra.mxu0 %v15876_v45 }
 0x4fc   : > { %14952 = vmatprep.subr.bf16.mxu0 %v15878_v48 }
 0x4ff   : > { %14953 = vmatpush3.bf16.msra.mxu0 %v15880_v51 }
 0x500   : > { %14954 = vmatprep.subr.bf16.mxu0 %v15882_v54  ;;  %v15899_v54 = vld [vmem:[#allocation6 + $0xb38] sm:$0xff]  }
 0x503   : > { %14955 = vmatpush3.bf16.msra.mxu0 %v15884_v56 }
 0x504   : > { %14956 = vmatprep.subr.bf16.mxu0 %v15886_v58 }
 0x507   : > { %14957 = vmatpush3.bf16.msra.mxu0 %v15888_v61 }
 0x508   : > { %14958 = vmatprep.subr.bf16.mxu0 %v15890_v47 }
 0x50b   : > { %14959 = vmatpush3.bf16.msra.mxu0 %v15892_v53 }
 0x50c   : > { %14960 = vmatprep.subr.bf16.mxu0 %v15894_v63  ;;  %v15901_v63 = vld [vmem:[#allocation6 + $0xb70] sm:$0xff]  }
 0x50f   : > { %14961 = vmatpush3.bf16.msra.mxu0 %v15896_v2 }
 0x510   : > { %15002 = vmatprep.subr.bf16.mxu0 %v15898_v4  ;;  %v15903_v4 = vld [vmem:[#allocation6 + $0xb30] sm:$0xff]  }
 0x572   : > { %v14824_v5 = vpop.f32.mrf.mxu0 }
 0x573   : > { %v14846_v7 = vpop.f32.mrf.mxu1 }
 0x574   : > { %v14825_v6 = vpop.f32.mrf.mxu0 }
 0x575   : > { %v14847_v9 = vpop.f32.mrf.mxu1  ;;  %v14826_v15 = vadd.f32 %v14825_v6, %v14824_v5  ;;  %v15904_v5 = vld [vmem:[#allocation6 + $0xbb0] sm:$0xff]   ;;  %v15905_v6 = vld [vmem:[#allocation6 + $0xb68] sm:$0xff]  }
 0x576   : > { %v14827_v8 = vpop.f32.mrf.mxu0  ;;  %v14848_v59 = vadd.f32 %v14847_v9, %v14846_v7  ;;  %v15906_v7 = vld [vmem:[#allocation6 + $0xbe8] sm:$0xff]  }
 0x577   : > { %v14849_v11 = vpop.f32.mrf.mxu1  ;;  %v4288_v21 = vadd.f32 %v14826_v15, %v13316_v17 }
 0x578   : > { %v14828_v10 = vpop.f32.mrf.mxu0 }
 0x579   : > { %v14850_v13 = vpop.f32.mrf.mxu1  ;;  %v14829_v22 = vadd.f32 %v14828_v10, %v14827_v8  ;;  %v4329_v14 = vadd.f32 %v14848_v59, %v4288_v21  ;;  %v15907_v10 = vld [vmem:[#allocation6 + $0xb28] sm:$0xff]   ;;  %v15913_v59 = vld [vmem:[#allocation6 + $0xb58] sm:$0xff]  }
 0x57a   : > { %v14851_v27 = vadd.f32 %v14850_v13, %v14849_v11  ;;  %v15908_v11 = vld [vmem:[#allocation6 + $0xba8] sm:$0xff]  }
 0x57b   : > { %v4291_v16 = vadd.f32 %v14829_v22, %v13316_v17  ;;  %v15909_v17 = vld [vmem:[#allocation6 + $0xb60] sm:$0xff]  }
 0x57c   : > { %v15911_v22 = vld [vmem:[#allocation6 + $0xb20] sm:$0xff]  }
 0x57d   : > { %v4332_v31 = vadd.f32 %v14851_v27, %v4291_v16  ;;  %v15917_v16 = vld [vmem:[#allocation6 + $0xb50] sm:$0xff]  }
 0x57e   : > { %v15919_v27 = vld [vmem:[#allocation6 + $0xb10] sm:$0xff]  }
 0x592   : > { %v14868_v12 = vpop.f32.mrf.mxu0 }
 0x593   : > { %v14890_v18 = vpop.f32.mrf.mxu1 }
 0x594   : > { %v14869_v3 = vpop.f32.mrf.mxu0 }
 0x595   : > { %v14891_v24 = vpop.f32.mrf.mxu1  ;;  %v14870_v26 = vadd.f32 %v14869_v3, %v14868_v12 }
 0x596   : > { %v14871_v20 = vpop.f32.mrf.mxu0  ;;  %v14892_v33 = vadd.f32 %v14891_v24, %v14890_v18  ;;  %v15910_v18 = vld [vmem:[#allocation6 + $0xbe0] sm:$0xff]  }
 0x597   : > { %v14893_v19 = vpop.f32.mrf.mxu1  ;;  %v4370_v28 = vadd.f32 %v14870_v26, %v4329_v14  ;;  %v15912_v24 = vld [vmem:[#allocation6 + $0xba0] sm:$0xff]   ;;  %v15914_v26 = vld [vmem:[#allocation6 + $0xbd8] sm:$0xff]  }
 0x598   : > { %v14872_v57 = vpop.f32.mrf.mxu0  ;;  %v15916_v14 = vld [vmem:[#allocation6 + $0xb98] sm:$0xff]  }
 0x599   : > { %v14873_v29 = vadd.f32 %v14872_v57, %v14871_v20  ;;  %v14894_v34 = vpop.f32.mrf.mxu1  ;;  %v4411_v36 = vadd.f32 %v14892_v33, %v4370_v28  ;;  %v15915_v57 = vld [vmem:[#allocation6 + $0xb18] sm:$0xff]   ;;  %v15920_v28 = vld [vmem:[#allocation6 + $0xb90] sm:$0xff]   ;;  %v15924_v33 = vld [vmem:[#allocation6 + $0xb88] sm:$0xff]  }
 0x59a   : > { %v14895_v39 = vadd.f32 %v14894_v34, %v14893_v19  ;;  %v15918_v19 = vld [vmem:[#allocation6 + $0xbd0] sm:$0xff]   ;;  %v15925_v34 = vld [vmem:[#allocation6 + $0xb40] sm:$0xff]  }
 0x59b   : > { %v4373_v37 = vadd.f32 %v14873_v29, %v4332_v31  ;;  %v15921_v29 = vld [vmem:[#allocation6 + $0xb48] sm:$0xff]  }
 0x59c   : > { %v15923_v31 = vld [vmem:[#allocation6 + $0xb08] sm:$0xff]  }
 0x59d   : > { %v4414_v43 = vadd.f32 %v14895_v39, %v4373_v37  ;;  %v15928_v37 = vld [vmem:[#allocation6 + $0xb80] sm:$0xff]   ;;  %v4499_v39 = vld [vmem:[#allocation3 + $0x1a] sm:$0x1] }
 0x5b2   : > { %v14912_v30 = vpop.f32.mrf.mxu0 }
 0x5b4   : > { %v14913_v35 = vpop.f32.mrf.mxu0 }
 0x5b5   : > { %v14914_v38 = vadd.f32 %v14913_v35, %v14912_v30  ;;  %v15922_v30 = vld [vmem:[#allocation6 + $0xbc8] sm:$0xff]   ;;  %v15926_v35 = vld [vmem:[#allocation6 + $0xbc0] sm:$0xff]  }
 0x5b6   : > { %v14915_v23 = vpop.f32.mrf.mxu0 }
 0x5b7   : > { %v4452_v40 = vadd.f32 %v14914_v38, %v4411_v36  ;;  %v15927_v36 = vld [vmem:[#allocation6 + $0xb00] sm:$0xff]   ;;  %v15929_v38 = vld [vmem:[#allocation6 + $0xc78] sm:$0xff]  }
 0x5b8   : > { %v14916_v41 = vpop.f32.mrf.mxu0 }
 0x5b9   : > { %v4458_v44 = vmax.f32 %v4452_v40, 0.0  ;;  %v14917_v32 = vadd.f32 %v14916_v41, %v14915_v23  ;;  %v4489_v23 = vld [vmem:[#allocation3 + $0x18] sm:$0x1] }
 0x5bb   : > { %4460 = vst [vmem:[#allocation3 + $0x8] sm:$0xff] %v4458_v44  ;;  %v4455_v45 = vadd.f32 %v14917_v32, %v4414_v43  ;;  %v15930_v32 = vld [vmem:[#allocation6 + $0xc38] sm:$0xff]  }
 0x5bd   : > { %v4459_v46 = vmax.f32 %v4455_v45, 0.0  ;;  %v4491_v45 = vpack.c.bf16 %v4489_v23, %v4489_v23  ;;  %v15972_v23 = vld [vmem:[#allocation6 + $0xd08] sm:$0xff]  }
 0x5bf   : > { %4461 = vst [vmem:[#allocation3 + $0x10] sm:$0xff] %v4459_v46  ;;  %v4490_v20 = vpack.c.bf16 %v4459_v46, %v4458_v44 }
 0x5c2   : > { %v4467_v48 = vld [vmem:[#allocation3 + $0x4] sm:$0xff] }
 0x5c3   : > { %v4477_v49 = vld [vmem:[#allocation3 + $0x6] sm:$0xff] }
 0x5c4   : > { %v4462_v51 = vld [vmem:[#allocation3 + $0x3] sm:$0xff] }
 0x5c5   : > { %v4472_v52 = vld [vmem:[#allocation3 + $0x5] sm:$0xff] }
 0x5c6   : > { %v16562_v56 = vld [vmem:[#allocation3 + $0xc] sm:$0xff]  ;;  %v4469_v50 = vld [vmem:[#allocation3 + $0x14] sm:$0x1]  ;;  %v4479_v53 = vld [vmem:[#allocation3 + $0x16] sm:$0x1] }
 0x5c7   : > { %v4478_v25 = vld [vmem:[#allocation3 + $0xe] sm:$0xff]  ;;  %v4470_v60 = vpack.c.bf16 %v16562_v56, %v4467_v48  ;;  %v4471_v2 = vpack.c.bf16 %v4469_v50, %v4469_v50  ;;  %v4481_v0 = vpack.c.bf16 %v4479_v53, %v4479_v53  ;;  %v15935_v50 = vld [vmem:[#allocation6 + $0xc60] sm:$0xff]  }
 0x5c8   : > { %v16564_v58 = vld [vmem:[#allocation3 + $0xb] sm:$0xff]  ;;  %v4480_v61 = vpack.c.bf16 %v4478_v25, %v4477_v49  ;;  %v4464_v8 = vld [vmem:[#allocation3 + $0x13] sm:$0x1]  ;;  %v4474_v9 = vld [vmem:[#allocation3 + $0x15] sm:$0x1] }
 0x5c9   : > { %v4465_v42 = vpack.c.bf16 %v16564_v58, %v4462_v51  ;;  %v4473_v47 = vld [vmem:[#allocation3 + $0xd] sm:$0xff]  ;;  %5191 = vmatprep.mubr.bf16.mxu1 %v4470_v60  ;;  %v4466_v3 = vpack.c.bf16 %v4464_v8, %v4464_v8  ;;  %v4476_v15 = vpack.c.bf16 %v4474_v9, %v4474_v9  ;;  %v4501_v51 = vpack.c.bf16 %v4499_v39, %v4499_v39  ;;  %v4484_v25 = vld [vmem:[#allocation3 + $0x17] sm:$0x1]  ;;  %v15973_v39 = vld [vmem:[#allocation6 + $0xcc0] sm:$0xff]  }
 0x5ca   : > { %v4475_v62 = vpack.c.bf16 %v4473_v47, %v4472_v52  ;;  %5239 = vmatprep.mubr.bf16.mxu0 %v4480_v61  ;;  %v4497_v12 = vld [vmem:[#allocation3 + $0xa] sm:$0xff]  ;;  %v4498_v13 = vld [vmem:[#allocation3 + $0x12] sm:$0xff]  ;;  %v4486_v47 = vpack.c.bf16 %v4484_v25, %v4484_v25 }
 0x5cb   : > { %5192 = vmatmul.mubr.bf16.vlgmr.msra.gmra.mxu1 %v4465_v42  ;;  %v4500_v21 = vpack.c.bf16 %v4498_v13, %v4497_v12  ;;  %v4483_v40 = vld [vmem:[#allocation3 + $0xf] sm:$0xff]  ;;  %v4482_v44 = vld [vmem:[#allocation3 + $0x7] sm:$0xff]  ;;  %v15945_v13 = vld [vmem:[#allocation6 + $0xcf8] sm:$0xff]  }
 0x5cc   : > { %5240 = vmatmul.mubr.bf16.vlgmr.msra.gmra.mxu0 %v4475_v62  ;;  %14975 = vmatpush3.bf16.msra.mxu1 %v15899_v54  ;;  %v4492_v41 = vld [vmem:[#allocation3 + $0x9] sm:$0xff]  ;;  %v4493_v43 = vld [vmem:[#allocation3 + $0x11] sm:$0xff]  ;;  %v4485_v46 = vpack.c.bf16 %v4483_v40, %v4482_v44  ;;  %v4494_v54 = vld [vmem:[#allocation3 + $0x19] sm:$0x1] }
 0x5cd   : > { %15003 = vmatpush3.bf16.msra.mxu0 %v15900_v55  ;;  %5199 = vmatprep.mubr.bf16.mxu1 %v4471_v2  ;;  %v4495_v48 = vpack.c.bf16 %v4493_v43, %v4492_v41  ;;  %v15931_v49 = vld [vmem:[#allocation6 + $0xc70] sm:$0xff]   ;;  %v15933_v55 = vld [vmem:[#allocation6 + $0xc68] sm:$0xff]   ;;  %v4496_v61 = vpack.c.bf16 %v4494_v54, %v4494_v54  ;;  %v15936_v62 = vld [vmem:[#allocation6 + $0xc20] sm:$0xff]  }
 0x5ce   : > { %5247 = vmatprep.mubr.bf16.mxu0 %v4481_v0  ;;  %14976 = vmatprep.subr.bf16.mxu1 %v15901_v63  ;;  %v15932_v52 = vld [vmem:[#allocation6 + $0xc30] sm:$0xff]   ;;  %v15934_v42 = vld [vmem:[#allocation6 + $0xc28] sm:$0xff]   ;;  %v15937_v63 = vld [vmem:[#allocation6 + $0xc58] sm:$0xff]  }
 0x5cf   : > { %15004 = vmatprep.subr.bf16.mxu0 %v15902_v1  ;;  %v4506_v60 = vld [vmem:[#allocation3 + $0x14] sm:$0xff]  ;;  %v15974_v40 = vld [vmem:[#allocation6 + $0xd40] sm:$0xff]  }
 0x5d0   : > { %14977 = vmatpush3.bf16.msra.mxu1 %v15903_v4  ;;  %v4508_v53 = vpack.c.bf16 %v4506_v60, %v16562_v56  ;;  %v15938_v1 = vld [vmem:[#allocation6 + $0xc18] sm:$0xff]   ;;  %v15939_v2 = vld [vmem:[#allocation6 + $0xc50] sm:$0xff]   ;;  %v15941_v4 = vld [vmem:[#allocation6 + $0xc48] sm:$0xff]  }
 0x5d1   : > { %15005 = vmatpush3.bf16.msra.mxu0 %v15904_v5  ;;  %14978 = vmatprep.subr.bf16.mxu1 %v15905_v6  ;;  %v15940_v0 = vld [vmem:[#allocation6 + $0xc10] sm:$0xff]   ;;  %v15942_v5 = vld [vmem:[#allocation6 + $0xc08] sm:$0xff]   ;;  %v15943_v6 = vld [vmem:[#allocation6 + $0xc40] sm:$0xff]  }
 0x5d2   : > { %15006 = vmatprep.subr.bf16.mxu0 %v15906_v7  ;;  %v15944_v56 = vld [vmem:[#allocation6 + $0xc00] sm:$0xff]   ;;  %v4507_v7 = vld [vmem:[#allocation3 + $0x1c] sm:$0x1]  ;;  %v4502_v8 = vld [vmem:[#allocation3 + $0x13] sm:$0xff] }
 0x5d3   : > { %5200 = vmatmul.mubr.bf16.gmra.mxu1 %v4466_v3  ;;  %v4509_v9 = vpack.c.bf16 %v4507_v7, %v4507_v7  ;;  %v15946_v3 = vld [vmem:[#allocation6 + $0xd78] sm:$0xff]   ;;  %v15975_v41 = vld [vmem:[#allocation6 + $0xc80] sm:$0xff]  }
 0x5d4   : > { %5248 = vmatmul.mubr.bf16.gmra.mxu0 %v4476_v15  ;;  %14979 = vmatpush3.bf16.msra.mxu1 %v15907_v10  ;;  %v4504_v10 = vpack.c.bf16 %v4502_v8, %v16564_v58  ;;  %v15947_v15 = vld [vmem:[#allocation6 + $0xcb8] sm:$0xff]   ;;  %v15953_v58 = vld [vmem:[#allocation6 + $0xce8] sm:$0xff]   ;;  %v15976_v43 = vld [vmem:[#allocation6 + $0xd00] sm:$0xff]  }
 0x5d5   : > { %15007 = vmatpush3.bf16.msra.mxu0 %v15908_v11  ;;  %5287 = vmatprep.mubr.bf16.mxu1 %v4490_v20  ;;  %v4503_v11 = vld [vmem:[#allocation3 + $0x1b] sm:$0x1]  ;;  %v15950_v20 = vld [vmem:[#allocation6 + $0xd70] sm:$0xff]  }
 0x5d6   : > { %5335 = vmatprep.mubr.bf16.mxu0 %v4500_v21  ;;  %14980 = vmatprep.subr.bf16.mxu1 %v15909_v17  ;;  %v4505_v12 = vpack.c.bf16 %v4503_v11, %v4503_v11  ;;  %v15948_v17 = vld [vmem:[#allocation6 + $0xd38] sm:$0xff]   ;;  %v15951_v21 = vld [vmem:[#allocation6 + $0xcb0] sm:$0xff]  }
 0x5d7   : > { %15008 = vmatprep.subr.bf16.mxu0 %v15910_v18  ;;  %v15949_v18 = vld [vmem:[#allocation6 + $0xcf0] sm:$0xff]   ;;  %v15977_v44 = vld [vmem:[#allocation6 + $0xdf8] sm:$0xff]  }
 0x5d8   : > { %14981 = vmatpush3.bf16.msra.mxu1 %v15911_v22  ;;  %v15952_v22 = vld [vmem:[#allocation6 + $0xd30] sm:$0xff]  }
 0x5d9   : > { %15009 = vmatpush3.bf16.msra.mxu0 %v15912_v24  ;;  %14982 = vmatprep.subr.bf16.mxu1 %v15913_v59  ;;  %v15954_v24 = vld [vmem:[#allocation6 + $0xd68] sm:$0xff]  }
 0x5da   : > { %15010 = vmatprep.subr.bf16.mxu0 %v15914_v26  ;;  %v15955_v59 = vld [vmem:[#allocation6 + $0xca8] sm:$0xff]  }
 0x5db   : > { %v15956_v26 = vld [vmem:[#allocation6 + $0xd28] sm:$0xff]  }
 0x5dc   : > { %14983 = vmatpush3.bf16.msra.mxu1 %v15915_v57  ;;  %v15957_v57 = vld [vmem:[#allocation6 + $0xce0] sm:$0xff]  }
 0x5dd   : > { %15011 = vmatpush3.bf16.msra.mxu0 %v15916_v14  ;;  %14984 = vmatprep.subr.bf16.mxu1 %v15917_v16  ;;  %v15958_v14 = vld [vmem:[#allocation6 + $0xd60] sm:$0xff]  }
 0x5de   : > { %15012 = vmatprep.subr.bf16.mxu0 %v15918_v19  ;;  %v15959_v16 = vld [vmem:[#allocation6 + $0xca0] sm:$0xff]  }
 0x5df   : > { %v15960_v19 = vld [vmem:[#allocation6 + $0xd20] sm:$0xff]  }
 0x5e0   : > { %14985 = vmatpush3.bf16.msra.mxu1 %v15919_v27  ;;  %v15961_v27 = vld [vmem:[#allocation6 + $0xcd8] sm:$0xff]  }
 0x5e1   : > { %15013 = vmatpush3.bf16.msra.mxu0 %v15920_v28  ;;  %14986 = vmatprep.subr.bf16.mxu1 %v15921_v29  ;;  %v15962_v28 = vld [vmem:[#allocation6 + $0xd58] sm:$0xff]  }
 0x5e2   : > { %15014 = vmatprep.subr.bf16.mxu0 %v15922_v30  ;;  %v15963_v29 = vld [vmem:[#allocation6 + $0xc98] sm:$0xff]  }
 0x5e3   : > { %v15964_v30 = vld [vmem:[#allocation6 + $0xd18] sm:$0xff]  }
 0x5e4   : > { %14987 = vmatpush3.bf16.msra.mxu1 %v15923_v31  ;;  %v15965_v31 = vld [vmem:[#allocation6 + $0xcd0] sm:$0xff]  }
 0x5e5   : > { %15015 = vmatpush3.bf16.msra.mxu0 %v15924_v33  ;;  %14988 = vmatprep.subr.bf16.mxu1 %v15925_v34  ;;  %v15966_v33 = vld [vmem:[#allocation6 + $0xd50] sm:$0xff]  }
 0x5e6   : > { %15016 = vmatprep.subr.bf16.mxu0 %v15926_v35  ;;  %v15967_v34 = vld [vmem:[#allocation6 + $0xc90] sm:$0xff]  }
 0x5e7   : > { %v15968_v35 = vld [vmem:[#allocation6 + $0xd10] sm:$0xff]  }
 0x5e8   : > { %14989 = vmatpush3.bf16.msra.mxu1 %v15927_v36  ;;  %v15969_v36 = vld [vmem:[#allocation6 + $0xcc8] sm:$0xff]  }
 0x5e9   : > { %15017 = vmatpush3.bf16.msra.mxu0 %v15928_v37  ;;  %15030 = vmatprep.subr.bf16.mxu1 %v15929_v38  ;;  %v15970_v37 = vld [vmem:[#allocation6 + $0xd48] sm:$0xff]  }
 0x5ea   : > { %15058 = vmatprep.subr.bf16.mxu0 %v15945_v13  ;;  %v15971_v38 = vld [vmem:[#allocation6 + $0xc88] sm:$0xff]  }
 0x5eb   : > { %5288 = vmatmul.mubr.bf16.vlgmr.msra.gmra.mxu1 %v4485_v46 }
 0x5ec   : > { %5336 = vmatmul.mubr.bf16.vlgmr.msra.gmra.mxu0 %v4495_v48  ;;  %15031 = vmatpush3.bf16.msra.mxu1 %v15930_v32  ;;  %v15978_v32 = vld [vmem:[#allocation6 + $0xe78] sm:$0xff]  }
 0x5ed   : > { %5295 = vmatprep.mubr.bf16.mxu1 %v4491_v45  ;;  %15032 = vmatprep.subr.bf16.mxu1 %v15931_v49 }
 0x5ee   : > { %5343 = vmatprep.mubr.bf16.mxu0 %v4501_v51  ;;  %15059 = vmatpush3.bf16.msra.mxu0 %v15947_v15 }
 0x5ef   : > { %15060 = vmatprep.subr.bf16.mxu0 %v15949_v18 }
 0x5f0   : > { %15033 = vmatpush3.bf16.msra.mxu1 %v15932_v52 }
 0x5f1   : > { %15034 = vmatprep.subr.bf16.mxu1 %v15933_v55 }
 0x5f2   : > { %15061 = vmatpush3.bf16.msra.mxu0 %v15951_v21 }
 0x5f3   : > { %5296 = vmatmul.mubr.bf16.gmra.mxu1 %v4486_v47  ;;  %15062 = vmatprep.subr.bf16.mxu0 %v15953_v58 }
 0x5f4   : > { %5344 = vmatmul.mubr.bf16.gmra.mxu0 %v4496_v61  ;;  %15035 = vmatpush3.bf16.msra.mxu1 %v15934_v42 }
 0x5f5   : > { %5383 = vmatprep.mubr.bf16.mxu1 %v4508_v53  ;;  %15036 = vmatprep.subr.bf16.mxu1 %v15935_v50 }
 0x5f6   : > { %15063 = vmatpush3.bf16.msra.mxu0 %v15955_v59 }
 0x5f7   : > { %15064 = vmatprep.subr.bf16.mxu0 %v15957_v57 }
 0x5f8   : > { %15037 = vmatpush3.bf16.msra.mxu1 %v15936_v62 }
 0x5f9   : > { %15038 = vmatprep.subr.bf16.mxu1 %v15937_v63 }
 0x5fa   : > { %15065 = vmatpush3.bf16.msra.mxu0 %v15959_v16 }
 0x5fb   : > { %15066 = vmatprep.subr.bf16.mxu0 %v15961_v27 }
 0x5fc   : > { %15039 = vmatpush3.bf16.msra.mxu1 %v15938_v1 }
 0x5fd   : > { %15040 = vmatprep.subr.bf16.mxu1 %v15939_v2 }
 0x5fe   : > { %15067 = vmatpush3.bf16.msra.mxu0 %v15963_v29 }
 0x5ff   : > { %15068 = vmatprep.subr.bf16.mxu0 %v15965_v31 }
 0x600   : > { %15041 = vmatpush3.bf16.msra.mxu1 %v15940_v0 }
 0x601   : > { %15042 = vmatprep.subr.bf16.mxu1 %v15941_v4 }
 0x602   : > { %15069 = vmatpush3.bf16.msra.mxu0 %v15967_v34 }
 0x603   : > { %15070 = vmatprep.subr.bf16.mxu0 %v15969_v36 }
 0x604   : > { %15043 = vmatpush3.bf16.msra.mxu1 %v15942_v5 }
 0x605   : > { %15044 = vmatprep.subr.bf16.mxu1 %v15943_v6 }
 0x606   : > { %15071 = vmatpush3.bf16.msra.mxu0 %v15971_v38 }
 0x607   : > { %15072 = vmatprep.subr.bf16.mxu0 %v15973_v39 }
 0x608   : > { %15045 = vmatpush3.bf16.msra.mxu1 %v15944_v56 }
 0x609   : > { %15080 = vmatprep.subr.bf16.mxu1 %v15946_v3 }
 0x60a   : > { %15073 = vmatpush3.bf16.msra.mxu0 %v15975_v41 }
 0x60b   : > { %5384 = vmatmul.mubr.bf16.vlgmr.msra.gmra.mxu1 %v4504_v10  ;;  %15102 = vmatprep.subr.bf16.mxu0 %v15977_v44 }
 0x60c   : > { %5391 = vmatprep.mubr.bf16.mxu1 %v4509_v9  ;;  %15081 = vmatpush3.bf16.msra.mxu1 %v15948_v17  ;;  %v13397_v17 = vld [vmem:[#allocation8 + $0x5] ss:$0 sm:$0xff] }
 0x60d   : > { %15082 = vmatprep.subr.bf16.mxu1 %v15950_v20 }
 0x610   : > { %15083 = vmatpush3.bf16.msra.mxu1 %v15952_v22 }
 0x611   : > { %15084 = vmatprep.subr.bf16.mxu1 %v15954_v24 }
 0x613   : > { %5392 = vmatmul.mubr.bf16.gmra.mxu1 %v4505_v12 }
 0x614   : > { %15085 = vmatpush3.bf16.msra.mxu1 %v15956_v26 }
 0x615   : > { %15086 = vmatprep.subr.bf16.mxu1 %v15958_v14 }
 0x618   : > { %15087 = vmatpush3.bf16.msra.mxu1 %v15960_v19 }
 0x619   : > { %15088 = vmatprep.subr.bf16.mxu1 %v15962_v28 }
 0x61c   : > { %15089 = vmatpush3.bf16.msra.mxu1 %v15964_v30 }
 0x61d   : > { %15090 = vmatprep.subr.bf16.mxu1 %v15966_v33 }
 0x620   : > { %15091 = vmatpush3.bf16.msra.mxu1 %v15968_v35 }
 0x621   : > { %15092 = vmatprep.subr.bf16.mxu1 %v15970_v37 }
 0x624   : > { %15093 = vmatpush3.bf16.msra.mxu1 %v15972_v23 }
 0x625   : > { %15094 = vmatprep.subr.bf16.mxu1 %v15974_v40 }
 0x628   : > { %15095 = vmatpush3.bf16.msra.mxu1 %v15976_v43 }
 0x629   : > { %15124 = vmatprep.subr.bf16.mxu1 %v15978_v32 }
 0x68b   : > { %v14934_v45 = vpop.f32.mrf.mxu1 }
 0x68c   : > { %v14962_v46 = vpop.f32.mrf.mxu0 }
 0x68d   : > { %v14935_v48 = vpop.f32.mrf.mxu1 }
 0x68e   : > { %v14963_v49 = vpop.f32.mrf.mxu0  ;;  %v14936_v15 = vadd.f32 %v14935_v48, %v14934_v45 }
 0x68f   : > { %v14937_v51 = vpop.f32.mrf.mxu1  ;;  %v14964_v21 = vadd.f32 %v14963_v49, %v14962_v46 }
 0x690   : > { %v14965_v52 = vpop.f32.mrf.mxu0  ;;  %v5194_v20 = vadd.f32 %v14936_v15, %v13397_v17  ;;  %v15983_v15 = vld [vmem:[#allocation6 + $0xdb0] sm:$0xff]  }
 0x691   : > { %v14938_v54 = vpop.f32.mrf.mxu1 }
 0x692   : > { %v14966_v55 = vpop.f32.mrf.mxu0  ;;  %v14939_v18 = vadd.f32 %v14938_v54, %v14937_v51  ;;  %v5242_v24 = vadd.f32 %v14964_v21, %v5194_v20  ;;  %v15986_v20 = vld [vmem:[#allocation6 + $0xe68] sm:$0xff]  }
 0x693   : > { %v14940_v25 = vpop.f32.mrf.mxu1  ;;  %v14967_v26 = vadd.f32 %v14966_v55, %v14965_v52  ;;  %v15987_v21 = vld [vmem:[#allocation6 + $0xda8] sm:$0xff]  }
 0x694   : > { %v14968_v60 = vpop.f32.mrf.mxu0  ;;  %v5197_v58 = vadd.f32 %v14939_v18, %v13397_v17  ;;  %v15985_v18 = vld [vmem:[#allocation6 + $0xde8] sm:$0xff]  }
 0x695   : > { %v14941_v61 = vpop.f32.mrf.mxu1 }
 0x696   : > { %v14969_v42 = vpop.f32.mrf.mxu0  ;;  %v14942_v59 = vadd.f32 %v14941_v61, %v14940_v25  ;;  %v5245_v16 = vadd.f32 %v14967_v26, %v5197_v58  ;;  %v15989_v58 = vld [vmem:[#allocation6 + $0xde0] sm:$0xff]  }
 0x697   : > { %v14943_v47 = vpop.f32.mrf.mxu1  ;;  %v14970_v31 = vadd.f32 %v14969_v42, %v14968_v60  ;;  %v15992_v26 = vld [vmem:[#allocation6 + $0xe20] sm:$0xff]  }
 0x698   : > { %v14971_v50 = vpop.f32.mrf.mxu0  ;;  %v5202_v27 = vadd.f32 %v14942_v59, %v13397_v17  ;;  %v15984_v17 = vld [vmem:[#allocation6 + $0xe30] sm:$0xff]   ;;  %v15991_v59 = vld [vmem:[#allocation6 + $0xda0] sm:$0xff]  }
 0x699   : > { %v14944_v53 = vpop.f32.mrf.mxu1  ;;  %v15979_v50 = vld [vmem:[#allocation6 + $0xdb8] sm:$0xff]  }
 0x69a   : > { %v14972_v62 = vpop.f32.mrf.mxu0  ;;  %v5250_v38 = vadd.f32 %v14970_v31, %v5202_v27  ;;  %v15997_v27 = vld [vmem:[#allocation6 + $0xdd0] sm:$0xff]   ;;  %v16001_v31 = vld [vmem:[#allocation6 + $0xdc8] sm:$0xff]  }
 0x6ab   : > { %v14990_v63 = vpop.f32.mrf.mxu1 }
 0x6ac   : > { %v15018_v1 = vpop.f32.mrf.mxu0 }
 0x6ad   : > { %v14991_v2 = vpop.f32.mrf.mxu1 }
 0x6ae   : > { %v15019_v0 = vpop.f32.mrf.mxu0  ;;  %v14992_v22 = vadd.f32 %v14991_v2, %v14990_v63 }
 0x6af   : > { %v14993_v4 = vpop.f32.mrf.mxu1  ;;  %v15020_v28 = vadd.f32 %v15019_v0, %v15018_v1 }
 0x6b0   : > { %v15021_v5 = vpop.f32.mrf.mxu0  ;;  %v5290_v14 = vadd.f32 %v14992_v22, %v5242_v24  ;;  %v15988_v22 = vld [vmem:[#allocation6 + $0xe28] sm:$0xff]   ;;  %v15990_v24 = vld [vmem:[#allocation6 + $0xe60] sm:$0xff]  }
 0x6b1   : > { %v14994_v6 = vpop.f32.mrf.mxu1 }
 0x6b2   : > { %v15022_v56 = vpop.f32.mrf.mxu0  ;;  %v14995_v57 = vadd.f32 %v14994_v6, %v14993_v4  ;;  %v5338_v33 = vadd.f32 %v15020_v28, %v5290_v14  ;;  %v15980_v6 = vld [vmem:[#allocation6 + $0xe38] sm:$0xff]   ;;  %v15998_v28 = vld [vmem:[#allocation6 + $0xe50] sm:$0xff]  }
 0x6b3   : > { %v14996_v7 = vpop.f32.mrf.mxu1  ;;  %v15023_v36 = vadd.f32 %v15022_v56, %v15021_v5  ;;  %v15994_v14 = vld [vmem:[#allocation6 + $0xe58] sm:$0xff]  }
 0x6b4   : > { %v15024_v8 = vpop.f32.mrf.mxu0  ;;  %v5293_v29 = vadd.f32 %v14995_v57, %v5245_v16  ;;  %v15993_v57 = vld [vmem:[#allocation6 + $0xdd8] sm:$0xff]  }
 0x6b5   : > { %v14997_v9 = vpop.f32.mrf.mxu1  ;;  %v15995_v16 = vld [vmem:[#allocation6 + $0xd98] sm:$0xff]  }
 0x6b6   : > { %v15025_v10 = vpop.f32.mrf.mxu0  ;;  %v14998_v34 = vadd.f32 %v14997_v9, %v14996_v7  ;;  %v5341_v39 = vadd.f32 %v15023_v36, %v5293_v29  ;;  %v15981_v7 = vld [vmem:[#allocation6 + $0xdf0] sm:$0xff]   ;;  %v16005_v36 = vld [vmem:[#allocation6 + $0xdc0] sm:$0xff]  }
 0x6b7   : > { %v14999_v11 = vpop.f32.mrf.mxu1  ;;  %v15026_v43 = vadd.f32 %v15025_v10, %v15024_v8  ;;  %v15982_v8 = vld [vmem:[#allocation6 + $0xe70] sm:$0xff]  }
 0x6b8   : > { %v15027_v12 = vpop.f32.mrf.mxu0  ;;  %v5298_v41 = vadd.f32 %v14998_v34, %v5250_v38  ;;  %v15999_v29 = vld [vmem:[#allocation6 + $0xd90] sm:$0xff]   ;;  %v16003_v34 = vld [vmem:[#allocation6 + $0xd88] sm:$0xff]   ;;  %v16007_v38 = vld [vmem:[#allocation6 + $0xd80] sm:$0xff]  }
 0x6b9   : > { %v15000_v13 = vpop.f32.mrf.mxu1 }
 0x6ba   : > { %v15028_v3 = vpop.f32.mrf.mxu0  ;;  %v5346_v49 = vadd.f32 %v15026_v43, %v5298_v41 }
 0x6cb   : > { %v15046_v19 = vpop.f32.mrf.mxu1 }
 0x6cd   : > { %v15047_v30 = vpop.f32.mrf.mxu1 }
 0x6ce   : > { %v15048_v35 = vadd.f32 %v15047_v30, %v15046_v19  ;;  %v15996_v19 = vld [vmem:[#allocation6 + $0xe18] sm:$0xff]   ;;  %v16000_v30 = vld [vmem:[#allocation6 + $0xe10] sm:$0xff]  }
 0x6cf   : > { %v15049_v37 = vpop.f32.mrf.mxu1 }
 0x6d0   : > { %v16570_v23 = vadd.f32 %v15048_v35, %v5338_v33  ;;  %v16002_v33 = vld [vmem:[#allocation6 + $0xe48] sm:$0xff]  }
 0x6d1   : > { %v15050_v40 = vpop.f32.mrf.mxu1  ;;  %v16004_v35 = vld [vmem:[#allocation6 + $0xe08] sm:$0xff]  }
 0x6d2   : > { %v5399_v44 = vmax.f32 %v16570_v23, 0.0  ;;  %v15051_v32 = vadd.f32 %v15050_v40, %v15049_v37  ;;  %v16006_v37 = vld [vmem:[#allocation6 + $0xe40] sm:$0xff]   ;;  %v16009_v40 = vld [vmem:[#allocation6 + $0xef8] sm:$0xff]  }
 0x6d3   : > { %v15052_v45 = vpop.f32.mrf.mxu1  ;;  %v16016_v23 = vld [vmem:[#allocation6 + $0xea0] sm:$0xff]  }
 0x6d4   : > { %5402 = vst [vmem:[#allocation2 + $0x8] sm:$0xff] %v5399_v44  ;;  %v16575_v46 = vadd.f32 %v15051_v32, %v5341_v39  ;;  %v16008_v39 = vld [vmem:[#allocation6 + $0xe00] sm:$0xff]  }
 0x6d5   : > { %v15053_v48 = vpop.f32.mrf.mxu1 }
 0x6d6   : > { %v5400_v51 = vmax.f32 %v16575_v46, 0.0  ;;  %v15054_v52 = vadd.f32 %v15053_v48, %v15052_v45  ;;  %v16010_v45 = vld [vmem:[#allocation6 + $0xeb8] sm:$0xff]  }
 0x6d7   : > { %v15055_v54 = vpop.f32.mrf.mxu1  ;;  %v16018_v46 = vld [vmem:[#allocation6 + $0xe98] sm:$0xff]  }
 0x6d8   : > { %5403 = vst [vmem:[#allocation2 + $0x10] sm:$0xff] %v5400_v51  ;;  %v5394_v55 = vadd.f32 %v15054_v52, %v5346_v49  ;;  %v5419_v48 = vpack.c.bf16 %v5400_v51, %v5399_v44  ;;  %v16011_v52 = vld [vmem:[#allocation6 + $0xef0] sm:$0xff]   ;;  %v16017_v44 = vld [vmem:[#allocation6 + $0xed8] sm:$0xff]  }
 0x6d9   : > { %v15056_v25 = vpop.f32.mrf.mxu1  ;;  %v16019_v51 = vld [vmem:[#allocation6 + $0xed0] sm:$0xff]  }
 0x6da   : > { %v5401_v60 = vmax.f32 %v5394_v55, 0.0  ;;  %v16012_v55 = vld [vmem:[#allocation6 + $0xeb0] sm:$0xff]   ;;  %v16013_v25 = vld [vmem:[#allocation6 + $0xee8] sm:$0xff]  }
 0x6db   : > { %v5408_v61 = vld [vmem:[#allocation2 + $0x5] sm:$0xff] }
 0x6dc   : > { %5404 = vst [vmem:[#allocation2 + $0x18] sm:$0x1] %v5401_v60  ;;  %v5414_v42 = vld [vmem:[#allocation2 + $0x7] sm:$0xff] }
 0x6dd   : > { %v5405_v47 = vld [vmem:[#allocation2 + $0x4] sm:$0xff] }
 0x6de   : > { %v5411_v4 = vld [vmem:[#allocation2 + $0x6] sm:$0xff] }
 0x6df   : > { %v16580_v53 = vld [vmem:[#allocation2 + $0xd] sm:$0xff] }
 0x6e0   : > { %v5415_v62 = vld [vmem:[#allocation2 + $0xf] sm:$0xff]  ;;  %v5410_v1 = vpack.c.bf16 %v16580_v53, %v5408_v61  ;;  %v16015_v61 = vld [vmem:[#allocation6 + $0xee0] sm:$0xff]  }
 0x6e1   : > { %v16582_v63 = vld [vmem:[#allocation2 + $0xc] sm:$0xff]  ;;  %v5416_v2 = vpack.c.bf16 %v5415_v62, %v5414_v42  ;;  %v16024_v62 = vld [vmem:[#allocation6 + $0xe80] sm:$0xff]  }
 0x6e2   : > { %v5407_v0 = vpack.c.bf16 %v16582_v63, %v5405_v47  ;;  %v5412_v5 = vld [vmem:[#allocation2 + $0xe] sm:$0xff]  ;;  %6114 = vmatprep.mubr.bf16.mxu0 %v5410_v1 }
 0x6e3   : > { %v5413_v56 = vpack.c.bf16 %v5412_v5, %v5411_v4  ;;  %6155 = vmatprep.mubr.bf16.mxu1 %v5416_v2  ;;  %v5420_v9 = vld [vmem:[#allocation2 + $0x9] sm:$0xff]  ;;  %v5421_v10 = vld [vmem:[#allocation2 + $0x11] sm:$0xff] }
 0x6e4   : > { %6115 = vmatmul.mubr.bf16.vlgmr.msra.gmra.mxu0 %v5407_v0  ;;  %v5426_v11 = vld [vmem:[#allocation2 + $0xb] sm:$0xff]  ;;  %v5427_v12 = vld [vmem:[#allocation2 + $0x13] sm:$0xff]  ;;  %v5422_v13 = vpack.c.bf16 %v5421_v10, %v5420_v9 }
 0x6e5   : > { %6156 = vmatmul.mubr.bf16.vlgmr.msra.gmra.mxu1 %v5413_v56  ;;  %15103 = vmatpush3.bf16.msra.mxu0 %v15979_v50  ;;  %v5428_v3 = vpack.c.bf16 %v5427_v12, %v5426_v11  ;;  %v5424_v41 = vld [vmem:[#allocation2 + $0x12] sm:$0xff]  ;;  %v5423_v32 = vld [vmem:[#allocation2 + $0xa] sm:$0xff] }
 0x6e6   : > { %15125 = vmatpush3.bf16.msra.mxu1 %v15980_v6  ;;  %15104 = vmatprep.subr.bf16.mxu0 %v15981_v7  ;;  %v5431_v43 = vld [vmem:[#allocation2 + $0x15] sm:$0xff]  ;;  %v5425_v49 = vpack.c.bf16 %v5424_v41, %v5423_v32  ;;  %v16014_v60 = vld [vmem:[#allocation6 + $0xea8] sm:$0xff]  }
 0x6e7   : > { %15126 = vmatprep.subr.bf16.mxu1 %v15982_v8  ;;  %6196 = vmatprep.mubr.bf16.mxu0 %v5422_v13  ;;  %v5432_v54 = vpack.c.bf16 %v5431_v43, %v16580_v53  ;;  %v16020_v42 = vld [vmem:[#allocation6 + $0xe90] sm:$0xff]   ;;  %v16021_v47 = vld [vmem:[#allocation6 + $0xec8] sm:$0xff]   ;;  %v16023_v53 = vld [vmem:[#allocation6 + $0xec0] sm:$0xff]  }
 0x6e8   : > { %6237 = vmatprep.mubr.bf16.mxu1 %v5428_v3  ;;  %v16022_v50 = vld [vmem:[#allocation6 + $0xe88] sm:$0xff]   ;;  %v5429_v1 = vld [vmem:[#allocation2 + $0x14] sm:$0xff]  ;;  %v16037_v13 = vld [vmem:[#allocation6 + $0xf60] sm:$0xff]  }
 0x6e9   : > { %15105 = vmatpush3.bf16.msra.mxu0 %v15983_v15  ;;  %v5430_v2 = vpack.c.bf16 %v5429_v1, %v16582_v63  ;;  %v16025_v0 = vld [vmem:[#allocation6 + $0xf78] sm:$0xff]   ;;  %v16029_v56 = vld [vmem:[#allocation6 + $0xf70] sm:$0xff]   ;;  %v16033_v10 = vld [vmem:[#allocation6 + $0xf68] sm:$0xff]  }
 0x6ea   : > { %15127 = vmatpush3.bf16.msra.mxu1 %v15984_v17  ;;  %15106 = vmatprep.subr.bf16.mxu0 %v15985_v18  ;;  %v16026_v4 = vld [vmem:[#allocation6 + $0xff8] sm:$0xff]   ;;  %v16030_v7 = vld [vmem:[#allocation6 + $0xff0] sm:$0xff]   ;;  %v16034_v11 = vld [vmem:[#allocation6 + $0xfe8] sm:$0xff]  }
 0x6eb   : > { %15128 = vmatprep.subr.bf16.mxu1 %v15986_v20  ;;  %v16027_v5 = vld [vmem:[#allocation6 + $0xf38] sm:$0xff]   ;;  %v16031_v8 = vld [vmem:[#allocation6 + $0xf30] sm:$0xff]   ;;  %v16035_v63 = vld [vmem:[#allocation6 + $0xf28] sm:$0xff]  }
 0x6ec   : > { %v16028_v6 = vld [vmem:[#allocation6 + $0xfb8] sm:$0xff]   ;;  %v16032_v9 = vld [vmem:[#allocation6 + $0xfb0] sm:$0xff]   ;;  %v16036_v12 = vld [vmem:[#allocation6 + $0xfa8] sm:$0xff]  }
 0x6ed   : > { %15107 = vmatpush3.bf16.msra.mxu0 %v15987_v21  ;;  %v16038_v3 = vld [vmem:[#allocation6 + $0xfe0] sm:$0xff]   ;;  %v16041_v18 = vld [vmem:[#allocation6 + $0xf58] sm:$0xff]  }
 0x6ee   : > { %15129 = vmatpush3.bf16.msra.mxu1 %v15988_v22  ;;  %15108 = vmatprep.subr.bf16.mxu0 %v15989_v58  ;;  %v16039_v15 = vld [vmem:[#allocation6 + $0xf20] sm:$0xff]   ;;  %v16042_v20 = vld [vmem:[#allocation6 + $0xfd8] sm:$0xff]   ;;  %v16045_v58 = vld [vmem:[#allocation6 + $0xf50] sm:$0xff]  }
 0x6ef   : > { %15130 = vmatprep.subr.bf16.mxu1 %v15990_v24  ;;  %v16040_v17 = vld [vmem:[#allocation6 + $0xfa0] sm:$0xff]   ;;  %v16043_v21 = vld [vmem:[#allocation6 + $0xf18] sm:$0xff]   ;;  %v16046_v24 = vld [vmem:[#allocation6 + $0xfd0] sm:$0xff]  }
 0x6f0   : > { %v16044_v22 = vld [vmem:[#allocation6 + $0xf98] sm:$0xff]  }
 0x6f1   : > { %15109 = vmatpush3.bf16.msra.mxu0 %v15991_v59  ;;  %v16047_v59 = vld [vmem:[#allocation6 + $0xf10] sm:$0xff]  }
 0x6f2   : > { %15131 = vmatpush3.bf16.msra.mxu1 %v15992_v26  ;;  %15110 = vmatprep.subr.bf16.mxu0 %v15993_v57  ;;  %v16048_v26 = vld [vmem:[#allocation6 + $0xf90] sm:$0xff]   ;;  %v16049_v57 = vld [vmem:[#allocation6 + $0xf48] sm:$0xff]  }
 0x6f3   : > { %15132 = vmatprep.subr.bf16.mxu1 %v15994_v14  ;;  %v16050_v14 = vld [vmem:[#allocation6 + $0xfc8] sm:$0xff]  }
 0x6f5   : > { %15111 = vmatpush3.bf16.msra.mxu0 %v15995_v16  ;;  %v16051_v16 = vld [vmem:[#allocation6 + $0xf08] sm:$0xff]  }
 0x6f6   : > { %15133 = vmatpush3.bf16.msra.mxu1 %v15996_v19  ;;  %15112 = vmatprep.subr.bf16.mxu0 %v15997_v27  ;;  %v16052_v19 = vld [vmem:[#allocation6 + $0xf88] sm:$0xff]   ;;  %v16053_v27 = vld [vmem:[#allocation6 + $0xf40] sm:$0xff]  }
 0x6f7   : > { %15134 = vmatprep.subr.bf16.mxu1 %v15998_v28  ;;  %v16054_v28 = vld [vmem:[#allocation6 + $0xfc0] sm:$0xff]  }
 0x6f9   : > { %15113 = vmatpush3.bf16.msra.mxu0 %v15999_v29  ;;  %v16055_v29 = vld [vmem:[#allocation6 + $0xf00] sm:$0xff]  }
 0x6fa   : > { %15135 = vmatpush3.bf16.msra.mxu1 %v16000_v30  ;;  %15114 = vmatprep.subr.bf16.mxu0 %v16001_v31  ;;  %v16056_v30 = vld [vmem:[#allocation6 + $0xf80] sm:$0xff]   ;;  %v16057_v31 = vld [vmem:[#allocation6 + $0x1078] sm:$0xff]  }
 0x6fb   : > { %15136 = vmatprep.subr.bf16.mxu1 %v16002_v33  ;;  %v16058_v33 = vld [vmem:[#allocation6 + $0x10f8] sm:$0xff]  }
 0x6fd   : > { %15115 = vmatpush3.bf16.msra.mxu0 %v16003_v34 }
 0x6fe   : > { %15137 = vmatpush3.bf16.msra.mxu1 %v16004_v35  ;;  %15116 = vmatprep.subr.bf16.mxu0 %v16005_v36 }
 0x6ff   : > { %15138 = vmatprep.subr.bf16.mxu1 %v16006_v37 }
 0x701   : > { %15117 = vmatpush3.bf16.msra.mxu0 %v16007_v38 }
 0x702   : > { %15139 = vmatpush3.bf16.msra.mxu1 %v16008_v39  ;;  %15146 = vmatprep.subr.bf16.mxu0 %v16009_v40 }
 0x703   : > { %15168 = vmatprep.subr.bf16.mxu1 %v16025_v0 }
 0x704   : > { %6197 = vmatmul.mubr.bf16.vlgmr.msra.gmra.mxu0 %v5419_v48  ;;  %v13478_v48 = vld [vmem:[#allocation8 + $0x6] ss:$0 sm:$0xff] }
 0x705   : > { %6238 = vmatmul.mubr.bf16.vlgmr.msra.gmra.mxu1 %v5425_v49  ;;  %15147 = vmatpush3.bf16.msra.mxu0 %v16010_v45 }
 0x706   : > { %6278 = vmatprep.mubr.bf16.mxu0 %v5432_v54  ;;  %15148 = vmatprep.subr.bf16.mxu0 %v16011_v52 }
 0x707   : > { %15169 = vmatpush3.bf16.msra.mxu1 %v16027_v5 }
 0x708   : > { %15170 = vmatprep.subr.bf16.mxu1 %v16029_v56 }
 0x709   : > { %15149 = vmatpush3.bf16.msra.mxu0 %v16012_v55 }
 0x70a   : > { %15150 = vmatprep.subr.bf16.mxu0 %v16013_v25 }
 0x70b   : > { %15171 = vmatpush3.bf16.msra.mxu1 %v16031_v8 }
 0x70c   : > { %15172 = vmatprep.subr.bf16.mxu1 %v16033_v10 }
 0x70d   : > { %15151 = vmatpush3.bf16.msra.mxu0 %v16014_v60 }
 0x70e   : > { %15152 = vmatprep.subr.bf16.mxu0 %v16015_v61 }
 0x70f   : > { %15173 = vmatpush3.bf16.msra.mxu1 %v16035_v63 }
 0x710   : > { %15174 = vmatprep.subr.bf16.mxu1 %v16037_v13 }
 0x711   : > { %15153 = vmatpush3.bf16.msra.mxu0 %v16016_v23 }
 0x712   : > { %15154 = vmatprep.subr.bf16.mxu0 %v16017_v44 }
 0x713   : > { %15175 = vmatpush3.bf16.msra.mxu1 %v16039_v15 }
 0x714   : > { %15176 = vmatprep.subr.bf16.mxu1 %v16041_v18  ;;  %v16059_v18 = vld [vmem:[#allocation6 + $0x1038] sm:$0xff]  }
 0x715   : > { %15155 = vmatpush3.bf16.msra.mxu0 %v16018_v46 }
 0x716   : > { %15156 = vmatprep.subr.bf16.mxu0 %v16019_v51 }
 0x717   : > { %15177 = vmatpush3.bf16.msra.mxu1 %v16043_v21 }
 0x718   : > { %15178 = vmatprep.subr.bf16.mxu1 %v16045_v58 }
 0x719   : > { %15157 = vmatpush3.bf16.msra.mxu0 %v16020_v42 }
 0x71a   : > { %15158 = vmatprep.subr.bf16.mxu0 %v16021_v47 }
 0x71b   : > { %15179 = vmatpush3.bf16.msra.mxu1 %v16047_v59 }
 0x71c   : > { %15180 = vmatprep.subr.bf16.mxu1 %v16049_v57 }
 0x71d   : > { %15159 = vmatpush3.bf16.msra.mxu0 %v16022_v50 }
 0x71e   : > { %15160 = vmatprep.subr.bf16.mxu0 %v16023_v53 }
 0x71f   : > { %15181 = vmatpush3.bf16.msra.mxu1 %v16051_v16 }
 0x720   : > { %15182 = vmatprep.subr.bf16.mxu1 %v16053_v27 }
 0x721   : > { %15161 = vmatpush3.bf16.msra.mxu0 %v16024_v62 }
 0x722   : > { %15196 = vmatprep.subr.bf16.mxu0 %v16026_v4 }
 0x723   : > { %15183 = vmatpush3.bf16.msra.mxu1 %v16055_v29  ;;  %v16062_v29 = vld [vmem:[#allocation6 + $0x10f0] sm:$0xff]  }
 0x724   : > { %6279 = vmatmul.mubr.bf16.vlgmr.msra.gmra.mxu0 %v5430_v2  ;;  %15224 = vmatprep.subr.bf16.mxu1 %v16057_v31 }
 0x725   : > { %15197 = vmatpush3.bf16.msra.mxu0 %v16028_v6 }
 0x726   : > { %15198 = vmatprep.subr.bf16.mxu0 %v16030_v7 }
 0x729   : > { %15199 = vmatpush3.bf16.msra.mxu0 %v16032_v9 }
 0x72a   : > { %15200 = vmatprep.subr.bf16.mxu0 %v16034_v11 }
 0x72d   : > { %15201 = vmatpush3.bf16.msra.mxu0 %v16036_v12 }
 0x72e   : > { %15202 = vmatprep.subr.bf16.mxu0 %v16038_v3 }
 0x731   : > { %15203 = vmatpush3.bf16.msra.mxu0 %v16040_v17 }
 0x732   : > { %15204 = vmatprep.subr.bf16.mxu0 %v16042_v20  ;;  %v16060_v20 = vld [vmem:[#allocation6 + $0x10b8] sm:$0xff]  }
 0x735   : > { %15205 = vmatpush3.bf16.msra.mxu0 %v16044_v22 }
 0x736   : > { %15206 = vmatprep.subr.bf16.mxu0 %v16046_v24 }
 0x739   : > { %15207 = vmatpush3.bf16.msra.mxu0 %v16048_v26 }
 0x73a   : > { %15208 = vmatprep.subr.bf16.mxu0 %v16050_v14 }
 0x73d   : > { %15209 = vmatpush3.bf16.msra.mxu0 %v16052_v19 }
 0x73e   : > { %15210 = vmatprep.subr.bf16.mxu0 %v16054_v28  ;;  %v16061_v28 = vld [vmem:[#allocation6 + $0x1070] sm:$0xff]  }
 0x741   : > { %15211 = vmatpush3.bf16.msra.mxu0 %v16056_v30 }
 0x742   : > { %15252 = vmatprep.subr.bf16.mxu0 %v16058_v33  ;;  %v16063_v33 = vld [vmem:[#allocation6 + $0x1030] sm:$0xff]  }
 0x7a4   : > { %v15074_v34 = vpop.f32.mrf.mxu0 }
 0x7a5   : > { %v15096_v36 = vpop.f32.mrf.mxu1 }
 0x7a6   : > { %v15075_v35 = vpop.f32.mrf.mxu0 }
 0x7a7   : > { %v15097_v38 = vpop.f32.mrf.mxu1  ;;  %v15076_v45 = vadd.f32 %v15075_v35, %v15074_v34  ;;  %v16064_v34 = vld [vmem:[#allocation6 + $0x10b0] sm:$0xff]   ;;  %v16065_v35 = vld [vmem:[#allocation6 + $0x1068] sm:$0xff]  }
 0x7a8   : > { %v15077_v37 = vpop.f32.mrf.mxu0  ;;  %v15098_v60 = vadd.f32 %v15097_v38, %v15096_v36  ;;  %v16066_v36 = vld [vmem:[#allocation6 + $0x10e8] sm:$0xff]  }
 0x7a9   : > { %v15099_v40 = vpop.f32.mrf.mxu1  ;;  %v6117_v54 = vadd.f32 %v15076_v45, %v13478_v48 }
 0x7aa   : > { %v15078_v39 = vpop.f32.mrf.mxu0 }
 0x7ab   : > { %v15100_v43 = vpop.f32.mrf.mxu1  ;;  %v15079_v55 = vadd.f32 %v15078_v39, %v15077_v37  ;;  %v6158_v44 = vadd.f32 %v15098_v60, %v6117_v54  ;;  %v16067_v39 = vld [vmem:[#allocation6 + $0x1028] sm:$0xff]   ;;  %v16073_v60 = vld [vmem:[#allocation6 + $0x1058] sm:$0xff]  }
 0x7ac   : > { %v15101_v42 = vadd.f32 %v15100_v43, %v15099_v40  ;;  %v16068_v40 = vld [vmem:[#allocation6 + $0x10a8] sm:$0xff]  }
 0x7ad   : > { %v6120_v46 = vadd.f32 %v15079_v55, %v13478_v48  ;;  %v16069_v48 = vld [vmem:[#allocation6 + $0x1060] sm:$0xff]  }
 0x7ae   : > { %v16071_v55 = vld [vmem:[#allocation6 + $0x1020] sm:$0xff]  }
 0x7af   : > { %v6161_v62 = vadd.f32 %v15101_v42, %v6120_v46  ;;  %v16077_v46 = vld [vmem:[#allocation6 + $0x1050] sm:$0xff]  }
 0x7b0   : > { %v16079_v42 = vld [vmem:[#allocation6 + $0x1010] sm:$0xff]  }
 0x7c4   : > { %v15118_v41 = vpop.f32.mrf.mxu0 }
 0x7c5   : > { %v15140_v49 = vpop.f32.mrf.mxu1 }
 0x7c6   : > { %v15119_v32 = vpop.f32.mrf.mxu0 }
 0x7c7   : > { %v15141_v25 = vpop.f32.mrf.mxu1  ;;  %v15120_v61 = vadd.f32 %v15119_v32, %v15118_v41 }
 0x7c8   : > { %v15121_v52 = vpop.f32.mrf.mxu0  ;;  %v15142_v1 = vadd.f32 %v15141_v25, %v15140_v49  ;;  %v16070_v49 = vld [vmem:[#allocation6 + $0x10e0] sm:$0xff]  }
 0x7c9   : > { %v15143_v51 = vpop.f32.mrf.mxu1  ;;  %v6199_v47 = vadd.f32 %v15120_v61, %v6158_v44  ;;  %v16072_v25 = vld [vmem:[#allocation6 + $0x10a0] sm:$0xff]   ;;  %v16074_v61 = vld [vmem:[#allocation6 + $0x10d8] sm:$0xff]  }
 0x7ca   : > { %v15122_v23 = vpop.f32.mrf.mxu0  ;;  %v16076_v44 = vld [vmem:[#allocation6 + $0x1098] sm:$0xff]  }
 0x7cb   : > { %v15123_v50 = vadd.f32 %v15122_v23, %v15121_v52  ;;  %v15144_v2 = vpop.f32.mrf.mxu1  ;;  %v6240_v4 = vadd.f32 %v15142_v1, %v6199_v47  ;;  %v16075_v23 = vld [vmem:[#allocation6 + $0x1018] sm:$0xff]   ;;  %v16080_v47 = vld [vmem:[#allocation6 + $0x1090] sm:$0xff]   ;;  %v16084_v1 = vld [vmem:[#allocation6 + $0x1088] sm:$0xff]  }
 0x7cc   : > { %v15145_v7 = vadd.f32 %v15144_v2, %v15143_v51  ;;  %v16078_v51 = vld [vmem:[#allocation6 + $0x10d0] sm:$0xff]   ;;  %v16085_v2 = vld [vmem:[#allocation6 + $0x1040] sm:$0xff]  }
 0x7cd   : > { %v6202_v5 = vadd.f32 %v15123_v50, %v6161_v62  ;;  %v16081_v50 = vld [vmem:[#allocation6 + $0x1048] sm:$0xff]  }
 0x7ce   : > { %v16083_v62 = vld [vmem:[#allocation6 + $0x1008] sm:$0xff]  }
 0x7cf   : > { %v6243_v10 = vadd.f32 %v15145_v7, %v6202_v5  ;;  %v16088_v5 = vld [vmem:[#allocation6 + $0x1080] sm:$0xff]   ;;  %v6328_v7 = vld [vmem:[#allocation3 + $0x1a] sm:$0x1] }
 0x7e4   : > { %v15162_v53 = vpop.f32.mrf.mxu0 }
 0x7e6   : > { %v15163_v0 = vpop.f32.mrf.mxu0 }
 0x7e7   : > { %v15164_v6 = vadd.f32 %v15163_v0, %v15162_v53  ;;  %v16082_v53 = vld [vmem:[#allocation6 + $0x10c8] sm:$0xff]   ;;  %v16086_v0 = vld [vmem:[#allocation6 + $0x10c0] sm:$0xff]  }
 0x7e8   : > { %v15165_v56 = vpop.f32.mrf.mxu0 }
 0x7e9   : > { %v6281_v8 = vadd.f32 %v15164_v6, %v6240_v4  ;;  %v16087_v4 = vld [vmem:[#allocation6 + $0x1000] sm:$0xff]   ;;  %v16089_v6 = vld [vmem:[#allocation6 + $0x1178] sm:$0xff]  }
 0x7ea   : > { %v15166_v9 = vpop.f32.mrf.mxu0 }
 0x7eb   : > { %v6287_v11 = vmax.f32 %v6281_v8, 0.0  ;;  %v15167_v63 = vadd.f32 %v15166_v9, %v15165_v56  ;;  %v6318_v56 = vld [vmem:[#allocation3 + $0x18] sm:$0x1] }
 0x7ed   : > { %6289 = vst [vmem:[#allocation3 + $0x8] sm:$0xff] %v6287_v11  ;;  %v6284_v12 = vadd.f32 %v15167_v63, %v6243_v10  ;;  %v16090_v63 = vld [vmem:[#allocation6 + $0x1138] sm:$0xff]  }
 0x7ef   : > { %v6288_v13 = vmax.f32 %v6284_v12, 0.0  ;;  %v6320_v12 = vpack.c.bf16 %v6318_v56, %v6318_v56  ;;  %v16132_v56 = vld [vmem:[#allocation6 + $0x1208] sm:$0xff]  }
 0x7f1   : > { %6290 = vst [vmem:[#allocation3 + $0x10] sm:$0xff] %v6288_v13  ;;  %v6319_v52 = vpack.c.bf16 %v6288_v13, %v6287_v11 }
 0x7f4   : > { %v6296_v3 = vld [vmem:[#allocation3 + $0x4] sm:$0xff] }
 0x7f5   : > { %v6306_v15 = vld [vmem:[#allocation3 + $0x6] sm:$0xff] }
 0x7f6   : > { %v6291_v17 = vld [vmem:[#allocation3 + $0x3] sm:$0xff] }
 0x7f7   : > { %v6301_v57 = vld [vmem:[#allocation3 + $0x5] sm:$0xff] }
 0x7f8   : > { %v16592_v21 = vld [vmem:[#allocation3 + $0xc] sm:$0xff]  ;;  %v6298_v16 = vld [vmem:[#allocation3 + $0x14] sm:$0x1]  ;;  %v6308_v27 = vld [vmem:[#allocation3 + $0x16] sm:$0x1] }
 0x7f9   : > { %v6307_v22 = vld [vmem:[#allocation3 + $0xe] sm:$0xff]  ;;  %v6299_v24 = vpack.c.bf16 %v16592_v21, %v6296_v3  ;;  %v6300_v30 = vpack.c.bf16 %v6298_v16, %v6298_v16  ;;  %v6310_v31 = vpack.c.bf16 %v6308_v27, %v6308_v27  ;;  %v16095_v16 = vld [vmem:[#allocation6 + $0x1160] sm:$0xff]  }
 0x7fa   : > { %v16594_v58 = vld [vmem:[#allocation3 + $0xb] sm:$0xff]  ;;  %v6309_v59 = vpack.c.bf16 %v6307_v22, %v6306_v15  ;;  %v6293_v37 = vld [vmem:[#allocation3 + $0x13] sm:$0x1]  ;;  %v6303_v38 = vld [vmem:[#allocation3 + $0x15] sm:$0x1] }
 0x7fb   : > { %v6294_v26 = vpack.c.bf16 %v16594_v58, %v6291_v17  ;;  %v6302_v14 = vld [vmem:[#allocation3 + $0xd] sm:$0xff]  ;;  %7020 = vmatprep.mubr.bf16.mxu1 %v6299_v24  ;;  %v6295_v32 = vpack.c.bf16 %v6293_v37, %v6293_v37  ;;  %v6305_v45 = vpack.c.bf16 %v6303_v38, %v6303_v38  ;;  %v6330_v17 = vpack.c.bf16 %v6328_v7, %v6328_v7  ;;  %v6313_v24 = vld [vmem:[#allocation3 + $0x17] sm:$0x1]  ;;  %v16096_v27 = vld [vmem:[#allocation6 + $0x1120] sm:$0xff]  }
 0x7fc   : > { %v6304_v19 = vpack.c.bf16 %v6302_v14, %v6301_v57  ;;  %7068 = vmatprep.mubr.bf16.mxu0 %v6309_v59  ;;  %v6326_v41 = vld [vmem:[#allocation3 + $0xa] sm:$0xff]  ;;  %v6327_v43 = vld [vmem:[#allocation3 + $0x12] sm:$0xff]  ;;  %v6315_v14 = vpack.c.bf16 %v6313_v24, %v6313_v24  ;;  %v16133_v7 = vld [vmem:[#allocation6 + $0x11c0] sm:$0xff]  }
 0x7fd   : > { %7021 = vmatmul.mubr.bf16.vlgmr.msra.gmra.mxu1 %v6294_v26  ;;  %v6329_v54 = vpack.c.bf16 %v6327_v43, %v6326_v41  ;;  %v6312_v8 = vld [vmem:[#allocation3 + $0xf] sm:$0xff]  ;;  %v6311_v11 = vld [vmem:[#allocation3 + $0x7] sm:$0xff]  ;;  %v16105_v43 = vld [vmem:[#allocation6 + $0x11f8] sm:$0xff]  }
 0x7fe   : > { %7069 = vmatmul.mubr.bf16.vlgmr.msra.gmra.mxu0 %v6304_v19  ;;  %15225 = vmatpush3.bf16.msra.mxu1 %v16059_v18  ;;  %v6321_v9 = vld [vmem:[#allocation3 + $0x9] sm:$0xff]  ;;  %v6322_v10 = vld [vmem:[#allocation3 + $0x11] sm:$0xff]  ;;  %v6314_v13 = vpack.c.bf16 %v6312_v8, %v6311_v11  ;;  %v16134_v8 = vld [vmem:[#allocation6 + $0x1240] sm:$0xff]  }
 0x7ff   : > { %15253 = vmatpush3.bf16.msra.mxu0 %v16060_v20  ;;  %7028 = vmatprep.mubr.bf16.mxu1 %v6300_v30  ;;  %v6324_v3 = vpack.c.bf16 %v6322_v10, %v6321_v9  ;;  %v16091_v15 = vld [vmem:[#allocation6 + $0x1170] sm:$0xff]   ;;  %v6323_v20 = vld [vmem:[#allocation3 + $0x19] sm:$0x1]  ;;  %v16093_v22 = vld [vmem:[#allocation6 + $0x1168] sm:$0xff]  }
 0x800   : > { %7076 = vmatprep.mubr.bf16.mxu0 %v6310_v31  ;;  %15226 = vmatprep.subr.bf16.mxu1 %v16061_v28  ;;  %v16092_v18 = vld [vmem:[#allocation6 + $0x1130] sm:$0xff]   ;;  %v6325_v26 = vpack.c.bf16 %v6323_v20, %v6323_v20  ;;  %v16094_v57 = vld [vmem:[#allocation6 + $0x1128] sm:$0xff]   ;;  %v16097_v28 = vld [vmem:[#allocation6 + $0x1158] sm:$0xff]  }
 0x801   : > { %15254 = vmatprep.subr.bf16.mxu0 %v16062_v29  ;;  %v6335_v59 = vld [vmem:[#allocation3 + $0x14] sm:$0xff]  ;;  %v16135_v9 = vld [vmem:[#allocation6 + $0x1180] sm:$0xff]  }
 0x802   : > { %15227 = vmatpush3.bf16.msra.mxu1 %v16063_v33  ;;  %v6337_v19 = vpack.c.bf16 %v6335_v59, %v16592_v21  ;;  %v16098_v29 = vld [vmem:[#allocation6 + $0x1118] sm:$0xff]   ;;  %v16099_v30 = vld [vmem:[#allocation6 + $0x1150] sm:$0xff]   ;;  %v16101_v33 = vld [vmem:[#allocation6 + $0x1148] sm:$0xff]  }
 0x803   : > { %15255 = vmatpush3.bf16.msra.mxu0 %v16064_v34  ;;  %15228 = vmatprep.subr.bf16.mxu1 %v16065_v35  ;;  %v16100_v31 = vld [vmem:[#allocation6 + $0x1110] sm:$0xff]   ;;  %v16102_v34 = vld [vmem:[#allocation6 + $0x1108] sm:$0xff]   ;;  %v16103_v35 = vld [vmem:[#allocation6 + $0x1140] sm:$0xff]  }
 0x804   : > { %15256 = vmatprep.subr.bf16.mxu0 %v16066_v36  ;;  %v16104_v21 = vld [vmem:[#allocation6 + $0x1100] sm:$0xff]   ;;  %v6336_v36 = vld [vmem:[#allocation3 + $0x1c] sm:$0x1]  ;;  %v6331_v37 = vld [vmem:[#allocation3 + $0x13] sm:$0xff] }
 0x805   : > { %7029 = vmatmul.mubr.bf16.gmra.mxu1 %v6295_v32  ;;  %v6338_v38 = vpack.c.bf16 %v6336_v36, %v6336_v36  ;;  %v16106_v32 = vld [vmem:[#allocation6 + $0x1278] sm:$0xff]   ;;  %v16136_v10 = vld [vmem:[#allocation6 + $0x1200] sm:$0xff]  }
 0x806   : > { %7077 = vmatmul.mubr.bf16.gmra.mxu0 %v6305_v45  ;;  %15229 = vmatpush3.bf16.msra.mxu1 %v16067_v39  ;;  %v6333_v39 = vpack.c.bf16 %v6331_v37, %v16594_v58  ;;  %v16107_v45 = vld [vmem:[#allocation6 + $0x11b8] sm:$0xff]   ;;  %v16113_v58 = vld [vmem:[#allocation6 + $0x11e8] sm:$0xff]  }
 0x807   : > { %15257 = vmatpush3.bf16.msra.mxu0 %v16068_v40  ;;  %7116 = vmatprep.mubr.bf16.mxu1 %v6319_v52  ;;  %v6332_v40 = vld [vmem:[#allocation3 + $0x1b] sm:$0x1]  ;;  %v16110_v52 = vld [vmem:[#allocation6 + $0x1270] sm:$0xff]  }
 0x808   : > { %7164 = vmatprep.mubr.bf16.mxu0 %v6329_v54  ;;  %15230 = vmatprep.subr.bf16.mxu1 %v16069_v48  ;;  %v6334_v41 = vpack.c.bf16 %v6332_v40, %v6332_v40  ;;  %v16108_v48 = vld [vmem:[#allocation6 + $0x1238] sm:$0xff]   ;;  %v16111_v54 = vld [vmem:[#allocation6 + $0x11b0] sm:$0xff]  }
 0x809   : > { %15258 = vmatprep.subr.bf16.mxu0 %v16070_v49  ;;  %v16109_v49 = vld [vmem:[#allocation6 + $0x11f0] sm:$0xff]   ;;  %v16137_v11 = vld [vmem:[#allocation6 + $0x12f8] sm:$0xff]  }
 0x80a   : > { %15231 = vmatpush3.bf16.msra.mxu1 %v16071_v55  ;;  %v16112_v55 = vld [vmem:[#allocation6 + $0x1230] sm:$0xff]  }
 0x80b   : > { %15259 = vmatpush3.bf16.msra.mxu0 %v16072_v25  ;;  %15232 = vmatprep.subr.bf16.mxu1 %v16073_v60  ;;  %v16114_v25 = vld [vmem:[#allocation6 + $0x1268] sm:$0xff]  }
 0x80c   : > { %15260 = vmatprep.subr.bf16.mxu0 %v16074_v61  ;;  %v16115_v60 = vld [vmem:[#allocation6 + $0x11a8] sm:$0xff]  }
 0x80d   : > { %v16116_v61 = vld [vmem:[#allocation6 + $0x1228] sm:$0xff]  }
 0x80e   : > { %15233 = vmatpush3.bf16.msra.mxu1 %v16075_v23  ;;  %v16117_v23 = vld [vmem:[#allocation6 + $0x11e0] sm:$0xff]  }
 0x80f   : > { %15261 = vmatpush3.bf16.msra.mxu0 %v16076_v44  ;;  %15234 = vmatprep.subr.bf16.mxu1 %v16077_v46  ;;  %v16118_v44 = vld [vmem:[#allocation6 + $0x1260] sm:$0xff]  }
 0x810   : > { %15262 = vmatprep.subr.bf16.mxu0 %v16078_v51  ;;  %v16119_v46 = vld [vmem:[#allocation6 + $0x11a0] sm:$0xff]  }
 0x811   : > { %v16120_v51 = vld [vmem:[#allocation6 + $0x1220] sm:$0xff]  }
 0x812   : > { %15235 = vmatpush3.bf16.msra.mxu1 %v16079_v42  ;;  %v16121_v42 = vld [vmem:[#allocation6 + $0x11d8] sm:$0xff]  }
 0x813   : > { %15263 = vmatpush3.bf16.msra.mxu0 %v16080_v47  ;;  %15236 = vmatprep.subr.bf16.mxu1 %v16081_v50  ;;  %v16122_v47 = vld [vmem:[#allocation6 + $0x1258] sm:$0xff]  }
 0x814   : > { %15264 = vmatprep.subr.bf16.mxu0 %v16082_v53  ;;  %v16123_v50 = vld [vmem:[#allocation6 + $0x1198] sm:$0xff]  }
 0x815   : > { %v16124_v53 = vld [vmem:[#allocation6 + $0x1218] sm:$0xff]  }
 0x816   : > { %15237 = vmatpush3.bf16.msra.mxu1 %v16083_v62  ;;  %v16125_v62 = vld [vmem:[#allocation6 + $0x11d0] sm:$0xff]  }
 0x817   : > { %15265 = vmatpush3.bf16.msra.mxu0 %v16084_v1  ;;  %15238 = vmatprep.subr.bf16.mxu1 %v16085_v2  ;;  %v16126_v1 = vld [vmem:[#allocation6 + $0x1250] sm:$0xff]  }
 0x818   : > { %15266 = vmatprep.subr.bf16.mxu0 %v16086_v0  ;;  %v16127_v2 = vld [vmem:[#allocation6 + $0x1190] sm:$0xff]  }
 0x819   : > { %v16128_v0 = vld [vmem:[#allocation6 + $0x1210] sm:$0xff]  }
 0x81a   : > { %15239 = vmatpush3.bf16.msra.mxu1 %v16087_v4  ;;  %v16129_v4 = vld [vmem:[#allocation6 + $0x11c8] sm:$0xff]  }
 0x81b   : > { %15267 = vmatpush3.bf16.msra.mxu0 %v16088_v5  ;;  %15280 = vmatprep.subr.bf16.mxu1 %v16089_v6  ;;  %v16130_v5 = vld [vmem:[#allocation6 + $0x1248] sm:$0xff]  }
 0x81c   : > { %15308 = vmatprep.subr.bf16.mxu0 %v16105_v43  ;;  %v16131_v6 = vld [vmem:[#allocation6 + $0x1188] sm:$0xff]  }
 0x81d   : > { %7117 = vmatmul.mubr.bf16.vlgmr.msra.gmra.mxu1 %v6314_v13 }
 0x81e   : > { %7165 = vmatmul.mubr.bf16.vlgmr.msra.gmra.mxu0 %v6324_v3  ;;  %15281 = vmatpush3.bf16.msra.mxu1 %v16090_v63  ;;  %v16138_v63 = vld [vmem:[#allocation6 + $0x1378] sm:$0xff]  }
 0x81f   : > { %7124 = vmatprep.mubr.bf16.mxu1 %v6320_v12  ;;  %15282 = vmatprep.subr.bf16.mxu1 %v16091_v15 }
 0x820   : > { %7172 = vmatprep.mubr.bf16.mxu0 %v6330_v17  ;;  %15309 = vmatpush3.bf16.msra.mxu0 %v16107_v45 }
 0x821   : > { %15310 = vmatprep.subr.bf16.mxu0 %v16109_v49 }
 0x822   : > { %15283 = vmatpush3.bf16.msra.mxu1 %v16092_v18 }
 0x823   : > { %15284 = vmatprep.subr.bf16.mxu1 %v16093_v22 }
 0x824   : > { %15311 = vmatpush3.bf16.msra.mxu0 %v16111_v54 }
 0x825   : > { %7125 = vmatmul.mubr.bf16.gmra.mxu1 %v6315_v14  ;;  %15312 = vmatprep.subr.bf16.mxu0 %v16113_v58 }
 0x826   : > { %7173 = vmatmul.mubr.bf16.gmra.mxu0 %v6325_v26  ;;  %15285 = vmatpush3.bf16.msra.mxu1 %v16094_v57 }
 0x827   : > { %7212 = vmatprep.mubr.bf16.mxu1 %v6337_v19  ;;  %15286 = vmatprep.subr.bf16.mxu1 %v16095_v16 }
 0x828   : > { %15313 = vmatpush3.bf16.msra.mxu0 %v16115_v60 }
 0x829   : > { %15314 = vmatprep.subr.bf16.mxu0 %v16117_v23 }
 0x82a   : > { %15287 = vmatpush3.bf16.msra.mxu1 %v16096_v27 }
 0x82b   : > { %15288 = vmatprep.subr.bf16.mxu1 %v16097_v28 }
 0x82c   : > { %15315 = vmatpush3.bf16.msra.mxu0 %v16119_v46 }
 0x82d   : > { %15316 = vmatprep.subr.bf16.mxu0 %v16121_v42 }
 0x82e   : > { %15289 = vmatpush3.bf16.msra.mxu1 %v16098_v29 }
 0x82f   : > { %15290 = vmatprep.subr.bf16.mxu1 %v16099_v30 }
 0x830   : > { %15317 = vmatpush3.bf16.msra.mxu0 %v16123_v50 }
 0x831   : > { %15318 = vmatprep.subr.bf16.mxu0 %v16125_v62 }
 0x832   : > { %15291 = vmatpush3.bf16.msra.mxu1 %v16100_v31 }
 0x833   : > { %15292 = vmatprep.subr.bf16.mxu1 %v16101_v33 }
 0x834   : > { %15319 = vmatpush3.bf16.msra.mxu0 %v16127_v2 }
 0x835   : > { %15320 = vmatprep.subr.bf16.mxu0 %v16129_v4 }
 0x836   : > { %15293 = vmatpush3.bf16.msra.mxu1 %v16102_v34 }
 0x837   : > { %15294 = vmatprep.subr.bf16.mxu1 %v16103_v35 }
 0x838   : > { %15321 = vmatpush3.bf16.msra.mxu0 %v16131_v6 }
 0x839   : > { %15322 = vmatprep.subr.bf16.mxu0 %v16133_v7 }
 0x83a   : > { %15295 = vmatpush3.bf16.msra.mxu1 %v16104_v21 }
 0x83b   : > { %15330 = vmatprep.subr.bf16.mxu1 %v16106_v32 }
 0x83c   : > { %15323 = vmatpush3.bf16.msra.mxu0 %v16135_v9 }
 0x83d   : > { %7213 = vmatmul.mubr.bf16.vlgmr.msra.gmra.mxu1 %v6333_v39  ;;  %15352 = vmatprep.subr.bf16.mxu0 %v16137_v11 }
 0x83e   : > { %7220 = vmatprep.mubr.bf16.mxu1 %v6338_v38  ;;  %15331 = vmatpush3.bf16.msra.mxu1 %v16108_v48  ;;  %v13559_v48 = vld [vmem:[#allocation8 + $0x7] ss:$0 sm:$0xff] }
 0x83f   : > { %15332 = vmatprep.subr.bf16.mxu1 %v16110_v52 }
 0x842   : > { %15333 = vmatpush3.bf16.msra.mxu1 %v16112_v55 }
 0x843   : > { %15334 = vmatprep.subr.bf16.mxu1 %v16114_v25 }
 0x845   : > { %7221 = vmatmul.mubr.bf16.gmra.mxu1 %v6334_v41 }
 0x846   : > { %15335 = vmatpush3.bf16.msra.mxu1 %v16116_v61 }
 0x847   : > { %15336 = vmatprep.subr.bf16.mxu1 %v16118_v44 }
 0x84a   : > { %15337 = vmatpush3.bf16.msra.mxu1 %v16120_v51 }
 0x84b   : > { %15338 = vmatprep.subr.bf16.mxu1 %v16122_v47 }
 0x84e   : > { %15339 = vmatpush3.bf16.msra.mxu1 %v16124_v53 }
 0x84f   : > { %15340 = vmatprep.subr.bf16.mxu1 %v16126_v1 }
 0x852   : > { %15341 = vmatpush3.bf16.msra.mxu1 %v16128_v0 }
 0x853   : > { %15342 = vmatprep.subr.bf16.mxu1 %v16130_v5 }
 0x856   : > { %15343 = vmatpush3.bf16.msra.mxu1 %v16132_v56 }
 0x857   : > { %15344 = vmatprep.subr.bf16.mxu1 %v16134_v8 }
 0x85a   : > { %15345 = vmatpush3.bf16.msra.mxu1 %v16136_v10 }
 0x85b   : > { %15374 = vmatprep.subr.bf16.mxu1 %v16138_v63 }
 0x8bd   : > { %v15184_v12 = vpop.f32.mrf.mxu1 }
 0x8be   : > { %v15212_v13 = vpop.f32.mrf.mxu0 }
 0x8bf   : > { %v15185_v3 = vpop.f32.mrf.mxu1 }
 0x8c0   : > { %v15213_v15 = vpop.f32.mrf.mxu0  ;;  %v15186_v45 = vadd.f32 %v15185_v3, %v15184_v12 }
 0x8c1   : > { %v15187_v17 = vpop.f32.mrf.mxu1  ;;  %v15214_v54 = vadd.f32 %v15213_v15, %v15212_v13 }
 0x8c2   : > { %v15215_v18 = vpop.f32.mrf.mxu0  ;;  %v7023_v52 = vadd.f32 %v15186_v45, %v13559_v48  ;;  %v16143_v45 = vld [vmem:[#allocation6 + $0x12b0] sm:$0xff]  }
 0x8c3   : > { %v15188_v20 = vpop.f32.mrf.mxu1 }
 0x8c4   : > { %v15216_v22 = vpop.f32.mrf.mxu0  ;;  %v15189_v49 = vadd.f32 %v15188_v20, %v15187_v17  ;;  %v7071_v25 = vadd.f32 %v15214_v54, %v7023_v52  ;;  %v16146_v52 = vld [vmem:[#allocation6 + $0x1368] sm:$0xff]  }
 0x8c5   : > { %v15190_v24 = vpop.f32.mrf.mxu1  ;;  %v15217_v61 = vadd.f32 %v15216_v22, %v15215_v18  ;;  %v16147_v54 = vld [vmem:[#allocation6 + $0x12a8] sm:$0xff]  }
 0x8c6   : > { %v15218_v59 = vpop.f32.mrf.mxu0  ;;  %v7026_v58 = vadd.f32 %v15189_v49, %v13559_v48  ;;  %v16145_v49 = vld [vmem:[#allocation6 + $0x12e8] sm:$0xff]  }
 0x8c7   : > { %v15191_v26 = vpop.f32.mrf.mxu1 }
 0x8c8   : > { %v15219_v57 = vpop.f32.mrf.mxu0  ;;  %v15192_v60 = vadd.f32 %v15191_v26, %v15190_v24  ;;  %v7074_v46 = vadd.f32 %v15217_v61, %v7026_v58  ;;  %v16149_v58 = vld [vmem:[#allocation6 + $0x12e0] sm:$0xff]  }
 0x8c9   : > { %v15193_v14 = vpop.f32.mrf.mxu1  ;;  %v15220_v62 = vadd.f32 %v15219_v57, %v15218_v59  ;;  %v16152_v61 = vld [vmem:[#allocation6 + $0x1320] sm:$0xff]  }
 0x8ca   : > { %v15221_v16 = vpop.f32.mrf.mxu0  ;;  %v7031_v42 = vadd.f32 %v15192_v60, %v13559_v48  ;;  %v16144_v48 = vld [vmem:[#allocation6 + $0x1330] sm:$0xff]   ;;  %v16151_v60 = vld [vmem:[#allocation6 + $0x12a0] sm:$0xff]  }
 0x8cb   : > { %v15194_v19 = vpop.f32.mrf.mxu1  ;;  %v16139_v16 = vld [vmem:[#allocation6 + $0x12b8] sm:$0xff]  }
 0x8cc   : > { %v15222_v27 = vpop.f32.mrf.mxu0  ;;  %v7079_v6 = vadd.f32 %v15220_v62, %v7031_v42  ;;  %v16157_v42 = vld [vmem:[#allocation6 + $0x12d0] sm:$0xff]   ;;  %v16161_v62 = vld [vmem:[#allocation6 + $0x12c8] sm:$0xff]  }
 0x8dd   : > { %v15240_v28 = vpop.f32.mrf.mxu1 }
 0x8de   : > { %v15268_v29 = vpop.f32.mrf.mxu0 }
 0x8df   : > { %v15241_v30 = vpop.f32.mrf.mxu1 }
 0x8e0   : > { %v15269_v31 = vpop.f32.mrf.mxu0  ;;  %v15242_v55 = vadd.f32 %v15241_v30, %v15240_v28 }
 0x8e1   : > { %v15243_v33 = vpop.f32.mrf.mxu1  ;;  %v15270_v47 = vadd.f32 %v15269_v31, %v15268_v29 }
 0x8e2   : > { %v15271_v34 = vpop.f32.mrf.mxu0  ;;  %v7119_v44 = vadd.f32 %v15242_v55, %v7071_v25  ;;  %v16148_v55 = vld [vmem:[#allocation6 + $0x1328] sm:$0xff]   ;;  %v16150_v25 = vld [vmem:[#allocation6 + $0x1360] sm:$0xff]  }
 0x8e3   : > { %v15244_v35 = vpop.f32.mrf.mxu1 }
 0x8e4   : > { %v15272_v21 = vpop.f32.mrf.mxu0  ;;  %v15245_v23 = vadd.f32 %v15244_v35, %v15243_v33  ;;  %v7167_v1 = vadd.f32 %v15270_v47, %v7119_v44  ;;  %v16140_v35 = vld [vmem:[#allocation6 + $0x1338] sm:$0xff]   ;;  %v16158_v47 = vld [vmem:[#allocation6 + $0x1350] sm:$0xff]  }
 0x8e5   : > { %v15246_v36 = vpop.f32.mrf.mxu1  ;;  %v15273_v4 = vadd.f32 %v15272_v21, %v15271_v34  ;;  %v16154_v44 = vld [vmem:[#allocation6 + $0x1358] sm:$0xff]  }
 0x8e6   : > { %v15274_v37 = vpop.f32.mrf.mxu0  ;;  %v7122_v50 = vadd.f32 %v15245_v23, %v7074_v46  ;;  %v16153_v23 = vld [vmem:[#allocation6 + $0x12d8] sm:$0xff]  }
 0x8e7   : > { %v15247_v38 = vpop.f32.mrf.mxu1  ;;  %v16155_v46 = vld [vmem:[#allocation6 + $0x1298] sm:$0xff]  }
 0x8e8   : > { %v15275_v39 = vpop.f32.mrf.mxu0  ;;  %v15248_v2 = vadd.f32 %v15247_v38, %v15246_v36  ;;  %v7170_v7 = vadd.f32 %v15273_v4, %v7122_v50  ;;  %v16141_v36 = vld [vmem:[#allocation6 + $0x12f0] sm:$0xff]   ;;  %v16165_v4 = vld [vmem:[#allocation6 + $0x12c0] sm:$0xff]  }
 0x8e9   : > { %v15249_v40 = vpop.f32.mrf.mxu1  ;;  %v15276_v10 = vadd.f32 %v15275_v39, %v15274_v37  ;;  %v16142_v37 = vld [vmem:[#allocation6 + $0x1370] sm:$0xff]  }
 0x8ea   : > { %v15277_v41 = vpop.f32.mrf.mxu0  ;;  %v7127_v9 = vadd.f32 %v15248_v2, %v7079_v6  ;;  %v16159_v50 = vld [vmem:[#allocation6 + $0x1290] sm:$0xff]   ;;  %v16163_v2 = vld [vmem:[#allocation6 + $0x1288] sm:$0xff]   ;;  %v16167_v6 = vld [vmem:[#allocation6 + $0x1280] sm:$0xff]  }
 0x8eb   : > { %v15250_v43 = vpop.f32.mrf.mxu1 }
 0x8ec   : > { %v15278_v32 = vpop.f32.mrf.mxu0  ;;  %v7175_v15 = vadd.f32 %v15276_v10, %v7127_v9 }
 0x8fd   : > { %v15296_v51 = vpop.f32.mrf.mxu1 }
 0x8ff   : > { %v15297_v53 = vpop.f32.mrf.mxu1 }
 0x900   : > { %v15298_v0 = vadd.f32 %v15297_v53, %v15296_v51  ;;  %v16156_v51 = vld [vmem:[#allocation6 + $0x1318] sm:$0xff]   ;;  %v16160_v53 = vld [vmem:[#allocation6 + $0x1310] sm:$0xff]  }
 0x901   : > { %v15299_v5 = vpop.f32.mrf.mxu1 }
 0x902   : > { %v16600_v56 = vadd.f32 %v15298_v0, %v7167_v1  ;;  %v16162_v1 = vld [vmem:[#allocation6 + $0x1348] sm:$0xff]  }
 0x903   : > { %v15300_v8 = vpop.f32.mrf.mxu1  ;;  %v16164_v0 = vld [vmem:[#allocation6 + $0x1308] sm:$0xff]  }
 0x904   : > { %v7228_v11 = vmax.f32 %v16600_v56, 0.0  ;;  %v15301_v63 = vadd.f32 %v15300_v8, %v15299_v5  ;;  %v16166_v5 = vld [vmem:[#allocation6 + $0x1340] sm:$0xff]   ;;  %v16169_v8 = vld [vmem:[#allocation6 + $0x13f8] sm:$0xff]  }
 0x905   : > { %v15302_v12 = vpop.f32.mrf.mxu1  ;;  %v16176_v56 = vld [vmem:[#allocation6 + $0x13a0] sm:$0xff]  }
 0x906   : > { %7231 = vst [vmem:[#allocation2 + $0x8] sm:$0xff] %v7228_v11  ;;  %v16605_v13 = vadd.f32 %v15301_v63, %v7170_v7  ;;  %v16168_v7 = vld [vmem:[#allocation6 + $0x1300] sm:$0xff]  }
 0x907   : > { %v15303_v3 = vpop.f32.mrf.mxu1 }
 0x908   : > { %v7229_v17 = vmax.f32 %v16605_v13, 0.0  ;;  %v15304_v18 = vadd.f32 %v15303_v3, %v15302_v12  ;;  %v16170_v12 = vld [vmem:[#allocation6 + $0x13b8] sm:$0xff]  }
 0x909   : > { %v15305_v20 = vpop.f32.mrf.mxu1  ;;  %v16178_v13 = vld [vmem:[#allocation6 + $0x1398] sm:$0xff]  }
 0x90a   : > { %7232 = vst [vmem:[#allocation2 + $0x10] sm:$0xff] %v7229_v17  ;;  %v7223_v22 = vadd.f32 %v15304_v18, %v7175_v15  ;;  %v7248_v3 = vpack.c.bf16 %v7229_v17, %v7228_v11  ;;  %v16171_v18 = vld [vmem:[#allocation6 + $0x13f0] sm:$0xff]   ;;  %v16177_v11 = vld [vmem:[#allocation6 + $0x13d8] sm:$0xff]  }
 0x90b   : > { %v15306_v24 = vpop.f32.mrf.mxu1  ;;  %v16179_v17 = vld [vmem:[#allocation6 + $0x13d0] sm:$0xff]  }
 0x90c   : > { %v7230_v59 = vmax.f32 %v7223_v22, 0.0  ;;  %v16172_v22 = vld [vmem:[#allocation6 + $0x13b0] sm:$0xff]   ;;  %v16173_v24 = vld [vmem:[#allocation6 + $0x13e8] sm:$0xff]  }
 0x90d   : > { %v7237_v26 = vld [vmem:[#allocation2 + $0x5] sm:$0xff] }
 0x90e   : > { %7233 = vst [vmem:[#allocation2 + $0x18] sm:$0x1] %v7230_v59  ;;  %v7243_v57 = vld [vmem:[#allocation2 + $0x7] sm:$0xff] }
 0x90f   : > { %v7234_v14 = vld [vmem:[#allocation2 + $0x4] sm:$0xff] }
 0x910   : > { %v7240_v33 = vld [vmem:[#allocation2 + $0x6] sm:$0xff] }
 0x911   : > { %v16610_v19 = vld [vmem:[#allocation2 + $0xd] sm:$0xff] }
 0x912   : > { %v7244_v27 = vld [vmem:[#allocation2 + $0xf] sm:$0xff]  ;;  %v7239_v29 = vpack.c.bf16 %v16610_v19, %v7237_v26  ;;  %v16175_v26 = vld [vmem:[#allocation6 + $0x13e0] sm:$0xff]  }
 0x913   : > { %v16612_v28 = vld [vmem:[#allocation2 + $0xc] sm:$0xff]  ;;  %v7245_v30 = vpack.c.bf16 %v7244_v27, %v7243_v57  ;;  %v16184_v27 = vld [vmem:[#allocation6 + $0x1380] sm:$0xff]  }
 0x914   : > { %v7236_v31 = vpack.c.bf16 %v16612_v28, %v7234_v14  ;;  %v7241_v34 = vld [vmem:[#allocation2 + $0xe] sm:$0xff]  ;;  %7943 = vmatprep.mubr.bf16.mxu0 %v7239_v29 }
 0x915   : > { %v7242_v21 = vpack.c.bf16 %v7241_v34, %v7240_v33  ;;  %7984 = vmatprep.mubr.bf16.mxu1 %v7245_v30  ;;  %v7249_v38 = vld [vmem:[#allocation2 + $0x9] sm:$0xff]  ;;  %v7250_v39 = vld [vmem:[#allocation2 + $0x11] sm:$0xff] }
 0x916   : > { %7944 = vmatmul.mubr.bf16.vlgmr.msra.gmra.mxu0 %v7236_v31  ;;  %v7255_v40 = vld [vmem:[#allocation2 + $0xb] sm:$0xff]  ;;  %v7256_v41 = vld [vmem:[#allocation2 + $0x13] sm:$0xff]  ;;  %v7251_v43 = vpack.c.bf16 %v7250_v39, %v7249_v38 }
 0x917   : > { %7985 = vmatmul.mubr.bf16.vlgmr.msra.gmra.mxu1 %v7242_v21  ;;  %15353 = vmatpush3.bf16.msra.mxu0 %v16139_v16  ;;  %v7257_v32 = vpack.c.bf16 %v7256_v41, %v7255_v40  ;;  %v7253_v9 = vld [vmem:[#allocation2 + $0x12] sm:$0xff]  ;;  %v7252_v63 = vld [vmem:[#allocation2 + $0xa] sm:$0xff] }
 0x918   : > { %15375 = vmatpush3.bf16.msra.mxu1 %v16140_v35  ;;  %15354 = vmatprep.subr.bf16.mxu0 %v16141_v36  ;;  %v7260_v10 = vld [vmem:[#allocation2 + $0x15] sm:$0xff]  ;;  %v7254_v15 = vpack.c.bf16 %v7253_v9, %v7252_v63  ;;  %v16174_v59 = vld [vmem:[#allocation6 + $0x13a8] sm:$0xff]  }
 0x919   : > { %15376 = vmatprep.subr.bf16.mxu1 %v16142_v37  ;;  %8025 = vmatprep.mubr.bf16.mxu0 %v7251_v43  ;;  %v7261_v20 = vpack.c.bf16 %v7260_v10, %v16610_v19  ;;  %v16180_v57 = vld [vmem:[#allocation6 + $0x1390] sm:$0xff]   ;;  %v16181_v14 = vld [vmem:[#allocation6 + $0x13c8] sm:$0xff]   ;;  %v16183_v19 = vld [vmem:[#allocation6 + $0x13c0] sm:$0xff]  }
 0x91a   : > { %8066 = vmatprep.mubr.bf16.mxu1 %v7257_v32  ;;  %v16182_v16 = vld [vmem:[#allocation6 + $0x1388] sm:$0xff]   ;;  %v7258_v29 = vld [vmem:[#allocation2 + $0x14] sm:$0xff] }
 0x91b   : > { %15355 = vmatpush3.bf16.msra.mxu0 %v16143_v45  ;;  %v7259_v30 = vpack.c.bf16 %v7258_v29, %v16612_v28  ;;  %v8206_v31 = vld [vmem:[#allocation9 + $0x1c0] sm:$0xff] }
 0x91c   : > { %15377 = vmatpush3.bf16.msra.mxu1 %v16144_v48  ;;  %15356 = vmatprep.subr.bf16.mxu0 %v16145_v49  ;;  %v8210_v33 = vld [vmem:[#allocation9 + $0x1e0] sm:$0xff] }
 0x91d   : > { %15378 = vmatprep.subr.bf16.mxu1 %v16146_v52  ;;  %v8334_v34 = vld [vmem:[#allocation9 + $0x5c0] sm:$0xff]  ;;  %v13777_v35 = vcombine.low %v8206_v31, %v8210_v33  ;;  %v13778_v21 = vcombine.high %v8206_v31, %v8210_v33 }
 0x91e   : > { %v8338_v36 = vld [vmem:[#allocation9 + $0x5e0] sm:$0xff] }
 0x91f   : > { %15357 = vmatpush3.bf16.msra.mxu0 %v16147_v54  ;;  %v8198_v37 = vld [vmem:[#allocation9 + $0x180] sm:$0xff]  ;;  %v13905_v39 = vcombine.low %v8334_v34, %v8338_v36  ;;  %v13906_v40 = vcombine.high %v8334_v34, %v8338_v36 }
 0x920   : > { %15379 = vmatpush3.bf16.msra.mxu1 %v16148_v55  ;;  %15358 = vmatprep.subr.bf16.mxu0 %v16149_v58  ;;  %v8202_v38 = vld [vmem:[#allocation9 + $0x1a0] sm:$0xff] }
 0x921   : > { %15380 = vmatprep.subr.bf16.mxu1 %v16150_v25  ;;  %v13770_v41 = vcombine.high %v8198_v37, %v8202_v38  ;;  %v8326_v43 = vld [vmem:[#allocation9 + $0x580] sm:$0xff]  ;;  %v13769_v54 = vcombine.low %v8198_v37, %v8202_v38 }
 0x922   : > { %v8330_v32 = vld [vmem:[#allocation9 + $0x5a0] sm:$0xff] }
 0x923   : > { %15359 = vmatpush3.bf16.msra.mxu0 %v16151_v60  ;;  %v8190_v45 = vld [vmem:[#allocation9 + $0x140] sm:$0xff]  ;;  %v13898_v48 = vcombine.high %v8326_v43, %v8330_v32  ;;  %v13897_v55 = vcombine.low %v8326_v43, %v8330_v32 }
 0x924   : > { %15381 = vmatpush3.bf16.msra.mxu1 %v16152_v61  ;;  %15360 = vmatprep.subr.bf16.mxu0 %v16153_v23  ;;  %v8194_v49 = vld [vmem:[#allocation9 + $0x160] sm:$0xff] }
 0x925   : > { %15382 = vmatprep.subr.bf16.mxu1 %v16154_v44  ;;  %v8318_v52 = vld [vmem:[#allocation9 + $0x540] sm:$0xff]  ;;  %v13762_v58 = vcombine.high %v8190_v45, %v8194_v49  ;;  %v13761_v60 = vcombine.low %v8190_v45, %v8194_v49 }
 0x926   : > { %v8322_v28 = vld [vmem:[#allocation9 + $0x560] sm:$0xff] }
 0x927   : > { %15361 = vmatpush3.bf16.msra.mxu0 %v16155_v46  ;;  %v13890_v25 = vcombine.high %v8318_v52, %v8322_v28  ;;  %v13889_v61 = vcombine.low %v8318_v52, %v8322_v28  ;;  %v8182_v23 = vld [vmem:[#allocation9 + $0x100] sm:$0xff] }
 0x928   : > { %15383 = vmatpush3.bf16.msra.mxu1 %v16156_v51  ;;  %15362 = vmatprep.subr.bf16.mxu0 %v16157_v42  ;;  %v8186_v44 = vld [vmem:[#allocation9 + $0x120] sm:$0xff] }
 0x929   : > { %15384 = vmatprep.subr.bf16.mxu1 %v16158_v47  ;;  %v8310_v46 = vld [vmem:[#allocation9 + $0x500] sm:$0xff]  ;;  %v13754_v51 = vcombine.high %v8182_v23, %v8186_v44  ;;  %v13753_v47 = vcombine.low %v8182_v23, %v8186_v44 }
 0x92a   : > { %v8314_v42 = vld [vmem:[#allocation9 + $0x520] sm:$0xff] }
 0x92b   : > { %15363 = vmatpush3.bf16.msra.mxu0 %v16159_v50  ;;  %v13881_v50 = vcombine.low %v8310_v46, %v8314_v42  ;;  %v8170_v9 = vld [vmem:[#allocation9 + $0xa0] sm:$0xff] }
 0x92c   : > { %15385 = vmatpush3.bf16.msra.mxu1 %v16160_v53  ;;  %15364 = vmatprep.subr.bf16.mxu0 %v16161_v62  ;;  %v13882_v53 = vcombine.high %v8310_v46, %v8314_v42  ;;  %v8174_v62 = vld [vmem:[#allocation9 + $0xc0] sm:$0xff] }
 0x92d   : > { %15386 = vmatprep.subr.bf16.mxu1 %v16162_v1  ;;  %v8178_v1 = vld [vmem:[#allocation9 + $0xe0] sm:$0xff] }
 0x92e   : > { %v8294_v10 = vld [vmem:[#allocation9 + $0x480] sm:$0xff] }
 0x92f   : > { %15365 = vmatpush3.bf16.msra.mxu0 %v16163_v2  ;;  %v8302_v2 = vld [vmem:[#allocation9 + $0x4c0] sm:$0xff] }
 0x930   : > { %15387 = vmatpush3.bf16.msra.mxu1 %v16164_v0  ;;  %15366 = vmatprep.subr.bf16.mxu0 %v16165_v4  ;;  %v13746_v0 = vcombine.high %v8174_v62, %v8178_v1  ;;  %v8306_v4 = vld [vmem:[#allocation9 + $0x4e0] sm:$0xff] }
 0x931   : > { %15388 = vmatprep.subr.bf16.mxu1 %v16166_v5  ;;  %v13745_v5 = vcombine.low %v8174_v62, %v8178_v1  ;;  %v8270_v29 = vld [vmem:[#allocation9 + $0x3c0] sm:$0xff] }
 0x932   : > { %v8398_v31 = vld [vmem:[#allocation9 + $0x7c0] sm:$0xff] }
 0x933   : > { %15367 = vmatpush3.bf16.msra.mxu0 %v16167_v6  ;;  %v13873_v6 = vcombine.low %v8302_v2, %v8306_v4  ;;  %v8402_v33 = vld [vmem:[#allocation9 + $0x7e0] sm:$0xff] }
 0x934   : > { %15389 = vmatpush3.bf16.msra.mxu1 %v16168_v7  ;;  %15396 = vmatprep.subr.bf16.mxu0 %v16169_v8  ;;  %v13874_v7 = vcombine.high %v8302_v2, %v8306_v4  ;;  %v8166_v8 = vld [vmem:[#allocation9 + $0x80] sm:$0xff]  ;;  %v13970_v36 = vcombine.high %v8398_v31, %v8402_v33  ;;  %v13969_v43 = vcombine.low %v8398_v31, %v8402_v33 }
 0x935   : > { %12032 = vmatprep.subr.bf16.mxu1 %v13778_v21  ;;  %v13737_v63 = vcombine.low %v8166_v8, %v8170_v9  ;;  %v8262_v37 = vld [vmem:[#allocation9 + $0x380] sm:$0xff] }
 0x936   : > { %8026 = vmatmul.mubr.bf16.vlgmr.msra.gmra.mxu0 %v7248_v3  ;;  %v8298_v3 = vld [vmem:[#allocation9 + $0x4a0] sm:$0xff] }
 0x937   : > { %8067 = vmatmul.mubr.bf16.vlgmr.msra.gmra.mxu1 %v7254_v15  ;;  %15397 = vmatpush3.bf16.msra.mxu0 %v16170_v12  ;;  %v13738_v12 = vcombine.high %v8166_v8, %v8170_v9  ;;  %v8158_v15 = vld [vmem:[#allocation9 + $0x40] sm:$0xff] }
 0x938   : > { %8107 = vmatprep.mubr.bf16.mxu0 %v7261_v20  ;;  %15398 = vmatprep.subr.bf16.mxu0 %v16171_v18  ;;  %v8162_v18 = vld [vmem:[#allocation9 + $0x60] sm:$0xff]  ;;  %v13865_v20 = vcombine.low %v8294_v10, %v8298_v3 }
 0x939   : > { %12033 = vmatpush1.bf16.msra.mxu1 %v13777_v35  ;;  %v8266_v38 = vld [vmem:[#allocation9 + $0x3a0] sm:$0xff] }
 0x93a   : > { %12034 = vmatprep.subr.bf16.mxu1 %v13770_v41  ;;  %v13834_v32 = vcombine.high %v8262_v37, %v8266_v38  ;;  %v8258_v49 = vld [vmem:[#allocation9 + $0x360] sm:$0xff] }
 0x93b   : > { %15399 = vmatpush3.bf16.msra.mxu0 %v16172_v22  ;;  %v13866_v22 = vcombine.high %v8294_v10, %v8298_v3  ;;  %v8382_v52 = vld [vmem:[#allocation9 + $0x740] sm:$0xff] }
 0x93c   : > { %15400 = vmatprep.subr.bf16.mxu0 %v16173_v24  ;;  %v13730_v24 = vcombine.high %v8158_v15, %v8162_v18  ;;  %v8386_v28 = vld [vmem:[#allocation9 + $0x760] sm:$0xff] }
 0x93d   : > { %12035 = vmatpush1.bf16.msra.mxu1 %v13769_v54  ;;  %v13833_v54 = vcombine.low %v8262_v37, %v8266_v38  ;;  %v8246_v23 = vld [vmem:[#allocation9 + $0x300] sm:$0xff] }
 0x93e   : > { %12036 = vmatprep.subr.bf16.mxu1 %v13762_v58  ;;  %v8250_v44 = vld [vmem:[#allocation9 + $0x320] sm:$0xff] }
 0x93f   : > { %15401 = vmatpush3.bf16.msra.mxu0 %v16174_v59  ;;  %v8286_v59 = vld [vmem:[#allocation9 + $0x440] sm:$0xff] }
 0x940   : > { %15402 = vmatprep.subr.bf16.mxu0 %v16175_v26  ;;  %v8290_v26 = vld [vmem:[#allocation9 + $0x460] sm:$0xff] }
 0x941   : > { %12037 = vmatpush1.bf16.msra.mxu1 %v13761_v60  ;;  %v8374_v46 = vld [vmem:[#allocation9 + $0x700] sm:$0xff] }
 0x942   : > { %12038 = vmatprep.subr.bf16.mxu1 %v13754_v51  ;;  %v13818_v51 = vcombine.high %v8246_v23, %v8250_v44  ;;  %v8378_v42 = vld [vmem:[#allocation9 + $0x720] sm:$0xff] }
 0x943   : > { %15403 = vmatpush3.bf16.msra.mxu0 %v16176_v56  ;;  %v8150_v56 = vld [vmem:[#allocation9] sm:$0xff] }
 0x944   : > { %15404 = vmatprep.subr.bf16.mxu0 %v16177_v11  ;;  %v13858_v11 = vcombine.high %v8286_v59, %v8290_v26  ;;  %v8238_v62 = vld [vmem:[#allocation9 + $0x2c0] sm:$0xff] }
 0x945   : > { %12039 = vmatpush1.bf16.msra.mxu1 %v13753_v47  ;;  %v13817_v47 = vcombine.low %v8246_v23, %v8250_v44  ;;  %v8242_v1 = vld [vmem:[#allocation9 + $0x2e0] sm:$0xff] }
 0x946   : > { %12040 = vmatprep.subr.bf16.mxu1 %v13746_v0  ;;  %v8366_v2 = vld [vmem:[#allocation9 + $0x6c0] sm:$0xff]  ;;  %v13810_v0 = vcombine.high %v8238_v62, %v8242_v1 }
 0x947   : > { %15405 = vmatpush3.bf16.msra.mxu0 %v16178_v13  ;;  %v8154_v13 = vld [vmem:[#allocation9 + $0x20] sm:$0xff] }
 0x948   : > { %15406 = vmatprep.subr.bf16.mxu0 %v16179_v17  ;;  %v8278_v17 = vld [vmem:[#allocation9 + $0x400] sm:$0xff]  ;;  %v13721_v34 = vcombine.low %v8150_v56, %v8154_v13 }
 0x949   : > { %12041 = vmatpush1.bf16.msra.mxu1 %v13745_v5  ;;  %v8370_v4 = vld [vmem:[#allocation9 + $0x6e0] sm:$0xff]  ;;  %v13809_v5 = vcombine.low %v8238_v62, %v8242_v1 }
 0x94a   : > { %12042 = vmatprep.subr.bf16.mxu1 %v13738_v12  ;;  %v8230_v8 = vld [vmem:[#allocation9 + $0x280] sm:$0xff] }
 0x94b   : > { %15407 = vmatpush3.bf16.msra.mxu0 %v16180_v57  ;;  %v8282_v57 = vld [vmem:[#allocation9 + $0x420] sm:$0xff] }
 0x94c   : > { %15408 = vmatprep.subr.bf16.mxu0 %v16181_v14  ;;  %v13729_v14 = vcombine.low %v8158_v15, %v8162_v18  ;;  %v13849_v35 = vcombine.low %v8278_v17, %v8282_v57  ;;  %v8234_v9 = vld [vmem:[#allocation9 + $0x2a0] sm:$0xff] }
 0x94d   : > { %12043 = vmatpush1.bf16.msra.mxu1 %v13737_v63  ;;  %v8358_v10 = vld [vmem:[#allocation9 + $0x680] sm:$0xff]  ;;  %v13802_v63 = vcombine.high %v8230_v8, %v8234_v9  ;;  %v13801_v3 = vcombine.low %v8230_v8, %v8234_v9 }
 0x94e   : > { %12044 = vmatprep.subr.bf16.mxu1 %v13730_v24  ;;  %v8362_v12 = vld [vmem:[#allocation9 + $0x6a0] sm:$0xff] }
 0x94f   : > { %15409 = vmatpush3.bf16.msra.mxu0 %v16182_v16  ;;  %v13857_v16 = vcombine.low %v8286_v59, %v8290_v26  ;;  %v13929_v15 = vcombine.low %v8358_v10, %v8362_v12  ;;  %v13930_v18 = vcombine.high %v8358_v10, %v8362_v12  ;;  %v8350_v24 = vld [vmem:[#allocation9 + $0x640] sm:$0xff] }
 0x950   : > { %15410 = vmatprep.subr.bf16.mxu0 %v16183_v19  ;;  %v13722_v19 = vcombine.high %v8150_v56, %v8154_v13  ;;  %v8354_v26 = vld [vmem:[#allocation9 + $0x660] sm:$0xff] }
 0x951   : > { %12045 = vmatpush1.bf16.msra.mxu1 %v13729_v14  ;;  %v8214_v56 = vld [vmem:[#allocation9 + $0x200] sm:$0xff] }
 0x952   : > { %12046 = vmatprep.subr.bf16.mxu1 %v13722_v19  ;;  %v8346_v14 = vld [vmem:[#allocation9 + $0x620] sm:$0xff] }
 0x953   : > { %15411 = vmatpush3.bf16.msra.mxu0 %v16184_v27  ;;  %v13850_v27 = vcombine.high %v8278_v17, %v8282_v57  ;;  %v13922_v17 = vcombine.high %v8350_v24, %v8354_v26  ;;  %v8342_v57 = vld [vmem:[#allocation9 + $0x600] sm:$0xff] }
 0x954   : > { %12075 = vmatprep.subr.bf16.mxu0 %v13906_v40  ;;  %v8394_v40 = vld [vmem:[#allocation9 + $0x7a0] sm:$0xff] }
 0x955   : > { %12047 = vmatpush1.bf16.msra.mxu1 %v13721_v34  ;;  %v16622_v31 = vld [vmem:[#allocation9 + $0x9c0] sm:$0xff] }
 0x956   : > { %8108 = vmatmul.mubr.bf16.vlgmr.msra.gmra.mxu0 %v7259_v30  ;;  %v8274_v30 = vld [vmem:[#allocation9 + $0x3e0] sm:$0xff] }
 0x957   : > { %12076 = vmatpush1.bf16.msra.mxu0 %v13905_v39  ;;  %v13842_v21 = vcombine.high %v8270_v29, %v8274_v30  ;;  %v8390_v39 = vld [vmem:[#allocation9 + $0x780] sm:$0xff]  ;;  %v13841_v41 = vcombine.low %v8270_v29, %v8274_v30  ;;  %v13913_v30 = vcombine.low %v8342_v57, %v8346_v14 }
 0x958   : > { %12077 = vmatprep.subr.bf16.mxu0 %v13898_v48  ;;  %v13962_v45 = vcombine.high %v8390_v39, %v8394_v40  ;;  %v8254_v48 = vld [vmem:[#allocation9 + $0x340] sm:$0xff] }
 0x959   : > { %12048 = vmatprep.subr.bf16.mxu1 %v13842_v21  ;;  %v13826_v58 = vcombine.high %v8254_v48, %v8258_v49  ;;  %v13825_v60 = vcombine.low %v8254_v48, %v8258_v49  ;;  %v16624_v33 = vld [vmem:[#allocation9 + $0x9e0] sm:$0xff] }
 0x95a   : > { %12049 = vmatpush2.bf16.msra.mxu1 %v13841_v41  ;;  %v16626_v34 = vld [vmem:[#allocation9 + $0xdc0] sm:$0xff]  ;;  %v14034_v21 = vcombine.high %v16622_v31, %v16624_v33 }
 0x95b   : > { %12078 = vmatpush1.bf16.msra.mxu0 %v13897_v55  ;;  %12050 = vmatprep.subr.bf16.mxu1 %v13834_v32  ;;  %v13961_v55 = vcombine.low %v8390_v39, %v8394_v40 }
 0x95c   : > { %12079 = vmatprep.subr.bf16.mxu0 %v13890_v25  ;;  %v13954_v25 = vcombine.high %v8382_v52, %v8386_v28 }
 0x95e   : > { %12051 = vmatpush2.bf16.msra.mxu1 %v13833_v54 }
 0x95f   : > { %12080 = vmatpush1.bf16.msra.mxu0 %v13889_v61  ;;  %12052 = vmatprep.subr.bf16.mxu1 %v13826_v58  ;;  %v13953_v61 = vcombine.low %v8382_v52, %v8386_v28 }
 0x960   : > { %12081 = vmatprep.subr.bf16.mxu0 %v13882_v53  ;;  %v13946_v53 = vcombine.high %v8374_v46, %v8378_v42 }
 0x962   : > { %12053 = vmatpush2.bf16.msra.mxu1 %v13825_v60 }
 0x963   : > { %12082 = vmatpush1.bf16.msra.mxu0 %v13881_v50  ;;  %v13945_v50 = vcombine.low %v8374_v46, %v8378_v42  ;;  %12054 = vmatprep.subr.bf16.mxu1 %v13818_v51 }
 0x964   : > { %12083 = vmatprep.subr.bf16.mxu0 %v13874_v7  ;;  %v13938_v7 = vcombine.high %v8366_v2, %v8370_v4 }
 0x966   : > { %12055 = vmatpush2.bf16.msra.mxu1 %v13817_v47 }
 0x967   : > { %12084 = vmatpush1.bf16.msra.mxu0 %v13873_v6  ;;  %v13937_v6 = vcombine.low %v8366_v2, %v8370_v4  ;;  %12056 = vmatprep.subr.bf16.mxu1 %v13810_v0 }
 0x968   : > { %12085 = vmatprep.subr.bf16.mxu0 %v13866_v22  ;;  %v8226_v22 = vld [vmem:[#allocation9 + $0x260] sm:$0xff] }
 0x96a   : > { %12057 = vmatpush2.bf16.msra.mxu1 %v13809_v5 }
 0x96b   : > { %12086 = vmatpush1.bf16.msra.mxu0 %v13865_v20  ;;  %v8222_v20 = vld [vmem:[#allocation9 + $0x240] sm:$0xff]  ;;  %12058 = vmatprep.subr.bf16.mxu1 %v13802_v63 }
 0x96c   : > { %12087 = vmatprep.subr.bf16.mxu0 %v13858_v11  ;;  %v13794_v59 = vcombine.high %v8222_v20, %v8226_v22  ;;  %v8218_v11 = vld [vmem:[#allocation9 + $0x220] sm:$0xff]  ;;  %v13793_v13 = vcombine.low %v8222_v20, %v8226_v22 }
 0x96d   : > { %v13786_v19 = vcombine.high %v8214_v56, %v8218_v11  ;;  %v13785_v29 = vcombine.low %v8214_v56, %v8218_v11  ;;  %v8458_v56 = vld [vmem:[#allocation9 + $0x9a0] sm:$0xff] }
 0x96e   : > { %12059 = vmatpush2.bf16.msra.mxu1 %v13801_v3  ;;  %v8582_v11 = vld [vmem:[#allocation9 + $0xd80] sm:$0xff] }
 0x96f   : > { %12088 = vmatpush1.bf16.msra.mxu0 %v13857_v16  ;;  %12060 = vmatprep.subr.bf16.mxu1 %v13794_v59  ;;  %v13921_v16 = vcombine.low %v8350_v24, %v8354_v26  ;;  %v8454_v26 = vld [vmem:[#allocation9 + $0x980] sm:$0xff] }
 0x970   : > { %12089 = vmatprep.subr.bf16.mxu0 %v13850_v27  ;;  %v13914_v27 = vcombine.high %v8342_v57, %v8346_v14 }
 0x972   : > { %12061 = vmatpush2.bf16.msra.mxu1 %v13793_v13  ;;  %v8586_v13 = vld [vmem:[#allocation9 + $0xda0] sm:$0xff] }
 0x973   : > { %12090 = vmatpush1.bf16.msra.mxu0 %v13849_v35  ;;  %12062 = vmatprep.subr.bf16.mxu1 %v13786_v19  ;;  %v14033_v35 = vcombine.low %v16622_v31, %v16624_v33 }
 0x974   : > { %12091 = vmatprep.subr.bf16.mxu0 %v13970_v36  ;;  %v16632_v36 = vld [vmem:[#allocation9 + $0xde0] sm:$0xff] }
 0x975   : > { %v14161_v37 = vcombine.low %v16626_v34, %v16632_v36  ;;  %v14162_v38 = vcombine.high %v16626_v34, %v16632_v36  ;;  %v8430_v36 = vld [vmem:[#allocation9 + $0x8c0] sm:$0xff] }
 0x976   : > { %12063 = vmatpush2.bf16.msra.mxu1 %v13785_v29 }
 0x977   : > { %12092 = vmatpush2.bf16.msra.mxu0 %v13969_v43  ;;  %12118 = vmatprep.subr.bf16.mxu1 %v14034_v21 }
 0x978   : > { %12093 = vmatprep.subr.bf16.mxu0 %v13962_v45 }
 0x97b   : > { %12094 = vmatpush2.bf16.msra.mxu0 %v13961_v55  ;;  %v13640_v55 = vld [vmem:[#allocation8 + $0x8] ss:$0 sm:$0xff] }
 0x97c   : > { %12095 = vmatprep.subr.bf16.mxu0 %v13954_v25 }
 0x97f   : > { %12096 = vmatpush2.bf16.msra.mxu0 %v13953_v61 }
 0x980   : > { %12097 = vmatprep.subr.bf16.mxu0 %v13946_v53 }
 0x983   : > { %12098 = vmatpush2.bf16.msra.mxu0 %v13945_v50 }
 0x984   : > { %12099 = vmatprep.subr.bf16.mxu0 %v13938_v7 }
 0x987   : > { %12100 = vmatpush2.bf16.msra.mxu0 %v13937_v6 }
 0x988   : > { %12101 = vmatprep.subr.bf16.mxu0 %v13930_v18 }
 0x98b   : > { %12102 = vmatpush2.bf16.msra.mxu0 %v13929_v15 }
 0x98c   : > { %12103 = vmatprep.subr.bf16.mxu0 %v13922_v17 }
 0x98f   : > { %12104 = vmatpush2.bf16.msra.mxu0 %v13921_v16 }
 0x990   : > { %12105 = vmatprep.subr.bf16.mxu0 %v13914_v27 }
 0x993   : > { %12106 = vmatpush2.bf16.msra.mxu0 %v13913_v30 }
 0x994   : > { %12161 = vmatprep.subr.bf16.mxu0 %v14162_v38 }
 0x9d6   : > { %v15324_v39 = vpop.f32.mrf.mxu0 }
 0x9d7   : > { %v15346_v41 = vpop.f32.mrf.mxu1 }
 0x9d8   : > { %v15325_v40 = vpop.f32.mrf.mxu0 }
 0x9d9   : > { %v15347_v32 = vpop.f32.mrf.mxu1  ;;  %v15326_v54 = vadd.f32 %v15325_v40, %v15324_v39 }
 0x9da   : > { %v15327_v43 = vpop.f32.mrf.mxu0  ;;  %v15348_v44 = vadd.f32 %v15347_v32, %v15346_v41 }
 0x9db   : > { %v15349_v48 = vpop.f32.mrf.mxu1  ;;  %v7946_v60 = vadd.f32 %v15326_v54, %v13640_v55  ;;  %v8578_v54 = vld [vmem:[#allocation9 + $0xd60] sm:$0xff] }
 0x9dc   : > { %v15328_v45 = vpop.f32.mrf.mxu0 }
 0x9dd   : > { %v15350_v52 = vpop.f32.mrf.mxu1  ;;  %v15329_v61 = vadd.f32 %v15328_v45, %v15327_v43  ;;  %v7987_v42 = vadd.f32 %v15348_v44, %v7946_v60  ;;  %v8446_v45 = vld [vmem:[#allocation9 + $0x940] sm:$0xff]  ;;  %v14153_v60 = vcombine.low %v8582_v11, %v8586_v13 }
 0x9de   : > { %v15351_v53 = vadd.f32 %v15350_v52, %v15349_v48  ;;  %v14026_v48 = vcombine.high %v8454_v26, %v8458_v56  ;;  %v8450_v52 = vld [vmem:[#allocation9 + $0x960] sm:$0xff] }
 0x9df   : > { %v7949_v47 = vadd.f32 %v15329_v61, %v13640_v55  ;;  %v14018_v61 = vcombine.high %v8446_v45, %v8450_v52  ;;  %v8438_v44 = vld [vmem:[#allocation9 + $0x900] sm:$0xff]  ;;  %v14017_v31 = vcombine.low %v8446_v45, %v8450_v52 }
 0x9e0   : > { %v8522_v52 = vld [vmem:[#allocation9 + $0xba0] sm:$0xff] }
 0x9e1   : > { %v7990_v0 = vadd.f32 %v15351_v53, %v7949_v47  ;;  %v8558_v47 = vld [vmem:[#allocation9 + $0xcc0] sm:$0xff] }
 0x9f6   : > { %v15368_v49 = vpop.f32.mrf.mxu0 }
 0x9f7   : > { %v15390_v58 = vpop.f32.mrf.mxu1 }
 0x9f8   : > { %v15369_v28 = vpop.f32.mrf.mxu0 }
 0x9f9   : > { %v15391_v23 = vpop.f32.mrf.mxu1  ;;  %v15370_v46 = vadd.f32 %v15369_v28, %v15368_v49  ;;  %v14154_v49 = vcombine.high %v8582_v11, %v8586_v13  ;;  %v8574_v28 = vld [vmem:[#allocation9 + $0xd40] sm:$0xff] }
 0x9fa   : > { %v15371_v25 = vpop.f32.mrf.mxu0  ;;  %v15392_v4 = vadd.f32 %v15391_v23, %v15390_v58  ;;  %v14146_v23 = vcombine.high %v8574_v28, %v8578_v54  ;;  %v14145_v33 = vcombine.low %v8574_v28, %v8578_v54  ;;  %v8410_v11 = vld [vmem:[#allocation9 + $0x820] sm:$0xff] }
 0x9fb   : > { %v15393_v50 = vpop.f32.mrf.mxu1  ;;  %v8028_v62 = vadd.f32 %v15370_v46, %v7987_v42  ;;  %v8442_v46 = vld [vmem:[#allocation9 + $0x920] sm:$0xff] }
 0x9fc   : > { %v15372_v51 = vpop.f32.mrf.mxu0  ;;  %v8570_v42 = vld [vmem:[#allocation9 + $0xd20] sm:$0xff]  ;;  %v14010_v34 = vcombine.high %v8438_v44, %v8442_v46  ;;  %v14009_v53 = vcombine.low %v8438_v44, %v8442_v46 }
 0x9fd   : > { %v15373_v1 = vadd.f32 %v15372_v51, %v15371_v25  ;;  %v15394_v5 = vpop.f32.mrf.mxu1  ;;  %v8069_v7 = vadd.f32 %v15392_v4, %v8028_v62  ;;  %v14025_v25 = vcombine.low %v8454_v26, %v8458_v56  ;;  %v8566_v51 = vld [vmem:[#allocation9 + $0xd00] sm:$0xff] }
 0x9fe   : > { %v15395_v63 = vadd.f32 %v15394_v5, %v15393_v50  ;;  %v8562_v50 = vld [vmem:[#allocation9 + $0xce0] sm:$0xff]  ;;  %v14137_v62 = vcombine.low %v8566_v51, %v8570_v42 }
 0x9ff   : > { %v8031_v8 = vadd.f32 %v15373_v1, %v7990_v0  ;;  %v8422_v0 = vld [vmem:[#allocation9 + $0x880] sm:$0xff] }
 0xa00   : > { %v8426_v4 = vld [vmem:[#allocation9 + $0x8a0] sm:$0xff] }
 0xa01   : > { %v8072_v15 = vadd.f32 %v15395_v63, %v8031_v8  ;;  %v8550_v5 = vld [vmem:[#allocation9 + $0xc80] sm:$0xff]  ;;  %v14129_v8 = vcombine.low %v8558_v47, %v8562_v50 }
 0xa02   : > { %v8414_v63 = vld [vmem:[#allocation9 + $0x840] sm:$0xff] }
 0xa03   : > { %v8406_v56 = vld [vmem:[#allocation9 + $0x800] sm:$0xff] }
 0xa04   : > { %v8534_v13 = vld [vmem:[#allocation9 + $0xc00] sm:$0xff] }
 0xa05   : > { %v8646_v28 = vld [vmem:[#allocation9 + $0xf80] sm:$0xff] }
 0xa06   : > { %v8650_v54 = vld [vmem:[#allocation9 + $0xfa0] sm:$0xff] }
 0xa07   : > { %v8510_v44 = vld [vmem:[#allocation9 + $0xb40] sm:$0xff] }
 0xa08   : > { %v8514_v46 = vld [vmem:[#allocation9 + $0xb60] sm:$0xff] }
 0xa16   : > { %v15412_v2 = vpop.f32.mrf.mxu0 }
 0xa18   : > { %v15413_v6 = vpop.f32.mrf.mxu0 }
 0xa19   : > { %v15414_v9 = vadd.f32 %v15413_v6, %v15412_v2  ;;  %v14130_v2 = vcombine.high %v8558_v47, %v8562_v50  ;;  %v8554_v6 = vld [vmem:[#allocation9 + $0xca0] sm:$0xff] }
 0xa1a   : > { %v15415_v10 = vpop.f32.mrf.mxu0  ;;  %v8630_v47 = vld [vmem:[#allocation9 + $0xf00] sm:$0xff] }
 0xa1b   : > { %v16638_v12 = vadd.f32 %v15414_v9, %v8069_v7  ;;  %v13994_v9 = vcombine.high %v8422_v0, %v8426_v4  ;;  %v8634_v50 = vld [vmem:[#allocation9 + $0xf20] sm:$0xff] }
 0xa1c   : > { %v15416_v3 = vpop.f32.mrf.mxu0 }
 0xa1d   : > { %v8116_v18 = vmax.f32 %v16638_v12, 0.0  ;;  %v15417_v20 = vadd.f32 %v15416_v3, %v15415_v10  ;;  %v14122_v10 = vcombine.high %v8550_v5, %v8554_v6  ;;  %v8418_v3 = vld [vmem:[#allocation9 + $0x860] sm:$0xff] }
 0xa1f   : > { %8118 = vst [vmem:[#allocation3 + $0x8] sm:$0xff] %v8116_v18  ;;  %v8113_v22 = vadd.f32 %v15417_v20, %v8072_v15  ;;  %v8542_v15 = vld [vmem:[#allocation9 + $0xc40] sm:$0xff] }
 0xa20   : > { %v8546_v20 = vld [vmem:[#allocation9 + $0xc60] sm:$0xff] }
 0xa21   : > { %v8117_v24 = vmax.f32 %v8113_v22, 0.0  ;;  %v13993_v22 = vcombine.low %v8422_v0, %v8426_v4  ;;  %v14114_v26 = vcombine.high %v8542_v15, %v8546_v20  ;;  %v8494_v0 = vld [vmem:[#allocation9 + $0xac0] sm:$0xff] }
 0xa22   : > { %v8498_v4 = vld [vmem:[#allocation9 + $0xae0] sm:$0xff] }
 0xa23   : > { %8119 = vst [vmem:[#allocation3 + $0x10] sm:$0xff] %v8117_v24  ;;  %v14121_v24 = vcombine.low %v8550_v5, %v8554_v6  ;;  %v8622_v5 = vld [vmem:[#allocation9 + $0xec0] sm:$0xff] }
 0xa24   : > { %v8626_v6 = vld [vmem:[#allocation9 + $0xee0] sm:$0xff] }
 0xa26   : > { %v8123_v59 = vld [vmem:[#allocation3 + $0x5] sm:$0xff] }
 0xa27   : > { %v8129_v17 = vld [vmem:[#allocation3 + $0x7] sm:$0xff] }
 0xa28   : > { %v8120_v57 = vld [vmem:[#allocation3 + $0x4] sm:$0xff] }
 0xa29   : > { %v8126_v14 = vld [vmem:[#allocation3 + $0x6] sm:$0xff] }
 0xa2a   : > { %v8124_v16 = vld [vmem:[#allocation3 + $0xd] sm:$0x7f] }
 0xa2b   : > { %v8130_v19 = vld [vmem:[#allocation3 + $0xf] sm:$0x7f]  ;;  %v16643_v29 = vpack.c.bf16 %v8124_v16, %v8123_v59  ;;  %v13986_v59 = vcombine.high %v8414_v63, %v8418_v3  ;;  %v13978_v16 = vcombine.high %v8406_v56, %v8410_v11 }
 0xa2c   : > { %v8121_v27 = vld [vmem:[#allocation3 + $0xc] sm:$0x7f]  ;;  %v16645_v30 = vpack.c.bf16 %v8130_v19, %v8129_v17  ;;  %v8142_v32 = vld [vmem:[#allocation3 + $0x13] sm:$0x7f] }
 0xa2d   : > { %v16647_v21 = vpack.c.bf16 %v8121_v27, %v8120_v57  ;;  %v8127_v38 = vld [vmem:[#allocation3 + $0xe] sm:$0x7f]  ;;  %12064 = vmatprep.mubr.bf16.mxu1 %v16643_v29  ;;  %v13985_v57 = vcombine.low %v8414_v63, %v8418_v3 }
 0xa2e   : > { %v8135_v39 = vld [vmem:[#allocation3 + $0x9] sm:$0xff]  ;;  %v8136_v40 = vld [vmem:[#allocation3 + $0x11] sm:$0x7f]  ;;  %v16649_v41 = vpack.c.bf16 %v8127_v38, %v8126_v14  ;;  %12107 = vmatprep.mubr.bf16.mxu0 %v16645_v30  ;;  %v14113_v14 = vcombine.low %v8542_v15, %v8546_v20 }
 0xa2f   : > { %v8141_v43 = vld [vmem:[#allocation3 + $0xb] sm:$0xff]  ;;  %12065 = vmatmul.mubr.bf16.vlgmr.msra.gmra.mxu1 %v16647_v21  ;;  %v16655_v55 = vpack.c.bf16 %v8136_v40, %v8135_v39 }
 0xa30   : > { %12108 = vmatmul.mubr.bf16.vlgmr.msra.gmra.mxu0 %v16649_v41  ;;  %v16657_v58 = vpack.c.bf16 %v8142_v32, %v8141_v43  ;;  %12119 = vmatpush1.bf16.msra.mxu1 %v14033_v35  ;;  %v14138_v35 = vcombine.high %v8566_v51, %v8570_v42  ;;  %v8538_v17 = vld [vmem:[#allocation9 + $0xc20] sm:$0xff]  ;;  %v13977_v43 = vcombine.low %v8406_v56, %v8410_v11 }
 0xa31   : > { %12162 = vmatpush1.bf16.msra.mxu0 %v14161_v37  ;;  %12150 = vmatprep.mubr.bf16.mxu1 %v16655_v55  ;;  %v8434_v37 = vld [vmem:[#allocation9 + $0x8e0] sm:$0xff]  ;;  %v14106_v19 = vcombine.high %v8534_v13, %v8538_v17  ;;  %v14105_v32 = vcombine.low %v8534_v13, %v8538_v17 }
 0xa32   : > { %12193 = vmatprep.mubr.bf16.mxu0 %v16657_v58  ;;  %12120 = vmatprep.subr.bf16.mxu1 %v14026_v48  ;;  %v14002_v1 = vcombine.high %v8430_v36, %v8434_v37  ;;  %v14001_v7 = vcombine.low %v8430_v36, %v8434_v37  ;;  %v8526_v27 = vld [vmem:[#allocation9 + $0xbc0] sm:$0xff] }
 0xa33   : > { %12163 = vmatprep.subr.bf16.mxu0 %v14154_v49  ;;  %v8530_v38 = vld [vmem:[#allocation9 + $0xbe0] sm:$0xff] }
 0xa34   : > { %12121 = vmatpush1.bf16.msra.mxu1 %v14025_v25  ;;  %v8654_v39 = vld [vmem:[#allocation9 + $0xfc0] sm:$0xff]  ;;  %v14098_v45 = vcombine.high %v8526_v27, %v8530_v38  ;;  %v14097_v25 = vcombine.low %v8526_v27, %v8530_v38 }
 0xa35   : > { %12164 = vmatpush1.bf16.msra.mxu0 %v14153_v60  ;;  %12122 = vmatprep.subr.bf16.mxu1 %v14018_v61  ;;  %v8658_v40 = vld [vmem:[#allocation9 + $0xfe0] sm:$0xff] }
 0xa36   : > { %12165 = vmatprep.subr.bf16.mxu0 %v14146_v23  ;;  %v14226_v48 = vcombine.high %v8654_v39, %v8658_v40  ;;  %v8518_v49 = vld [vmem:[#allocation9 + $0xb80] sm:$0xff]  ;;  %v14225_v60 = vcombine.low %v8654_v39, %v8658_v40  ;;  %v14218_v23 = vcombine.high %v8646_v28, %v8650_v54 }
 0xa37   : > { %v14090_v61 = vcombine.high %v8518_v49, %v8522_v52  ;;  %v8638_v51 = vld [vmem:[#allocation9 + $0xf40] sm:$0xff] }
 0xa38   : > { %12123 = vmatpush1.bf16.msra.mxu1 %v14017_v31  ;;  %v8642_v42 = vld [vmem:[#allocation9 + $0xf60] sm:$0xff]  ;;  %v14089_v31 = vcombine.low %v8518_v49, %v8522_v52 }
 0xa39   : > { %12166 = vmatpush1.bf16.msra.mxu0 %v14145_v33  ;;  %12124 = vmatprep.subr.bf16.mxu1 %v14010_v34  ;;  %v14217_v33 = vcombine.low %v8646_v28, %v8650_v54  ;;  %v14082_v34 = vcombine.high %v8510_v44, %v8514_v46  ;;  %v8502_v36 = vld [vmem:[#allocation9 + $0xb00] sm:$0xff]  ;;  %v8207_v28 = vld [vmem:[#allocation9 + $0x1c8] sm:$0xff] }
 0xa3a   : > { %12167 = vmatprep.subr.bf16.mxu0 %v14138_v35  ;;  %v14210_v35 = vcombine.high %v8638_v51, %v8642_v42  ;;  %v8506_v37 = vld [vmem:[#allocation9 + $0xb20] sm:$0xff]  ;;  %v8211_v54 = vld [vmem:[#allocation9 + $0x1e8] sm:$0xff] }
 0xa3b   : > { %v8486_v63 = vld [vmem:[#allocation9 + $0xa80] sm:$0xff] }
 0xa3c   : > { %12125 = vmatpush1.bf16.msra.mxu1 %v14009_v53  ;;  %v14081_v53 = vcombine.low %v8510_v44, %v8514_v46  ;;  %v8490_v3 = vld [vmem:[#allocation9 + $0xaa0] sm:$0xff] }
 0xa3d   : > { %12168 = vmatpush1.bf16.msra.mxu0 %v14137_v62  ;;  %12126 = vmatprep.subr.bf16.mxu1 %v14002_v1  ;;  %v14209_v62 = vcombine.low %v8638_v51, %v8642_v42  ;;  %v14074_v1 = vcombine.high %v8502_v36, %v8506_v37  ;;  %v8614_v15 = vld [vmem:[#allocation9 + $0xe80] sm:$0xff]  ;;  %v8199_v51 = vld [vmem:[#allocation9 + $0x188] sm:$0xff] }
 0xa3e   : > { %12169 = vmatprep.subr.bf16.mxu0 %v14130_v2  ;;  %v14202_v2 = vcombine.high %v8630_v47, %v8634_v50  ;;  %v8618_v20 = vld [vmem:[#allocation9 + $0xea0] sm:$0xff] }
 0xa3f   : > { %v8478_v56 = vld [vmem:[#allocation9 + $0xa40] sm:$0xff] }
 0xa40   : > { %12127 = vmatpush1.bf16.msra.mxu1 %v14001_v7  ;;  %v14073_v7 = vcombine.low %v8502_v36, %v8506_v37  ;;  %v8482_v11 = vld [vmem:[#allocation9 + $0xa60] sm:$0xff]  ;;  %v8203_v36 = vld [vmem:[#allocation9 + $0x1a8] sm:$0xff] }
 0xa41   : > { %12170 = vmatpush1.bf16.msra.mxu0 %v14129_v8  ;;  %12128 = vmatprep.subr.bf16.mxu1 %v13994_v9  ;;  %v14201_v8 = vcombine.low %v8630_v47, %v8634_v50  ;;  %v14066_v9 = vcombine.high %v8494_v0, %v8498_v4  ;;  %v8606_v13 = vld [vmem:[#allocation9 + $0xe40] sm:$0xff] }
 0xa42   : > { %12171 = vmatprep.subr.bf16.mxu0 %v14122_v10  ;;  %v14194_v10 = vcombine.high %v8622_v5, %v8626_v6  ;;  %v8610_v17 = vld [vmem:[#allocation9 + $0xe60] sm:$0xff] }
 0xa43   : > { %v8470_v27 = vld [vmem:[#allocation9 + $0xa00] sm:$0xff] }
 0xa44   : > { %12129 = vmatpush1.bf16.msra.mxu1 %v13993_v22  ;;  %v14065_v22 = vcombine.low %v8494_v0, %v8498_v4  ;;  %v8474_v38 = vld [vmem:[#allocation9 + $0xa20] sm:$0xff] }
 0xa45   : > { %12172 = vmatpush1.bf16.msra.mxu0 %v14121_v24  ;;  %12130 = vmatprep.subr.bf16.mxu1 %v13986_v59  ;;  %v14193_v24 = vcombine.low %v8622_v5, %v8626_v6  ;;  %v14058_v59 = vcombine.high %v8486_v63, %v8490_v3  ;;  %v8598_v39 = vld [vmem:[#allocation9 + $0xe00] sm:$0xff]  ;;  %v8191_v5 = vld [vmem:[#allocation9 + $0x148] sm:$0xff] }
 0xa46   : > { %12173 = vmatprep.subr.bf16.mxu0 %v14114_v26  ;;  %v14186_v26 = vcombine.high %v8614_v15, %v8618_v20  ;;  %v8602_v40 = vld [vmem:[#allocation9 + $0xe20] sm:$0xff]  ;;  %v8195_v6 = vld [vmem:[#allocation9 + $0x168] sm:$0xff] }
 0xa47   : > { %v8718_v49 = vld [vmem:[#allocation9 + $0x11c0] sm:$0xff] }
 0xa48   : > { %12131 = vmatpush1.bf16.msra.mxu1 %v13985_v57  ;;  %v14057_v57 = vcombine.low %v8486_v63, %v8490_v3  ;;  %v8722_v52 = vld [vmem:[#allocation9 + $0x11e0] sm:$0xff]  ;;  %v8183_v63 = vld [vmem:[#allocation9 + $0x108] sm:$0xff] }
 0xa49   : > { %12174 = vmatpush1.bf16.msra.mxu0 %v14113_v14  ;;  %12132 = vmatprep.subr.bf16.mxu1 %v13978_v16  ;;  %v14185_v14 = vcombine.low %v8614_v15, %v8618_v20  ;;  %v14050_v16 = vcombine.high %v8478_v56, %v8482_v11  ;;  %v8710_v44 = vld [vmem:[#allocation9 + $0x1180] sm:$0xff]  ;;  %v14289_v37 = vcombine.low %v8718_v49, %v8722_v52  ;;  %v8187_v3 = vld [vmem:[#allocation9 + $0x128] sm:$0xff] }
 0xa4a   : > { %12175 = vmatprep.subr.bf16.mxu0 %v14106_v19  ;;  %v14178_v19 = vcombine.high %v8606_v13, %v8610_v17  ;;  %v8714_v46 = vld [vmem:[#allocation9 + $0x11a0] sm:$0xff]  ;;  %v13763_v20 = vcombine.low %v8191_v5, %v8195_v6 }
 0xa4b   : > { %v8133_v42 = vld [vmem:[#allocation3 + $0x10] sm:$0x7f]  ;;  %v14281_v12 = vcombine.low %v8710_v44, %v8714_v46 }
 0xa4c   : > { %12133 = vmatpush1.bf16.msra.mxu1 %v13977_v43  ;;  %v14049_v43 = vcombine.low %v8478_v56, %v8482_v11  ;;  %v16669_v47 = vpack.c.bf16 %v8133_v42, %v8116_v18  ;;  %v8702_v0 = vld [vmem:[#allocation9 + $0x1140] sm:$0xff]  ;;  %v13771_v18 = vcombine.low %v8199_v51, %v8203_v36  ;;  %v8175_v56 = vld [vmem:[#allocation9 + $0xc8] sm:$0xff] }
 0xa4d   : > { %12176 = vmatpush1.bf16.msra.mxu0 %v14105_v32  ;;  %12134 = vmatprep.subr.bf16.mxu1 %v14098_v45  ;;  %v14177_v32 = vcombine.low %v8606_v13, %v8610_v17  ;;  %v14042_v45 = vcombine.high %v8470_v27, %v8474_v38  ;;  %v8706_v4 = vld [vmem:[#allocation9 + $0x1160] sm:$0xff]  ;;  %v8179_v11 = vld [vmem:[#allocation9 + $0xe8] sm:$0xff]  ;;  %v13755_v17 = vcombine.low %v8183_v63, %v8187_v3 }
 0xa4e   : > { %12177 = vmatprep.subr.bf16.mxu0 %v14226_v48  ;;  %v14170_v48 = vcombine.high %v8598_v39, %v8602_v40  ;;  %v14273_v15 = vcombine.low %v8702_v0, %v8706_v4 }
 0xa50   : > { %12135 = vmatpush2.bf16.msra.mxu1 %v14097_v25  ;;  %v14041_v25 = vcombine.low %v8470_v27, %v8474_v38  ;;  %v8167_v27 = vld [vmem:[#allocation9 + $0x88] sm:$0xff] }
 0xa51   : > { %12178 = vmatpush2.bf16.msra.mxu0 %v14225_v60  ;;  %12136 = vmatprep.subr.bf16.mxu1 %v14090_v61  ;;  %v14169_v60 = vcombine.low %v8598_v39, %v8602_v40  ;;  %v14290_v61 = vcombine.high %v8718_v49, %v8722_v52  ;;  %v8171_v38 = vld [vmem:[#allocation9 + $0xa8] sm:$0xff]  ;;  %v13747_v40 = vcombine.low %v8175_v56, %v8179_v11 }
 0xa52   : > { %12179 = vmatprep.subr.bf16.mxu0 %v14218_v23  ;;  %v13780_v23 = vcombine.high %v8207_v28, %v8211_v54  ;;  %v8159_v49 = vld [vmem:[#allocation9 + $0x48] sm:$0xff] }
 0xa53   : > { %v8163_v52 = vld [vmem:[#allocation9 + $0x68] sm:$0xff] }
 0xa54   : > { %12137 = vmatpush2.bf16.msra.mxu1 %v14089_v31  ;;  %v8138_v31 = vld [vmem:[#allocation3 + $0xa] sm:$0xff]  ;;  %v13731_v42 = vcombine.low %v8159_v49, %v8163_v52 }
 0xa55   : > { %12180 = vmatpush2.bf16.msra.mxu0 %v14217_v33  ;;  %12138 = vmatprep.subr.bf16.mxu1 %v14082_v34  ;;  %v8139_v33 = vld [vmem:[#allocation3 + $0x12] sm:$0x7f] }
 0xa56   : > { %12181 = vmatprep.subr.bf16.mxu0 %v14210_v35  ;;  %v8147_v34 = vld [vmem:[#allocation3 + $0xd] sm:$0xff]  ;;  %v8148_v35 = vld [vmem:[#allocation3 + $0x15] sm:$0x7f]  ;;  %v16671_v50 = vpack.c.bf16 %v8139_v33, %v8138_v31 }
 0xa58   : > { %12139 = vmatpush2.bf16.msra.mxu1 %v14081_v53  ;;  %v13779_v53 = vcombine.low %v8207_v28, %v8211_v54  ;;  %v13739_v54 = vcombine.low %v8167_v27, %v8171_v38 }
 0xa59   : > { %12182 = vmatpush2.bf16.msra.mxu0 %v14209_v62  ;;  %12140 = vmatprep.subr.bf16.mxu1 %v14074_v1  ;;  %v16673_v62 = vpack.c.bf16 %v8148_v35, %v8147_v34  ;;  %v14282_v1 = vcombine.high %v8710_v44, %v8714_v46  ;;  %v8151_v44 = vld [vmem:[#allocation9 + $0x8] sm:$0xff]  ;;  %v8782_v34 = vld [vmem:[#allocation9 + $0x13c0] sm:$0xff] }
 0xa5a   : > { %12183 = vmatprep.subr.bf16.mxu0 %v14202_v2  ;;  %v13772_v2 = vcombine.high %v8199_v51, %v8203_v36  ;;  %v8155_v46 = vld [vmem:[#allocation9 + $0x28] sm:$0xff]  ;;  %v8786_v35 = vld [vmem:[#allocation9 + $0x13e0] sm:$0xff] }
 0xa5b   : > { %v13724_v33 = vcombine.high %v8151_v44, %v8155_v46  ;;  %v8271_v36 = vld [vmem:[#allocation9 + $0x3c8] sm:$0xff] }
 0xa5c   : > { %12141 = vmatpush2.bf16.msra.mxu1 %v14073_v7  ;;  %v14274_v7 = vcombine.high %v8702_v0, %v8706_v4  ;;  %v8774_v4 = vld [vmem:[#allocation9 + $0x1380] sm:$0xff] }
 0xa5d   : > { %12184 = vmatpush2.bf16.msra.mxu0 %v14201_v8  ;;  %12142 = vmatprep.subr.bf16.mxu1 %v14066_v9  ;;  %v13764_v8 = vcombine.high %v8191_v5, %v8195_v6  ;;  %v8694_v9 = vld [vmem:[#allocation9 + $0x1100] sm:$0xff]  ;;  %v8263_v6 = vld [vmem:[#allocation9 + $0x388] sm:$0xff] }
 0xa5e   : > { %12185 = vmatprep.subr.bf16.mxu0 %v14194_v10  ;;  %v8698_v10 = vld [vmem:[#allocation9 + $0x1120] sm:$0xff] }
 0xa5f   : > { %v14265_v13 = vcombine.low %v8694_v9, %v8698_v10  ;;  %v8778_v5 = vld [vmem:[#allocation9 + $0x13a0] sm:$0xff] }
 0xa60   : > { %12143 = vmatpush2.bf16.msra.mxu1 %v14065_v22  ;;  %v14266_v22 = vcombine.high %v8694_v9, %v8698_v10  ;;  %v8766_v10 = vld [vmem:[#allocation9 + $0x1340] sm:$0xff] }
 0xa61   : > { %12186 = vmatpush2.bf16.msra.mxu0 %v14193_v24  ;;  %12144 = vmatprep.subr.bf16.mxu1 %v14058_v59  ;;  %v13756_v24 = vcombine.high %v8183_v63, %v8187_v3  ;;  %v8686_v59 = vld [vmem:[#allocation9 + $0x10c0] sm:$0xff]  ;;  %v8255_v3 = vld [vmem:[#allocation9 + $0x348] sm:$0xff] }
 0xa62   : > { %12187 = vmatprep.subr.bf16.mxu0 %v14186_v26  ;;  %v8690_v26 = vld [vmem:[#allocation9 + $0x10e0] sm:$0xff] }
 0xa63   : > { %v14257_v39 = vcombine.low %v8686_v59, %v8690_v26  ;;  %v8770_v63 = vld [vmem:[#allocation9 + $0x1360] sm:$0xff] }
 0xa64   : > { %12145 = vmatpush2.bf16.msra.mxu1 %v14057_v57  ;;  %v14258_v57 = vcombine.high %v8686_v59, %v8690_v26  ;;  %v8758_v26 = vld [vmem:[#allocation9 + $0x1300] sm:$0xff] }
 0xa65   : > { %12188 = vmatpush2.bf16.msra.mxu0 %v14185_v14  ;;  %12146 = vmatprep.subr.bf16.mxu1 %v14050_v16  ;;  %v13748_v14 = vcombine.high %v8175_v56, %v8179_v11  ;;  %v8678_v16 = vld [vmem:[#allocation9 + $0x1080] sm:$0xff]  ;;  %v8247_v11 = vld [vmem:[#allocation9 + $0x308] sm:$0xff] }
 0xa66   : > { %12189 = vmatprep.subr.bf16.mxu0 %v14178_v19  ;;  %v8682_v19 = vld [vmem:[#allocation9 + $0x10a0] sm:$0xff] }
 0xa67   : > { %v14249_v28 = vcombine.low %v8678_v16, %v8682_v19  ;;  %v8762_v56 = vld [vmem:[#allocation9 + $0x1320] sm:$0xff] }
 0xa68   : > { %12147 = vmatpush2.bf16.msra.mxu1 %v14049_v43  ;;  %v14250_v43 = vcombine.high %v8678_v16, %v8682_v19  ;;  %v8750_v19 = vld [vmem:[#allocation9 + $0x12c0] sm:$0xff] }
 0xa69   : > { %12190 = vmatpush2.bf16.msra.mxu0 %v14177_v32  ;;  %12148 = vmatprep.subr.bf16.mxu1 %v14042_v45  ;;  %v13740_v32 = vcombine.high %v8167_v27, %v8171_v38  ;;  %v8670_v45 = vld [vmem:[#allocation9 + $0x1040] sm:$0xff]  ;;  %v8239_v38 = vld [vmem:[#allocation9 + $0x2c8] sm:$0xff] }
 0xa6a   : > { %12191 = vmatprep.subr.bf16.mxu0 %v14170_v48  ;;  %v8674_v48 = vld [vmem:[#allocation9 + $0x1060] sm:$0xff] }
 0xa6b   : > { %v14241_v51 = vcombine.low %v8670_v45, %v8674_v48  ;;  %v8754_v27 = vld [vmem:[#allocation9 + $0x12e0] sm:$0xff] }
 0xa6c   : > { %12149 = vmatpush2.bf16.msra.mxu1 %v14041_v25  ;;  %v14242_v25 = vcombine.high %v8670_v45, %v8674_v48  ;;  %v8742_v48 = vld [vmem:[#allocation9 + $0x1280] sm:$0xff] }
 0xa6d   : > { %12192 = vmatpush2.bf16.msra.mxu0 %v14169_v60  ;;  %12204 = vmatprep.subr.bf16.mxu1 %v14290_v61  ;;  %v13732_v60 = vcombine.high %v8159_v49, %v8163_v52  ;;  %v8662_v61 = vld [vmem:[#allocation9 + $0x1000] sm:$0xff]  ;;  %v8231_v52 = vld [vmem:[#allocation9 + $0x288] sm:$0xff] }
 0xa6e   : > { %12247 = vmatprep.subr.bf16.mxu0 %v13780_v23  ;;  %v8666_v23 = vld [vmem:[#allocation9 + $0x1020] sm:$0xff] }
 0xa6f   : > { %12151 = vmatmul.mubr.bf16.vlgmr.msra.gmra.mxu1 %v16669_v47  ;;  %v14234_v31 = vcombine.high %v8662_v61, %v8666_v23  ;;  %v8746_v49 = vld [vmem:[#allocation9 + $0x12a0] sm:$0xff] }
 0xa70   : > { %12194 = vmatmul.mubr.bf16.vlgmr.msra.gmra.mxu0 %v16671_v50  ;;  %12205 = vmatpush1.bf16.msra.mxu1 %v14289_v37  ;;  %v8275_v37 = vld [vmem:[#allocation9 + $0x3e8] sm:$0xff] }
 0xa71   : > { %12236 = vmatprep.mubr.bf16.mxu1 %v16673_v62  ;;  %12248 = vmatpush1.bf16.msra.mxu0 %v13779_v53  ;;  %v14233_v53 = vcombine.low %v8662_v61, %v8666_v23  ;;  %v13844_v0 = vcombine.high %v8271_v36, %v8275_v37  ;;  %v8734_v23 = vld [vmem:[#allocation9 + $0x1240] sm:$0xff] }
 0xa72   : > { %12279 = vmatprep.mubr.bf16.mxu0 %v16643_v29  ;;  %12206 = vmatprep.subr.bf16.mxu1 %v14282_v1  ;;  %v13723_v1 = vcombine.low %v8151_v44, %v8155_v46  ;;  %v8738_v44 = vld [vmem:[#allocation9 + $0x1260] sm:$0xff]  ;;  %v8223_v46 = vld [vmem:[#allocation9 + $0x248] sm:$0xff] }
 0xa73   : > { %12249 = vmatprep.subr.bf16.mxu0 %v13772_v2  ;;  %v14354_v2 = vcombine.high %v8782_v34, %v8786_v35 }
 0xa74   : > { %12207 = vmatpush1.bf16.msra.mxu1 %v14281_v12  ;;  %v8267_v12 = vld [vmem:[#allocation9 + $0x3a8] sm:$0xff] }
 0xa75   : > { %12250 = vmatpush1.bf16.msra.mxu0 %v13771_v18  ;;  %12208 = vmatprep.subr.bf16.mxu1 %v14274_v7  ;;  %v14353_v18 = vcombine.low %v8782_v34, %v8786_v35  ;;  %v13843_v7 = vcombine.low %v8271_v36, %v8275_v37  ;;  %v13836_v9 = vcombine.high %v8263_v6, %v8267_v12  ;;  %v8726_v35 = vld [vmem:[#allocation9 + $0x1200] sm:$0xff]  ;;  %v8215_v37 = vld [vmem:[#allocation9 + $0x208] sm:$0xff] }
 0xa76   : > { %12251 = vmatprep.subr.bf16.mxu0 %v13764_v8  ;;  %v14346_v8 = vcombine.high %v8774_v4, %v8778_v5  ;;  %v8730_v36 = vld [vmem:[#allocation9 + $0x1220] sm:$0xff] }
 0xa78   : > { %12209 = vmatpush1.bf16.msra.mxu1 %v14273_v15  ;;  %v8259_v15 = vld [vmem:[#allocation9 + $0x368] sm:$0xff] }
 0xa79   : > { %12252 = vmatpush1.bf16.msra.mxu0 %v13763_v20  ;;  %12210 = vmatprep.subr.bf16.mxu1 %v14266_v22  ;;  %v14345_v20 = vcombine.low %v8774_v4, %v8778_v5  ;;  %v13835_v22 = vcombine.low %v8263_v6, %v8267_v12  ;;  %v13828_v59 = vcombine.high %v8255_v3, %v8259_v15  ;;  %v8335_v5 = vld [vmem:[#allocation9 + $0x5c8] sm:$0xff] }
 0xa7a   : > { %12253 = vmatprep.subr.bf16.mxu0 %v13756_v24  ;;  %v14338_v24 = vcombine.high %v8766_v10, %v8770_v63  ;;  %v8339_v6 = vld [vmem:[#allocation9 + $0x5e8] sm:$0xff] }
 0xa7b   : > { %v8463_v12 = vld [vmem:[#allocation9 + $0x9c8] sm:$0xff] }
 0xa7c   : > { %12211 = vmatpush1.bf16.msra.mxu1 %v14265_v13  ;;  %v8251_v13 = vld [vmem:[#allocation9 + $0x328] sm:$0xff] }
 0xa7d   : > { %12254 = vmatpush1.bf16.msra.mxu0 %v13755_v17  ;;  %12212 = vmatprep.subr.bf16.mxu1 %v14258_v57  ;;  %v14337_v17 = vcombine.low %v8766_v10, %v8770_v63  ;;  %v13827_v57 = vcombine.low %v8255_v3, %v8259_v15  ;;  %v13820_v16 = vcombine.high %v8247_v11, %v8251_v13  ;;  %v8144_v10 = vld [vmem:[#allocation3 + $0xc] sm:$0xff]  ;;  %v8145_v63 = vld [vmem:[#allocation3 + $0x14] sm:$0x7f] }
 0xa7e   : > { %12255 = vmatprep.subr.bf16.mxu0 %v13748_v14  ;;  %v14330_v14 = vcombine.high %v8758_v26, %v8762_v56  ;;  %v8327_v15 = vld [vmem:[#allocation9 + $0x588] sm:$0xff] }
 0xa80   : > { %12213 = vmatpush1.bf16.msra.mxu1 %v14257_v39  ;;  %v8243_v39 = vld [vmem:[#allocation9 + $0x2e8] sm:$0xff] }
 0xa81   : > { %12256 = vmatpush1.bf16.msra.mxu0 %v13747_v40  ;;  %12214 = vmatprep.subr.bf16.mxu1 %v14250_v43  ;;  %v14329_v40 = vcombine.low %v8758_v26, %v8762_v56  ;;  %v13819_v43 = vcombine.low %v8247_v11, %v8251_v13  ;;  %v13812_v45 = vcombine.high %v8239_v38, %v8243_v39  ;;  %v8319_v13 = vld [vmem:[#allocation9 + $0x548] sm:$0xff] }
 0xa82   : > { %12257 = vmatprep.subr.bf16.mxu0 %v13740_v32  ;;  %v14322_v32 = vcombine.high %v8750_v19, %v8754_v27  ;;  %v16679_v26 = vpack.c.bf16 %v8145_v63, %v8144_v10  ;;  %v8411_v10 = vld [vmem:[#allocation9 + $0x828] sm:$0xff] }
 0xa84   : > { %12215 = vmatpush1.bf16.msra.mxu1 %v14249_v28  ;;  %v8235_v28 = vld [vmem:[#allocation9 + $0x2a8] sm:$0xff] }
 0xa85   : > { %12258 = vmatpush1.bf16.msra.mxu0 %v13739_v54  ;;  %12216 = vmatprep.subr.bf16.mxu1 %v14242_v25  ;;  %v14321_v54 = vcombine.low %v8750_v19, %v8754_v27  ;;  %v13811_v25 = vcombine.low %v8239_v38, %v8243_v39  ;;  %v13804_v61 = vcombine.high %v8231_v52, %v8235_v28 }
 0xa86   : > { %12259 = vmatprep.subr.bf16.mxu0 %v13732_v60  ;;  %v14314_v60 = vcombine.high %v8742_v48, %v8746_v49 }
 0xa88   : > { %12217 = vmatpush1.bf16.msra.mxu1 %v14241_v51  ;;  %v8227_v51 = vld [vmem:[#allocation9 + $0x268] sm:$0xff] }
 0xa89   : > { %12260 = vmatpush1.bf16.msra.mxu0 %v13731_v42  ;;  %12218 = vmatprep.subr.bf16.mxu1 %v14234_v31  ;;  %v14313_v42 = vcombine.low %v8742_v48, %v8746_v49  ;;  %v13803_v31 = vcombine.low %v8231_v52, %v8235_v28  ;;  %v13796_v34 = vcombine.high %v8223_v46, %v8227_v51 }
 0xa8a   : > { %12261 = vmatprep.subr.bf16.mxu0 %v13724_v33  ;;  %v14306_v33 = vcombine.high %v8734_v23, %v8738_v44 }
 0xa8c   : > { %12219 = vmatpush1.bf16.msra.mxu1 %v14233_v53  ;;  %v8219_v53 = vld [vmem:[#allocation9 + $0x228] sm:$0xff] }
 0xa8d   : > { %12262 = vmatpush1.bf16.msra.mxu0 %v13723_v1  ;;  %12220 = vmatprep.subr.bf16.mxu1 %v14354_v2  ;;  %v14305_v1 = vcombine.low %v8734_v23, %v8738_v44  ;;  %v13795_v2 = vcombine.low %v8223_v46, %v8227_v51  ;;  %v13788_v4 = vcombine.high %v8215_v37, %v8219_v53 }
 0xa8e   : > { %12263 = vmatprep.subr.bf16.mxu0 %v13844_v0  ;;  %v14298_v0 = vcombine.high %v8726_v35, %v8730_v36 }
 0xa90   : > { %12221 = vmatpush2.bf16.msra.mxu1 %v14353_v18  ;;  %v8467_v18 = vld [vmem:[#allocation9 + $0x9e8] sm:$0xff] }
 0xa91   : > { %12264 = vmatpush2.bf16.msra.mxu0 %v13843_v7  ;;  %12222 = vmatprep.subr.bf16.mxu1 %v14346_v8  ;;  %v14297_v7 = vcombine.low %v8726_v35, %v8730_v36  ;;  %v13787_v8 = vcombine.low %v8215_v37, %v8219_v53  ;;  %v14036_v3 = vcombine.high %v8463_v12, %v8467_v18 }
 0xa92   : > { %12265 = vmatprep.subr.bf16.mxu0 %v13836_v9  ;;  %v13908_v9 = vcombine.high %v8335_v5, %v8339_v6  ;;  %v14035_v56 = vcombine.low %v8463_v12, %v8467_v18 }
 0xa94   : > { %12223 = vmatpush2.bf16.msra.mxu1 %v14345_v20  ;;  %v8331_v20 = vld [vmem:[#allocation9 + $0x5a8] sm:$0xff] }
 0xa95   : > { %12266 = vmatpush2.bf16.msra.mxu0 %v13835_v22  ;;  %12224 = vmatprep.subr.bf16.mxu1 %v14338_v24  ;;  %v13907_v22 = vcombine.low %v8335_v5, %v8339_v6  ;;  %v8455_v24 = vld [vmem:[#allocation9 + $0x988] sm:$0xff]  ;;  %v13900_v11 = vcombine.high %v8327_v15, %v8331_v20  ;;  %v13899_v19 = vcombine.low %v8327_v15, %v8331_v20 }
 0xa96   : > { %12267 = vmatprep.subr.bf16.mxu0 %v13828_v59  ;;  %v8459_v59 = vld [vmem:[#allocation9 + $0x9a8] sm:$0xff] }
 0xa97   : > { %v14027_v27 = vcombine.low %v8455_v24, %v8459_v59 }
 0xa98   : > { %12225 = vmatpush2.bf16.msra.mxu1 %v14337_v17  ;;  %v8323_v17 = vld [vmem:[#allocation9 + $0x568] sm:$0xff] }
 0xa99   : > { %12268 = vmatpush2.bf16.msra.mxu0 %v13827_v57  ;;  %12226 = vmatprep.subr.bf16.mxu1 %v14330_v14  ;;  %v14028_v57 = vcombine.high %v8455_v24, %v8459_v59  ;;  %v8447_v14 = vld [vmem:[#allocation9 + $0x948] sm:$0xff]  ;;  %v13892_v38 = vcombine.high %v8319_v13, %v8323_v17  ;;  %v13891_v48 = vcombine.low %v8319_v13, %v8323_v17 }
 0xa9a   : > { %12269 = vmatprep.subr.bf16.mxu0 %v13820_v16  ;;  %v8451_v16 = vld [vmem:[#allocation9 + $0x968] sm:$0xff] }
 0xa9b   : > { %v14020_v39 = vcombine.high %v8447_v14, %v8451_v16  ;;  %v14019_v49 = vcombine.low %v8447_v14, %v8451_v16  ;;  %v8403_v24 = vld [vmem:[#allocation9 + $0x7e8] sm:$0xff] }
 0xa9c   : > { %12227 = vmatpush2.bf16.msra.mxu1 %v14329_v40  ;;  %v8311_v40 = vld [vmem:[#allocation9 + $0x508] sm:$0xff] }
 0xa9d   : > { %12270 = vmatpush2.bf16.msra.mxu0 %v13819_v43  ;;  %12228 = vmatprep.subr.bf16.mxu1 %v14322_v32  ;;  %v8315_v43 = vld [vmem:[#allocation9 + $0x528] sm:$0xff] }
 0xa9e   : > { %12271 = vmatprep.subr.bf16.mxu0 %v13812_v45  ;;  %v8439_v32 = vld [vmem:[#allocation9 + $0x908] sm:$0xff]  ;;  %v13884_v52 = vcombine.high %v8311_v40, %v8315_v43  ;;  %v13883_v23 = vcombine.low %v8311_v40, %v8315_v43 }
 0xa9f   : > { %v8443_v45 = vld [vmem:[#allocation9 + $0x928] sm:$0xff] }
 0xaa0   : > { %12229 = vmatpush2.bf16.msra.mxu1 %v14321_v54  ;;  %v14012_v28 = vcombine.high %v8439_v32, %v8443_v45  ;;  %v8303_v54 = vld [vmem:[#allocation9 + $0x4c8] sm:$0xff]  ;;  %v14011_v44 = vcombine.low %v8439_v32, %v8443_v45 }
 0xaa1   : > { %12272 = vmatpush2.bf16.msra.mxu0 %v13811_v25  ;;  %12230 = vmatprep.subr.bf16.mxu1 %v14314_v60  ;;  %v8307_v25 = vld [vmem:[#allocation9 + $0x4e8] sm:$0xff] }
 0xaa2   : > { %12273 = vmatprep.subr.bf16.mxu0 %v13804_v61  ;;  %v8431_v60 = vld [vmem:[#allocation9 + $0x8c8] sm:$0xff]  ;;  %v13876_v46 = vcombine.high %v8303_v54, %v8307_v25  ;;  %v13875_v35 = vcombine.low %v8303_v54, %v8307_v25 }
 0xaa3   : > { %v8435_v61 = vld [vmem:[#allocation9 + $0x8e8] sm:$0xff] }
 0xaa4   : > { %12231 = vmatpush2.bf16.msra.mxu1 %v14313_v42  ;;  %v14004_v51 = vcombine.high %v8431_v60, %v8435_v61  ;;  %v8295_v42 = vld [vmem:[#allocation9 + $0x488] sm:$0xff]  ;;  %v14003_v36 = vcombine.low %v8431_v60, %v8435_v61 }
 0xaa5   : > { %12274 = vmatpush2.bf16.msra.mxu0 %v13803_v31  ;;  %12232 = vmatprep.subr.bf16.mxu1 %v14306_v33  ;;  %v8299_v31 = vld [vmem:[#allocation9 + $0x4a8] sm:$0xff] }
 0xaa6   : > { %12275 = vmatprep.subr.bf16.mxu0 %v13796_v34  ;;  %v8423_v33 = vld [vmem:[#allocation9 + $0x888] sm:$0xff]  ;;  %v13868_v37 = vcombine.high %v8295_v42, %v8299_v31  ;;  %v13867_v5 = vcombine.low %v8295_v42, %v8299_v31 }
 0xaa7   : > { %v8427_v34 = vld [vmem:[#allocation9 + $0x8a8] sm:$0xff] }
 0xaa8   : > { %12233 = vmatpush2.bf16.msra.mxu1 %v14305_v1  ;;  %v13996_v53 = vcombine.high %v8423_v33, %v8427_v34  ;;  %v8287_v1 = vld [vmem:[#allocation9 + $0x448] sm:$0xff]  ;;  %v13995_v6 = vcombine.low %v8423_v33, %v8427_v34 }
 0xaa9   : > { %12276 = vmatpush2.bf16.msra.mxu0 %v13795_v2  ;;  %12234 = vmatprep.subr.bf16.mxu1 %v14298_v0  ;;  %v8291_v2 = vld [vmem:[#allocation9 + $0x468] sm:$0xff] }
 0xaaa   : > { %12277 = vmatprep.subr.bf16.mxu0 %v13788_v4  ;;  %v8415_v0 = vld [vmem:[#allocation9 + $0x848] sm:$0xff]  ;;  %v13860_v12 = vcombine.high %v8287_v1, %v8291_v2  ;;  %v13859_v63 = vcombine.low %v8287_v1, %v8291_v2 }
 0xaab   : > { %v8419_v4 = vld [vmem:[#allocation9 + $0x868] sm:$0xff] }
 0xaac   : > { %12235 = vmatpush2.bf16.msra.mxu1 %v14297_v7  ;;  %v13988_v18 = vcombine.high %v8415_v0, %v8419_v4  ;;  %v8279_v7 = vld [vmem:[#allocation9 + $0x408] sm:$0xff] }
 0xaad   : > { %12278 = vmatpush2.bf16.msra.mxu0 %v13787_v8  ;;  %12290 = vmatprep.subr.bf16.mxu1 %v13908_v9  ;;  %v8283_v8 = vld [vmem:[#allocation9 + $0x428] sm:$0xff] }
 0xaae   : > { %12333 = vmatprep.subr.bf16.mxu0 %v14036_v3  ;;  %v8407_v9 = vld [vmem:[#allocation9 + $0x808] sm:$0xff]  ;;  %v13987_v3 = vcombine.low %v8415_v0, %v8419_v4  ;;  %v13852_v15 = vcombine.high %v8279_v7, %v8283_v8 }
 0xaaf   : > { %12237 = vmatmul.mubr.bf16.vlgmr.msra.gmra.mxu1 %v16679_v26  ;;  %v13980_v20 = vcombine.high %v8407_v9, %v8411_v10  ;;  %v8527_v59 = vld [vmem:[#allocation9 + $0xbc8] sm:$0xff]  ;;  %v13979_v13 = vcombine.low %v8407_v9, %v8411_v10 }
 0xab0   : > { %12280 = vmatmul.mubr.bf16.vlgmr.msra.gmra.mxu0 %v16647_v21  ;;  %12291 = vmatpush1.bf16.msra.mxu1 %v13907_v22  ;;  %v8399_v22 = vld [vmem:[#allocation9 + $0x7c8] sm:$0xff] }
 0xab1   : > { %12322 = vmatprep.mubr.bf16.mxu1 %v16645_v30  ;;  %12334 = vmatpush1.bf16.msra.mxu0 %v14035_v56  ;;  %v8531_v56 = vld [vmem:[#allocation9 + $0xbe8] sm:$0xff]  ;;  %v13972_v17 = vcombine.high %v8399_v22, %v8403_v24 }
 0xab2   : > { %12365 = vmatprep.mubr.bf16.mxu0 %v16655_v55  ;;  %12292 = vmatprep.subr.bf16.mxu1 %v13900_v11  ;;  %v13851_v11 = vcombine.low %v8279_v7, %v8283_v8  ;;  %v8391_v14 = vld [vmem:[#allocation9 + $0x788] sm:$0xff] }
 0xab3   : > { %12335 = vmatprep.subr.bf16.mxu0 %v14028_v57  ;;  %v14100_v57 = vcombine.high %v8527_v59, %v8531_v56  ;;  %v8395_v16 = vld [vmem:[#allocation9 + $0x7a8] sm:$0xff] }
 0xab4   : > { %12293 = vmatpush1.bf16.msra.mxu1 %v13899_v19  ;;  %v8519_v19 = vld [vmem:[#allocation9 + $0xb88] sm:$0xff]  ;;  %v13964_v40 = vcombine.high %v8391_v14, %v8395_v16 }
 0xab5   : > { %12336 = vmatpush1.bf16.msra.mxu0 %v14027_v27  ;;  %12294 = vmatprep.subr.bf16.mxu1 %v13892_v38  ;;  %v8523_v27 = vld [vmem:[#allocation9 + $0xba8] sm:$0xff]  ;;  %v13971_v38 = vcombine.low %v8399_v22, %v8403_v24 }
 0xab6   : > { %12337 = vmatprep.subr.bf16.mxu0 %v14020_v39  ;;  %v14099_v39 = vcombine.low %v8527_v59, %v8531_v56  ;;  %v14092_v43 = vcombine.high %v8519_v19, %v8523_v27  ;;  %v8383_v32 = vld [vmem:[#allocation9 + $0x748] sm:$0xff] }
 0xab7   : > { %v8387_v45 = vld [vmem:[#allocation9 + $0x768] sm:$0xff] }
 0xab8   : > { %12295 = vmatpush1.bf16.msra.mxu1 %v13891_v48  ;;  %v8511_v48 = vld [vmem:[#allocation9 + $0xb48] sm:$0xff]  ;;  %v13956_v54 = vcombine.high %v8383_v32, %v8387_v45 }
 0xab9   : > { %12338 = vmatpush1.bf16.msra.mxu0 %v14019_v49  ;;  %12296 = vmatprep.subr.bf16.mxu1 %v13884_v52  ;;  %v8515_v49 = vld [vmem:[#allocation9 + $0xb68] sm:$0xff]  ;;  %v13963_v52 = vcombine.low %v8391_v14, %v8395_v16 }
 0xaba   : > { %12339 = vmatprep.subr.bf16.mxu0 %v14012_v28  ;;  %v14091_v28 = vcombine.low %v8519_v19, %v8523_v27  ;;  %v14084_v25 = vcombine.high %v8511_v48, %v8515_v49  ;;  %v8375_v60 = vld [vmem:[#allocation9 + $0x708] sm:$0xff] }
 0xabb   : > { %v8379_v61 = vld [vmem:[#allocation9 + $0x728] sm:$0xff] }
 0xabc   : > { %12297 = vmatpush1.bf16.msra.mxu1 %v13883_v23  ;;  %v8503_v23 = vld [vmem:[#allocation9 + $0xb08] sm:$0xff]  ;;  %v13948_v42 = vcombine.high %v8375_v60, %v8379_v61 }
 0xabd   : > { %12340 = vmatpush1.bf16.msra.mxu0 %v14011_v44  ;;  %12298 = vmatprep.subr.bf16.mxu1 %v13876_v46  ;;  %v8507_v44 = vld [vmem:[#allocation9 + $0xb28] sm:$0xff]  ;;  %v13955_v46 = vcombine.low %v8383_v32, %v8387_v45 }
 0xabe   : > { %12341 = vmatprep.subr.bf16.mxu0 %v14004_v51  ;;  %v14083_v51 = vcombine.low %v8511_v48, %v8515_v49  ;;  %v14076_v31 = vcombine.high %v8503_v23, %v8507_v44  ;;  %v8367_v33 = vld [vmem:[#allocation9 + $0x6c8] sm:$0xff] }
 0xabf   : > { %v8371_v34 = vld [vmem:[#allocation9 + $0x6e8] sm:$0xff] }
 0xac0   : > { %12299 = vmatpush1.bf16.msra.mxu1 %v13875_v35  ;;  %v8495_v35 = vld [vmem:[#allocation9 + $0xac8] sm:$0xff]  ;;  %v13940_v1 = vcombine.high %v8367_v33, %v8371_v34 }
 0xac1   : > { %12342 = vmatpush1.bf16.msra.mxu0 %v14003_v36  ;;  %12300 = vmatprep.subr.bf16.mxu1 %v13868_v37  ;;  %v8499_v36 = vld [vmem:[#allocation9 + $0xae8] sm:$0xff]  ;;  %v13947_v37 = vcombine.low %v8375_v60, %v8379_v61 }
 0xac2   : > { %12343 = vmatprep.subr.bf16.mxu0 %v13996_v53  ;;  %v14075_v53 = vcombine.low %v8503_v23, %v8507_v44  ;;  %v14068_v2 = vcombine.high %v8495_v35, %v8499_v36  ;;  %v8359_v0 = vld [vmem:[#allocation9 + $0x688] sm:$0xff] }
 0xac3   : > { %v8363_v4 = vld [vmem:[#allocation9 + $0x6a8] sm:$0xff] }
 0xac4   : > { %12301 = vmatpush1.bf16.msra.mxu1 %v13867_v5  ;;  %v8487_v5 = vld [vmem:[#allocation9 + $0xa88] sm:$0xff]  ;;  %v13932_v7 = vcombine.high %v8359_v0, %v8363_v4 }
 0xac5   : > { %12344 = vmatpush1.bf16.msra.mxu0 %v13995_v6  ;;  %12302 = vmatprep.subr.bf16.mxu1 %v13860_v12  ;;  %v8491_v6 = vld [vmem:[#allocation9 + $0xaa8] sm:$0xff]  ;;  %v13939_v12 = vcombine.low %v8367_v33, %v8371_v34 }
 0xac6   : > { %12345 = vmatprep.subr.bf16.mxu0 %v13988_v18  ;;  %v14067_v18 = vcombine.low %v8495_v35, %v8499_v36  ;;  %v14060_v8 = vcombine.high %v8487_v5, %v8491_v6  ;;  %v8351_v9 = vld [vmem:[#allocation9 + $0x648] sm:$0xff] }
 0xac7   : > { %v8355_v10 = vld [vmem:[#allocation9 + $0x668] sm:$0xff] }
 0xac8   : > { %12303 = vmatpush1.bf16.msra.mxu1 %v13859_v63  ;;  %v8479_v63 = vld [vmem:[#allocation9 + $0xa48] sm:$0xff]  ;;  %v13924_v22 = vcombine.high %v8351_v9, %v8355_v10 }
 0xac9   : > { %12346 = vmatpush1.bf16.msra.mxu0 %v13987_v3  ;;  %12304 = vmatprep.subr.bf16.mxu1 %v13852_v15  ;;  %v8483_v3 = vld [vmem:[#allocation9 + $0xa68] sm:$0xff]  ;;  %v13931_v15 = vcombine.low %v8359_v0, %v8363_v4 }
 0xaca   : > { %12347 = vmatprep.subr.bf16.mxu0 %v13980_v20  ;;  %v14059_v20 = vcombine.low %v8487_v5, %v8491_v6  ;;  %v14052_v24 = vcombine.high %v8479_v63, %v8483_v3  ;;  %v8343_v59 = vld [vmem:[#allocation9 + $0x608] sm:$0xff] }
 0xacb   : > { %v8347_v56 = vld [vmem:[#allocation9 + $0x628] sm:$0xff] }
 0xacc   : > { %12305 = vmatpush1.bf16.msra.mxu1 %v13851_v11  ;;  %v8471_v11 = vld [vmem:[#allocation9 + $0xa08] sm:$0xff]  ;;  %v13916_v14 = vcombine.high %v8343_v59, %v8347_v56 }
 0xacd   : > { %12348 = vmatpush1.bf16.msra.mxu0 %v13979_v13  ;;  %12306 = vmatprep.subr.bf16.mxu1 %v13972_v17  ;;  %v8475_v13 = vld [vmem:[#allocation9 + $0xa28] sm:$0xff]  ;;  %v13923_v17 = vcombine.low %v8351_v9, %v8355_v10 }
 0xace   : > { %12349 = vmatprep.subr.bf16.mxu0 %v14100_v57  ;;  %v14051_v57 = vcombine.low %v8479_v63, %v8483_v3  ;;  %v14044_v16 = vcombine.high %v8471_v11, %v8475_v13  ;;  %v8591_v19 = vld [vmem:[#allocation9 + $0xdc8] sm:$0xff] }
 0xacf   : > { %v8595_v27 = vld [vmem:[#allocation9 + $0xde8] sm:$0xff] }
 0xad0   : > { %12307 = vmatpush2.bf16.msra.mxu1 %v13971_v38  ;;  %v8719_v38 = vld [vmem:[#allocation9 + $0x11c8] sm:$0xff]  ;;  %v14164_v32 = vcombine.high %v8591_v19, %v8595_v27 }
 0xad1   : > { %12350 = vmatpush2.bf16.msra.mxu0 %v14099_v39  ;;  %12308 = vmatprep.subr.bf16.mxu1 %v13964_v40  ;;  %v8723_v39 = vld [vmem:[#allocation9 + $0x11e8] sm:$0xff]  ;;  %v13915_v40 = vcombine.low %v8343_v59, %v8347_v56 }
 0xad2   : > { %12351 = vmatprep.subr.bf16.mxu0 %v14092_v43  ;;  %v14043_v43 = vcombine.low %v8471_v11, %v8475_v13  ;;  %v14292_v45 = vcombine.high %v8719_v38, %v8723_v39  ;;  %v8583_v48 = vld [vmem:[#allocation9 + $0xd88] sm:$0xff] }
 0xad3   : > { %v8587_v49 = vld [vmem:[#allocation9 + $0xda8] sm:$0xff] }
 0xad4   : > { %12309 = vmatpush2.bf16.msra.mxu1 %v13963_v52  ;;  %v14163_v52 = vcombine.low %v8591_v19, %v8595_v27  ;;  %v14156_v60 = vcombine.high %v8583_v48, %v8587_v49  ;;  %v8575_v61 = vld [vmem:[#allocation9 + $0xd48] sm:$0xff] }
 0xad5   : > { %12352 = vmatpush2.bf16.msra.mxu0 %v14091_v28  ;;  %12310 = vmatprep.subr.bf16.mxu1 %v13956_v54  ;;  %v8711_v28 = vld [vmem:[#allocation9 + $0x1188] sm:$0xff] }
 0xad6   : > { %12353 = vmatprep.subr.bf16.mxu0 %v14084_v25  ;;  %v8715_v54 = vld [vmem:[#allocation9 + $0x11a8] sm:$0xff]  ;;  %v14291_v25 = vcombine.low %v8719_v38, %v8723_v39 }
 0xad7   : > { %v8579_v23 = vld [vmem:[#allocation9 + $0xd68] sm:$0xff]  ;;  %v14284_v44 = vcombine.high %v8711_v28, %v8715_v54 }
 0xad8   : > { %12311 = vmatpush2.bf16.msra.mxu1 %v13955_v46  ;;  %v8703_v46 = vld [vmem:[#allocation9 + $0x1148] sm:$0xff]  ;;  %v14148_v33 = vcombine.high %v8575_v61, %v8579_v23 }
 0xad9   : > { %12354 = vmatpush2.bf16.msra.mxu0 %v14083_v51  ;;  %12312 = vmatprep.subr.bf16.mxu1 %v13948_v42  ;;  %v8707_v51 = vld [vmem:[#allocation9 + $0x1168] sm:$0xff]  ;;  %v14155_v42 = vcombine.low %v8583_v48, %v8587_v49 }
 0xada   : > { %12355 = vmatprep.subr.bf16.mxu0 %v14076_v31  ;;  %v14283_v31 = vcombine.low %v8711_v28, %v8715_v54  ;;  %v14276_v34 = vcombine.high %v8703_v46, %v8707_v51  ;;  %v8567_v35 = vld [vmem:[#allocation9 + $0xd08] sm:$0xff] }
 0xadb   : > { %v8571_v36 = vld [vmem:[#allocation9 + $0xd28] sm:$0xff] }
 0xadc   : > { %12313 = vmatpush2.bf16.msra.mxu1 %v13947_v37  ;;  %v8695_v37 = vld [vmem:[#allocation9 + $0x1108] sm:$0xff]  ;;  %v14140_v0 = vcombine.high %v8567_v35, %v8571_v36 }
 0xadd   : > { %12356 = vmatpush2.bf16.msra.mxu0 %v14075_v53  ;;  %12314 = vmatprep.subr.bf16.mxu1 %v13940_v1  ;;  %v8699_v53 = vld [vmem:[#allocation9 + $0x1128] sm:$0xff]  ;;  %v14147_v1 = vcombine.low %v8575_v61, %v8579_v23 }
 0xade   : > { %12357 = vmatprep.subr.bf16.mxu0 %v14068_v2  ;;  %v14275_v2 = vcombine.low %v8703_v46, %v8707_v51  ;;  %v14268_v4 = vcombine.high %v8695_v37, %v8699_v53  ;;  %v8559_v5 = vld [vmem:[#allocation9 + $0xcc8] sm:$0xff] }
 0xadf   : > { %v8563_v6 = vld [vmem:[#allocation9 + $0xce8] sm:$0xff] }
 0xae0   : > { %12315 = vmatpush2.bf16.msra.mxu1 %v13939_v12  ;;  %v8687_v12 = vld [vmem:[#allocation9 + $0x10c8] sm:$0xff]  ;;  %v14132_v9 = vcombine.high %v8559_v5, %v8563_v6 }
 0xae1   : > { %12358 = vmatpush2.bf16.msra.mxu0 %v14067_v18  ;;  %12316 = vmatprep.subr.bf16.mxu1 %v13932_v7  ;;  %v8691_v18 = vld [vmem:[#allocation9 + $0x10e8] sm:$0xff]  ;;  %v14139_v7 = vcombine.low %v8567_v35, %v8571_v36 }
 0xae2   : > { %12359 = vmatprep.subr.bf16.mxu0 %v14060_v8  ;;  %v14267_v8 = vcombine.low %v8695_v37, %v8699_v53  ;;  %v14260_v10 = vcombine.high %v8687_v12, %v8691_v18  ;;  %v8551_v63 = vld [vmem:[#allocation9 + $0xc88] sm:$0xff] }
 0xae3   : > { %v8555_v3 = vld [vmem:[#allocation9 + $0xca8] sm:$0xff] }
 0xae4   : > { %12317 = vmatpush2.bf16.msra.mxu1 %v13931_v15  ;;  %v8679_v15 = vld [vmem:[#allocation9 + $0x1088] sm:$0xff]  ;;  %v14124_v59 = vcombine.high %v8551_v63, %v8555_v3 }
 0xae5   : > { %12360 = vmatpush2.bf16.msra.mxu0 %v14059_v20  ;;  %12318 = vmatprep.subr.bf16.mxu1 %v13924_v22  ;;  %v8683_v20 = vld [vmem:[#allocation9 + $0x10a8] sm:$0xff]  ;;  %v14131_v22 = vcombine.low %v8559_v5, %v8563_v6 }
 0xae6   : > { %12361 = vmatprep.subr.bf16.mxu0 %v14052_v24  ;;  %v14259_v24 = vcombine.low %v8687_v12, %v8691_v18  ;;  %v14252_v56 = vcombine.high %v8679_v15, %v8683_v20  ;;  %v8543_v11 = vld [vmem:[#allocation9 + $0xc48] sm:$0xff] }
 0xae7   : > { %v8547_v13 = vld [vmem:[#allocation9 + $0xc68] sm:$0xff] }
 0xae8   : > { %12319 = vmatpush2.bf16.msra.mxu1 %v13923_v17  ;;  %v8671_v17 = vld [vmem:[#allocation9 + $0x1048] sm:$0xff]  ;;  %v14116_v19 = vcombine.high %v8543_v11, %v8547_v13 }
 0xae9   : > { %12362 = vmatpush2.bf16.msra.mxu0 %v14051_v57  ;;  %12320 = vmatprep.subr.bf16.mxu1 %v13916_v14  ;;  %v8675_v57 = vld [vmem:[#allocation9 + $0x1068] sm:$0xff]  ;;  %v14123_v14 = vcombine.low %v8551_v63, %v8555_v3 }
 0xaea   : > { %12363 = vmatprep.subr.bf16.mxu0 %v14044_v16  ;;  %v14251_v16 = vcombine.low %v8679_v15, %v8683_v20  ;;  %v14244_v27 = vcombine.high %v8671_v17, %v8675_v57  ;;  %v8535_v38 = vld [vmem:[#allocation9 + $0xc08] sm:$0xff] }
 0xaeb   : > { %v8539_v39 = vld [vmem:[#allocation9 + $0xc28] sm:$0xff] }
 0xaec   : > { %12321 = vmatpush2.bf16.msra.mxu1 %v13915_v40  ;;  %v8663_v40 = vld [vmem:[#allocation9 + $0x1008] sm:$0xff]  ;;  %v14108_v48 = vcombine.high %v8535_v38, %v8539_v39 }
 0xaed   : > { %12364 = vmatpush2.bf16.msra.mxu0 %v14043_v43  ;;  %12376 = vmatprep.subr.bf16.mxu1 %v14164_v32  ;;  %v8667_v43 = vld [vmem:[#allocation9 + $0x1028] sm:$0xff]  ;;  %v14115_v32 = vcombine.low %v8543_v11, %v8547_v13 }
 0xaee   : > { %12419 = vmatprep.subr.bf16.mxu0 %v14292_v45  ;;  %v14243_v45 = vcombine.low %v8671_v17, %v8675_v57  ;;  %v14236_v49 = vcombine.high %v8663_v40, %v8667_v43  ;;  %v8659_v28 = vld [vmem:[#allocation9 + $0xfe8] sm:$0xff]  ;;  %v14235_v61 = vcombine.low %v8663_v40, %v8667_v43 }
 0xaef   : > { %12323 = vmatmul.mubr.bf16.vlgmr.msra.gmra.mxu1 %v16649_v41  ;;  %v8783_v54 = vld [vmem:[#allocation9 + $0x13c8] sm:$0xff] }
 0xaf0   : > { %12366 = vmatmul.mubr.bf16.vlgmr.msra.gmra.mxu0 %v16669_v47  ;;  %12377 = vmatpush1.bf16.msra.mxu1 %v14163_v52  ;;  %v8655_v52 = vld [vmem:[#allocation9 + $0xfc8] sm:$0xff] }
 0xaf1   : > { %12408 = vmatprep.mubr.bf16.mxu1 %v16657_v58  ;;  %12420 = vmatpush1.bf16.msra.mxu0 %v14291_v25  ;;  %v8787_v25 = vld [vmem:[#allocation9 + $0x13e8] sm:$0xff]  ;;  %v14228_v23 = vcombine.high %v8655_v52, %v8659_v28 }
 0xaf2   : > { %12451 = vmatprep.mubr.bf16.mxu0 %v16673_v62  ;;  %12378 = vmatprep.subr.bf16.mxu1 %v14156_v60  ;;  %v14107_v60 = vcombine.low %v8535_v38, %v8539_v39  ;;  %v8647_v46 = vld [vmem:[#allocation9 + $0xf88] sm:$0xff] }
 0xaf3   : > { %12421 = vmatprep.subr.bf16.mxu0 %v14284_v44  ;;  %v14356_v44 = vcombine.high %v8783_v54, %v8787_v25  ;;  %v8651_v51 = vld [vmem:[#allocation9 + $0xfa8] sm:$0xff] }
 0xaf4   : > { %12379 = vmatpush1.bf16.msra.mxu1 %v14155_v42  ;;  %v8775_v42 = vld [vmem:[#allocation9 + $0x1388] sm:$0xff]  ;;  %v14220_v35 = vcombine.high %v8647_v46, %v8651_v51 }
 0xaf5   : > { %12422 = vmatpush1.bf16.msra.mxu0 %v14283_v31  ;;  %12380 = vmatprep.subr.bf16.mxu1 %v14148_v33  ;;  %v8779_v31 = vld [vmem:[#allocation9 + $0x13a8] sm:$0xff]  ;;  %v14227_v33 = vcombine.low %v8655_v52, %v8659_v28 }
 0xaf6   : > { %12423 = vmatprep.subr.bf16.mxu0 %v14276_v34  ;;  %v14355_v34 = vcombine.low %v8783_v54, %v8787_v25  ;;  %v14348_v36 = vcombine.high %v8775_v42, %v8779_v31  ;;  %v8639_v37 = vld [vmem:[#allocation9 + $0xf48] sm:$0xff] }
 0xaf7   : > { %v8643_v53 = vld [vmem:[#allocation9 + $0xf68] sm:$0xff] }
 0xaf8   : > { %12381 = vmatpush1.bf16.msra.mxu1 %v14147_v1  ;;  %v8767_v1 = vld [vmem:[#allocation9 + $0x1348] sm:$0xff]  ;;  %v14212_v5 = vcombine.high %v8639_v37, %v8643_v53 }
 0xaf9   : > { %12424 = vmatpush1.bf16.msra.mxu0 %v14275_v2  ;;  %12382 = vmatprep.subr.bf16.mxu1 %v14140_v0  ;;  %v8771_v2 = vld [vmem:[#allocation9 + $0x1368] sm:$0xff]  ;;  %v14219_v0 = vcombine.low %v8647_v46, %v8651_v51 }
 0xafa   : > { %12425 = vmatprep.subr.bf16.mxu0 %v14268_v4  ;;  %v14347_v4 = vcombine.low %v8775_v42, %v8779_v31  ;;  %v14340_v6 = vcombine.high %v8767_v1, %v8771_v2  ;;  %v8631_v12 = vld [vmem:[#allocation9 + $0xf08] sm:$0xff]  ;;  %v8208_v42 = vld [vmem:[#allocation9 + $0x1d0] sm:$0xff] }
 0xafb   : > { %v8635_v18 = vld [vmem:[#allocation9 + $0xf28] sm:$0xff]  ;;  %v8212_v31 = vld [vmem:[#allocation9 + $0x1f0] sm:$0xff] }
 0xafc   : > { %12383 = vmatpush1.bf16.msra.mxu1 %v14139_v7  ;;  %v8759_v7 = vld [vmem:[#allocation9 + $0x1308] sm:$0xff]  ;;  %v14204_v63 = vcombine.high %v8631_v12, %v8635_v18 }
 0xafd   : > { %12426 = vmatpush1.bf16.msra.mxu0 %v14267_v8  ;;  %12384 = vmatprep.subr.bf16.mxu1 %v14132_v9  ;;  %v8763_v8 = vld [vmem:[#allocation9 + $0x1328] sm:$0xff]  ;;  %v14211_v9 = vcombine.low %v8639_v37, %v8643_v53  ;;  %v13782_v37 = vcombine.high %v8208_v42, %v8212_v31 }
 0xafe   : > { %12427 = vmatprep.subr.bf16.mxu0 %v14260_v10  ;;  %v14339_v10 = vcombine.low %v8767_v1, %v8771_v2  ;;  %v14332_v3 = vcombine.high %v8759_v7, %v8763_v8  ;;  %v8623_v15 = vld [vmem:[#allocation9 + $0xec8] sm:$0xff]  ;;  %v8200_v1 = vld [vmem:[#allocation9 + $0x190] sm:$0xff] }
 0xaff   : > { %v8627_v20 = vld [vmem:[#allocation9 + $0xee8] sm:$0xff]  ;;  %v8204_v2 = vld [vmem:[#allocation9 + $0x1b0] sm:$0xff] }
 0xb00   : > { %12385 = vmatpush1.bf16.msra.mxu1 %v14131_v22  ;;  %v8751_v22 = vld [vmem:[#allocation9 + $0x12c8] sm:$0xff]  ;;  %v14196_v11 = vcombine.high %v8623_v15, %v8627_v20 }
 0xb01   : > { %12428 = vmatpush1.bf16.msra.mxu0 %v14259_v24  ;;  %12386 = vmatprep.subr.bf16.mxu1 %v14124_v59  ;;  %v8755_v24 = vld [vmem:[#allocation9 + $0x12e8] sm:$0xff]  ;;  %v14203_v59 = vcombine.low %v8631_v12, %v8635_v18  ;;  %v13774_v12 = vcombine.high %v8200_v1, %v8204_v2  ;;  %v8192_v18 = vld [vmem:[#allocation9 + $0x150] sm:$0xff] }
 0xb02   : > { %12429 = vmatprep.subr.bf16.mxu0 %v14252_v56  ;;  %v14331_v56 = vcombine.low %v8759_v7, %v8763_v8  ;;  %v14324_v13 = vcombine.high %v8751_v22, %v8755_v24  ;;  %v8615_v17 = vld [vmem:[#allocation9 + $0xe88] sm:$0xff]  ;;  %v8196_v7 = vld [vmem:[#allocation9 + $0x170] sm:$0xff] }
 0xb03   : > { %v8619_v57 = vld [vmem:[#allocation9 + $0xea8] sm:$0xff] }
 0xb04   : > { %12387 = vmatpush1.bf16.msra.mxu1 %v14123_v14  ;;  %v8743_v14 = vld [vmem:[#allocation9 + $0x1288] sm:$0xff]  ;;  %v14188_v38 = vcombine.high %v8615_v17, %v8619_v57 }
 0xb05   : > { %12430 = vmatpush1.bf16.msra.mxu0 %v14251_v16  ;;  %12388 = vmatprep.subr.bf16.mxu1 %v14116_v19  ;;  %v8747_v16 = vld [vmem:[#allocation9 + $0x12a8] sm:$0xff]  ;;  %v14195_v19 = vcombine.low %v8623_v15, %v8627_v20  ;;  %v13766_v15 = vcombine.high %v8192_v18, %v8196_v7 }
 0xb06   : > { %12431 = vmatprep.subr.bf16.mxu0 %v14244_v27  ;;  %v14323_v27 = vcombine.low %v8751_v22, %v8755_v24  ;;  %v14316_v39 = vcombine.high %v8743_v14, %v8747_v16  ;;  %v8607_v40 = vld [vmem:[#allocation9 + $0xe48] sm:$0xff]  ;;  %v8184_v22 = vld [vmem:[#allocation9 + $0x110] sm:$0xff] }
 0xb07   : > { %v8611_v43 = vld [vmem:[#allocation9 + $0xe68] sm:$0xff]  ;;  %v8188_v24 = vld [vmem:[#allocation9 + $0x130] sm:$0xff] }
 0xb08   : > { %12389 = vmatpush1.bf16.msra.mxu1 %v14115_v32  ;;  %v8735_v32 = vld [vmem:[#allocation9 + $0x1248] sm:$0xff]  ;;  %v14180_v52 = vcombine.high %v8607_v40, %v8611_v43 }
 0xb09   : > { %12432 = vmatpush1.bf16.msra.mxu0 %v14243_v45  ;;  %12390 = vmatprep.subr.bf16.mxu1 %v14108_v48  ;;  %v8739_v45 = vld [vmem:[#allocation9 + $0x1268] sm:$0xff]  ;;  %v14187_v48 = vcombine.low %v8615_v17, %v8619_v57  ;;  %v13758_v17 = vcombine.high %v8184_v22, %v8188_v24 }
 0xb0a   : > { %12433 = vmatprep.subr.bf16.mxu0 %v14236_v49  ;;  %v14315_v49 = vcombine.low %v8743_v14, %v8747_v16  ;;  %v14308_v28 = vcombine.high %v8735_v32, %v8739_v45  ;;  %v8599_v54 = vld [vmem:[#allocation9 + $0xe08] sm:$0xff]  ;;  %v8176_v14 = vld [vmem:[#allocation9 + $0xd0] sm:$0xff] }
 0xb0b   : > { %v8603_v25 = vld [vmem:[#allocation9 + $0xe28] sm:$0xff]  ;;  %v8180_v16 = vld [vmem:[#allocation9 + $0xf0] sm:$0xff] }
 0xb0c   : > { %12391 = vmatpush1.bf16.msra.mxu1 %v14107_v60  ;;  %v8727_v60 = vld [vmem:[#allocation9 + $0x1208] sm:$0xff]  ;;  %v14172_v46 = vcombine.high %v8599_v54, %v8603_v25 }
 0xb0d   : > { %12434 = vmatpush1.bf16.msra.mxu0 %v14235_v61  ;;  %12392 = vmatprep.subr.bf16.mxu1 %v14228_v23  ;;  %v8731_v61 = vld [vmem:[#allocation9 + $0x1228] sm:$0xff]  ;;  %v14179_v23 = vcombine.low %v8607_v40, %v8611_v43  ;;  %v13750_v40 = vcombine.high %v8176_v14, %v8180_v16 }
 0xb0e   : > { %12435 = vmatprep.subr.bf16.mxu0 %v14356_v44  ;;  %v14307_v44 = vcombine.low %v8735_v32, %v8739_v45  ;;  %v14300_v51 = vcombine.high %v8727_v60, %v8731_v61  ;;  %v8168_v32 = vld [vmem:[#allocation9 + $0x90] sm:$0xff] }
 0xb0f   : > { %v8172_v45 = vld [vmem:[#allocation9 + $0xb0] sm:$0xff] }
 0xb10   : > { %12393 = vmatpush2.bf16.msra.mxu1 %v14227_v33  ;;  %v8336_v33 = vld [vmem:[#allocation9 + $0x5d0] sm:$0xff] }
 0xb11   : > { %12436 = vmatpush2.bf16.msra.mxu0 %v14355_v34  ;;  %12394 = vmatprep.subr.bf16.mxu1 %v14220_v35  ;;  %v8340_v34 = vld [vmem:[#allocation9 + $0x5f0] sm:$0xff]  ;;  %v14171_v35 = vcombine.low %v8599_v54, %v8603_v25  ;;  %v13742_v54 = vcombine.high %v8168_v32, %v8172_v45 }
 0xb12   : > { %12437 = vmatprep.subr.bf16.mxu0 %v14348_v36  ;;  %v14299_v36 = vcombine.low %v8727_v60, %v8731_v61  ;;  %v13910_v53 = vcombine.high %v8336_v33, %v8340_v34  ;;  %v8160_v60 = vld [vmem:[#allocation9 + $0x50] sm:$0xff] }
 0xb13   : > { %v8164_v61 = vld [vmem:[#allocation9 + $0x70] sm:$0xff] }
 0xb14   : > { %12395 = vmatpush2.bf16.msra.mxu1 %v14219_v0  ;;  %v13781_v0 = vcombine.low %v8208_v42, %v8212_v31  ;;  %v13734_v42 = vcombine.high %v8160_v60, %v8164_v61 }
 0xb15   : > { %12438 = vmatpush2.bf16.msra.mxu0 %v14347_v4  ;;  %12396 = vmatprep.subr.bf16.mxu1 %v14212_v5  ;;  %v8328_v4 = vld [vmem:[#allocation9 + $0x590] sm:$0xff] }
 0xb16   : > { %12439 = vmatprep.subr.bf16.mxu0 %v14340_v6  ;;  %v8332_v5 = vld [vmem:[#allocation9 + $0x5b0] sm:$0xff]  ;;  %v13909_v6 = vcombine.low %v8336_v33, %v8340_v34 }
 0xb17   : > { %v13902_v8 = vcombine.high %v8328_v4, %v8332_v5  ;;  %v8152_v33 = vld [vmem:[#allocation9 + $0x10] sm:$0xff] }
 0xb18   : > { %12397 = vmatpush2.bf16.msra.mxu1 %v14211_v9  ;;  %v8320_v9 = vld [vmem:[#allocation9 + $0x550] sm:$0xff] }
 0xb19   : > { %12440 = vmatpush2.bf16.msra.mxu0 %v14339_v10  ;;  %12398 = vmatprep.subr.bf16.mxu1 %v14204_v63  ;;  %v8324_v10 = vld [vmem:[#allocation9 + $0x570] sm:$0xff]  ;;  %v13773_v63 = vcombine.low %v8200_v1, %v8204_v2 }
 0xb1a   : > { %12441 = vmatprep.subr.bf16.mxu0 %v14332_v3  ;;  %v13901_v3 = vcombine.low %v8328_v4, %v8332_v5  ;;  %v13894_v20 = vcombine.high %v8320_v9, %v8324_v10  ;;  %v8156_v34 = vld [vmem:[#allocation9 + $0x30] sm:$0xff] }
 0xb1b   : > { %v13726_v1 = vcombine.high %v8152_v33, %v8156_v34  ;;  %v8276_v4 = vld [vmem:[#allocation9 + $0x3f0] sm:$0xff] }
 0xb1c   : > { %12399 = vmatpush2.bf16.msra.mxu1 %v14203_v59  ;;  %v8312_v59 = vld [vmem:[#allocation9 + $0x510] sm:$0xff] }
 0xb1d   : > { %12442 = vmatpush2.bf16.msra.mxu0 %v14331_v56  ;;  %12400 = vmatprep.subr.bf16.mxu1 %v14196_v11  ;;  %v8316_v56 = vld [vmem:[#allocation9 + $0x530] sm:$0xff]  ;;  %v13765_v11 = vcombine.low %v8192_v18, %v8196_v7 }
 0xb1e   : > { %12443 = vmatprep.subr.bf16.mxu0 %v14324_v13  ;;  %v13893_v13 = vcombine.low %v8320_v9, %v8324_v10  ;;  %v13886_v57 = vcombine.high %v8312_v59, %v8316_v56  ;;  %v8400_v5 = vld [vmem:[#allocation9 + $0x7d0] sm:$0xff] }
 0xb1f   : > { %v8264_v9 = vld [vmem:[#allocation9 + $0x390] sm:$0xff] }
 0xb20   : > { %12401 = vmatpush2.bf16.msra.mxu1 %v14195_v19  ;;  %v8304_v19 = vld [vmem:[#allocation9 + $0x4d0] sm:$0xff] }
 0xb21   : > { %12444 = vmatpush2.bf16.msra.mxu0 %v14323_v27  ;;  %12402 = vmatprep.subr.bf16.mxu1 %v14188_v38  ;;  %v8308_v27 = vld [vmem:[#allocation9 + $0x4f0] sm:$0xff]  ;;  %v13757_v38 = vcombine.low %v8184_v22, %v8188_v24 }
 0xb22   : > { %12445 = vmatprep.subr.bf16.mxu0 %v14316_v39  ;;  %v13885_v39 = vcombine.low %v8312_v59, %v8316_v56  ;;  %v13878_v43 = vcombine.high %v8304_v19, %v8308_v27  ;;  %v8268_v10 = vld [vmem:[#allocation9 + $0x3b0] sm:$0xff] }
 0xb23   : > { %v13838_v22 = vcombine.high %v8264_v9, %v8268_v10  ;;  %v8256_v59 = vld [vmem:[#allocation9 + $0x350] sm:$0xff] }
 0xb24   : > { %12403 = vmatpush2.bf16.msra.mxu1 %v14187_v48  ;;  %v8296_v48 = vld [vmem:[#allocation9 + $0x490] sm:$0xff] }
 0xb25   : > { %12446 = vmatpush2.bf16.msra.mxu0 %v14315_v49  ;;  %12404 = vmatprep.subr.bf16.mxu1 %v14180_v52  ;;  %v8300_v49 = vld [vmem:[#allocation9 + $0x4b0] sm:$0xff]  ;;  %v13749_v52 = vcombine.low %v8176_v14, %v8180_v16 }
 0xb26   : > { %12447 = vmatprep.subr.bf16.mxu0 %v14308_v28  ;;  %v13877_v28 = vcombine.low %v8304_v19, %v8308_v27  ;;  %v13870_v25 = vcombine.high %v8296_v48, %v8300_v49  ;;  %v8260_v56 = vld [vmem:[#allocation9 + $0x370] sm:$0xff] }
 0xb27   : > { %v13830_v14 = vcombine.high %v8256_v59, %v8260_v56  ;;  %v8248_v19 = vld [vmem:[#allocation9 + $0x310] sm:$0xff] }
 0xb28   : > { %12405 = vmatpush2.bf16.msra.mxu1 %v14179_v23  ;;  %v8288_v23 = vld [vmem:[#allocation9 + $0x450] sm:$0xff] }
 0xb29   : > { %12448 = vmatpush2.bf16.msra.mxu0 %v14307_v44  ;;  %12406 = vmatprep.subr.bf16.mxu1 %v14172_v46  ;;  %v8292_v44 = vld [vmem:[#allocation9 + $0x470] sm:$0xff]  ;;  %v13741_v46 = vcombine.low %v8168_v32, %v8172_v45  ;;  %v13829_v32 = vcombine.low %v8256_v59, %v8260_v56 }
 0xb2a   : > { %12449 = vmatprep.subr.bf16.mxu0 %v14300_v51  ;;  %v13869_v51 = vcombine.low %v8296_v48, %v8300_v49  ;;  %v13862_v31 = vcombine.high %v8288_v23, %v8292_v44  ;;  %v8252_v27 = vld [vmem:[#allocation9 + $0x330] sm:$0xff] }
 0xb2b   : > { %v13822_v48 = vcombine.high %v8248_v19, %v8252_v27  ;;  %v8216_v56 = vld [vmem:[#allocation9 + $0x210] sm:$0xff] }
 0xb2c   : > { %12407 = vmatpush2.bf16.msra.mxu1 %v14171_v35  ;;  %v8280_v35 = vld [vmem:[#allocation9 + $0x410] sm:$0xff] }
 0xb2d   : > { %12450 = vmatpush2.bf16.msra.mxu0 %v14299_v36  ;;  %12462 = vmatprep.subr.bf16.mxu1 %v13782_v37  ;;  %v8284_v36 = vld [vmem:[#allocation9 + $0x430] sm:$0xff]  ;;  %v13733_v37 = vcombine.low %v8160_v60, %v8164_v61 }
 0xb2e   : > { %12505 = vmatprep.subr.bf16.mxu0 %v13910_v53  ;;  %v13861_v53 = vcombine.low %v8288_v23, %v8292_v44  ;;  %v13854_v2 = vcombine.high %v8280_v35, %v8284_v36  ;;  %v13853_v18 = vcombine.low %v8280_v35, %v8284_v36  ;;  %v8372_v60 = vld [vmem:[#allocation9 + $0x6f0] sm:$0xff]  ;;  %v13821_v23 = vcombine.low %v8248_v19, %v8252_v27  ;;  %v12109_v44 = vpop.f32.mrf.mxu0 }
 0xb2f   : > { %12409 = vmatmul.mubr.bf16.vlgmr.msra.gmra.mxu1 %v16671_v50  ;;  %v8360_v35 = vld [vmem:[#allocation9 + $0x690] sm:$0xff] }
 0xb30   : > { %12452 = vmatmul.mubr.bf16.vlgmr.msra.gmra.mxu0 %v16679_v26  ;;  %12463 = vmatpush1.bf16.msra.mxu1 %v13781_v0  ;;  %v8272_v0 = vld [vmem:[#allocation9 + $0x3d0] sm:$0xff] }
 0xb31   : > { %12494 = vmatprep.mubr.bf16.mxu1 %v16643_v29  ;;  %12506 = vmatpush1.bf16.msra.mxu0 %v13909_v6  ;;  %v8404_v6 = vld [vmem:[#allocation9 + $0x7f0] sm:$0xff]  ;;  %v13846_v7 = vcombine.high %v8272_v0, %v8276_v4 }
 0xb32   : > { %12537 = vmatprep.mubr.bf16.mxu0 %v16645_v30  ;;  %12464 = vmatprep.subr.bf16.mxu1 %v13774_v12  ;;  %v13725_v12 = vcombine.low %v8152_v33, %v8156_v34  ;;  %v8236_v33 = vld [vmem:[#allocation9 + $0x2b0] sm:$0xff] }
 0xb33   : > { %12507 = vmatprep.subr.bf16.mxu0 %v13902_v8  ;;  %v13974_v8 = vcombine.high %v8400_v5, %v8404_v6  ;;  %v8364_v36 = vld [vmem:[#allocation9 + $0x6b0] sm:$0xff] }
 0xb34   : > { %12465 = vmatpush1.bf16.msra.mxu1 %v13773_v63  ;;  %v8392_v63 = vld [vmem:[#allocation9 + $0x790] sm:$0xff] }
 0xb35   : > { %12508 = vmatpush1.bf16.msra.mxu0 %v13901_v3  ;;  %12466 = vmatprep.subr.bf16.mxu1 %v13766_v15  ;;  %v8396_v3 = vld [vmem:[#allocation9 + $0x7b0] sm:$0xff]  ;;  %v13845_v15 = vcombine.low %v8272_v0, %v8276_v4 }
 0xb36   : > { %12509 = vmatprep.subr.bf16.mxu0 %v13894_v20  ;;  %v13973_v20 = vcombine.low %v8400_v5, %v8404_v6  ;;  %v13966_v24 = vcombine.high %v8392_v63, %v8396_v3  ;;  %v13934_v6 = vcombine.high %v8360_v35, %v8364_v36 }
 0xb38   : > { %12467 = vmatpush1.bf16.msra.mxu1 %v13765_v11  ;;  %v8384_v11 = vld [vmem:[#allocation9 + $0x750] sm:$0xff] }
 0xb39   : > { %12510 = vmatpush1.bf16.msra.mxu0 %v13893_v13  ;;  %12468 = vmatprep.subr.bf16.mxu1 %v13758_v17  ;;  %v8388_v13 = vld [vmem:[#allocation9 + $0x770] sm:$0xff]  ;;  %v13837_v17 = vcombine.low %v8264_v9, %v8268_v10 }
 0xb3a   : > { %12511 = vmatprep.subr.bf16.mxu0 %v13886_v57  ;;  %v13965_v57 = vcombine.low %v8392_v63, %v8396_v3  ;;  %v13958_v16 = vcombine.high %v8384_v11, %v8388_v13  ;;  %v13957_v45 = vcombine.low %v8384_v11, %v8388_v13  ;;  %v8356_v9 = vld [vmem:[#allocation9 + $0x670] sm:$0xff] }
 0xb3b   : > { %v8220_v11 = vld [vmem:[#allocation9 + $0x230] sm:$0xff] }
 0xb3c   : > { %12469 = vmatpush1.bf16.msra.mxu1 %v13757_v38  ;;  %v16693_v38 = vpop.f32.mrf.mxu1  ;;  %v8344_v13 = vld [vmem:[#allocation9 + $0x610] sm:$0xff] }
 0xb3d   : > { %12512 = vmatpush1.bf16.msra.mxu0 %v13885_v39  ;;  %12470 = vmatprep.subr.bf16.mxu1 %v13750_v40  ;;  %v8376_v39 = vld [vmem:[#allocation9 + $0x710] sm:$0xff] }
 0xb3e   : > { %12513 = vmatprep.subr.bf16.mxu0 %v13878_v43  ;;  %v8380_v40 = vld [vmem:[#allocation9 + $0x730] sm:$0xff]  ;;  %v8792_v43 = vlaneseq }
 0xb3f   : > { %v13950_v49 = vcombine.high %v8376_v39, %v8380_v40 }
 0xb40   : > { %12471 = vmatpush1.bf16.msra.mxu1 %v13749_v52  ;;  %v8240_v52 = vld [vmem:[#allocation9 + $0x2d0] sm:$0xff]  ;;  %v16695_v61 = vshrl.u32 %v8792_v43, 7 }
 0xb41   : > { %12514 = vmatpush1.bf16.msra.mxu0 %v13877_v28  ;;  %12472 = vmatprep.subr.bf16.mxu1 %v13742_v54  ;;  %v8244_v28 = vld [vmem:[#allocation9 + $0x2f0] sm:$0xff]  ;;  %v12068_v54 = vpop.f32.mrf.mxu1 }
 0xb42   : > { %12515 = vmatprep.subr.bf16.mxu0 %v13870_v25  ;;  %v8368_v25 = vld [vmem:[#allocation9 + $0x6d0] sm:$0xff]  ;;  %v8798_v5 = vsub.s32 1, %v16695_v61 }
 0xb43   : > { %v12070_v34 = vpop.f32.mrf.mxu1  ;;  %v13941_v0 = vcombine.low %v8368_v25, %v8372_v60 }
 0xb44   : > { %12473 = vmatpush1.bf16.msra.mxu1 %v13741_v46  ;;  %v13949_v46 = vcombine.low %v8376_v39, %v8380_v40  ;;  %v13790_v39 = vcombine.high %v8216_v56, %v8220_v11 }
 0xb45   : > { %12516 = vmatpush1.bf16.msra.mxu0 %v13869_v51  ;;  %12474 = vmatprep.subr.bf16.mxu1 %v13734_v42  ;;  %v13814_v51 = vcombine.high %v8240_v52, %v8244_v28  ;;  %v13942_v42 = vcombine.high %v8368_v25, %v8372_v60 }
 0xb46   : > { %12517 = vmatprep.subr.bf16.mxu0 %v13862_v31  ;;  %v8232_v31 = vld [vmem:[#allocation9 + $0x290] sm:$0xff] }
 0xb47   : > { %v13806_v4 = vcombine.high %v8232_v31, %v8236_v33  ;;  %v13805_v63 = vcombine.low %v8232_v31, %v8236_v33 }
 0xb48   : > { %12475 = vmatpush1.bf16.msra.mxu1 %v13733_v37  ;;  %v8794_v37 = vsub.s32 0, %v16695_v61 }
 0xb49   : > { %12518 = vmatpush1.bf16.msra.mxu0 %v13861_v53  ;;  %12476 = vmatprep.subr.bf16.mxu1 %v13726_v1  ;;  %v13813_v53 = vcombine.low %v8240_v52, %v8244_v28  ;;  %v16698_v1 = vld [vmem:[#allocation11] sm:$0xff]  ;;  %v8596_v52 = vld [vmem:[#allocation9 + $0xdf0] sm:$0xff] }
 0xb4a   : > { %12519 = vmatprep.subr.bf16.mxu0 %v13854_v2  ;;  %v12111_v2 = vpop.f32.mrf.mxu0  ;;  %v8795_v10 = vrot.slane %v16698_v1, %v8794_v37 }
 0xb4c   : > { %12477 = vmatpush1.bf16.msra.mxu1 %v13725_v12  ;;  %v8224_v12 = vld [vmem:[#allocation9 + $0x250] sm:$0xff]  ;;  %v12113_v3 = vpop.f32.mrf.mxu0  ;;  %v12071_v25 = vadd.f32 %v12070_v34, %v8795_v10 }
 0xb4d   : > { %12520 = vmatpush1.bf16.msra.mxu0 %v13853_v18  ;;  %12478 = vmatprep.subr.bf16.mxu1 %v13846_v7  ;;  %v8228_v18 = vld [vmem:[#allocation9 + $0x270] sm:$0xff]  ;;  %v12072_v7 = vpop.f32.mrf.mxu1 }
 0xb4e   : > { %12521 = vmatprep.subr.bf16.mxu0 %v13974_v8  ;;  %v8352_v8 = vld [vmem:[#allocation9 + $0x650] sm:$0xff]  ;;  %v12114_v37 = vadd.f32 %v12113_v3, %v12071_v25 }
 0xb4f   : > { %v13926_v59 = vcombine.high %v8352_v8, %v8356_v9  ;;  %v13925_v27 = vcombine.low %v8352_v8, %v8356_v9  ;;  %v8452_v8 = vld [vmem:[#allocation9 + $0x970] sm:$0xff] }
 0xb50   : > { %12479 = vmatpush2.bf16.msra.mxu1 %v13845_v15  ;;  %v12152_v15 = vpop.f32.mrf.mxu1 }
 0xb51   : > { %12522 = vmatpush2.bf16.msra.mxu0 %v13973_v20  ;;  %12480 = vmatprep.subr.bf16.mxu1 %v13838_v22  ;;  %v13933_v20 = vcombine.low %v8360_v35, %v8364_v36  ;;  %v13798_v22 = vcombine.high %v8224_v12, %v8228_v18  ;;  %v8456_v35 = vld [vmem:[#allocation9 + $0x990] sm:$0xff] }
 0xb52   : > { %12523 = vmatprep.subr.bf16.mxu0 %v13966_v24  ;;  %v8799_v24 = vrot.slane %v16698_v1, %v8798_v5  ;;  %v12154_v19 = vpop.f32.mrf.mxu1  ;;  %v8460_v36 = vld [vmem:[#allocation9 + $0x9b0] sm:$0xff] }
 0xb54   : > { %12481 = vmatpush2.bf16.msra.mxu1 %v13837_v17  ;;  %v8348_v17 = vld [vmem:[#allocation9 + $0x630] sm:$0xff]  ;;  %v12069_v40 = vadd.f32 %v12068_v54, %v8799_v24  ;;  %v12156_v60 = vpop.f32.mrf.mxu1 }
 0xb55   : > { %12524 = vmatpush2.bf16.msra.mxu0 %v13965_v57  ;;  %12482 = vmatprep.subr.bf16.mxu1 %v13830_v14  ;;  %v12067_v57 = vadd.f32 %v16693_v38, %v8795_v10  ;;  %v13797_v14 = vcombine.low %v8224_v12, %v8228_v18  ;;  %v13918_v43 = vcombine.high %v8344_v13, %v8348_v17 }
 0xb56   : > { %12525 = vmatprep.subr.bf16.mxu0 %v13958_v16  ;;  %v12115_v16 = vpop.f32.mrf.mxu0  ;;  %v13789_v38 = vcombine.low %v8216_v56, %v8220_v11  ;;  %v12157_v12 = vadd.f32 %v12156_v60, %v12114_v37  ;;  %v14030_v18 = vcombine.high %v8456_v35, %v8460_v36  ;;  %v8432_v60 = vld [vmem:[#allocation9 + $0x8d0] sm:$0xff] }
 0xb57   : > { %v12110_v28 = vadd.f32 %v12109_v44, %v12067_v57  ;;  %v8552_v37 = vld [vmem:[#allocation9 + $0xc90] sm:$0xff] }
 0xb58   : > { %12483 = vmatpush2.bf16.msra.mxu1 %v13829_v32  ;;  %v8464_v32 = vld [vmem:[#allocation9 + $0x9d0] sm:$0xff] }
 0xb59   : > { %12526 = vmatpush2.bf16.msra.mxu0 %v13957_v45  ;;  %12484 = vmatprep.subr.bf16.mxu1 %v13822_v48  ;;  %v8468_v45 = vld [vmem:[#allocation9 + $0x9f0] sm:$0xff]  ;;  %v12195_v48 = vpop.f32.mrf.mxu0  ;;  %v12153_v54 = vadd.f32 %v12152_v15, %v12110_v28 }
 0xb5a   : > { %12527 = vmatprep.subr.bf16.mxu0 %v13950_v49  ;;  %v8592_v49 = vld [vmem:[#allocation9 + $0xdd0] sm:$0xff]  ;;  %v14037_v34 = vcombine.low %v8464_v32, %v8468_v45 }
 0xb5b   : > { %v14166_v31 = vcombine.high %v8592_v49, %v8596_v52  ;;  %v12197_v33 = vpop.f32.mrf.mxu0  ;;  %v14165_v5 = vcombine.low %v8592_v49, %v8596_v52  ;;  %v8576_v15 = vld [vmem:[#allocation9 + $0xd50] sm:$0xff] }
 0xb5c   : > { %12485 = vmatpush2.bf16.msra.mxu1 %v13821_v23  ;;  %v13917_v23 = vcombine.low %v8344_v13, %v8348_v17 }
 0xb5d   : > { %12528 = vmatpush2.bf16.msra.mxu0 %v13949_v46  ;;  %12486 = vmatprep.subr.bf16.mxu1 %v13814_v51  ;;  %v14038_v46 = vcombine.high %v8464_v32, %v8468_v45  ;;  %v12112_v51 = vadd.f32 %v12111_v2, %v12069_v40  ;;  %v12196_v2 = vadd.f32 %v12195_v48, %v12153_v54  ;;  %v12199_v9 = vpop.f32.mrf.mxu0  ;;  %v8568_v40 = vld [vmem:[#allocation9 + $0xd10] sm:$0xff] }
 0xb5e   : > { %12529 = vmatprep.subr.bf16.mxu0 %v13942_v42  ;;  %v12073_v42 = vadd.f32 %v12072_v7, %v8799_v24  ;;  %v8448_v7 = vld [vmem:[#allocation9 + $0x950] sm:$0xff]  ;;  %v12200_v17 = vadd.f32 %v12199_v9, %v12157_v12 }
 0xb5f   : > { %v12155_v44 = vadd.f32 %v12154_v19, %v12112_v51  ;;  %v14022_v13 = vcombine.high %v8448_v7, %v8452_v8  ;;  %v8444_v19 = vld [vmem:[#allocation9 + $0x930] sm:$0xff]  ;;  %v14021_v48 = vcombine.low %v8448_v7, %v8452_v8 }
 0xb60   : > { %12487 = vmatpush2.bf16.msra.mxu1 %v13813_v53  ;;  %v8584_v53 = vld [vmem:[#allocation9 + $0xd90] sm:$0xff] }
 0xb61   : > { %12530 = vmatpush2.bf16.msra.mxu0 %v13941_v0  ;;  %12488 = vmatprep.subr.bf16.mxu1 %v13806_v4  ;;  %v8588_v0 = vld [vmem:[#allocation9 + $0xdb0] sm:$0xff]  ;;  %v12158_v4 = vpop.f32.mrf.mxu1 }
 0xb62   : > { %12531 = vmatprep.subr.bf16.mxu0 %v13934_v6  ;;  %v12116_v6 = vadd.f32 %v12115_v16, %v12073_v42  ;;  %v14158_v3 = vcombine.high %v8584_v53, %v8588_v0  ;;  %v14157_v11 = vcombine.low %v8584_v53, %v8588_v0  ;;  %v8440_v16 = vld [vmem:[#allocation9 + $0x910] sm:$0xff] }
 0xb63   : > { %v14014_v28 = vcombine.high %v8440_v16, %v8444_v19  ;;  %v8564_v51 = vld [vmem:[#allocation9 + $0xcf0] sm:$0xff]  ;;  %v14013_v42 = vcombine.low %v8440_v16, %v8444_v19 }
 0xb64   : > { %12489 = vmatpush2.bf16.msra.mxu1 %v13805_v63  ;;  %v14029_v63 = vcombine.low %v8456_v35, %v8460_v36  ;;  %v12159_v24 = vadd.f32 %v12158_v4, %v12116_v6  ;;  %v8424_v35 = vld [vmem:[#allocation9 + $0x890] sm:$0xff] }
 0xb65   : > { %12532 = vmatpush2.bf16.msra.mxu0 %v13933_v20  ;;  %12490 = vmatprep.subr.bf16.mxu1 %v13798_v22  ;;  %v8580_v20 = vld [vmem:[#allocation9 + $0xd70] sm:$0xff]  ;;  %v12198_v22 = vadd.f32 %v12197_v33, %v12155_v44 }
 0xb66   : > { %12533 = vmatprep.subr.bf16.mxu0 %v13926_v59  ;;  %v14149_v52 = vcombine.low %v8576_v15, %v8580_v20  ;;  %v8428_v36 = vld [vmem:[#allocation9 + $0x8b0] sm:$0xff] }
 0xb67   : > { %v8556_v44 = vld [vmem:[#allocation9 + $0xcb0] sm:$0xff]  ;;  %v13998_v0 = vcombine.high %v8424_v35, %v8428_v36 }
 0xb68   : > { %12491 = vmatpush2.bf16.msra.mxu1 %v13797_v14  ;;  %v14150_v14 = vcombine.high %v8576_v15, %v8580_v20  ;;  %v14126_v4 = vcombine.high %v8552_v37, %v8556_v44  ;;  %v8420_v6 = vld [vmem:[#allocation9 + $0x870] sm:$0xff]  ;;  %v14125_v7 = vcombine.low %v8552_v37, %v8556_v44 }
 0xb69   : > { %12534 = vmatpush2.bf16.msra.mxu0 %v13925_v27  ;;  %12492 = vmatprep.subr.bf16.mxu1 %v13790_v39  ;;  %v12201_v27 = vpop.f32.mrf.mxu0  ;;  %v8548_v12 = vld [vmem:[#allocation9 + $0xc70] sm:$0xff] }
 0xb6a   : > { %12535 = vmatprep.subr.bf16.mxu0 %v13918_v43  ;;  %v8572_v43 = vld [vmem:[#allocation9 + $0xd30] sm:$0xff]  ;;  %v12202_v32 = vadd.f32 %v12201_v27, %v12159_v24 }
 0xb6b   : > { %v14141_v54 = vcombine.low %v8568_v40, %v8572_v43  ;;  %v8540_v15 = vld [vmem:[#allocation9 + $0xc30] sm:$0xff] }
 0xb6c   : > { %12493 = vmatpush2.bf16.msra.mxu1 %v13789_v38  ;;  %v14142_v38 = vcombine.high %v8568_v40, %v8572_v43  ;;  %v8520_v27 = vld [vmem:[#allocation9 + $0xb90] sm:$0xff] }
 0xb6d   : > { %12536 = vmatpush2.bf16.msra.mxu0 %v13917_v23  ;;  %12548 = vmatprep.subr.bf16.mxu1 %v14038_v46  ;;  %v8436_v23 = vld [vmem:[#allocation9 + $0x8f0] sm:$0xff] }
 0xb6e   : > { %12591 = vmatprep.subr.bf16.mxu0 %v14166_v31  ;;  %v8560_v46 = vld [vmem:[#allocation9 + $0xcd0] sm:$0xff]  ;;  %v14006_v31 = vcombine.high %v8432_v60, %v8436_v23 }
 0xb6f   : > { %v12238_v10 = vpop.f32.mrf.mxu1  ;;  %12495 = vmatmul.mubr.bf16.vlgmr.msra.gmra.mxu1 %v16647_v21  ;;  %v14134_v33 = vcombine.high %v8560_v46, %v8564_v51  ;;  %v14133_v53 = vcombine.low %v8560_v46, %v8564_v51  ;;  %v8648_v40 = vld [vmem:[#allocation9 + $0xf90] sm:$0xff] }
 0xb70   : > { %v12239_v59 = vadd.f32 %v12238_v10, %v12196_v2  ;;  %12538 = vmatmul.mubr.bf16.vlgmr.msra.gmra.mxu0 %v16649_v41  ;;  %12549 = vmatpush1.bf16.msra.mxu1 %v14037_v34  ;;  %v14005_v34 = vcombine.low %v8432_v60, %v8436_v23  ;;  %v8544_v2 = vld [vmem:[#allocation9 + $0xc50] sm:$0xff] }
 0xb71   : > { %12580 = vmatprep.mubr.bf16.mxu1 %v16655_v55  ;;  %12592 = vmatpush1.bf16.msra.mxu0 %v14165_v5  ;;  %v12240_v56 = vpop.f32.mrf.mxu1  ;;  %v8416_v5 = vld [vmem:[#allocation9 + $0x850] sm:$0xff]  ;;  %v14118_v9 = vcombine.high %v8544_v2, %v8548_v12 }
 0xb72   : > { %12892 = vst [vmem:[%s16708_s22] sm:$0xff] %v12239_v59  ;;  %12623 = vmatprep.mubr.bf16.mxu0 %v16657_v58  ;;  %v12241_v57 = vadd.f32 %v12240_v56, %v12198_v22  ;;  %12550 = vmatprep.subr.bf16.mxu1 %v14030_v18  ;;  %v13997_v18 = vcombine.low %v8424_v35, %v8428_v36  ;;  %v8408_v10 = vld [vmem:[#allocation9 + $0x810] sm:$0xff] }
 0xb73   : > { %v12242_v39 = vpop.f32.mrf.mxu1  ;;  %12593 = vmatprep.subr.bf16.mxu0 %v14158_v3  ;;  %v13990_v8 = vcombine.high %v8416_v5, %v8420_v6  ;;  %v8536_v3 = vld [vmem:[#allocation9 + $0xc10] sm:$0xff]  ;;  %v13989_v20 = vcombine.low %v8416_v5, %v8420_v6  ;;  %v14117_v22 = vcombine.low %v8544_v2, %v8548_v12 }
 0xb74   : > { %12893 = vst [vmem:[%s16708_s22 + $0x8] sm:$0xff] %v12241_v57  ;;  %v12243_v45 = vadd.f32 %v12242_v39, %v12200_v17  ;;  %12551 = vmatpush1.bf16.msra.mxu1 %v14029_v63  ;;  %v8412_v63 = vld [vmem:[#allocation9 + $0x830] sm:$0xff]  ;;  %v14110_v59 = vcombine.high %v8536_v3, %v8540_v15 }
 0xb75   : > { %12594 = vmatpush1.bf16.msra.mxu0 %v14157_v11  ;;  %v12244_v49 = vpop.f32.mrf.mxu1  ;;  %12552 = vmatprep.subr.bf16.mxu1 %v14022_v13  ;;  %v13982_v24 = vcombine.high %v8408_v10, %v8412_v63  ;;  %v8528_v56 = vld [vmem:[#allocation9 + $0xbd0] sm:$0xff]  ;;  %v13981_v57 = vcombine.low %v8408_v10, %v8412_v63 }
 0xb76   : > { %12900 = vst [vmem:[%s16708_s22 + $0x40] sm:$0x7f] %v12243_v45  ;;  %v12245_v25 = vadd.f32 %v12244_v49, %v12202_v32  ;;  %12595 = vmatprep.subr.bf16.mxu0 %v14150_v14  ;;  %v8532_v11 = vld [vmem:[#allocation9 + $0xbf0] sm:$0xff]  ;;  %v14109_v14 = vcombine.low %v8536_v3, %v8540_v15 }
 0xb77   : > { %v8656_v13 = vld [vmem:[#allocation9 + $0xfd0] sm:$0xff]  ;;  %v14102_v16 = vcombine.high %v8528_v56, %v8532_v11  ;;  %v14101_v32 = vcombine.low %v8528_v56, %v8532_v11 }
 0xb78   : > { %12901 = vst [vmem:[%s16708_s22 + $0x48] sm:$0x7f] %v12245_v25  ;;  %12553 = vmatpush1.bf16.msra.mxu1 %v14021_v48  ;;  %v8660_v17 = vld [vmem:[#allocation9 + $0xff0] sm:$0xff] }
 0xb79   : > { %12596 = vmatpush1.bf16.msra.mxu0 %v14149_v52  ;;  %12554 = vmatprep.subr.bf16.mxu1 %v14014_v28  ;;  %v14230_v19 = vcombine.high %v8656_v13, %v8660_v17  ;;  %v8524_v39 = vld [vmem:[#allocation9 + $0xbb0] sm:$0xff]  ;;  %v14229_v45 = vcombine.low %v8656_v13, %v8660_v17 }
 0xb7a   : > { %12597 = vmatprep.subr.bf16.mxu0 %v14142_v38  ;;  %v8652_v43 = vld [vmem:[#allocation9 + $0xfb0] sm:$0xff]  ;;  %v14094_v48 = vcombine.high %v8520_v27, %v8524_v39  ;;  %v14093_v60 = vcombine.low %v8520_v27, %v8524_v39 }
 0xb7b   : > { %v14222_v49 = vcombine.high %v8648_v40, %v8652_v43  ;;  %v8512_v52 = vld [vmem:[#allocation9 + $0xb50] sm:$0xff]  ;;  %v14221_v23 = vcombine.low %v8648_v40, %v8652_v43 }
 0xb7c   : > { %12555 = vmatpush1.bf16.msra.mxu1 %v14013_v42  ;;  %v8516_v28 = vld [vmem:[#allocation9 + $0xb70] sm:$0xff] }
 0xb7d   : > { %12598 = vmatpush1.bf16.msra.mxu0 %v14141_v54  ;;  %12556 = vmatprep.subr.bf16.mxu1 %v14006_v31  ;;  %v8640_v25 = vld [vmem:[#allocation9 + $0xf50] sm:$0xff]  ;;  %v14086_v46 = vcombine.high %v8512_v52, %v8516_v28  ;;  %v14085_v35 = vcombine.low %v8512_v52, %v8516_v28 }
 0xb7e   : > { %12599 = vmatprep.subr.bf16.mxu0 %v14134_v33  ;;  %v8644_v38 = vld [vmem:[#allocation9 + $0xf70] sm:$0xff] }
 0xb7f   : > { %v14214_v51 = vcombine.high %v8640_v25, %v8644_v38  ;;  %v8504_v42 = vld [vmem:[#allocation9 + $0xb10] sm:$0xff]  ;;  %v14213_v36 = vcombine.low %v8640_v25, %v8644_v38 }
 0xb80   : > { %12557 = vmatpush1.bf16.msra.mxu1 %v14005_v34  ;;  %v8508_v54 = vld [vmem:[#allocation9 + $0xb30] sm:$0xff] }
 0xb81   : > { %12600 = vmatpush1.bf16.msra.mxu0 %v14133_v53  ;;  %12558 = vmatprep.subr.bf16.mxu1 %v13998_v0  ;;  %v8632_v31 = vld [vmem:[#allocation9 + $0xf10] sm:$0xff]  ;;  %v14078_v37 = vcombine.high %v8504_v42, %v8508_v54  ;;  %v14077_v5 = vcombine.low %v8504_v42, %v8508_v54  ;;  %v8205_v42 = vld [vmem:[#allocation9 + $0x1b8] sm:$0xff] }
 0xb82   : > { %12601 = vmatprep.subr.bf16.mxu0 %v14126_v4  ;;  %v8636_v33 = vld [vmem:[#allocation9 + $0xf30] sm:$0xff] }
 0xb83   : > { %v14206_v44 = vcombine.high %v8632_v31, %v8636_v33  ;;  %v8496_v34 = vld [vmem:[#allocation9 + $0xad0] sm:$0xff]  ;;  %v14205_v6 = vcombine.low %v8632_v31, %v8636_v33 }
 0xb84   : > { %12559 = vmatpush1.bf16.msra.mxu1 %v13997_v18  ;;  %v8500_v53 = vld [vmem:[#allocation9 + $0xaf0] sm:$0xff] }
 0xb85   : > { %12602 = vmatpush1.bf16.msra.mxu0 %v14125_v7  ;;  %12560 = vmatprep.subr.bf16.mxu1 %v13990_v8  ;;  %v8624_v0 = vld [vmem:[#allocation9 + $0xed0] sm:$0xff]  ;;  %v14070_v2 = vcombine.high %v8496_v34, %v8500_v53  ;;  %v14069_v10 = vcombine.low %v8496_v34, %v8500_v53 }
 0xb86   : > { %12603 = vmatprep.subr.bf16.mxu0 %v14118_v9  ;;  %v8628_v4 = vld [vmem:[#allocation9 + $0xef0] sm:$0xff] }
 0xb87   : > { %v14198_v12 = vcombine.high %v8624_v0, %v8628_v4  ;;  %v8488_v18 = vld [vmem:[#allocation9 + $0xa90] sm:$0xff]  ;;  %v14197_v63 = vcombine.low %v8624_v0, %v8628_v4 }
 0xb88   : > { %12561 = vmatpush1.bf16.msra.mxu1 %v13989_v20  ;;  %v8492_v7 = vld [vmem:[#allocation9 + $0xab0] sm:$0xff] }
 0xb89   : > { %12604 = vmatpush1.bf16.msra.mxu0 %v14117_v22  ;;  %12562 = vmatprep.subr.bf16.mxu1 %v13982_v24  ;;  %v8616_v8 = vld [vmem:[#allocation9 + $0xe90] sm:$0xff]  ;;  %v14062_v3 = vcombine.high %v8488_v18, %v8492_v7  ;;  %v14061_v56 = vcombine.low %v8488_v18, %v8492_v7 }
 0xb8a   : > { %12605 = vmatprep.subr.bf16.mxu0 %v14110_v59  ;;  %v8620_v9 = vld [vmem:[#allocation9 + $0xeb0] sm:$0xff] }
 0xb8b   : > { %v14190_v15 = vcombine.high %v8616_v8, %v8620_v9  ;;  %v8480_v20 = vld [vmem:[#allocation9 + $0xa50] sm:$0xff]  ;;  %v14189_v11 = vcombine.low %v8616_v8, %v8620_v9 }
 0xb8c   : > { %12563 = vmatpush1.bf16.msra.mxu1 %v13981_v57  ;;  %v8484_v22 = vld [vmem:[#allocation9 + $0xa70] sm:$0xff] }
 0xb8d   : > { %12606 = vmatpush1.bf16.msra.mxu0 %v14109_v14  ;;  %12564 = vmatprep.subr.bf16.mxu1 %v14102_v16  ;;  %v8608_v24 = vld [vmem:[#allocation9 + $0xe50] sm:$0xff]  ;;  %v14054_v13 = vcombine.high %v8480_v20, %v8484_v22  ;;  %v14053_v27 = vcombine.low %v8480_v20, %v8484_v22 }
 0xb8e   : > { %12607 = vmatprep.subr.bf16.mxu0 %v14230_v19  ;;  %v8612_v59 = vld [vmem:[#allocation9 + $0xe70] sm:$0xff] }
 0xb8f   : > { %v14182_v17 = vcombine.high %v8608_v24, %v8612_v59  ;;  %v8472_v57 = vld [vmem:[#allocation9 + $0xa10] sm:$0xff]  ;;  %v14181_v39 = vcombine.low %v8608_v24, %v8612_v59 }
 0xb90   : > { %12565 = vmatpush2.bf16.msra.mxu1 %v14101_v32  ;;  %v8476_v14 = vld [vmem:[#allocation9 + $0xa30] sm:$0xff] }
 0xb91   : > { %12608 = vmatpush2.bf16.msra.mxu0 %v14229_v45  ;;  %12566 = vmatprep.subr.bf16.mxu1 %v14094_v48  ;;  %v8600_v16 = vld [vmem:[#allocation9 + $0xe10] sm:$0xff]  ;;  %v14046_v40 = vcombine.high %v8472_v57, %v8476_v14  ;;  %v8209_v48 = vld [vmem:[#allocation9 + $0x1d8] sm:$0xff]  ;;  %v14045_v52 = vcombine.low %v8472_v57, %v8476_v14 }
 0xb92   : > { %12609 = vmatprep.subr.bf16.mxu0 %v14222_v49  ;;  %v8604_v19 = vld [vmem:[#allocation9 + $0xe30] sm:$0xff]  ;;  %v8213_v49 = vld [vmem:[#allocation9 + $0x1f8] sm:$0xff] }
 0xb93   : > { %v14174_v43 = vcombine.high %v8600_v16, %v8604_v19  ;;  %v8720_v32 = vld [vmem:[#allocation9 + $0x11d0] sm:$0xff]  ;;  %v14173_v28 = vcombine.low %v8600_v16, %v8604_v19  ;;  %v13784_v38 = vcombine.high %v8209_v48, %v8213_v49  ;;  %v13783_v54 = vcombine.low %v8209_v48, %v8213_v49 }
 0xb94   : > { %12567 = vmatpush2.bf16.msra.mxu1 %v14093_v60  ;;  %v8724_v45 = vld [vmem:[#allocation9 + $0x11f0] sm:$0xff] }
 0xb95   : > { %12610 = vmatpush2.bf16.msra.mxu0 %v14221_v23  ;;  %12568 = vmatprep.subr.bf16.mxu1 %v14086_v46  ;;  %v14294_v25 = vcombine.high %v8720_v32, %v8724_v45  ;;  %v8712_v60 = vld [vmem:[#allocation9 + $0x1190] sm:$0xff]  ;;  %v14293_v46 = vcombine.low %v8720_v32, %v8724_v45 }
 0xb96   : > { %12611 = vmatprep.subr.bf16.mxu0 %v14214_v51  ;;  %v8716_v23 = vld [vmem:[#allocation9 + $0x11b0] sm:$0xff]  ;;  %v8201_v51 = vld [vmem:[#allocation9 + $0x198] sm:$0xff] }
 0xb97   : > { %v14286_v31 = vcombine.high %v8712_v60, %v8716_v23  ;;  %v8704_v33 = vld [vmem:[#allocation9 + $0x1150] sm:$0xff]  ;;  %v14285_v34 = vcombine.low %v8712_v60, %v8716_v23  ;;  %v13775_v53 = vcombine.low %v8201_v51, %v8205_v42 }
 0xb98   : > { %12569 = vmatpush2.bf16.msra.mxu1 %v14085_v35  ;;  %v8708_v35 = vld [vmem:[#allocation9 + $0x1170] sm:$0xff] }
 0xb99   : > { %12612 = vmatpush2.bf16.msra.mxu0 %v14213_v36  ;;  %12570 = vmatprep.subr.bf16.mxu1 %v14078_v37  ;;  %v13776_v36 = vcombine.high %v8201_v51, %v8205_v42  ;;  %v8193_v37 = vld [vmem:[#allocation9 + $0x158] sm:$0xff]  ;;  %v14278_v0 = vcombine.high %v8704_v33, %v8708_v35  ;;  %v14277_v18 = vcombine.low %v8704_v33, %v8708_v35  ;;  %v8680_v59 = vld [vmem:[#allocation9 + $0x1090] sm:$0xff] }
 0xb9a   : > { %12613 = vmatprep.subr.bf16.mxu0 %v14206_v44  ;;  %v8197_v44 = vld [vmem:[#allocation9 + $0x178] sm:$0xff]  ;;  %v8672_v19 = vld [vmem:[#allocation9 + $0x1050] sm:$0xff] }
 0xb9b   : > { %v13768_v4 = vcombine.high %v8193_v37, %v8197_v44  ;;  %v13767_v7 = vcombine.low %v8193_v37, %v8197_v44  ;;  %v8664_v49 = vld [vmem:[#allocation9 + $0x1010] sm:$0xff] }
 0xb9c   : > { %12571 = vmatpush2.bf16.msra.mxu1 %v14077_v5  ;;  %v8696_v5 = vld [vmem:[#allocation9 + $0x1110] sm:$0xff] }
 0xb9d   : > { %12614 = vmatpush2.bf16.msra.mxu0 %v14205_v6  ;;  %12572 = vmatprep.subr.bf16.mxu1 %v14070_v2  ;;  %v8700_v6 = vld [vmem:[#allocation9 + $0x1130] sm:$0xff]  ;;  %v8185_v2 = vld [vmem:[#allocation9 + $0x118] sm:$0xff] }
 0xb9e   : > { %12615 = vmatprep.subr.bf16.mxu0 %v14198_v12  ;;  %v8189_v12 = vld [vmem:[#allocation9 + $0x138] sm:$0xff]  ;;  %v14270_v8 = vcombine.high %v8696_v5, %v8700_v6  ;;  %v8784_v51 = vld [vmem:[#allocation9 + $0x13d0] sm:$0xff] }
 0xb9f   : > { %v13760_v9 = vcombine.high %v8185_v2, %v8189_v12  ;;  %v13759_v20 = vcombine.low %v8185_v2, %v8189_v12  ;;  %v8788_v42 = vld [vmem:[#allocation9 + $0x13f0] sm:$0xff] }
 0xba0   : > { %12573 = vmatpush2.bf16.msra.mxu1 %v14069_v10  ;;  %v8688_v10 = vld [vmem:[#allocation9 + $0x10d0] sm:$0xff] }
 0xba1   : > { %12616 = vmatpush2.bf16.msra.mxu0 %v14197_v63  ;;  %12574 = vmatprep.subr.bf16.mxu1 %v14062_v3  ;;  %v8692_v63 = vld [vmem:[#allocation9 + $0x10f0] sm:$0xff]  ;;  %v8177_v3 = vld [vmem:[#allocation9 + $0xd8] sm:$0xff] }
 0xba2   : > { %12617 = vmatprep.subr.bf16.mxu0 %v14190_v15  ;;  %v8181_v15 = vld [vmem:[#allocation9 + $0xf8] sm:$0xff]  ;;  %v14262_v22 = vcombine.high %v8688_v10, %v8692_v63  ;;  %v8776_v44 = vld [vmem:[#allocation9 + $0x1390] sm:$0xff] }
 0xba3   : > { %v13752_v24 = vcombine.high %v8177_v3, %v8181_v15  ;;  %v13751_v57 = vcombine.low %v8177_v3, %v8181_v15  ;;  %v8768_v12 = vld [vmem:[#allocation9 + $0x1350] sm:$0xff] }
 0xba4   : > { %12575 = vmatpush2.bf16.msra.mxu1 %v14061_v56  ;;  %v8684_v56 = vld [vmem:[#allocation9 + $0x10b0] sm:$0xff] }
 0xba5   : > { %12618 = vmatpush2.bf16.msra.mxu0 %v14189_v11  ;;  %12576 = vmatprep.subr.bf16.mxu1 %v14054_v13  ;;  %v8169_v11 = vld [vmem:[#allocation9 + $0x98] sm:$0xff]  ;;  %v14254_v14 = vcombine.high %v8680_v59, %v8684_v56  ;;  %v8760_v15 = vld [vmem:[#allocation9 + $0x1310] sm:$0xff] }
 0xba6   : > { %12619 = vmatprep.subr.bf16.mxu0 %v14182_v17  ;;  %v8173_v13 = vld [vmem:[#allocation9 + $0xb8] sm:$0xff]  ;;  %v14261_v17 = vcombine.low %v8688_v10, %v8692_v63 }
 0xba7   : > { %v13744_v16 = vcombine.high %v8169_v11, %v8173_v13  ;;  %v13743_v32 = vcombine.low %v8169_v11, %v8173_v13 }
 0xba8   : > { %12577 = vmatpush2.bf16.msra.mxu1 %v14053_v27  ;;  %v8676_v27 = vld [vmem:[#allocation9 + $0x1070] sm:$0xff] }
 0xba9   : > { %12620 = vmatpush2.bf16.msra.mxu0 %v14181_v39  ;;  %12578 = vmatprep.subr.bf16.mxu1 %v14046_v40  ;;  %v8161_v39 = vld [vmem:[#allocation9 + $0x58] sm:$0xff]  ;;  %v14246_v45 = vcombine.high %v8672_v19, %v8676_v27 }
 0xbaa   : > { %12621 = vmatprep.subr.bf16.mxu0 %v14174_v43  ;;  %v8165_v40 = vld [vmem:[#allocation9 + $0x78] sm:$0xff]  ;;  %v14253_v43 = vcombine.low %v8680_v59, %v8684_v56 }
 0xbab   : > { %v13736_v48 = vcombine.high %v8161_v39, %v8165_v40  ;;  %v13735_v60 = vcombine.low %v8161_v39, %v8165_v40 }
 0xbac   : > { %12579 = vmatpush2.bf16.msra.mxu1 %v14045_v52  ;;  %v8668_v52 = vld [vmem:[#allocation9 + $0x1030] sm:$0xff] }
 0xbad   : > { %12622 = vmatpush2.bf16.msra.mxu0 %v14173_v28  ;;  %12634 = vmatprep.subr.bf16.mxu1 %v14294_v25  ;;  %v8153_v28 = vld [vmem:[#allocation9 + $0x18] sm:$0xff]  ;;  %v14238_v23 = vcombine.high %v8664_v49, %v8668_v52  ;;  %v14237_v33 = vcombine.low %v8664_v49, %v8668_v52 }
 0xbae   : > { %12677 = vmatprep.subr.bf16.mxu0 %v13784_v38  ;;  %v8157_v25 = vld [vmem:[#allocation9 + $0x38] sm:$0xff]  ;;  %v14245_v38 = vcombine.low %v8672_v19, %v8676_v27 }
 0xbaf   : > { %12581 = vmatmul.mubr.bf16.vlgmr.msra.gmra.mxu1 %v16669_v47  ;;  %v13727_v35 = vcombine.low %v8153_v28, %v8157_v25  ;;  %v8237_v49 = vld [vmem:[#allocation9 + $0x2b8] sm:$0xff] }
 0xbb0   : > { %12624 = vmatmul.mubr.bf16.vlgmr.msra.gmra.mxu0 %v16671_v50  ;;  %12635 = vmatpush1.bf16.msra.mxu1 %v14293_v46  ;;  %v13728_v46 = vcombine.high %v8153_v28, %v8157_v25 }
 0xbb1   : > { %12666 = vmatprep.mubr.bf16.mxu1 %v16673_v62  ;;  %12678 = vmatpush1.bf16.msra.mxu0 %v13783_v54  ;;  %v8273_v54 = vld [vmem:[#allocation9 + $0x3d8] sm:$0xff] }
 0xbb2   : > { %12709 = vmatprep.mubr.bf16.mxu0 %v16643_v29  ;;  %12636 = vmatprep.subr.bf16.mxu1 %v14286_v31  ;;  %v14269_v29 = vcombine.low %v8696_v5, %v8700_v6  ;;  %v8277_v31 = vld [vmem:[#allocation9 + $0x3f8] sm:$0xff] }
 0xbb3   : > { %12679 = vmatprep.subr.bf16.mxu0 %v13776_v36  ;;  %v14358_v36 = vcombine.high %v8784_v51, %v8788_v42  ;;  %v13848_v37 = vcombine.high %v8273_v54, %v8277_v31  ;;  %v13847_v5 = vcombine.low %v8273_v54, %v8277_v31  ;;  %v8802_v54 = vsub.s32 2, %v16695_v61 }
 0xbb4   : > { %12637 = vmatpush1.bf16.msra.mxu1 %v14285_v34  ;;  %v8780_v34 = vld [vmem:[#allocation9 + $0x13b0] sm:$0xff] }
 0xbb5   : > { %12680 = vmatpush1.bf16.msra.mxu0 %v13775_v53  ;;  %12638 = vmatprep.subr.bf16.mxu1 %v14278_v0  ;;  %v8265_v53 = vld [vmem:[#allocation9 + $0x398] sm:$0xff]  ;;  %v14350_v6 = vcombine.high %v8776_v44, %v8780_v34 }
 0xbb6   : > { %12681 = vmatprep.subr.bf16.mxu0 %v13768_v4  ;;  %v8269_v0 = vld [vmem:[#allocation9 + $0x3b8] sm:$0xff]  ;;  %v14357_v4 = vcombine.low %v8784_v51, %v8788_v42 }
 0xbb7   : > { %v13840_v2 = vcombine.high %v8265_v53, %v8269_v0  ;;  %v13839_v10 = vcombine.low %v8265_v53, %v8269_v0  ;;  %v8225_v51 = vld [vmem:[#allocation9 + $0x258] sm:$0xff]  ;;  %v8728_v0 = vld [vmem:[#allocation9 + $0x1210] sm:$0xff] }
 0xbb8   : > { %12639 = vmatpush1.bf16.msra.mxu1 %v14277_v18  ;;  %v8772_v18 = vld [vmem:[#allocation9 + $0x1370] sm:$0xff]  ;;  %v8229_v42 = vld [vmem:[#allocation9 + $0x278] sm:$0xff] }
 0xbb9   : > { %12682 = vmatpush1.bf16.msra.mxu0 %v13767_v7  ;;  %12640 = vmatprep.subr.bf16.mxu1 %v14270_v8  ;;  %v8257_v7 = vld [vmem:[#allocation9 + $0x358] sm:$0xff]  ;;  %v14342_v63 = vcombine.high %v8768_v12, %v8772_v18  ;;  %v14341_v59 = vcombine.low %v8768_v12, %v8772_v18  ;;  %v13800_v53 = vcombine.high %v8225_v51, %v8229_v42 }
 0xbba   : > { %12683 = vmatprep.subr.bf16.mxu0 %v13760_v9  ;;  %v8261_v8 = vld [vmem:[#allocation9 + $0x378] sm:$0xff]  ;;  %v14349_v9 = vcombine.low %v8776_v44, %v8780_v34  ;;  %v8806_v44 = vsub.s32 3, %v16695_v61 }
 0xbbb   : > { %v13832_v3 = vcombine.high %v8257_v7, %v8261_v8  ;;  %v13831_v56 = vcombine.low %v8257_v7, %v8261_v8  ;;  %v13799_v7 = vcombine.low %v8225_v51, %v8229_v42  ;;  %v8453_v51 = vld [vmem:[#allocation9 + $0x978] sm:$0xff] }
 0xbbc   : > { %12641 = vmatpush1.bf16.msra.mxu1 %v14269_v29  ;;  %v8764_v29 = vld [vmem:[#allocation9 + $0x1330] sm:$0xff] }
 0xbbd   : > { %12684 = vmatpush1.bf16.msra.mxu0 %v13759_v20  ;;  %12642 = vmatprep.subr.bf16.mxu1 %v14262_v22  ;;  %v8249_v20 = vld [vmem:[#allocation9 + $0x318] sm:$0xff]  ;;  %v14334_v11 = vcombine.high %v8760_v15, %v8764_v29  ;;  %v14333_v27 = vcombine.low %v8760_v15, %v8764_v29 }
 0xbbe   : > { %12685 = vmatprep.subr.bf16.mxu0 %v13752_v24  ;;  %v8253_v22 = vld [vmem:[#allocation9 + $0x338] sm:$0xff]  ;;  %v16722_v24 = vpop.f32.mrf.mxu0 }
 0xbbf   : > { %v13824_v13 = vcombine.high %v8249_v20, %v8253_v22  ;;  %v13823_v39 = vcombine.low %v8249_v20, %v8253_v22  ;;  %v8341_v15 = vld [vmem:[#allocation9 + $0x5f8] sm:$0xff] }
 0xbc0   : > { %12643 = vmatpush1.bf16.msra.mxu1 %v14261_v17  ;;  %v8752_v17 = vld [vmem:[#allocation9 + $0x12d0] sm:$0xff]  ;;  %v16724_v19 = vpop.f32.mrf.mxu0  ;;  %v8465_v29 = vld [vmem:[#allocation9 + $0x9d8] sm:$0xff] }
 0xbc1   : > { %12686 = vmatpush1.bf16.msra.mxu0 %v13751_v57  ;;  %12644 = vmatprep.subr.bf16.mxu1 %v14254_v14  ;;  %v8756_v57 = vld [vmem:[#allocation9 + $0x12f0] sm:$0xff]  ;;  %v8241_v14 = vld [vmem:[#allocation9 + $0x2d8] sm:$0xff] }
 0xbc2   : > { %12687 = vmatprep.subr.bf16.mxu0 %v13744_v16  ;;  %v8245_v16 = vld [vmem:[#allocation9 + $0x2f8] sm:$0xff]  ;;  %v14326_v40 = vcombine.high %v8752_v17, %v8756_v57  ;;  %v12285_v52 = vpop.f32.mrf.mxu0  ;;  %v14325_v28 = vcombine.low %v8752_v17, %v8756_v57 }
 0xbc3   : > { %v13815_v25 = vcombine.low %v8241_v14, %v8245_v16  ;;  %v8469_v20 = vld [vmem:[#allocation9 + $0x9f8] sm:$0xff] }
 0xbc4   : > { %12645 = vmatpush1.bf16.msra.mxu1 %v14253_v43  ;;  %v13816_v43 = vcombine.high %v8241_v14, %v8245_v16  ;;  %v12287_v31 = vpop.f32.mrf.mxu0  ;;  %v14040_v14 = vcombine.high %v8465_v29, %v8469_v20  ;;  %v8329_v16 = vld [vmem:[#allocation9 + $0x598] sm:$0xff] }
 0xbc5   : > { %12688 = vmatpush1.bf16.msra.mxu0 %v13743_v32  ;;  %12646 = vmatprep.subr.bf16.mxu1 %v14246_v45  ;;  %v8744_v32 = vld [vmem:[#allocation9 + $0x1290] sm:$0xff] }
 0xbc6   : > { %12689 = vmatprep.subr.bf16.mxu0 %v13736_v48  ;;  %v8748_v45 = vld [vmem:[#allocation9 + $0x12b0] sm:$0xff]  ;;  %v8233_v48 = vld [vmem:[#allocation9 + $0x298] sm:$0xff]  ;;  %v12367_v34 = vpop.f32.mrf.mxu0 }
 0xbc8   : > { %12647 = vmatpush1.bf16.msra.mxu1 %v14245_v38  ;;  %v14318_v38 = vcombine.high %v8744_v32, %v8748_v45 }
 0xbc9   : > { %12690 = vmatpush1.bf16.msra.mxu0 %v13735_v60  ;;  %12648 = vmatprep.subr.bf16.mxu1 %v14238_v23  ;;  %v13808_v60 = vcombine.high %v8233_v48, %v8237_v49  ;;  %v8736_v23 = vld [vmem:[#allocation9 + $0x1250] sm:$0xff] }
 0xbca   : > { %12691 = vmatprep.subr.bf16.mxu0 %v13728_v46  ;;  %v8740_v46 = vld [vmem:[#allocation9 + $0x1270] sm:$0xff] }
 0xbcb   : > { %v14309_v12 = vcombine.low %v8736_v23, %v8740_v46 }
 0xbcc   : > { %12649 = vmatpush1.bf16.msra.mxu1 %v14237_v33  ;;  %v14317_v33 = vcombine.low %v8744_v32, %v8748_v45  ;;  %v8461_v32 = vld [vmem:[#allocation9 + $0x9b8] sm:$0xff] }
 0xbcd   : > { %12692 = vmatpush1.bf16.msra.mxu0 %v13727_v35  ;;  %12650 = vmatprep.subr.bf16.mxu1 %v14358_v36  ;;  %v12324_v35 = vpop.f32.mrf.mxu1  ;;  %v13807_v36 = vcombine.low %v8233_v48, %v8237_v49  ;;  %v14039_v48 = vcombine.low %v8465_v29, %v8469_v20  ;;  %v8321_v49 = vld [vmem:[#allocation9 + $0x558] sm:$0xff] }
 0xbce   : > { %12693 = vmatprep.subr.bf16.mxu0 %v13848_v37  ;;  %v14310_v37 = vcombine.high %v8736_v23, %v8740_v46  ;;  %v8325_v23 = vld [vmem:[#allocation9 + $0x578] sm:$0xff] }
 0xbcf   : > { %v12326_v18 = vpop.f32.mrf.mxu1  ;;  %v8449_v46 = vld [vmem:[#allocation9 + $0x958] sm:$0xff] }
 0xbd0   : > { %12651 = vmatpush2.bf16.msra.mxu1 %v14357_v4  ;;  %v8732_v4 = vld [vmem:[#allocation9 + $0x1230] sm:$0xff] }
 0xbd1   : > { %12694 = vmatpush2.bf16.msra.mxu0 %v13847_v5  ;;  %12652 = vmatprep.subr.bf16.mxu1 %v14350_v6  ;;  %v8217_v5 = vld [vmem:[#allocation9 + $0x218] sm:$0xff]  ;;  %v14302_v8 = vcombine.high %v8728_v0, %v8732_v4 }
 0xbd2   : > { %12695 = vmatprep.subr.bf16.mxu0 %v13840_v2  ;;  %v8221_v6 = vld [vmem:[#allocation9 + $0x238] sm:$0xff]  ;;  %v8803_v2 = vrot.slane %v16698_v1, %v8802_v54 }
 0xbd4   : > { %12653 = vmatpush2.bf16.msra.mxu1 %v14349_v9  ;;  %v8807_v9 = vrot.slane %v16698_v1, %v8806_v44  ;;  %v12282_v22 = vadd.f32 %v16722_v24, %v8803_v2  ;;  %v8457_v24 = vld [vmem:[#allocation9 + $0x998] sm:$0xff] }
 0xbd5   : > { %12696 = vmatpush2.bf16.msra.mxu0 %v13839_v10  ;;  %12654 = vmatprep.subr.bf16.mxu1 %v14342_v63  ;;  %v12369_v10 = vpop.f32.mrf.mxu0  ;;  %v13792_v63 = vcombine.high %v8217_v5, %v8221_v6  ;;  %v14032_v54 = vcombine.high %v8457_v24, %v8461_v32  ;;  %v14031_v44 = vcombine.low %v8457_v24, %v8461_v32  ;;  %v8429_v24 = vld [vmem:[#allocation9 + $0x8b8] sm:$0xff] }
 0xbd6   : > { %12697 = vmatprep.subr.bf16.mxu0 %v13832_v3  ;;  %v8337_v3 = vld [vmem:[#allocation9 + $0x5d8] sm:$0xff]  ;;  %v12284_v17 = vadd.f32 %v16724_v19, %v8807_v9  ;;  %v12325_v57 = vadd.f32 %v12324_v35, %v12282_v22 }
 0xbd7   : > { %v12371_v1 = vpop.f32.mrf.mxu0 }
 0xbd8   : > { %12655 = vmatpush2.bf16.msra.mxu1 %v14341_v59  ;;  %v14301_v59 = vcombine.low %v8728_v0, %v8732_v4 }
 0xbd9   : > { %12698 = vmatpush2.bf16.msra.mxu0 %v13831_v56  ;;  %12656 = vmatprep.subr.bf16.mxu1 %v14334_v11  ;;  %v12328_v56 = vpop.f32.mrf.mxu1  ;;  %v13791_v11 = vcombine.low %v8217_v5, %v8221_v6 }
 0xbda   : > { %12699 = vmatprep.subr.bf16.mxu0 %v13824_v13  ;;  %v13912_v13 = vcombine.high %v8337_v3, %v8341_v15 }
 0xbdb   : > { %v12330_v45 = vpop.f32.mrf.mxu1 }
 0xbdc   : > { %12657 = vmatpush2.bf16.msra.mxu1 %v14333_v27  ;;  %v8333_v27 = vld [vmem:[#allocation9 + $0x5b8] sm:$0xff] }
 0xbdd   : > { %12700 = vmatpush2.bf16.msra.mxu0 %v13823_v39  ;;  %12658 = vmatprep.subr.bf16.mxu1 %v14326_v40  ;;  %v12286_v39 = vadd.f32 %v12285_v52, %v8803_v2  ;;  %v12327_v40 = vadd.f32 %v12326_v18, %v12284_v17  ;;  %v13903_v42 = vcombine.low %v8329_v16, %v8333_v27  ;;  %v8313_v2 = vld [vmem:[#allocation9 + $0x518] sm:$0xff] }
 0xbde   : > { %12701 = vmatprep.subr.bf16.mxu0 %v13816_v43  ;;  %v13911_v43 = vcombine.low %v8337_v3, %v8341_v15  ;;  %v14023_v3 = vcombine.low %v8449_v46, %v8453_v51  ;;  %v8437_v17 = vld [vmem:[#allocation9 + $0x8f8] sm:$0xff] }
 0xbdf   : > { %v12329_v19 = vadd.f32 %v12328_v56, %v12286_v39  ;;  %v8309_v56 = vld [vmem:[#allocation9 + $0x4f8] sm:$0xff] }
 0xbe0   : > { %12659 = vmatpush2.bf16.msra.mxu1 %v14325_v28  ;;  %v12288_v28 = vadd.f32 %v12287_v31, %v8807_v9  ;;  %v8297_v39 = vld [vmem:[#allocation9 + $0x498] sm:$0xff] }
 0xbe1   : > { %12702 = vmatpush2.bf16.msra.mxu0 %v13815_v25  ;;  %12660 = vmatprep.subr.bf16.mxu1 %v14318_v38  ;;  %v12368_v25 = vadd.f32 %v12367_v34, %v12325_v57  ;;  %v12373_v38 = vpop.f32.mrf.mxu0  ;;  %v13896_v34 = vcombine.high %v8321_v49, %v8325_v23  ;;  %v12372_v0 = vadd.f32 %v12371_v1, %v12329_v19  ;;  %v8417_v19 = vld [vmem:[#allocation9 + $0x858] sm:$0xff] }
 0xbe2   : > { %12703 = vmatprep.subr.bf16.mxu0 %v13808_v60  ;;  %v13904_v60 = vcombine.high %v8329_v16, %v8333_v27  ;;  %v12331_v35 = vadd.f32 %v12330_v45, %v12288_v28  ;;  %v8289_v28 = vld [vmem:[#allocation9 + $0x458] sm:$0xff] }
 0xbe4   : > { %12661 = vmatpush2.bf16.msra.mxu1 %v14317_v33  ;;  %v12370_v33 = vadd.f32 %v12369_v10, %v12327_v40  ;;  %v8301_v40 = vld [vmem:[#allocation9 + $0x4b8] sm:$0xff] }
 0xbe5   : > { %12704 = vmatpush2.bf16.msra.mxu0 %v13807_v36  ;;  %12662 = vmatprep.subr.bf16.mxu1 %v14310_v37 }
 0xbe6   : > { %12705 = vmatprep.subr.bf16.mxu0 %v13800_v53  ;;  %v14024_v53 = vcombine.high %v8449_v46, %v8453_v51 }
 0xbe8   : > { %12663 = vmatpush2.bf16.msra.mxu1 %v14309_v12  ;;  %v8317_v12 = vld [vmem:[#allocation9 + $0x538] sm:$0xff] }
 0xbe9   : > { %12706 = vmatpush2.bf16.msra.mxu0 %v13799_v7  ;;  %12664 = vmatprep.subr.bf16.mxu1 %v14302_v8  ;;  %v12374_v7 = vadd.f32 %v12373_v38, %v12331_v35  ;;  %v13888_v15 = vcombine.high %v8313_v2, %v8317_v12  ;;  %v13887_v1 = vcombine.low %v8313_v2, %v8317_v12  ;;  %v8421_v38 = vld [vmem:[#allocation9 + $0x878] sm:$0xff] }
 0xbea   : > { %12707 = vmatprep.subr.bf16.mxu0 %v13792_v63  ;;  %v13895_v63 = vcombine.low %v8321_v49, %v8325_v23  ;;  %v13992_v51 = vcombine.high %v8417_v19, %v8421_v38  ;;  %v8393_v12 = vld [vmem:[#allocation9 + $0x798] sm:$0xff] }
 0xbec   : > { %12665 = vmatpush2.bf16.msra.mxu1 %v14301_v59  ;;  %v8305_v59 = vld [vmem:[#allocation9 + $0x4d8] sm:$0xff] }
 0xbed   : > { %12708 = vmatpush2.bf16.msra.mxu0 %v13791_v11  ;;  %12720 = vmatprep.subr.bf16.mxu1 %v13912_v13  ;;  %v8433_v13 = vld [vmem:[#allocation9 + $0x8d8] sm:$0xff]  ;;  %v13880_v16 = vcombine.high %v8305_v59, %v8309_v56  ;;  %v13879_v32 = vcombine.low %v8305_v59, %v8309_v56 }
 0xbee   : > { %12763 = vmatprep.subr.bf16.mxu0 %v14040_v14  ;;  %v14008_v27 = vcombine.high %v8433_v13, %v8437_v17  ;;  %v14007_v45 = vcombine.low %v8433_v13, %v8437_v17  ;;  %v8377_v56 = vld [vmem:[#allocation9 + $0x718] sm:$0xff] }
 0xbef   : > { %v12410_v52 = vpop.f32.mrf.mxu1  ;;  %12667 = vmatmul.mubr.bf16.vlgmr.msra.gmra.mxu1 %v16679_v26  ;;  %v8505_v13 = vld [vmem:[#allocation9 + $0xb18] sm:$0xff] }
 0xbf0   : > { %v12411_v36 = vadd.f32 %v12410_v52, %v12368_v25  ;;  %v12453_v37 = vpop.f32.mrf.mxu0  ;;  %12710 = vmatmul.mubr.bf16.vlgmr.msra.gmra.mxu0 %v16647_v21  ;;  %12721 = vmatpush1.bf16.msra.mxu1 %v13911_v43  ;;  %v8441_v21 = vld [vmem:[#allocation9 + $0x918] sm:$0xff] }
 0xbf1   : > { %12752 = vmatprep.mubr.bf16.mxu1 %v16645_v30  ;;  %12764 = vmatpush1.bf16.msra.mxu0 %v14039_v48  ;;  %v12412_v31 = vpop.f32.mrf.mxu1  ;;  %v8445_v30 = vld [vmem:[#allocation9 + $0x938] sm:$0xff]  ;;  %v13872_v48 = vcombine.high %v8297_v39, %v8301_v40 }
 0xbf2   : > { %v12454_v4 = vadd.f32 %v12453_v37, %v12411_v36  ;;  %12795 = vmatprep.mubr.bf16.mxu0 %v16655_v55  ;;  %v12413_v5 = vadd.f32 %v12412_v31, %v12370_v33  ;;  %v12455_v6 = vpop.f32.mrf.mxu0  ;;  %12722 = vmatprep.subr.bf16.mxu1 %v13904_v60  ;;  %v14016_v22 = vcombine.high %v8441_v21, %v8445_v30  ;;  %v8425_v43 = vld [vmem:[#allocation9 + $0x898] sm:$0xff] }
 0xbf3   : > { %v12414_v18 = vpop.f32.mrf.mxu1  ;;  %12765 = vmatprep.subr.bf16.mxu0 %v14032_v54  ;;  %v14015_v14 = vcombine.low %v8441_v21, %v8445_v30  ;;  %v14000_v49 = vcombine.high %v8425_v43, %v8429_v24  ;;  %v8293_v25 = vld [vmem:[#allocation9 + $0x478] sm:$0xff]  ;;  %v13871_v60 = vcombine.low %v8297_v39, %v8301_v40  ;;  %v13999_v23 = vcombine.low %v8425_v43, %v8429_v24 }
 0xbf4   : > { %12894 = vst [vmem:[%s16708_s22 + $0x10] sm:$0xff] %v12454_v4  ;;  %v12456_v8 = vadd.f32 %v12455_v6, %v12413_v5  ;;  %v12415_v9 = vadd.f32 %v12414_v18, %v12372_v0  ;;  %v12457_v10 = vpop.f32.mrf.mxu0  ;;  %12723 = vmatpush1.bf16.msra.mxu1 %v13903_v42  ;;  %v13864_v46 = vcombine.high %v8289_v28, %v8293_v25  ;;  %v8281_v52 = vld [vmem:[#allocation9 + $0x418] sm:$0xff] }
 0xbf5   : > { %12766 = vmatpush1.bf16.msra.mxu0 %v14031_v44  ;;  %v12416_v55 = vpop.f32.mrf.mxu1  ;;  %12724 = vmatprep.subr.bf16.mxu1 %v13896_v34  ;;  %v8285_v42 = vld [vmem:[#allocation9 + $0x438] sm:$0xff]  ;;  %v13863_v35 = vcombine.low %v8289_v28, %v8293_v25  ;;  %v13991_v36 = vcombine.low %v8417_v19, %v8421_v38 }
 0xbf6   : > { %12895 = vst [vmem:[%s16708_s22 + $0x18] sm:$0xff] %v12456_v8  ;;  %v12458_v29 = vadd.f32 %v12457_v10, %v12415_v9  ;;  %v12417_v20 = vadd.f32 %v12416_v55, %v12374_v7  ;;  %12767 = vmatprep.subr.bf16.mxu0 %v14024_v53  ;;  %v12459_v11 = vpop.f32.mrf.mxu0  ;;  %v8409_v54 = vld [vmem:[#allocation9 + $0x818] sm:$0xff]  ;;  %v13856_v37 = vcombine.high %v8281_v52, %v8285_v42 }
 0xbf7   : > { %v8413_v33 = vld [vmem:[#allocation9 + $0x838] sm:$0xff]  ;;  %v13855_v4 = vcombine.low %v8281_v52, %v8285_v42 }
 0xbf8   : > { %12902 = vst [vmem:[%s16708_s22 + $0x50] sm:$0x7f] %v12458_v29  ;;  %v12460_v57 = vadd.f32 %v12459_v11, %v12417_v20  ;;  %12725 = vmatpush1.bf16.msra.mxu1 %v13895_v63  ;;  %v13984_v31 = vcombine.high %v8409_v54, %v8413_v33  ;;  %v8401_v44 = vld [vmem:[#allocation9 + $0x7d8] sm:$0xff]  ;;  %v13983_v5 = vcombine.low %v8409_v54, %v8413_v33 }
 0xbf9   : > { %12768 = vmatpush1.bf16.msra.mxu0 %v14023_v3  ;;  %12726 = vmatprep.subr.bf16.mxu1 %v13888_v15  ;;  %v8405_v34 = vld [vmem:[#allocation9 + $0x7f8] sm:$0xff] }
 0xbfa   : > { %12903 = vst [vmem:[%s16708_s22 + $0x58] sm:$0x7f] %v12460_v57  ;;  %12769 = vmatprep.subr.bf16.mxu0 %v14016_v22  ;;  %v8529_v53 = vld [vmem:[#allocation9 + $0xbd8] sm:$0xff]  ;;  %v13976_v6 = vcombine.high %v8401_v44, %v8405_v34  ;;  %v13975_v7 = vcombine.low %v8401_v44, %v8405_v34 }
 0xbfb   : > { %v8533_v0 = vld [vmem:[#allocation9 + $0xbf8] sm:$0xff] }
 0xbfc   : > { %12727 = vmatpush1.bf16.msra.mxu1 %v13887_v1  ;;  %v14104_v2 = vcombine.high %v8529_v53, %v8533_v0  ;;  %v8397_v18 = vld [vmem:[#allocation9 + $0x7b8] sm:$0xff]  ;;  %v14103_v8 = vcombine.low %v8529_v53, %v8533_v0 }
 0xbfd   : > { %12770 = vmatpush1.bf16.msra.mxu0 %v14015_v14  ;;  %12728 = vmatprep.subr.bf16.mxu1 %v13880_v16  ;;  %v8521_v21 = vld [vmem:[#allocation9 + $0xb98] sm:$0xff]  ;;  %v13968_v9 = vcombine.high %v8393_v12, %v8397_v18  ;;  %v13967_v29 = vcombine.low %v8393_v12, %v8397_v18 }
 0xbfe   : > { %12771 = vmatprep.subr.bf16.mxu0 %v14008_v27  ;;  %v8525_v30 = vld [vmem:[#allocation9 + $0xbb8] sm:$0xff] }
 0xbff   : > { %v14096_v10 = vcombine.high %v8521_v21, %v8525_v30  ;;  %v8385_v63 = vld [vmem:[#allocation9 + $0x758] sm:$0xff]  ;;  %v14095_v20 = vcombine.low %v8521_v21, %v8525_v30 }
 0xc00   : > { %12729 = vmatpush1.bf16.msra.mxu1 %v13879_v32  ;;  %v8389_v55 = vld [vmem:[#allocation9 + $0x778] sm:$0xff] }
 0xc01   : > { %12772 = vmatpush1.bf16.msra.mxu0 %v14007_v45  ;;  %12730 = vmatprep.subr.bf16.mxu1 %v13872_v48  ;;  %v8513_v3 = vld [vmem:[#allocation9 + $0xb58] sm:$0xff]  ;;  %v13960_v22 = vcombine.high %v8385_v63, %v8389_v55  ;;  %v13959_v57 = vcombine.low %v8385_v63, %v8389_v55 }
 0xc02   : > { %12773 = vmatprep.subr.bf16.mxu0 %v14000_v49  ;;  %v8517_v15 = vld [vmem:[#allocation9 + $0xb78] sm:$0xff] }
 0xc03   : > { %v14088_v59 = vcombine.high %v8513_v3, %v8517_v15  ;;  %v8381_v11 = vld [vmem:[#allocation9 + $0x738] sm:$0xff]  ;;  %v14087_v1 = vcombine.low %v8513_v3, %v8517_v15 }
 0xc04   : > { %12731 = vmatpush1.bf16.msra.mxu1 %v13871_v60  ;;  %v8509_v17 = vld [vmem:[#allocation9 + $0xb38] sm:$0xff]  ;;  %v13952_v14 = vcombine.high %v8377_v56, %v8381_v11  ;;  %v13951_v24 = vcombine.low %v8377_v56, %v8381_v11 }
 0xc05   : > { %12774 = vmatpush1.bf16.msra.mxu0 %v13999_v23  ;;  %12732 = vmatprep.subr.bf16.mxu1 %v13864_v46  ;;  %v14080_v16 = vcombine.high %v8505_v13, %v8509_v17  ;;  %v8369_v27 = vld [vmem:[#allocation9 + $0x6d8] sm:$0xff]  ;;  %v14079_v32 = vcombine.low %v8505_v13, %v8509_v17 }
 0xc06   : > { %12775 = vmatprep.subr.bf16.mxu0 %v13992_v51  ;;  %v8373_v39 = vld [vmem:[#allocation9 + $0x6f8] sm:$0xff] }
 0xc07   : > { %v8497_v40 = vld [vmem:[#allocation9 + $0xad8] sm:$0xff]  ;;  %v13944_v45 = vcombine.high %v8369_v27, %v8373_v39  ;;  %v13943_v38 = vcombine.low %v8369_v27, %v8373_v39 }
 0xc08   : > { %12733 = vmatpush1.bf16.msra.mxu1 %v13863_v35  ;;  %v8501_v43 = vld [vmem:[#allocation9 + $0xaf8] sm:$0xff] }
 0xc09   : > { %12776 = vmatpush1.bf16.msra.mxu0 %v13991_v36  ;;  %12734 = vmatprep.subr.bf16.mxu1 %v13856_v37  ;;  %v14072_v48 = vcombine.high %v8497_v40, %v8501_v43  ;;  %v8361_v49 = vld [vmem:[#allocation9 + $0x698] sm:$0xff]  ;;  %v14071_v60 = vcombine.low %v8497_v40, %v8501_v43 }
 0xc0a   : > { %12777 = vmatprep.subr.bf16.mxu0 %v13984_v31  ;;  %v8365_v28 = vld [vmem:[#allocation9 + $0x6b8] sm:$0xff] }
 0xc0b   : > { %v8489_v25 = vld [vmem:[#allocation9 + $0xa98] sm:$0xff]  ;;  %v13936_v23 = vcombine.high %v8361_v49, %v8365_v28  ;;  %v13935_v33 = vcombine.low %v8361_v49, %v8365_v28 }
 0xc0c   : > { %12735 = vmatpush1.bf16.msra.mxu1 %v13855_v4  ;;  %v8493_v19 = vld [vmem:[#allocation9 + $0xab8] sm:$0xff] }
 0xc0d   : > { %12778 = vmatpush1.bf16.msra.mxu0 %v13983_v5  ;;  %12736 = vmatprep.subr.bf16.mxu1 %v13976_v6  ;;  %v14064_v46 = vcombine.high %v8489_v25, %v8493_v19  ;;  %v8353_v51 = vld [vmem:[#allocation9 + $0x658] sm:$0xff]  ;;  %v14063_v35 = vcombine.low %v8489_v25, %v8493_v19 }
 0xc0e   : > { %12779 = vmatprep.subr.bf16.mxu0 %v14104_v2  ;;  %v8357_v52 = vld [vmem:[#allocation9 + $0x678] sm:$0xff] }
 0xc0f   : > { %v8481_v42 = vld [vmem:[#allocation9 + $0xa58] sm:$0xff]  ;;  %v13928_v36 = vcombine.high %v8353_v51, %v8357_v52  ;;  %v13927_v0 = vcombine.low %v8353_v51, %v8357_v52 }
 0xc10   : > { %12737 = vmatpush2.bf16.msra.mxu1 %v13975_v7  ;;  %v8485_v54 = vld [vmem:[#allocation9 + $0xa78] sm:$0xff] }
 0xc11   : > { %12780 = vmatpush2.bf16.msra.mxu0 %v14103_v8  ;;  %12738 = vmatprep.subr.bf16.mxu1 %v13968_v9  ;;  %v14056_v37 = vcombine.high %v8481_v42, %v8485_v54  ;;  %v8345_v31 = vld [vmem:[#allocation9 + $0x618] sm:$0xff]  ;;  %v14055_v4 = vcombine.low %v8481_v42, %v8485_v54 }
 0xc12   : > { %12781 = vmatprep.subr.bf16.mxu0 %v14096_v10  ;;  %v8349_v44 = vld [vmem:[#allocation9 + $0x638] sm:$0xff] }
 0xc13   : > { %v8473_v34 = vld [vmem:[#allocation9 + $0xa18] sm:$0xff]  ;;  %v13920_v5 = vcombine.high %v8345_v31, %v8349_v44  ;;  %v13919_v30 = vcombine.low %v8345_v31, %v8349_v44 }
 0xc14   : > { %12739 = vmatpush2.bf16.msra.mxu1 %v13967_v29  ;;  %v8477_v53 = vld [vmem:[#allocation9 + $0xa38] sm:$0xff] }
 0xc15   : > { %12782 = vmatpush2.bf16.msra.mxu0 %v14095_v20  ;;  %12740 = vmatprep.subr.bf16.mxu1 %v13960_v22  ;;  %v14048_v6 = vcombine.high %v8473_v34, %v8477_v53  ;;  %v8593_v2 = vld [vmem:[#allocation9 + $0xdd8] sm:$0xff]  ;;  %v14047_v7 = vcombine.low %v8473_v34, %v8477_v53 }
 0xc16   : > { %12783 = vmatprep.subr.bf16.mxu0 %v14088_v59  ;;  %v8597_v12 = vld [vmem:[#allocation9 + $0xdf8] sm:$0xff] }
 0xc17   : > { %v8721_v18 = vld [vmem:[#allocation9 + $0x11d8] sm:$0xff]  ;;  %v14168_v8 = vcombine.high %v8593_v2, %v8597_v12  ;;  %v14167_v55 = vcombine.low %v8593_v2, %v8597_v12 }
 0xc18   : > { %12741 = vmatpush2.bf16.msra.mxu1 %v13959_v57  ;;  %v8725_v21 = vld [vmem:[#allocation9 + $0x11f8] sm:$0xff] }
 0xc19   : > { %12784 = vmatpush2.bf16.msra.mxu0 %v14087_v1  ;;  %12742 = vmatprep.subr.bf16.mxu1 %v13952_v14  ;;  %v14296_v9 = vcombine.high %v8721_v18, %v8725_v21  ;;  %v8585_v10 = vld [vmem:[#allocation9 + $0xd98] sm:$0xff]  ;;  %v14295_v29 = vcombine.low %v8721_v18, %v8725_v21 }
 0xc1a   : > { %12785 = vmatprep.subr.bf16.mxu0 %v14080_v16  ;;  %v8589_v63 = vld [vmem:[#allocation9 + $0xdb8] sm:$0xff] }
 0xc1b   : > { %v8713_v3 = vld [vmem:[#allocation9 + $0x1198] sm:$0xff]  ;;  %v14160_v20 = vcombine.high %v8585_v10, %v8589_v63  ;;  %v14159_v17 = vcombine.low %v8585_v10, %v8589_v63 }
 0xc1c   : > { %12743 = vmatpush2.bf16.msra.mxu1 %v13951_v24  ;;  %v8717_v15 = vld [vmem:[#allocation9 + $0x11b8] sm:$0xff] }
 0xc1d   : > { %12786 = vmatpush2.bf16.msra.mxu0 %v14079_v32  ;;  %12744 = vmatprep.subr.bf16.mxu1 %v13944_v45  ;;  %v8577_v22 = vld [vmem:[#allocation9 + $0xd58] sm:$0xff]  ;;  %v14288_v56 = vcombine.high %v8713_v3, %v8717_v15  ;;  %v14287_v57 = vcombine.low %v8713_v3, %v8717_v15 }
 0xc1e   : > { %12787 = vmatprep.subr.bf16.mxu0 %v14072_v48  ;;  %v8581_v59 = vld [vmem:[#allocation9 + $0xd78] sm:$0xff] }
 0xc1f   : > { %v8705_v11 = vld [vmem:[#allocation9 + $0x1158] sm:$0xff]  ;;  %v14152_v1 = vcombine.high %v8577_v22, %v8581_v59  ;;  %v14151_v40 = vcombine.low %v8577_v22, %v8581_v59 }
 0xc20   : > { %12745 = vmatpush2.bf16.msra.mxu1 %v13943_v38  ;;  %v8709_v13 = vld [vmem:[#allocation9 + $0x1178] sm:$0xff] }
 0xc21   : > { %12788 = vmatpush2.bf16.msra.mxu0 %v14071_v60  ;;  %12746 = vmatprep.subr.bf16.mxu1 %v13936_v23  ;;  %v14280_v14 = vcombine.high %v8705_v11, %v8709_v13  ;;  %v8569_v16 = vld [vmem:[#allocation9 + $0xd18] sm:$0xff] }
 0xc22   : > { %12789 = vmatprep.subr.bf16.mxu0 %v14064_v46  ;;  %v8573_v27 = vld [vmem:[#allocation9 + $0xd38] sm:$0xff] }
 0xc23   : > { %v8701_v39 = vld [vmem:[#allocation9 + $0x1138] sm:$0xff]  ;;  %v14144_v43 = vcombine.high %v8569_v16, %v8573_v27 }
 0xc24   : > { %12747 = vmatpush2.bf16.msra.mxu1 %v13935_v33  ;;  %v8561_v24 = vld [vmem:[#allocation9 + $0xcd8] sm:$0xff] }
 0xc25   : > { %12790 = vmatpush2.bf16.msra.mxu0 %v14063_v35  ;;  %12748 = vmatprep.subr.bf16.mxu1 %v13928_v36  ;;  %v8565_v32 = vld [vmem:[#allocation9 + $0xcf8] sm:$0xff] }
 0xc26   : > { %12791 = vmatprep.subr.bf16.mxu0 %v14056_v37  ;;  %v8689_v45 = vld [vmem:[#allocation9 + $0x10d8] sm:$0xff]  ;;  %v14136_v28 = vcombine.high %v8561_v24, %v8565_v32  ;;  %v14135_v46 = vcombine.low %v8561_v24, %v8565_v32 }
 0xc27   : > { %v8693_v48 = vld [vmem:[#allocation9 + $0x10f8] sm:$0xff] }
 0xc28   : > { %12749 = vmatpush2.bf16.msra.mxu1 %v13927_v0  ;;  %v14264_v25 = vcombine.high %v8689_v45, %v8693_v48  ;;  %v8553_v19 = vld [vmem:[#allocation9 + $0xc98] sm:$0xff]  ;;  %v14263_v51 = vcombine.low %v8689_v45, %v8693_v48 }
 0xc29   : > { %12792 = vmatpush2.bf16.msra.mxu0 %v14055_v4  ;;  %12750 = vmatprep.subr.bf16.mxu1 %v13920_v5  ;;  %v8557_v38 = vld [vmem:[#allocation9 + $0xcb8] sm:$0xff] }
 0xc2a   : > { %12793 = vmatprep.subr.bf16.mxu0 %v14048_v6  ;;  %v8681_v60 = vld [vmem:[#allocation9 + $0x1098] sm:$0xff]  ;;  %v14128_v52 = vcombine.high %v8553_v19, %v8557_v38  ;;  %v14127_v37 = vcombine.low %v8553_v19, %v8557_v38 }
 0xc2b   : > { %v8685_v23 = vld [vmem:[#allocation9 + $0x10b8] sm:$0xff] }
 0xc2c   : > { %12751 = vmatpush2.bf16.msra.mxu1 %v13919_v30  ;;  %v14256_v42 = vcombine.high %v8681_v60, %v8685_v23  ;;  %v8545_v54 = vld [vmem:[#allocation9 + $0xc58] sm:$0xff]  ;;  %v14255_v31 = vcombine.low %v8681_v60, %v8685_v23 }
 0xc2d   : > { %12794 = vmatpush2.bf16.msra.mxu0 %v14047_v7  ;;  %12806 = vmatprep.subr.bf16.mxu1 %v14168_v8  ;;  %v8549_v33 = vld [vmem:[#allocation9 + $0xc78] sm:$0xff] }
 0xc2e   : > { %12849 = vmatprep.subr.bf16.mxu0 %v14296_v9  ;;  %v8673_v35 = vld [vmem:[#allocation9 + $0x1058] sm:$0xff]  ;;  %v14120_v44 = vcombine.high %v8545_v54, %v8549_v33  ;;  %v14119_v6 = vcombine.low %v8545_v54, %v8549_v33 }
 0xc2f   : > { %12753 = vmatmul.mubr.bf16.vlgmr.msra.gmra.mxu1 %v16649_v41  ;;  %v8697_v41 = vld [vmem:[#allocation9 + $0x1118] sm:$0xff] }
 0xc30   : > { %12796 = vmatmul.mubr.bf16.vlgmr.msra.gmra.mxu0 %v16669_v47  ;;  %12807 = vmatpush1.bf16.msra.mxu1 %v14167_v55  ;;  %v14279_v47 = vcombine.low %v8705_v11, %v8709_v13  ;;  %v14271_v49 = vcombine.low %v8697_v41, %v8701_v39  ;;  %v8677_v36 = vld [vmem:[#allocation9 + $0x1078] sm:$0xff] }
 0xc31   : > { %12838 = vmatprep.mubr.bf16.mxu1 %v16657_v58  ;;  %12850 = vmatpush1.bf16.msra.mxu0 %v14295_v29  ;;  %v14272_v58 = vcombine.high %v8697_v41, %v8701_v39  ;;  %v14248_v34 = vcombine.high %v8673_v35, %v8677_v36  ;;  %v8537_v53 = vld [vmem:[#allocation9 + $0xc18] sm:$0xff]  ;;  %v14247_v2 = vcombine.low %v8673_v35, %v8677_v36 }
 0xc32   : > { %12881 = vmatprep.mubr.bf16.mxu0 %v16673_v62  ;;  %12808 = vmatprep.subr.bf16.mxu1 %v14160_v20  ;;  %v14143_v62 = vcombine.low %v8569_v16, %v8573_v27  ;;  %v8541_v0 = vld [vmem:[#allocation9 + $0xc38] sm:$0xff] }
 0xc33   : > { %12851 = vmatprep.subr.bf16.mxu0 %v14288_v56  ;;  %v8665_v4 = vld [vmem:[#allocation9 + $0x1018] sm:$0xff]  ;;  %v14112_v12 = vcombine.high %v8537_v53, %v8541_v0  ;;  %v14111_v9 = vcombine.low %v8537_v53, %v8541_v0 }
 0xc34   : > { %12809 = vmatpush1.bf16.msra.mxu1 %v14159_v17  ;;  %v8669_v5 = vld [vmem:[#allocation9 + $0x1038] sm:$0xff] }
 0xc35   : > { %12852 = vmatpush1.bf16.msra.mxu0 %v14287_v57  ;;  %12810 = vmatprep.subr.bf16.mxu1 %v14152_v1  ;;  %v14240_v18 = vcombine.high %v8665_v4, %v8669_v5  ;;  %v8657_v21 = vld [vmem:[#allocation9 + $0xfd8] sm:$0xff]  ;;  %v14239_v10 = vcombine.low %v8665_v4, %v8669_v5 }
 0xc36   : > { %12853 = vmatprep.subr.bf16.mxu0 %v14280_v14  ;;  %v8661_v30 = vld [vmem:[#allocation9 + $0xff8] sm:$0xff] }
 0xc37   : > { %v8785_v7 = vld [vmem:[#allocation9 + $0x13d8] sm:$0xff]  ;;  %v14232_v63 = vcombine.high %v8657_v21, %v8661_v30  ;;  %v14231_v22 = vcombine.low %v8657_v21, %v8661_v30 }
 0xc38   : > { %12811 = vmatpush1.bf16.msra.mxu1 %v14151_v40  ;;  %v8789_v8 = vld [vmem:[#allocation9 + $0x13f8] sm:$0xff] }
 0xc39   : > { %12854 = vmatpush1.bf16.msra.mxu0 %v14279_v47  ;;  %12812 = vmatprep.subr.bf16.mxu1 %v14144_v43  ;;  %v14360_v55 = vcombine.high %v8785_v7, %v8789_v8  ;;  %v8649_v3 = vld [vmem:[#allocation9 + $0xf98] sm:$0xff]  ;;  %v14359_v59 = vcombine.low %v8785_v7, %v8789_v8 }
 0xc3a   : > { %12855 = vmatprep.subr.bf16.mxu0 %v14272_v58  ;;  %v8653_v15 = vld [vmem:[#allocation9 + $0xfb8] sm:$0xff] }
 0xc3b   : > { %v8777_v29 = vld [vmem:[#allocation9 + $0x1398] sm:$0xff]  ;;  %v14224_v56 = vcombine.high %v8649_v3, %v8653_v15  ;;  %v14223_v14 = vcombine.low %v8649_v3, %v8653_v15  ;;  %v8810_v15 = vsub.s32 4, %v16695_v61 }
 0xc3c   : > { %12813 = vmatpush1.bf16.msra.mxu1 %v14143_v62  ;;  %v8781_v20 = vld [vmem:[#allocation9 + $0x13b8] sm:$0xff] }
 0xc3d   : > { %12856 = vmatpush1.bf16.msra.mxu0 %v14271_v49  ;;  %12814 = vmatprep.subr.bf16.mxu1 %v14136_v28  ;;  %v14352_v11 = vcombine.high %v8777_v29, %v8781_v20  ;;  %v8641_v13 = vld [vmem:[#allocation9 + $0xf58] sm:$0xff]  ;;  %v14351_v16 = vcombine.low %v8777_v29, %v8781_v20  ;;  %v8814_v20 = vsub.s32 5, %v16695_v61 }
 0xc3e   : > { %12857 = vmatprep.subr.bf16.mxu0 %v14264_v25  ;;  %v8645_v17 = vld [vmem:[#allocation9 + $0xf78] sm:$0xff] }
 0xc3f   : > { %v8769_v57 = vld [vmem:[#allocation9 + $0x1358] sm:$0xff]  ;;  %v14216_v27 = vcombine.high %v8641_v13, %v8645_v17  ;;  %v14215_v58 = vcombine.low %v8641_v13, %v8645_v17 }
 0xc40   : > { %12815 = vmatpush1.bf16.msra.mxu1 %v14135_v46  ;;  %v8773_v1 = vld [vmem:[#allocation9 + $0x1378] sm:$0xff] }
 0xc41   : > { %12858 = vmatpush1.bf16.msra.mxu0 %v14263_v51  ;;  %12816 = vmatprep.subr.bf16.mxu1 %v14128_v52  ;;  %v14344_v41 = vcombine.high %v8769_v57, %v8773_v1  ;;  %v8633_v39 = vld [vmem:[#allocation9 + $0xf18] sm:$0xff]  ;;  %v14343_v24 = vcombine.low %v8769_v57, %v8773_v1 }
 0xc42   : > { %12859 = vmatprep.subr.bf16.mxu0 %v14256_v42  ;;  %v8637_v40 = vld [vmem:[#allocation9 + $0xf38] sm:$0xff] }
 0xc43   : > { %v8761_v47 = vld [vmem:[#allocation9 + $0x1318] sm:$0xff]  ;;  %v14208_v32 = vcombine.high %v8633_v39, %v8637_v40  ;;  %v14207_v25 = vcombine.low %v8633_v39, %v8637_v40 }
 0xc44   : > { %12817 = vmatpush1.bf16.msra.mxu1 %v14127_v37  ;;  %v8765_v43 = vld [vmem:[#allocation9 + $0x1338] sm:$0xff] }
 0xc45   : > { %12860 = vmatpush1.bf16.msra.mxu0 %v14255_v31  ;;  %12818 = vmatprep.subr.bf16.mxu1 %v14120_v44  ;;  %v14336_v45 = vcombine.high %v8761_v47, %v8765_v43  ;;  %v8625_v48 = vld [vmem:[#allocation9 + $0xed8] sm:$0xff]  ;;  %v14335_v19 = vcombine.low %v8761_v47, %v8765_v43 }
 0xc46   : > { %12861 = vmatprep.subr.bf16.mxu0 %v14248_v34  ;;  %v8629_v62 = vld [vmem:[#allocation9 + $0xef8] sm:$0xff] }
 0xc47   : > { %v8753_v49 = vld [vmem:[#allocation9 + $0x12d8] sm:$0xff]  ;;  %v14200_v38 = vcombine.high %v8625_v48, %v8629_v62  ;;  %v14199_v42 = vcombine.low %v8625_v48, %v8629_v62 }
 0xc48   : > { %12819 = vmatpush1.bf16.msra.mxu1 %v14119_v6  ;;  %v8757_v28 = vld [vmem:[#allocation9 + $0x12f8] sm:$0xff] }
 0xc49   : > { %12862 = vmatpush1.bf16.msra.mxu0 %v14247_v2  ;;  %12820 = vmatprep.subr.bf16.mxu1 %v14112_v12  ;;  %v14328_v60 = vcombine.high %v8753_v49, %v8757_v28  ;;  %v8617_v23 = vld [vmem:[#allocation9 + $0xe98] sm:$0xff]  ;;  %v14327_v54 = vcombine.low %v8753_v49, %v8757_v28 }
 0xc4a   : > { %12863 = vmatprep.subr.bf16.mxu0 %v14240_v18  ;;  %v8621_v46 = vld [vmem:[#allocation9 + $0xeb8] sm:$0xff] }
 0xc4b   : > { %v8745_v51 = vld [vmem:[#allocation9 + $0x1298] sm:$0xff]  ;;  %v14192_v33 = vcombine.high %v8617_v23, %v8621_v46  ;;  %v14191_v34 = vcombine.low %v8617_v23, %v8621_v46 }
 0xc4c   : > { %12821 = vmatpush1.bf16.msra.mxu1 %v14111_v9  ;;  %v8749_v52 = vld [vmem:[#allocation9 + $0x12b8] sm:$0xff] }
 0xc4d   : > { %12864 = vmatpush1.bf16.msra.mxu0 %v14239_v10  ;;  %12822 = vmatprep.subr.bf16.mxu1 %v14232_v63  ;;  %v14320_v35 = vcombine.high %v8745_v51, %v8749_v52  ;;  %v8609_v36 = vld [vmem:[#allocation9 + $0xe58] sm:$0xff]  ;;  %v14319_v53 = vcombine.low %v8745_v51, %v8749_v52  ;;  %v12496_v10 = vpop.f32.mrf.mxu1 }
 0xc4e   : > { %12865 = vmatprep.subr.bf16.mxu0 %v14360_v55  ;;  %v8613_v37 = vld [vmem:[#allocation9 + $0xe78] sm:$0xff]  ;;  %v12539_v55 = vpop.f32.mrf.mxu0 }
 0xc4f   : > { %v8737_v31 = vld [vmem:[#allocation9 + $0x1258] sm:$0xff]  ;;  %v14184_v0 = vcombine.high %v8609_v36, %v8613_v37  ;;  %v14183_v18 = vcombine.low %v8609_v36, %v8613_v37  ;;  %v12498_v63 = vpop.f32.mrf.mxu1 }
 0xc50   : > { %12823 = vmatpush2.bf16.msra.mxu1 %v14231_v22  ;;  %v8741_v44 = vld [vmem:[#allocation9 + $0x1278] sm:$0xff]  ;;  %v12541_v29 = vpop.f32.mrf.mxu0 }
 0xc51   : > { %12866 = vmatpush2.bf16.msra.mxu0 %v14359_v59  ;;  %12824 = vmatprep.subr.bf16.mxu1 %v14224_v56  ;;  %v14312_v4 = vcombine.high %v8737_v31, %v8741_v44  ;;  %v8601_v5 = vld [vmem:[#allocation9 + $0xe18] sm:$0xff]  ;;  %v14311_v21 = vcombine.low %v8737_v31, %v8741_v44  ;;  %v12500_v3 = vpop.f32.mrf.mxu1  ;;  %v16185_v59 = vld [vmem:[#allocation11] sm:$0xff]  ;;  %v8818_v44 = vsub.s32 6, %v16695_v61 }
 0xc52   : > { %12867 = vmatprep.subr.bf16.mxu0 %v14352_v11  ;;  %v8605_v6 = vld [vmem:[#allocation9 + $0xe38] sm:$0xff]  ;;  %v8811_v56 = vrot.slane %v16185_v59, %v8810_v15  ;;  %v12543_v11 = vpop.f32.mrf.mxu0  ;;  %v8815_v17 = vrot.slane %v16185_v59, %v8814_v20 }
 0xc53   : > { %v8729_v2 = vld [vmem:[#allocation9 + $0x1218] sm:$0xff]  ;;  %v14176_v30 = vcombine.high %v8601_v5, %v8605_v6  ;;  %v14175_v8 = vcombine.low %v8601_v5, %v8605_v6  ;;  %v12502_v22 = vpop.f32.mrf.mxu1  ;;  %v8819_v5 = vrot.slane %v16185_v59, %v8818_v44 }
 0xc54   : > { %12825 = vmatpush2.bf16.msra.mxu1 %v14223_v14  ;;  %v8733_v12 = vld [vmem:[#allocation9 + $0x1238] sm:$0xff]  ;;  %v12497_v57 = vadd.f32 %v12496_v10, %v8811_v56  ;;  %v12545_v1 = vpop.f32.mrf.mxu0  ;;  %v12499_v14 = vadd.f32 %v12498_v63, %v8815_v17  ;;  %v12503_v40 = vadd.f32 %v12502_v22, %v8815_v17 }
 0xc55   : > { %12868 = vmatpush2.bf16.msra.mxu0 %v14351_v16  ;;  %12826 = vmatprep.subr.bf16.mxu1 %v14216_v27  ;;  %v14304_v7 = vcombine.high %v8729_v2, %v8733_v12  ;;  %v14303_v9 = vcombine.low %v8729_v2, %v8733_v12  ;;  %v12501_v27 = vadd.f32 %v12500_v3, %v8811_v56 }
 0xc56   : > { %12869 = vmatprep.subr.bf16.mxu0 %v14344_v41  ;;  %v12540_v16 = vadd.f32 %v12539_v55, %v12497_v57  ;;  %v12542_v39 = vadd.f32 %v12541_v29, %v12499_v14 }
 0xc58   : > { %12827 = vmatpush2.bf16.msra.mxu1 %v14215_v58  ;;  %v12544_v58 = vadd.f32 %v12543_v11, %v12501_v27 }
 0xc59   : > { %12870 = vmatpush2.bf16.msra.mxu0 %v14343_v24  ;;  %12828 = vmatprep.subr.bf16.mxu1 %v14208_v32 }
 0xc5a   : > { %12871 = vmatprep.subr.bf16.mxu0 %v14336_v45  ;;  %v12546_v45 = vadd.f32 %v12545_v1, %v12503_v40 }
 0xc5c   : > { %12829 = vmatpush2.bf16.msra.mxu1 %v14207_v25 }
 0xc5d   : > { %12872 = vmatpush2.bf16.msra.mxu0 %v14335_v19  ;;  %12830 = vmatprep.subr.bf16.mxu1 %v14200_v38 }
 0xc5e   : > { %12873 = vmatprep.subr.bf16.mxu0 %v14328_v60 }
 0xc60   : > { %12831 = vmatpush2.bf16.msra.mxu1 %v14199_v42 }
 0xc61   : > { %12874 = vmatpush2.bf16.msra.mxu0 %v14327_v54  ;;  %12832 = vmatprep.subr.bf16.mxu1 %v14192_v33 }
 0xc62   : > { %12875 = vmatprep.subr.bf16.mxu0 %v14320_v35 }
 0xc64   : > { %12833 = vmatpush2.bf16.msra.mxu1 %v14191_v34 }
 0xc65   : > { %12876 = vmatpush2.bf16.msra.mxu0 %v14319_v53  ;;  %12834 = vmatprep.subr.bf16.mxu1 %v14184_v0  ;;  %v8822_v0 = vsub.s32 7, %v16695_v61 }
 0xc66   : > { %12877 = vmatprep.subr.bf16.mxu0 %v14312_v4 }
 0xc67   : > { %v8823_v2 = vrot.slane %v16185_v59, %v8822_v0 }
 0xc68   : > { %12835 = vmatpush2.bf16.msra.mxu1 %v14183_v18 }
 0xc69   : > { %12878 = vmatpush2.bf16.msra.mxu0 %v14311_v21  ;;  %12836 = vmatprep.subr.bf16.mxu1 %v14176_v30 }
 0xc6a   : > { %12879 = vmatprep.subr.bf16.mxu0 %v14304_v7 }
 0xc6c   : > { %12837 = vmatpush2.bf16.msra.mxu1 %v14175_v8 }
 0xc6d   : > { %12880 = vmatpush2.bf16.msra.mxu0 %v14303_v9 }
 0xc6f   : > { %12839 = vmatmul.mubr.bf16.vlgmr.msra.gmra.mxu1 %v16671_v50  ;;  %v12582_v13 = vpop.f32.mrf.mxu1 }
 0xc70   : > { %12882 = vmatmul.mubr.bf16.vlgmr.msra.gmra.mxu0 %v16679_v26  ;;  %v12625_v26 = vpop.f32.mrf.mxu0  ;;  %v12583_v47 = vadd.f32 %v12582_v13, %v12540_v16 }
 0xc71   : > { %v12584_v50 = vpop.f32.mrf.mxu1 }
 0xc72   : > { %v12627_v43 = vpop.f32.mrf.mxu0  ;;  %v12585_v24 = vadd.f32 %v12584_v50, %v12542_v39  ;;  %v12626_v48 = vadd.f32 %v12625_v26, %v12583_v47 }
 0xc73   : > { %v12586_v41 = vpop.f32.mrf.mxu1 }
 0xc74   : > { %v12587_v62 = vadd.f32 %v12586_v41, %v12544_v58  ;;  %v12629_v49 = vpop.f32.mrf.mxu0  ;;  %v12628_v25 = vadd.f32 %v12627_v43, %v12585_v24 }
 0xc75   : > { %v12588_v32 = vpop.f32.mrf.mxu1 }
 0xc76   : > { %v12589_v19 = vadd.f32 %v12588_v32, %v12546_v45  ;;  %v12630_v23 = vadd.f32 %v12629_v49, %v12587_v62  ;;  %v12631_v51 = vpop.f32.mrf.mxu0 }
 0xc78   : > { %v12632_v42 = vadd.f32 %v12631_v51, %v12589_v19 }
 0xcaf   : > { %v12668_v28 = vpop.f32.mrf.mxu1 }
 0xcb0   : > { %v12669_v38 = vadd.f32 %v12668_v28, %v12626_v48  ;;  %v12711_v36 = vpop.f32.mrf.mxu0 }
 0xcb1   : > { %v12670_v60 = vpop.f32.mrf.mxu1  ;;  %v12712_v18 = vadd.f32 %v12711_v36, %v8819_v5 }
 0xcb2   : > { %12896 = vst [vmem:[%s16708_s22 + $0x20] sm:$0xff] %v12669_v38  ;;  %v12671_v46 = vadd.f32 %v12670_v60, %v12628_v25  ;;  %v12713_v37 = vpop.f32.mrf.mxu0 }
 0xcb3   : > { %v12672_v52 = vpop.f32.mrf.mxu1  ;;  %v12714_v30 = vadd.f32 %v12713_v37, %v8823_v2 }
 0xcb4   : > { %12897 = vst [vmem:[%s16708_s22 + $0x28] sm:$0xff] %v12671_v46  ;;  %v12673_v54 = vadd.f32 %v12672_v52, %v12630_v23  ;;  %v12715_v31 = vpop.f32.mrf.mxu0 }
 0xcb5   : > { %v12674_v33 = vpop.f32.mrf.mxu1  ;;  %v12716_v9 = vadd.f32 %v12715_v31, %v8819_v5 }
 0xcb6   : > { %12904 = vst [vmem:[%s16708_s22 + $0x60] sm:$0x7f] %v12673_v54  ;;  %v12675_v35 = vadd.f32 %v12674_v33, %v12632_v42  ;;  %v12717_v34 = vpop.f32.mrf.mxu0 }
 0xcb7   : > { %v12718_v55 = vadd.f32 %v12717_v34, %v8823_v2 }
 0xcb8   : > { %12905 = vst [vmem:[%s16708_s22 + $0x68] sm:$0x7f] %v12675_v35 }
 0xcef   : > { %v12754_v53 = vpop.f32.mrf.mxu1 }
 0xcf0   : > { %v12797_v4 = vpop.f32.mrf.mxu0  ;;  %v12755_v7 = vadd.f32 %v12754_v53, %v12712_v18 }
 0xcf1   : > { %v12756_v6 = vpop.f32.mrf.mxu1 }
 0xcf2   : > { %v12799_v12 = vpop.f32.mrf.mxu0  ;;  %v12757_v10 = vadd.f32 %v12756_v6, %v12714_v30  ;;  %v12798_v3 = vadd.f32 %v12797_v4, %v12755_v7 }
 0xcf3   : > { %v12758_v21 = vpop.f32.mrf.mxu1 }
 0xcf4   : > { %v12801_v8 = vpop.f32.mrf.mxu0  ;;  %v12759_v15 = vadd.f32 %v12758_v21, %v12716_v9  ;;  %v12800_v61 = vadd.f32 %v12799_v12, %v12757_v10 }
 0xcf5   : > { %v12760_v63 = vpop.f32.mrf.mxu1 }
 0xcf6   : > { %v12803_v29 = vpop.f32.mrf.mxu0  ;;  %v12761_v22 = vadd.f32 %v12760_v63, %v12718_v55  ;;  %v12802_v13 = vadd.f32 %v12801_v8, %v12759_v15 }
 0xcf8   : > { %v12804_v14 = vadd.f32 %v12803_v29, %v12761_v22 }
 0xd2f   : > { %v12840_v20 = vpop.f32.mrf.mxu1 }
 0xd30   : > { %v12841_v56 = vadd.f32 %v12840_v20, %v12798_v3  ;;  %v12883_v59 = vpop.f32.mrf.mxu0 }
 0xd31   : > { %v12842_v11 = vpop.f32.mrf.mxu1 }
 0xd32   : > { %v12884_v17 = vadd.f32 %v12883_v59, %v12841_v56  ;;  %v12843_v57 = vadd.f32 %v12842_v11, %v12800_v61  ;;  %v12885_v1 = vpop.f32.mrf.mxu0 }
 0xd33   : > { %v12844_v50 = vpop.f32.mrf.mxu1 }
 0xd34   : > { %12898 = vst [vmem:[%s16708_s22 + $0x30] sm:$0xff] %v12884_v17  ;;  %v12886_v26 = vadd.f32 %v12885_v1, %v12843_v57  ;;  %v12845_v16 = vadd.f32 %v12844_v50, %v12802_v13  ;;  %v12887_v27 = vpop.f32.mrf.mxu0 }
 0xd35   : > { %v12846_v41 = vpop.f32.mrf.mxu1 }
 0xd36   : > { %12899 = vst [vmem:[%s16708_s22 + $0x38] sm:$0xff] %v12886_v26  ;;  %v12888_v39 = vadd.f32 %v12887_v27, %v12845_v16  ;;  %v12847_v40 = vadd.f32 %v12846_v41, %v12804_v14  ;;  %v12889_v47 = vpop.f32.mrf.mxu0 }
 0xd38   : > { %12906 = vst [vmem:[%s16708_s22 + $0x70] sm:$0x7f] %v12888_v39  ;;  %v12890_v43 = vadd.f32 %v12889_v47, %v12847_v40 }
 0xd3a   : > { %12907 = vst [vmem:[%s16708_s22 + $0x78] sm:$0x7f] %v12890_v43 }
 0xd3b PF: > { %s19_s21 = sadd.s32 1, %s16334_s21  }
 0xd3c   : > { %p16_p3 = scmp.ge.s32.totalorder %s19_s21, 4  }
 0xd3e   :  { %18 = sbr.rel (!%p16_p3) target bundleno = 3 (0x3), region = 110 }
 0xd43   :  { %12929 = vsyncpa [#allocation5], 1 }
 0xd44   :  { %12931 = vsyncpa [#allocation5 + $0x1], 1 }
 0xd45   :  { %12932 = vsyncpa [#allocation7], 1 }
 0xd46   :  { %12933 = vsyncpa [#allocation10], 1 }

</bundles_post_ra>
